<compile_context>
chip_gen: v5e
topology: v5e:2x2
jax: 0.10.0
libtpu: 0.0.40
codegen_flags: <defaults>
</compile_context>

<pallas_src>
import jax
import jax.numpy as jnp
from jax import lax
from jax.experimental import pallas as pl
from jax.experimental.pallas import tpu as pltpu


# ----------------------------- Pallas kernel ------------------------------ #
def etd_kernel(x_ref,                # (T*Bt, IF) time-major rows: row = t*Bt + b
               w1_ref, b1_ref,       # dense1: (IF, DF), (1, DF)
               wih1_ref, bl1_ref,    # lstm1 input path: (DF, 4H), (1, 4H)
               whh1_ref,             # lstm1 hidden path: (H, 4H)
               wih2_ref, whh2_ref,   # lstm2 input / hidden paths: (H, 4H) each
               bl2_ref,              # lstm2 bias: (1, 4H)
               w2_ref, b2_ref,       # dense2 (lane padded): (H, CP), (1, CP)
               out_ref,              # (Bt, CP)
               g1_ref):              # VMEM scratch (T*Bt, 4H): hoisted lstm1 gate inputs
    H = whh1_ref.shape[0]
    B = out_ref.shape[0]
    T = x_ref.shape[0] // B

    # ---- preamble: everything independent of the recurrent state ------------
    # dense1 + tanh for all T*B rows, then the lstm1 input projection (+bias),
    # as two big batched matmuls instead of 2*T tiny ones inside the loop.
    d = jnp.tanh(
        jnp.dot(x_ref[...], w1_ref[...], preferred_element_type=jnp.float32)
        + b1_ref[...])                                               # (T*B, DF)
    g1_ref[...] = (
        jnp.dot(d, wih1_ref[...], preferred_element_type=jnp.float32)
        + bl1_ref[...])                                              # (T*B, 4H)

    # Hoist the layer-2 bias broadcast out of the loop (no CSE of broadcasts).
    bl2_b = jnp.broadcast_to(bl2_ref[...], (B, 4 * H))

    def sigmoid1(x):
        # sigmoid(x) == 0.5*tanh(x/2) + 0.5 : one EUP push, no divide.
        return 0.5 * jnp.tanh(0.5 * x) + 0.5

    def gate_split(gates):
        # Gate columns were permuted offline to order i, f, o, g:
        # one sigmoid over a contiguous (B, 3H) slab + one tanh over (B, H).
        sfo = sigmoid1(gates[:, 0:3 * H])
        i = sfo[:, 0 * H:1 * H]
        f = sfo[:, 1 * H:2 * H]
        o = sfo[:, 2 * H:3 * H]
        g = jnp.tanh(gates[:, 3 * H:4 * H])
        return i, f, o, g

    # ---- recurrence: fully unrolled, state carried in vregs -----------------
    zeros = jnp.zeros((B, H), jnp.float32)
    h1, c1, h2, c2 = zeros, zeros, zeros, zeros
    for t in range(T):
        # Layer-2 hidden-path matmul depends only on the PREVIOUS h2, so it is
        # off the h1-dependent serial chain of this step.
        pre2 = (jnp.dot(h2, whh2_ref[...], preferred_element_type=jnp.float32)
                + bl2_b)

        # Layer-1 cell: only the hidden-state matmul is on the sequential path.
        gates1 = (g1_ref[t * B:(t + 1) * B, :]
                  + jnp.dot(h1, whh1_ref[...],
                            preferred_element_type=jnp.float32))
        i1, f1, o1, g1v = gate_split(gates1)
        c1 = f1 * c1 + i1 * g1v
        h1 = o1 * jnp.tanh(c1)

        # Layer-2 cell: only the h1-path matmul (K = H) remains serial.
        gates2 = pre2 + jnp.dot(h1, wih2_ref[...],
                                preferred_element_type=jnp.float32)
        i2, f2, o2, g2v = gate_split(gates2)
        c2 = f2 * c2 + i2 * g2v
        h2 = o2 * jnp.tanh(c2)

    # ---- dense2 on the last hidden state (lane-dense padded output) ---------
    out_ref[...] = (jnp.dot(h2, w2_ref[...], preferred_element_type=jnp.float32)
                    + b2_ref[...])


# ------------------------------- wrapper ---------------------------------- #
@jax.jit
def etd_forward(x, params):
    """x: (B, T, input_features) float32 -> (B, num_classes) float32."""
    (w1, b1, wih1, whh1, bl1, wih2, whh2, bl2, w2, b2) = params
    B, T, IF = x.shape
    H = whh1.shape[0]
    C = w2.shape[1]
    CP = max(128, ((C + 127) // 128) * 128)        # lane-dense output width

    assert B % 8 == 0, "batch must be a multiple of 8 (f32 sublane)"
    # Batch-parallel grid: 2 tiles when B >= 16 (one per v7x TensorCore), else
    # a single tile (degenerates to the gridless kernel). Raising B further is
    # the biggest system-level throughput lever (per-step matmul cost is flat
    # in M up to the MXU width).
    n_bt = 2 if (B >= 16 and B % 16 == 0) else 1
    Bt = B // n_bt

    # Permute LSTM gate columns from PyTorch order (i,f,g,o) to (i,f,o,g) so
    # the in-kernel nonlinearity is one contiguous sigmoid + one tanh.
    def permute_gates(a):
        i, f, g, o = jnp.split(a, 4, axis=-1)
        return jnp.concatenate([i, f, o, g], axis=-1)

    wih1p, whh1p, bl1p = map(permute_gates, (wih1, whh1, bl1))
    wih2p, whh2p, bl2p = map(permute_gates, (wih2, whh2, bl2))

    # Zero-pad dense2 to CP lanes for an unmasked lane-dense final store.
    w2p = jnp.zeros((H, CP), jnp.float32).at[:, :C].set(w2)
    b2p = jnp.zeros((1, CP), jnp.float32).at[:, :C].set(b2)

    # Time-major layout per batch tile: row = t*Bt + b_local. x is tiny, so
    # this host-side reorder is negligible.
    x_tm = (x.reshape(n_bt, Bt, T, IF)
              .transpose(0, 2, 1, 3)
              .reshape(n_bt, T * Bt, IF))

    def full(a):
        return pl.BlockSpec(a.shape, lambda i, nd=a.ndim: (0,) * nd)

    out = pl.pallas_call(
        etd_kernel,
        out_shape=jax.ShapeDtypeStruct((n_bt, Bt, CP), jnp.float32),
        grid=(n_bt,),
        in_specs=[
            pl.BlockSpec((None, T * Bt, IF), lambda i: (i, 0, 0)),
            full(w1), full(b1),
            full(wih1p), full(bl1p), full(whh1p),
            full(wih2p), full(whh2p), full(bl2p),
            full(w2p), full(b2p),
        ],
        out_specs=pl.BlockSpec((None, Bt, CP), lambda i: (i, 0, 0)),
        scratch_shapes=[pltpu.VMEM((T * Bt, 4 * H), jnp.float32)],
        compiler_params=pltpu.CompilerParams(
            dimension_semantics=("parallel",)),
    )(x_tm, w1, b1, wih1p, bl1p, whh1p, wih2p, whh2p, bl2p, w2p, b2p)
    return out.reshape(B, CP)[:, :C]


# --------------------------- pure-JAX reference ---------------------------- #
def etd_reference(x, params):
    (w1, b1, wih1, whh1, bl1, wih2, whh2, bl2, w2, b2) = params
    B, T, IF = x.shape
    H = whh1.shape[0]

    d = jnp.tanh(x @ w1 + b1)                                     # (B, T, DF)

    def run_lstm(seq, wih, whh, b):
        def step(carry, xt):
            h, c = carry
            gates = xt @ wih + h @ whh + b
            i = jax.nn.sigmoid(gates[:, 0 * H:1 * H])
            f = jax.nn.sigmoid(gates[:, 1 * H:2 * H])
            g = jnp.tanh(gates[:, 2 * H:3 * H])
            o = jax.nn.sigmoid(gates[:, 3 * H:4 * H])
            c = f * c + i * g
            h = o * jnp.tanh(c)
            return (h, c), h

        init = (jnp.zeros((B, H), jnp.float32), jnp.zeros((B, H), jnp.float32))
        _, hs = lax.scan(step, init, jnp.transpose(seq, (1, 0, 2)))
        return jnp.transpose(hs, (1, 0, 2))                        # (B, T, H)

    h1_seq = run_lstm(d, wih1, whh1, bl1)
    h2_seq = run_lstm(h1_seq, wih2, whh2, bl2)
    return h2_seq[:, -1, :] @ w2 + b2


# ------------------------------- main -------------------------------------- #
if __name__ == "__main__":
    # Small shapes consistent with the module (input_features, dense_features,
    # lstm_units, num_classes) scaled down; lstm_units kept at 128 for lane fit.
    B, T = 8, 8
    IF, DF, H, C = 4, 8, 128, 4

    key = jax.random.PRNGKey(0)
    ks = jax.random.split(key, 12)
    u = lambda k, shape: jax.random.uniform(k, shape, jnp.float32, -0.1, 0.1)

    params = (
        u(ks[0], (IF, DF)),        # dense1 weight (transposed)
        u(ks[1], (1, DF)),         # dense1 bias
        u(ks[2], (DF, 4 * H)),     # lstm1 W_ih^T   (PyTorch gate order i,f,g,o)
        u(ks[3], (H, 4 * H)),      # lstm1 W_hh^T
        u(ks[4], (1, 4 * H)),      # lstm1 b_ih + b_hh
        u(ks[5], (H, 4 * H)),      # lstm2 W_ih^T
        u(ks[6], (H, 4 * H)),      # lstm2 W_hh^T
        u(ks[7], (1, 4 * H)),      # lstm2 b_ih + b_hh
        u(ks[8], (H, C)),          # dense2 weight (transposed)
        u(ks[9], (1, C)),          # dense2 bias
    )

    x = jax.random.normal(ks[10], (B, T, IF), jnp.float32)

    out = jax.block_until_ready(etd_forward(x, params))
    ref = etd_reference(x, params)

    assert out.shape == (B, C)
    err = jnp.max(jnp.abs(out - ref))
    # Tolerance accounts for the tanh-based sigmoid reformulation (mathematically
    # exact, float-rounding differences only) propagated through the recurrence.
    assert jnp.allclose(out, ref, atol=2e-4, rtol=2e-4), f"max abs err {err}"

    print("KERNEL_OK")
</pallas_src>

<mosaic_0001>
module attributes {stable_mosaic.version = 11 : i64} {
  func.func @etd_kernel(%arg0: i32, %arg1: memref<1x64x4xf32, #tpu.memory_space<vmem>>, %arg2: memref<4x8xf32, #tpu.memory_space<vmem>>, %arg3: memref<1x8xf32, #tpu.memory_space<vmem>>, %arg4: memref<8x512xf32, #tpu.memory_space<vmem>>, %arg5: memref<1x512xf32, #tpu.memory_space<vmem>>, %arg6: memref<128x512xf32, #tpu.memory_space<vmem>>, %arg7: memref<128x512xf32, #tpu.memory_space<vmem>>, %arg8: memref<128x512xf32, #tpu.memory_space<vmem>>, %arg9: memref<1x512xf32, #tpu.memory_space<vmem>>, %arg10: memref<128x128xf32, #tpu.memory_space<vmem>>, %arg11: memref<1x128xf32, #tpu.memory_space<vmem>>, %arg12: memref<1x8x128xf32, #tpu.memory_space<vmem>>, %arg13: memref<64x512xf32, #tpu.memory_space<vmem>>) attributes {dimension_semantics = [#tpu.dimension_semantics<parallel>], iteration_bounds = array<i64: 1>, scalar_prefetch = 0 : i64, scratch_operands = 1 : i64, tpu.core_type = #tpu.core_type<tc>, window_params = [{transform_indices = @transform_0, window_bounds = array<i64: 1, 64, 4>}, {pipeline_mode = #tpu.pipeline_mode<synchronous>, transform_indices = @transform_1, window_bounds = array<i64: 4, 8>}, {pipeline_mode = #tpu.pipeline_mode<synchronous>, transform_indices = @transform_2, window_bounds = array<i64: 1, 8>}, {pipeline_mode = #tpu.pipeline_mode<synchronous>, transform_indices = @transform_3, window_bounds = array<i64: 8, 512>}, {pipeline_mode = #tpu.pipeline_mode<synchronous>, transform_indices = @transform_4, window_bounds = array<i64: 1, 512>}, {pipeline_mode = #tpu.pipeline_mode<synchronous>, transform_indices = @transform_5, window_bounds = array<i64: 128, 512>}, {pipeline_mode = #tpu.pipeline_mode<synchronous>, transform_indices = @transform_6, window_bounds = array<i64: 128, 512>}, {pipeline_mode = #tpu.pipeline_mode<synchronous>, transform_indices = @transform_7, window_bounds = array<i64: 128, 512>}, {pipeline_mode = #tpu.pipeline_mode<synchronous>, transform_indices = @transform_8, window_bounds = array<i64: 1, 512>}, {pipeline_mode = #tpu.pipeline_mode<synchronous>, transform_indices = @transform_9, window_bounds = array<i64: 128, 128>}, {pipeline_mode = #tpu.pipeline_mode<synchronous>, transform_indices = @transform_10, window_bounds = array<i64: 1, 128>}, {transform_indices = @transform_11, window_bounds = array<i64: 1, 8, 128>}]} {
    %c0 = arith.constant 0 : index
    %c0_0 = arith.constant 0 : index
    %c0_1 = arith.constant 0 : index
    %0 = vector.load %arg1[%c0, %c0_0, %c0_1] : memref<1x64x4xf32, #tpu.memory_space<vmem>>, vector<1x64x4xf32>
    %1 = vector.shape_cast %0 : vector<1x64x4xf32> to vector<64x4xf32>
    %c0_2 = arith.constant 0 : index
    %c0_3 = arith.constant 0 : index
    %2 = vector.load %arg2[%c0_2, %c0_3] : memref<4x8xf32, #tpu.memory_space<vmem>>, vector<4x8xf32>
    %cst = arith.constant dense<0.000000e+00> : vector<64x8xf32>
    %3 = tpu.matmul %1, %2, %cst {dimension_numbers = #tpu.dot_dimension_numbers<[1], [0], [0], [1], [0, 0, 1, 1], [], []>} : vector<64x4xf32>, vector<4x8xf32>, vector<64x8xf32> -> vector<64x8xf32>
    %c0_4 = arith.constant 0 : index
    %c0_5 = arith.constant 0 : index
    %4 = vector.load %arg3[%c0_4, %c0_5] : memref<1x8xf32, #tpu.memory_space<vmem>>, vector<1x8xf32>
    %5 = vector.broadcast %4 : vector<1x8xf32> to vector<64x8xf32>
    %6 = arith.addf %3, %5 : vector<64x8xf32>
    %7 = math.tanh %6 : vector<64x8xf32>
    %c0_6 = arith.constant 0 : index
    %c0_7 = arith.constant 0 : index
    %8 = vector.load %arg4[%c0_6, %c0_7] : memref<8x512xf32, #tpu.memory_space<vmem>>, vector<8x512xf32>
    %cst_8 = arith.constant dense<0.000000e+00> : vector<64x512xf32>
    %9 = tpu.matmul %7, %8, %cst_8 {dimension_numbers = #tpu.dot_dimension_numbers<[1], [0], [0], [1], [0, 0, 1, 1], [], []>} : vector<64x8xf32>, vector<8x512xf32>, vector<64x512xf32> -> vector<64x512xf32>
    %c0_9 = arith.constant 0 : index
    %c0_10 = arith.constant 0 : index
    %10 = vector.load %arg5[%c0_9, %c0_10] : memref<1x512xf32, #tpu.memory_space<vmem>>, vector<1x512xf32>
    %11 = vector.broadcast %10 : vector<1x512xf32> to vector<64x512xf32>
    %12 = arith.addf %9, %11 : vector<64x512xf32>
    %c0_11 = arith.constant 0 : index
    %c0_12 = arith.constant 0 : index
    %13 = vector.load %arg13[%c0_11, %c0_12] : memref<64x512xf32, #tpu.memory_space<vmem>>, vector<64x512xf32>
    tpu.vector_store %arg13[%c0_11, %c0_12], %12 {strides = array<i32>} : memref<64x512xf32, #tpu.memory_space<vmem>>, vector<64x512xf32>,
    %c0_13 = arith.constant 0 : index
    %c0_14 = arith.constant 0 : index
    %14 = vector.load %arg9[%c0_13, %c0_14] : memref<1x512xf32, #tpu.memory_space<vmem>>, vector<1x512xf32>
    %15 = vector.shape_cast %14 : vector<1x512xf32> to vector<1x512xf32>
    %16 = vector.broadcast %15 : vector<1x512xf32> to vector<8x512xf32>
    %cst_15 = arith.constant 0.000000e+00 : f32
    %17 = vector.broadcast %cst_15 : f32 to vector<8x128xf32>
    %c0_16 = arith.constant 0 : index
    %c0_17 = arith.constant 0 : index
    %18 = vector.load %arg8[%c0_16, %c0_17] : memref<128x512xf32, #tpu.memory_space<vmem>>, vector<128x512xf32>
    %cst_18 = arith.constant dense<0.000000e+00> : vector<8x512xf32>
    %19 = tpu.matmul %17, %18, %cst_18 {dimension_numbers = #tpu.dot_dimension_numbers<[1], [0], [0], [1], [0, 0, 1, 1], [], []>} : vector<8x128xf32>, vector<128x512xf32>, vector<8x512xf32> -> vector<8x512xf32>
    %20 = arith.addf %19, %16 : vector<8x512xf32>
    %c0_19 = arith.constant 0 : index
    %c0_20 = arith.constant 0 : index
    %21 = vector.load %arg13[%c0_19, %c0_20] : memref<64x512xf32, #tpu.memory_space<vmem>>, vector<8x512xf32>
    %c0_21 = arith.constant 0 : index
    %c0_22 = arith.constant 0 : index
    %22 = vector.load %arg6[%c0_21, %c0_22] : memref<128x512xf32, #tpu.memory_space<vmem>>, vector<128x512xf32>
    %cst_23 = arith.constant dense<0.000000e+00> : vector<8x512xf32>
    %23 = tpu.matmul %17, %22, %cst_23 {dimension_numbers = #tpu.dot_dimension_numbers<[1], [0], [0], [1], [0, 0, 1, 1], [], []>} : vector<8x128xf32>, vector<128x512xf32>, vector<8x512xf32> -> vector<8x512xf32>
    %24 = arith.addf %21, %23 : vector<8x512xf32>
    %25 = vector.extract_strided_slice %24 {offsets = [0, 0], sizes = [8, 384], strides = [1, 1]} : vector<8x512xf32> to vector<8x384xf32>
    %cst_24 = arith.constant 5.000000e-01 : f32
    %26 = vector.broadcast %cst_24 : f32 to vector<8x384xf32>
    %27 = arith.mulf %26, %25 : vector<8x384xf32>
    %28 = math.tanh %27 : vector<8x384xf32>
    %cst_25 = arith.constant 5.000000e-01 : f32
    %29 = vector.broadcast %cst_25 : f32 to vector<8x384xf32>
    %30 = arith.mulf %29, %28 : vector<8x384xf32>
    %cst_26 = arith.constant 5.000000e-01 : f32
    %31 = vector.broadcast %cst_26 : f32 to vector<8x384xf32>
    %32 = arith.addf %30, %31 : vector<8x384xf32>
    %33 = vector.extract_strided_slice %32 {offsets = [0, 0], sizes = [8, 128], strides = [1, 1]} : vector<8x384xf32> to vector<8x128xf32>
    %34 = vector.extract_strided_slice %32 {offsets = [0, 128], sizes = [8, 128], strides = [1, 1]} : vector<8x384xf32> to vector<8x128xf32>
    %35 = vector.extract_strided_slice %32 {offsets = [0, 256], sizes = [8, 128], strides = [1, 1]} : vector<8x384xf32> to vector<8x128xf32>
    %36 = vector.extract_strided_slice %24 {offsets = [0, 384], sizes = [8, 128], strides = [1, 1]} : vector<8x512xf32> to vector<8x128xf32>
    %37 = math.tanh %36 : vector<8x128xf32>
    %38 = arith.mulf %34, %17 : vector<8x128xf32>
    %39 = arith.mulf %33, %37 : vector<8x128xf32>
    %40 = arith.addf %38, %39 : vector<8x128xf32>
    %41 = math.tanh %40 : vector<8x128xf32>
    %42 = arith.mulf %35, %41 : vector<8x128xf32>
    %c0_27 = arith.constant 0 : index
    %c0_28 = arith.constant 0 : index
    %43 = vector.load %arg7[%c0_27, %c0_28] : memref<128x512xf32, #tpu.memory_space<vmem>>, vector<128x512xf32>
    %cst_29 = arith.constant dense<0.000000e+00> : vector<8x512xf32>
    %44 = tpu.matmul %42, %43, %cst_29 {dimension_numbers = #tpu.dot_dimension_numbers<[1], [0], [0], [1], [0, 0, 1, 1], [], []>} : vector<8x128xf32>, vector<128x512xf32>, vector<8x512xf32> -> vector<8x512xf32>
    %45 = arith.addf %20, %44 : vector<8x512xf32>
    %46 = vector.extract_strided_slice %45 {offsets = [0, 0], sizes = [8, 384], strides = [1, 1]} : vector<8x512xf32> to vector<8x384xf32>
    %cst_30 = arith.constant 5.000000e-01 : f32
    %47 = vector.broadcast %cst_30 : f32 to vector<8x384xf32>
    %48 = arith.mulf %47, %46 : vector<8x384xf32>
    %49 = math.tanh %48 : vector<8x384xf32>
    %cst_31 = arith.constant 5.000000e-01 : f32
    %50 = vector.broadcast %cst_31 : f32 to vector<8x384xf32>
    %51 = arith.mulf %50, %49 : vector<8x384xf32>
    %cst_32 = arith.constant 5.000000e-01 : f32
    %52 = vector.broadcast %cst_32 : f32 to vector<8x384xf32>
    %53 = arith.addf %51, %52 : vector<8x384xf32>
    %54 = vector.extract_strided_slice %53 {offsets = [0, 0], sizes = [8, 128], strides = [1, 1]} : vector<8x384xf32> to vector<8x128xf32>
    %55 = vector.extract_strided_slice %53 {offsets = [0, 128], sizes = [8, 128], strides = [1, 1]} : vector<8x384xf32> to vector<8x128xf32>
    %56 = vector.extract_strided_slice %53 {offsets = [0, 256], sizes = [8, 128], strides = [1, 1]} : vector<8x384xf32> to vector<8x128xf32>
    %57 = vector.extract_strided_slice %45 {offsets = [0, 384], sizes = [8, 128], strides = [1, 1]} : vector<8x512xf32> to vector<8x128xf32>
    %58 = math.tanh %57 : vector<8x128xf32>
    %59 = arith.mulf %55, %17 : vector<8x128xf32>
    %60 = arith.mulf %54, %58 : vector<8x128xf32>
    %61 = arith.addf %59, %60 : vector<8x128xf32>
    %62 = math.tanh %61 : vector<8x128xf32>
    %63 = arith.mulf %56, %62 : vector<8x128xf32>
    %c0_33 = arith.constant 0 : index
    %c0_34 = arith.constant 0 : index
    %64 = vector.load %arg8[%c0_33, %c0_34] : memref<128x512xf32, #tpu.memory_space<vmem>>, vector<128x512xf32>
    %cst_35 = arith.constant dense<0.000000e+00> : vector<8x512xf32>
    %65 = tpu.matmul %63, %64, %cst_35 {dimension_numbers = #tpu.dot_dimension_numbers<[1], [0], [0], [1], [0, 0, 1, 1], [], []>} : vector<8x128xf32>, vector<128x512xf32>, vector<8x512xf32> -> vector<8x512xf32>
    %66 = arith.addf %65, %16 : vector<8x512xf32>
    %c8 = arith.constant 8 : index
    %c0_36 = arith.constant 0 : index
    %67 = vector.load %arg13[%c8, %c0_36] : memref<64x512xf32, #tpu.memory_space<vmem>>, vector<8x512xf32>
    %c0_37 = arith.constant 0 : index
    %c0_38 = arith.constant 0 : index
    %68 = vector.load %arg6[%c0_37, %c0_38] : memref<128x512xf32, #tpu.memory_space<vmem>>, vector<128x512xf32>
    %cst_39 = arith.constant dense<0.000000e+00> : vector<8x512xf32>
    %69 = tpu.matmul %42, %68, %cst_39 {dimension_numbers = #tpu.dot_dimension_numbers<[1], [0], [0], [1], [0, 0, 1, 1], [], []>} : vector<8x128xf32>, vector<128x512xf32>, vector<8x512xf32> -> vector<8x512xf32>
    %70 = arith.addf %67, %69 : vector<8x512xf32>
    %71 = vector.extract_strided_slice %70 {offsets = [0, 0], sizes = [8, 384], strides = [1, 1]} : vector<8x512xf32> to vector<8x384xf32>
    %cst_40 = arith.constant 5.000000e-01 : f32
    %72 = vector.broadcast %cst_40 : f32 to vector<8x384xf32>
    %73 = arith.mulf %72, %71 : vector<8x384xf32>
    %74 = math.tanh %73 : vector<8x384xf32>
    %cst_41 = arith.constant 5.000000e-01 : f32
    %75 = vector.broadcast %cst_41 : f32 to vector<8x384xf32>
    %76 = arith.mulf %75, %74 : vector<8x384xf32>
    %cst_42 = arith.constant 5.000000e-01 : f32
    %77 = vector.broadcast %cst_42 : f32 to vector<8x384xf32>
    %78 = arith.addf %76, %77 : vector<8x384xf32>
    %79 = vector.extract_strided_slice %78 {offsets = [0, 0], sizes = [8, 128], strides = [1, 1]} : vector<8x384xf32> to vector<8x128xf32>
    %80 = vector.extract_strided_slice %78 {offsets = [0, 128], sizes = [8, 128], strides = [1, 1]} : vector<8x384xf32> to vector<8x128xf32>
    %81 = vector.extract_strided_slice %78 {offsets = [0, 256], sizes = [8, 128], strides = [1, 1]} : vector<8x384xf32> to vector<8x128xf32>
    %82 = vector.extract_strided_slice %70 {offsets = [0, 384], sizes = [8, 128], strides = [1, 1]} : vector<8x512xf32> to vector<8x128xf32>
    %83 = math.tanh %82 : vector<8x128xf32>
    %84 = arith.mulf %80, %40 : vector<8x128xf32>
    %85 = arith.mulf %79, %83 : vector<8x128xf32>
    %86 = arith.addf %84, %85 : vector<8x128xf32>
    %87 = math.tanh %86 : vector<8x128xf32>
    %88 = arith.mulf %81, %87 : vector<8x128xf32>
    %c0_43 = arith.constant 0 : index
    %c0_44 = arith.constant 0 : index
    %89 = vector.load %arg7[%c0_43, %c0_44] : memref<128x512xf32, #tpu.memory_space<vmem>>, vector<128x512xf32>
    %cst_45 = arith.constant dense<0.000000e+00> : vector<8x512xf32>
    %90 = tpu.matmul %88, %89, %cst_45 {dimension_numbers = #tpu.dot_dimension_numbers<[1], [0], [0], [1], [0, 0, 1, 1], [], []>} : vector<8x128xf32>, vector<128x512xf32>, vector<8x512xf32> -> vector<8x512xf32>
    %91 = arith.addf %66, %90 : vector<8x512xf32>
    %92 = vector.extract_strided_slice %91 {offsets = [0, 0], sizes = [8, 384], strides = [1, 1]} : vector<8x512xf32> to vector<8x384xf32>
    %cst_46 = arith.constant 5.000000e-01 : f32
    %93 = vector.broadcast %cst_46 : f32 to vector<8x384xf32>
    %94 = arith.mulf %93, %92 : vector<8x384xf32>
    %95 = math.tanh %94 : vector<8x384xf32>
    %cst_47 = arith.constant 5.000000e-01 : f32
    %96 = vector.broadcast %cst_47 : f32 to vector<8x384xf32>
    %97 = arith.mulf %96, %95 : vector<8x384xf32>
    %cst_48 = arith.constant 5.000000e-01 : f32
    %98 = vector.broadcast %cst_48 : f32 to vector<8x384xf32>
    %99 = arith.addf %97, %98 : vector<8x384xf32>
    %100 = vector.extract_strided_slice %99 {offsets = [0, 0], sizes = [8, 128], strides = [1, 1]} : vector<8x384xf32> to vector<8x128xf32>
    %101 = vector.extract_strided_slice %99 {offsets = [0, 128], sizes = [8, 128], strides = [1, 1]} : vector<8x384xf32> to vector<8x128xf32>
    %102 = vector.extract_strided_slice %99 {offsets = [0, 256], sizes = [8, 128], strides = [1, 1]} : vector<8x384xf32> to vector<8x128xf32>
    %103 = vector.extract_strided_slice %91 {offsets = [0, 384], sizes = [8, 128], strides = [1, 1]} : vector<8x512xf32> to vector<8x128xf32>
    %104 = math.tanh %103 : vector<8x128xf32>
    %105 = arith.mulf %101, %61 : vector<8x128xf32>
    %106 = arith.mulf %100, %104 : vector<8x128xf32>
    %107 = arith.addf %105, %106 : vector<8x128xf32>
    %108 = math.tanh %107 : vector<8x128xf32>
    %109 = arith.mulf %102, %108 : vector<8x128xf32>
    %c0_49 = arith.constant 0 : index
    %c0_50 = arith.constant 0 : index
    %110 = vector.load %arg8[%c0_49, %c0_50] : memref<128x512xf32, #tpu.memory_space<vmem>>, vector<128x512xf32>
    %cst_51 = arith.constant dense<0.000000e+00> : vector<8x512xf32>
    %111 = tpu.matmul %109, %110, %cst_51 {dimension_numbers = #tpu.dot_dimension_numbers<[1], [0], [0], [1], [0, 0, 1, 1], [], []>} : vector<8x128xf32>, vector<128x512xf32>, vector<8x512xf32> -> vector<8x512xf32>
    %112 = arith.addf %111, %16 : vector<8x512xf32>
    %c16 = arith.constant 16 : index
    %c0_52 = arith.constant 0 : index
    %113 = vector.load %arg13[%c16, %c0_52] : memref<64x512xf32, #tpu.memory_space<vmem>>, vector<8x512xf32>
    %c0_53 = arith.constant 0 : index
    %c0_54 = arith.constant 0 : index
    %114 = vector.load %arg6[%c0_53, %c0_54] : memref<128x512xf32, #tpu.memory_space<vmem>>, vector<128x512xf32>
    %cst_55 = arith.constant dense<0.000000e+00> : vector<8x512xf32>
    %115 = tpu.matmul %88, %114, %cst_55 {dimension_numbers = #tpu.dot_dimension_numbers<[1], [0], [0], [1], [0, 0, 1, 1], [], []>} : vector<8x128xf32>, vector<128x512xf32>, vector<8x512xf32> -> vector<8x512xf32>
    %116 = arith.addf %113, %115 : vector<8x512xf32>
    %117 = vector.extract_strided_slice %116 {offsets = [0, 0], sizes = [8, 384], strides = [1, 1]} : vector<8x512xf32> to vector<8x384xf32>
    %cst_56 = arith.constant 5.000000e-01 : f32
    %118 = vector.broadcast %cst_56 : f32 to vector<8x384xf32>
    %119 = arith.mulf %118, %117 : vector<8x384xf32>
    %120 = math.tanh %119 : vector<8x384xf32>
    %cst_57 = arith.constant 5.000000e-01 : f32
    %121 = vector.broadcast %cst_57 : f32 to vector<8x384xf32>
    %122 = arith.mulf %121, %120 : vector<8x384xf32>
    %cst_58 = arith.constant 5.000000e-01 : f32
    %123 = vector.broadcast %cst_58 : f32 to vector<8x384xf32>
    %124 = arith.addf %122, %123 : vector<8x384xf32>
    %125 = vector.extract_strided_slice %124 {offsets = [0, 0], sizes = [8, 128], strides = [1, 1]} : vector<8x384xf32> to vector<8x128xf32>
    %126 = vector.extract_strided_slice %124 {offsets = [0, 128], sizes = [8, 128], strides = [1, 1]} : vector<8x384xf32> to vector<8x128xf32>
    %127 = vector.extract_strided_slice %124 {offsets = [0, 256], sizes = [8, 128], strides = [1, 1]} : vector<8x384xf32> to vector<8x128xf32>
    %128 = vector.extract_strided_slice %116 {offsets = [0, 384], sizes = [8, 128], strides = [1, 1]} : vector<8x512xf32> to vector<8x128xf32>
    %129 = math.tanh %128 : vector<8x128xf32>
    %130 = arith.mulf %126, %86 : vector<8x128xf32>
    %131 = arith.mulf %125, %129 : vector<8x128xf32>
    %132 = arith.addf %130, %131 : vector<8x128xf32>
    %133 = math.tanh %132 : vector<8x128xf32>
    %134 = arith.mulf %127, %133 : vector<8x128xf32>
    %c0_59 = arith.constant 0 : index
    %c0_60 = arith.constant 0 : index
    %135 = vector.load %arg7[%c0_59, %c0_60] : memref<128x512xf32, #tpu.memory_space<vmem>>, vector<128x512xf32>
    %cst_61 = arith.constant dense<0.000000e+00> : vector<8x512xf32>
    %136 = tpu.matmul %134, %135, %cst_61 {dimension_numbers = #tpu.dot_dimension_numbers<[1], [0], [0], [1], [0, 0, 1, 1], [], []>} : vector<8x128xf32>, vector<128x512xf32>, vector<8x512xf32> -> vector<8x512xf32>
    %137 = arith.addf %112, %136 : vector<8x512xf32>
    %138 = vector.extract_strided_slice %137 {offsets = [0, 0], sizes = [8, 384], strides = [1, 1]} : vector<8x512xf32> to vector<8x384xf32>
    %cst_62 = arith.constant 5.000000e-01 : f32
    %139 = vector.broadcast %cst_62 : f32 to vector<8x384xf32>
    %140 = arith.mulf %139, %138 : vector<8x384xf32>
    %141 = math.tanh %140 : vector<8x384xf32>
    %cst_63 = arith.constant 5.000000e-01 : f32
    %142 = vector.broadcast %cst_63 : f32 to vector<8x384xf32>
    %143 = arith.mulf %142, %141 : vector<8x384xf32>
    %cst_64 = arith.constant 5.000000e-01 : f32
    %144 = vector.broadcast %cst_64 : f32 to vector<8x384xf32>
    %145 = arith.addf %143, %144 : vector<8x384xf32>
    %146 = vector.extract_strided_slice %145 {offsets = [0, 0], sizes = [8, 128], strides = [1, 1]} : vector<8x384xf32> to vector<8x128xf32>
    %147 = vector.extract_strided_slice %145 {offsets = [0, 128], sizes = [8, 128], strides = [1, 1]} : vector<8x384xf32> to vector<8x128xf32>
    %148 = vector.extract_strided_slice %145 {offsets = [0, 256], sizes = [8, 128], strides = [1, 1]} : vector<8x384xf32> to vector<8x128xf32>
    %149 = vector.extract_strided_slice %137 {offsets = [0, 384], sizes = [8, 128], strides = [1, 1]} : vector<8x512xf32> to vector<8x128xf32>
    %150 = math.tanh %149 : vector<8x128xf32>
    %151 = arith.mulf %147, %107 : vector<8x128xf32>
    %152 = arith.mulf %146, %150 : vector<8x128xf32>
    %153 = arith.addf %151, %152 : vector<8x128xf32>
    %154 = math.tanh %153 : vector<8x128xf32>
    %155 = arith.mulf %148, %154 : vector<8x128xf32>
    %c0_65 = arith.constant 0 : index
    %c0_66 = arith.constant 0 : index
    %156 = vector.load %arg8[%c0_65, %c0_66] : memref<128x512xf32, #tpu.memory_space<vmem>>, vector<128x512xf32>
    %cst_67 = arith.constant dense<0.000000e+00> : vector<8x512xf32>
    %157 = tpu.matmul %155, %156, %cst_67 {dimension_numbers = #tpu.dot_dimension_numbers<[1], [0], [0], [1], [0, 0, 1, 1], [], []>} : vector<8x128xf32>, vector<128x512xf32>, vector<8x512xf32> -> vector<8x512xf32>
    %158 = arith.addf %157, %16 : vector<8x512xf32>
    %c24 = arith.constant 24 : index
    %c0_68 = arith.constant 0 : index
    %159 = vector.load %arg13[%c24, %c0_68] : memref<64x512xf32, #tpu.memory_space<vmem>>, vector<8x512xf32>
    %c0_69 = arith.constant 0 : index
    %c0_70 = arith.constant 0 : index
    %160 = vector.load %arg6[%c0_69, %c0_70] : memref<128x512xf32, #tpu.memory_space<vmem>>, vector<128x512xf32>
    %cst_71 = arith.constant dense<0.000000e+00> : vector<8x512xf32>
    %161 = tpu.matmul %134, %160, %cst_71 {dimension_numbers = #tpu.dot_dimension_numbers<[1], [0], [0], [1], [0, 0, 1, 1], [], []>} : vector<8x128xf32>, vector<128x512xf32>, vector<8x512xf32> -> vector<8x512xf32>
    %162 = arith.addf %159, %161 : vector<8x512xf32>
    %163 = vector.extract_strided_slice %162 {offsets = [0, 0], sizes = [8, 384], strides = [1, 1]} : vector<8x512xf32> to vector<8x384xf32>
    %cst_72 = arith.constant 5.000000e-01 : f32
    %164 = vector.broadcast %cst_72 : f32 to vector<8x384xf32>
    %165 = arith.mulf %164, %163 : vector<8x384xf32>
    %166 = math.tanh %165 : vector<8x384xf32>
    %cst_73 = arith.constant 5.000000e-01 : f32
    %167 = vector.broadcast %cst_73 : f32 to vector<8x384xf32>
    %168 = arith.mulf %167, %166 : vector<8x384xf32>
    %cst_74 = arith.constant 5.000000e-01 : f32
    %169 = vector.broadcast %cst_74 : f32 to vector<8x384xf32>
    %170 = arith.addf %168, %169 : vector<8x384xf32>
    %171 = vector.extract_strided_slice %170 {offsets = [0, 0], sizes = [8, 128], strides = [1, 1]} : vector<8x384xf32> to vector<8x128xf32>
    %172 = vector.extract_strided_slice %170 {offsets = [0, 128], sizes = [8, 128], strides = [1, 1]} : vector<8x384xf32> to vector<8x128xf32>
    %173 = vector.extract_strided_slice %170 {offsets = [0, 256], sizes = [8, 128], strides = [1, 1]} : vector<8x384xf32> to vector<8x128xf32>
    %174 = vector.extract_strided_slice %162 {offsets = [0, 384], sizes = [8, 128], strides = [1, 1]} : vector<8x512xf32> to vector<8x128xf32>
    %175 = math.tanh %174 : vector<8x128xf32>
    %176 = arith.mulf %172, %132 : vector<8x128xf32>
    %177 = arith.mulf %171, %175 : vector<8x128xf32>
    %178 = arith.addf %176, %177 : vector<8x128xf32>
    %179 = math.tanh %178 : vector<8x128xf32>
    %180 = arith.mulf %173, %179 : vector<8x128xf32>
    %c0_75 = arith.constant 0 : index
    %c0_76 = arith.constant 0 : index
    %181 = vector.load %arg7[%c0_75, %c0_76] : memref<128x512xf32, #tpu.memory_space<vmem>>, vector<128x512xf32>
    %cst_77 = arith.constant dense<0.000000e+00> : vector<8x512xf32>
    %182 = tpu.matmul %180, %181, %cst_77 {dimension_numbers = #tpu.dot_dimension_numbers<[1], [0], [0], [1], [0, 0, 1, 1], [], []>} : vector<8x128xf32>, vector<128x512xf32>, vector<8x512xf32> -> vector<8x512xf32>
    %183 = arith.addf %158, %182 : vector<8x512xf32>
    %184 = vector.extract_strided_slice %183 {offsets = [0, 0], sizes = [8, 384], strides = [1, 1]} : vector<8x512xf32> to vector<8x384xf32>
    %cst_78 = arith.constant 5.000000e-01 : f32
    %185 = vector.broadcast %cst_78 : f32 to vector<8x384xf32>
    %186 = arith.mulf %185, %184 : vector<8x384xf32>
    %187 = math.tanh %186 : vector<8x384xf32>
    %cst_79 = arith.constant 5.000000e-01 : f32
    %188 = vector.broadcast %cst_79 : f32 to vector<8x384xf32>
    %189 = arith.mulf %188, %187 : vector<8x384xf32>
    %cst_80 = arith.constant 5.000000e-01 : f32
    %190 = vector.broadcast %cst_80 : f32 to vector<8x384xf32>
    %191 = arith.addf %189, %190 : vector<8x384xf32>
    %192 = vector.extract_strided_slice %191 {offsets = [0, 0], sizes = [8, 128], strides = [1, 1]} : vector<8x384xf32> to vector<8x128xf32>
    %193 = vector.extract_strided_slice %191 {offsets = [0, 128], sizes = [8, 128], strides = [1, 1]} : vector<8x384xf32> to vector<8x128xf32>
    %194 = vector.extract_strided_slice %191 {offsets = [0, 256], sizes = [8, 128], strides = [1, 1]} : vector<8x384xf32> to vector<8x128xf32>
    %195 = vector.extract_strided_slice %183 {offsets = [0, 384], sizes = [8, 128], strides = [1, 1]} : vector<8x512xf32> to vector<8x128xf32>
    %196 = math.tanh %195 : vector<8x128xf32>
    %197 = arith.mulf %193, %153 : vector<8x128xf32>
    %198 = arith.mulf %192, %196 : vector<8x128xf32>
    %199 = arith.addf %197, %198 : vector<8x128xf32>
    %200 = math.tanh %199 : vector<8x128xf32>
    %201 = arith.mulf %194, %200 : vector<8x128xf32>
    %c0_81 = arith.constant 0 : index
    %c0_82 = arith.constant 0 : index
    %202 = vector.load %arg8[%c0_81, %c0_82] : memref<128x512xf32, #tpu.memory_space<vmem>>, vector<128x512xf32>
    %cst_83 = arith.constant dense<0.000000e+00> : vector<8x512xf32>
    %203 = tpu.matmul %201, %202, %cst_83 {dimension_numbers = #tpu.dot_dimension_numbers<[1], [0], [0], [1], [0, 0, 1, 1], [], []>} : vector<8x128xf32>, vector<128x512xf32>, vector<8x512xf32> -> vector<8x512xf32>
    %204 = arith.addf %203, %16 : vector<8x512xf32>
    %c32 = arith.constant 32 : index
    %c0_84 = arith.constant 0 : index
    %205 = vector.load %arg13[%c32, %c0_84] : memref<64x512xf32, #tpu.memory_space<vmem>>, vector<8x512xf32>
    %c0_85 = arith.constant 0 : index
    %c0_86 = arith.constant 0 : index
    %206 = vector.load %arg6[%c0_85, %c0_86] : memref<128x512xf32, #tpu.memory_space<vmem>>, vector<128x512xf32>
    %cst_87 = arith.constant dense<0.000000e+00> : vector<8x512xf32>
    %207 = tpu.matmul %180, %206, %cst_87 {dimension_numbers = #tpu.dot_dimension_numbers<[1], [0], [0], [1], [0, 0, 1, 1], [], []>} : vector<8x128xf32>, vector<128x512xf32>, vector<8x512xf32> -> vector<8x512xf32>
    %208 = arith.addf %205, %207 : vector<8x512xf32>
    %209 = vector.extract_strided_slice %208 {offsets = [0, 0], sizes = [8, 384], strides = [1, 1]} : vector<8x512xf32> to vector<8x384xf32>
    %cst_88 = arith.constant 5.000000e-01 : f32
    %210 = vector.broadcast %cst_88 : f32 to vector<8x384xf32>
    %211 = arith.mulf %210, %209 : vector<8x384xf32>
    %212 = math.tanh %211 : vector<8x384xf32>
    %cst_89 = arith.constant 5.000000e-01 : f32
    %213 = vector.broadcast %cst_89 : f32 to vector<8x384xf32>
    %214 = arith.mulf %213, %212 : vector<8x384xf32>
    %cst_90 = arith.constant 5.000000e-01 : f32
    %215 = vector.broadcast %cst_90 : f32 to vector<8x384xf32>
    %216 = arith.addf %214, %215 : vector<8x384xf32>
    %217 = vector.extract_strided_slice %216 {offsets = [0, 0], sizes = [8, 128], strides = [1, 1]} : vector<8x384xf32> to vector<8x128xf32>
    %218 = vector.extract_strided_slice %216 {offsets = [0, 128], sizes = [8, 128], strides = [1, 1]} : vector<8x384xf32> to vector<8x128xf32>
    %219 = vector.extract_strided_slice %216 {offsets = [0, 256], sizes = [8, 128], strides = [1, 1]} : vector<8x384xf32> to vector<8x128xf32>
    %220 = vector.extract_strided_slice %208 {offsets = [0, 384], sizes = [8, 128], strides = [1, 1]} : vector<8x512xf32> to vector<8x128xf32>
    %221 = math.tanh %220 : vector<8x128xf32>
    %222 = arith.mulf %218, %178 : vector<8x128xf32>
    %223 = arith.mulf %217, %221 : vector<8x128xf32>
    %224 = arith.addf %222, %223 : vector<8x128xf32>
    %225 = math.tanh %224 : vector<8x128xf32>
    %226 = arith.mulf %219, %225 : vector<8x128xf32>
    %c0_91 = arith.constant 0 : index
    %c0_92 = arith.constant 0 : index
    %227 = vector.load %arg7[%c0_91, %c0_92] : memref<128x512xf32, #tpu.memory_space<vmem>>, vector<128x512xf32>
    %cst_93 = arith.constant dense<0.000000e+00> : vector<8x512xf32>
    %228 = tpu.matmul %226, %227, %cst_93 {dimension_numbers = #tpu.dot_dimension_numbers<[1], [0], [0], [1], [0, 0, 1, 1], [], []>} : vector<8x128xf32>, vector<128x512xf32>, vector<8x512xf32> -> vector<8x512xf32>
    %229 = arith.addf %204, %228 : vector<8x512xf32>
    %230 = vector.extract_strided_slice %229 {offsets = [0, 0], sizes = [8, 384], strides = [1, 1]} : vector<8x512xf32> to vector<8x384xf32>
    %cst_94 = arith.constant 5.000000e-01 : f32
    %231 = vector.broadcast %cst_94 : f32 to vector<8x384xf32>
    %232 = arith.mulf %231, %230 : vector<8x384xf32>
    %233 = math.tanh %232 : vector<8x384xf32>
    %cst_95 = arith.constant 5.000000e-01 : f32
    %234 = vector.broadcast %cst_95 : f32 to vector<8x384xf32>
    %235 = arith.mulf %234, %233 : vector<8x384xf32>
    %cst_96 = arith.constant 5.000000e-01 : f32
    %236 = vector.broadcast %cst_96 : f32 to vector<8x384xf32>
    %237 = arith.addf %235, %236 : vector<8x384xf32>
    %238 = vector.extract_strided_slice %237 {offsets = [0, 0], sizes = [8, 128], strides = [1, 1]} : vector<8x384xf32> to vector<8x128xf32>
    %239 = vector.extract_strided_slice %237 {offsets = [0, 128], sizes = [8, 128], strides = [1, 1]} : vector<8x384xf32> to vector<8x128xf32>
    %240 = vector.extract_strided_slice %237 {offsets = [0, 256], sizes = [8, 128], strides = [1, 1]} : vector<8x384xf32> to vector<8x128xf32>
    %241 = vector.extract_strided_slice %229 {offsets = [0, 384], sizes = [8, 128], strides = [1, 1]} : vector<8x512xf32> to vector<8x128xf32>
    %242 = math.tanh %241 : vector<8x128xf32>
    %243 = arith.mulf %239, %199 : vector<8x128xf32>
    %244 = arith.mulf %238, %242 : vector<8x128xf32>
    %245 = arith.addf %243, %244 : vector<8x128xf32>
    %246 = math.tanh %245 : vector<8x128xf32>
    %247 = arith.mulf %240, %246 : vector<8x128xf32>
    %c0_97 = arith.constant 0 : index
    %c0_98 = arith.constant 0 : index
    %248 = vector.load %arg8[%c0_97, %c0_98] : memref<128x512xf32, #tpu.memory_space<vmem>>, vector<128x512xf32>
    %cst_99 = arith.constant dense<0.000000e+00> : vector<8x512xf32>
    %249 = tpu.matmul %247, %248, %cst_99 {dimension_numbers = #tpu.dot_dimension_numbers<[1], [0], [0], [1], [0, 0, 1, 1], [], []>} : vector<8x128xf32>, vector<128x512xf32>, vector<8x512xf32> -> vector<8x512xf32>
    %250 = arith.addf %249, %16 : vector<8x512xf32>
    %c40 = arith.constant 40 : index
    %c0_100 = arith.constant 0 : index
    %251 = vector.load %arg13[%c40, %c0_100] : memref<64x512xf32, #tpu.memory_space<vmem>>, vector<8x512xf32>
    %c0_101 = arith.constant 0 : index
    %c0_102 = arith.constant 0 : index
    %252 = vector.load %arg6[%c0_101, %c0_102] : memref<128x512xf32, #tpu.memory_space<vmem>>, vector<128x512xf32>
    %cst_103 = arith.constant dense<0.000000e+00> : vector<8x512xf32>
    %253 = tpu.matmul %226, %252, %cst_103 {dimension_numbers = #tpu.dot_dimension_numbers<[1], [0], [0], [1], [0, 0, 1, 1], [], []>} : vector<8x128xf32>, vector<128x512xf32>, vector<8x512xf32> -> vector<8x512xf32>
    %254 = arith.addf %251, %253 : vector<8x512xf32>
    %255 = vector.extract_strided_slice %254 {offsets = [0, 0], sizes = [8, 384], strides = [1, 1]} : vector<8x512xf32> to vector<8x384xf32>
    %cst_104 = arith.constant 5.000000e-01 : f32
    %256 = vector.broadcast %cst_104 : f32 to vector<8x384xf32>
    %257 = arith.mulf %256, %255 : vector<8x384xf32>
    %258 = math.tanh %257 : vector<8x384xf32>
    %cst_105 = arith.constant 5.000000e-01 : f32
    %259 = vector.broadcast %cst_105 : f32 to vector<8x384xf32>
    %260 = arith.mulf %259, %258 : vector<8x384xf32>
    %cst_106 = arith.constant 5.000000e-01 : f32
    %261 = vector.broadcast %cst_106 : f32 to vector<8x384xf32>
    %262 = arith.addf %260, %261 : vector<8x384xf32>
    %263 = vector.extract_strided_slice %262 {offsets = [0, 0], sizes = [8, 128], strides = [1, 1]} : vector<8x384xf32> to vector<8x128xf32>
    %264 = vector.extract_strided_slice %262 {offsets = [0, 128], sizes = [8, 128], strides = [1, 1]} : vector<8x384xf32> to vector<8x128xf32>
    %265 = vector.extract_strided_slice %262 {offsets = [0, 256], sizes = [8, 128], strides = [1, 1]} : vector<8x384xf32> to vector<8x128xf32>
    %266 = vector.extract_strided_slice %254 {offsets = [0, 384], sizes = [8, 128], strides = [1, 1]} : vector<8x512xf32> to vector<8x128xf32>
    %267 = math.tanh %266 : vector<8x128xf32>
    %268 = arith.mulf %264, %224 : vector<8x128xf32>
    %269 = arith.mulf %263, %267 : vector<8x128xf32>
    %270 = arith.addf %268, %269 : vector<8x128xf32>
    %271 = math.tanh %270 : vector<8x128xf32>
    %272 = arith.mulf %265, %271 : vector<8x128xf32>
    %c0_107 = arith.constant 0 : index
    %c0_108 = arith.constant 0 : index
    %273 = vector.load %arg7[%c0_107, %c0_108] : memref<128x512xf32, #tpu.memory_space<vmem>>, vector<128x512xf32>
    %cst_109 = arith.constant dense<0.000000e+00> : vector<8x512xf32>
    %274 = tpu.matmul %272, %273, %cst_109 {dimension_numbers = #tpu.dot_dimension_numbers<[1], [0], [0], [1], [0, 0, 1, 1], [], []>} : vector<8x128xf32>, vector<128x512xf32>, vector<8x512xf32> -> vector<8x512xf32>
    %275 = arith.addf %250, %274 : vector<8x512xf32>
    %276 = vector.extract_strided_slice %275 {offsets = [0, 0], sizes = [8, 384], strides = [1, 1]} : vector<8x512xf32> to vector<8x384xf32>
    %cst_110 = arith.constant 5.000000e-01 : f32
    %277 = vector.broadcast %cst_110 : f32 to vector<8x384xf32>
    %278 = arith.mulf %277, %276 : vector<8x384xf32>
    %279 = math.tanh %278 : vector<8x384xf32>
    %cst_111 = arith.constant 5.000000e-01 : f32
    %280 = vector.broadcast %cst_111 : f32 to vector<8x384xf32>
    %281 = arith.mulf %280, %279 : vector<8x384xf32>
    %cst_112 = arith.constant 5.000000e-01 : f32
    %282 = vector.broadcast %cst_112 : f32 to vector<8x384xf32>
    %283 = arith.addf %281, %282 : vector<8x384xf32>
    %284 = vector.extract_strided_slice %283 {offsets = [0, 0], sizes = [8, 128], strides = [1, 1]} : vector<8x384xf32> to vector<8x128xf32>
    %285 = vector.extract_strided_slice %283 {offsets = [0, 128], sizes = [8, 128], strides = [1, 1]} : vector<8x384xf32> to vector<8x128xf32>
    %286 = vector.extract_strided_slice %283 {offsets = [0, 256], sizes = [8, 128], strides = [1, 1]} : vector<8x384xf32> to vector<8x128xf32>
    %287 = vector.extract_strided_slice %275 {offsets = [0, 384], sizes = [8, 128], strides = [1, 1]} : vector<8x512xf32> to vector<8x128xf32>
    %288 = math.tanh %287 : vector<8x128xf32>
    %289 = arith.mulf %285, %245 : vector<8x128xf32>
    %290 = arith.mulf %284, %288 : vector<8x128xf32>
    %291 = arith.addf %289, %290 : vector<8x128xf32>
    %292 = math.tanh %291 : vector<8x128xf32>
    %293 = arith.mulf %286, %292 : vector<8x128xf32>
    %c0_113 = arith.constant 0 : index
    %c0_114 = arith.constant 0 : index
    %294 = vector.load %arg8[%c0_113, %c0_114] : memref<128x512xf32, #tpu.memory_space<vmem>>, vector<128x512xf32>
    %cst_115 = arith.constant dense<0.000000e+00> : vector<8x512xf32>
    %295 = tpu.matmul %293, %294, %cst_115 {dimension_numbers = #tpu.dot_dimension_numbers<[1], [0], [0], [1], [0, 0, 1, 1], [], []>} : vector<8x128xf32>, vector<128x512xf32>, vector<8x512xf32> -> vector<8x512xf32>
    %296 = arith.addf %295, %16 : vector<8x512xf32>
    %c48 = arith.constant 48 : index
    %c0_116 = arith.constant 0 : index
    %297 = vector.load %arg13[%c48, %c0_116] : memref<64x512xf32, #tpu.memory_space<vmem>>, vector<8x512xf32>
    %c0_117 = arith.constant 0 : index
    %c0_118 = arith.constant 0 : index
    %298 = vector.load %arg6[%c0_117, %c0_118] : memref<128x512xf32, #tpu.memory_space<vmem>>, vector<128x512xf32>
    %cst_119 = arith.constant dense<0.000000e+00> : vector<8x512xf32>
    %299 = tpu.matmul %272, %298, %cst_119 {dimension_numbers = #tpu.dot_dimension_numbers<[1], [0], [0], [1], [0, 0, 1, 1], [], []>} : vector<8x128xf32>, vector<128x512xf32>, vector<8x512xf32> -> vector<8x512xf32>
    %300 = arith.addf %297, %299 : vector<8x512xf32>
    %301 = vector.extract_strided_slice %300 {offsets = [0, 0], sizes = [8, 384], strides = [1, 1]} : vector<8x512xf32> to vector<8x384xf32>
    %cst_120 = arith.constant 5.000000e-01 : f32
    %302 = vector.broadcast %cst_120 : f32 to vector<8x384xf32>
    %303 = arith.mulf %302, %301 : vector<8x384xf32>
    %304 = math.tanh %303 : vector<8x384xf32>
    %cst_121 = arith.constant 5.000000e-01 : f32
    %305 = vector.broadcast %cst_121 : f32 to vector<8x384xf32>
    %306 = arith.mulf %305, %304 : vector<8x384xf32>
    %cst_122 = arith.constant 5.000000e-01 : f32
    %307 = vector.broadcast %cst_122 : f32 to vector<8x384xf32>
    %308 = arith.addf %306, %307 : vector<8x384xf32>
    %309 = vector.extract_strided_slice %308 {offsets = [0, 0], sizes = [8, 128], strides = [1, 1]} : vector<8x384xf32> to vector<8x128xf32>
    %310 = vector.extract_strided_slice %308 {offsets = [0, 128], sizes = [8, 128], strides = [1, 1]} : vector<8x384xf32> to vector<8x128xf32>
    %311 = vector.extract_strided_slice %308 {offsets = [0, 256], sizes = [8, 128], strides = [1, 1]} : vector<8x384xf32> to vector<8x128xf32>
    %312 = vector.extract_strided_slice %300 {offsets = [0, 384], sizes = [8, 128], strides = [1, 1]} : vector<8x512xf32> to vector<8x128xf32>
    %313 = math.tanh %312 : vector<8x128xf32>
    %314 = arith.mulf %310, %270 : vector<8x128xf32>
    %315 = arith.mulf %309, %313 : vector<8x128xf32>
    %316 = arith.addf %314, %315 : vector<8x128xf32>
    %317 = math.tanh %316 : vector<8x128xf32>
    %318 = arith.mulf %311, %317 : vector<8x128xf32>
    %c0_123 = arith.constant 0 : index
    %c0_124 = arith.constant 0 : index
    %319 = vector.load %arg7[%c0_123, %c0_124] : memref<128x512xf32, #tpu.memory_space<vmem>>, vector<128x512xf32>
    %cst_125 = arith.constant dense<0.000000e+00> : vector<8x512xf32>
    %320 = tpu.matmul %318, %319, %cst_125 {dimension_numbers = #tpu.dot_dimension_numbers<[1], [0], [0], [1], [0, 0, 1, 1], [], []>} : vector<8x128xf32>, vector<128x512xf32>, vector<8x512xf32> -> vector<8x512xf32>
    %321 = arith.addf %296, %320 : vector<8x512xf32>
    %322 = vector.extract_strided_slice %321 {offsets = [0, 0], sizes = [8, 384], strides = [1, 1]} : vector<8x512xf32> to vector<8x384xf32>
    %cst_126 = arith.constant 5.000000e-01 : f32
    %323 = vector.broadcast %cst_126 : f32 to vector<8x384xf32>
    %324 = arith.mulf %323, %322 : vector<8x384xf32>
    %325 = math.tanh %324 : vector<8x384xf32>
    %cst_127 = arith.constant 5.000000e-01 : f32
    %326 = vector.broadcast %cst_127 : f32 to vector<8x384xf32>
    %327 = arith.mulf %326, %325 : vector<8x384xf32>
    %cst_128 = arith.constant 5.000000e-01 : f32
    %328 = vector.broadcast %cst_128 : f32 to vector<8x384xf32>
    %329 = arith.addf %327, %328 : vector<8x384xf32>
    %330 = vector.extract_strided_slice %329 {offsets = [0, 0], sizes = [8, 128], strides = [1, 1]} : vector<8x384xf32> to vector<8x128xf32>
    %331 = vector.extract_strided_slice %329 {offsets = [0, 128], sizes = [8, 128], strides = [1, 1]} : vector<8x384xf32> to vector<8x128xf32>
    %332 = vector.extract_strided_slice %329 {offsets = [0, 256], sizes = [8, 128], strides = [1, 1]} : vector<8x384xf32> to vector<8x128xf32>
    %333 = vector.extract_strided_slice %321 {offsets = [0, 384], sizes = [8, 128], strides = [1, 1]} : vector<8x512xf32> to vector<8x128xf32>
    %334 = math.tanh %333 : vector<8x128xf32>
    %335 = arith.mulf %331, %291 : vector<8x128xf32>
    %336 = arith.mulf %330, %334 : vector<8x128xf32>
    %337 = arith.addf %335, %336 : vector<8x128xf32>
    %338 = math.tanh %337 : vector<8x128xf32>
    %339 = arith.mulf %332, %338 : vector<8x128xf32>
    %c0_129 = arith.constant 0 : index
    %c0_130 = arith.constant 0 : index
    %340 = vector.load %arg8[%c0_129, %c0_130] : memref<128x512xf32, #tpu.memory_space<vmem>>, vector<128x512xf32>
    %cst_131 = arith.constant dense<0.000000e+00> : vector<8x512xf32>
    %341 = tpu.matmul %339, %340, %cst_131 {dimension_numbers = #tpu.dot_dimension_numbers<[1], [0], [0], [1], [0, 0, 1, 1], [], []>} : vector<8x128xf32>, vector<128x512xf32>, vector<8x512xf32> -> vector<8x512xf32>
    %342 = arith.addf %341, %16 : vector<8x512xf32>
    %c56 = arith.constant 56 : index
    %c0_132 = arith.constant 0 : index
    %343 = vector.load %arg13[%c56, %c0_132] : memref<64x512xf32, #tpu.memory_space<vmem>>, vector<8x512xf32>
    %c0_133 = arith.constant 0 : index
    %c0_134 = arith.constant 0 : index
    %344 = vector.load %arg6[%c0_133, %c0_134] : memref<128x512xf32, #tpu.memory_space<vmem>>, vector<128x512xf32>
    %cst_135 = arith.constant dense<0.000000e+00> : vector<8x512xf32>
    %345 = tpu.matmul %318, %344, %cst_135 {dimension_numbers = #tpu.dot_dimension_numbers<[1], [0], [0], [1], [0, 0, 1, 1], [], []>} : vector<8x128xf32>, vector<128x512xf32>, vector<8x512xf32> -> vector<8x512xf32>
    %346 = arith.addf %343, %345 : vector<8x512xf32>
    %347 = vector.extract_strided_slice %346 {offsets = [0, 0], sizes = [8, 384], strides = [1, 1]} : vector<8x512xf32> to vector<8x384xf32>
    %cst_136 = arith.constant 5.000000e-01 : f32
    %348 = vector.broadcast %cst_136 : f32 to vector<8x384xf32>
    %349 = arith.mulf %348, %347 : vector<8x384xf32>
    %350 = math.tanh %349 : vector<8x384xf32>
    %cst_137 = arith.constant 5.000000e-01 : f32
    %351 = vector.broadcast %cst_137 : f32 to vector<8x384xf32>
    %352 = arith.mulf %351, %350 : vector<8x384xf32>
    %cst_138 = arith.constant 5.000000e-01 : f32
    %353 = vector.broadcast %cst_138 : f32 to vector<8x384xf32>
    %354 = arith.addf %352, %353 : vector<8x384xf32>
    %355 = vector.extract_strided_slice %354 {offsets = [0, 0], sizes = [8, 128], strides = [1, 1]} : vector<8x384xf32> to vector<8x128xf32>
    %356 = vector.extract_strided_slice %354 {offsets = [0, 128], sizes = [8, 128], strides = [1, 1]} : vector<8x384xf32> to vector<8x128xf32>
    %357 = vector.extract_strided_slice %354 {offsets = [0, 256], sizes = [8, 128], strides = [1, 1]} : vector<8x384xf32> to vector<8x128xf32>
    %358 = vector.extract_strided_slice %346 {offsets = [0, 384], sizes = [8, 128], strides = [1, 1]} : vector<8x512xf32> to vector<8x128xf32>
    %359 = math.tanh %358 : vector<8x128xf32>
    %360 = arith.mulf %356, %316 : vector<8x128xf32>
    %361 = arith.mulf %355, %359 : vector<8x128xf32>
    %362 = arith.addf %360, %361 : vector<8x128xf32>
    %363 = math.tanh %362 : vector<8x128xf32>
    %364 = arith.mulf %357, %363 : vector<8x128xf32>
    %c0_139 = arith.constant 0 : index
    %c0_140 = arith.constant 0 : index
    %365 = vector.load %arg7[%c0_139, %c0_140] : memref<128x512xf32, #tpu.memory_space<vmem>>, vector<128x512xf32>
    %cst_141 = arith.constant dense<0.000000e+00> : vector<8x512xf32>
    %366 = tpu.matmul %364, %365, %cst_141 {dimension_numbers = #tpu.dot_dimension_numbers<[1], [0], [0], [1], [0, 0, 1, 1], [], []>} : vector<8x128xf32>, vector<128x512xf32>, vector<8x512xf32> -> vector<8x512xf32>
    %367 = arith.addf %342, %366 : vector<8x512xf32>
    %368 = vector.extract_strided_slice %367 {offsets = [0, 0], sizes = [8, 384], strides = [1, 1]} : vector<8x512xf32> to vector<8x384xf32>
    %cst_142 = arith.constant 5.000000e-01 : f32
    %369 = vector.broadcast %cst_142 : f32 to vector<8x384xf32>
    %370 = arith.mulf %369, %368 : vector<8x384xf32>
    %371 = math.tanh %370 : vector<8x384xf32>
    %cst_143 = arith.constant 5.000000e-01 : f32
    %372 = vector.broadcast %cst_143 : f32 to vector<8x384xf32>
    %373 = arith.mulf %372, %371 : vector<8x384xf32>
    %cst_144 = arith.constant 5.000000e-01 : f32
    %374 = vector.broadcast %cst_144 : f32 to vector<8x384xf32>
    %375 = arith.addf %373, %374 : vector<8x384xf32>
    %376 = vector.extract_strided_slice %375 {offsets = [0, 0], sizes = [8, 128], strides = [1, 1]} : vector<8x384xf32> to vector<8x128xf32>
    %377 = vector.extract_strided_slice %375 {offsets = [0, 128], sizes = [8, 128], strides = [1, 1]} : vector<8x384xf32> to vector<8x128xf32>
    %378 = vector.extract_strided_slice %375 {offsets = [0, 256], sizes = [8, 128], strides = [1, 1]} : vector<8x384xf32> to vector<8x128xf32>
    %379 = vector.extract_strided_slice %367 {offsets = [0, 384], sizes = [8, 128], strides = [1, 1]} : vector<8x512xf32> to vector<8x128xf32>
    %380 = math.tanh %379 : vector<8x128xf32>
    %381 = arith.mulf %377, %337 : vector<8x128xf32>
    %382 = arith.mulf %376, %380 : vector<8x128xf32>
    %383 = arith.addf %381, %382 : vector<8x128xf32>
    %384 = math.tanh %383 : vector<8x128xf32>
    %385 = arith.mulf %378, %384 : vector<8x128xf32>
    %c0_145 = arith.constant 0 : index
    %c0_146 = arith.constant 0 : index
    %386 = vector.load %arg10[%c0_145, %c0_146] : memref<128x128xf32, #tpu.memory_space<vmem>>, vector<128x128xf32>
    %cst_147 = arith.constant dense<0.000000e+00> : vector<8x128xf32>
    %387 = tpu.matmul %385, %386, %cst_147 {dimension_numbers = #tpu.dot_dimension_numbers<[1], [0], [0], [1], [0, 0, 1, 1], [], []>} : vector<8x128xf32>, vector<128x128xf32>, vector<8x128xf32> -> vector<8x128xf32>
    %c0_148 = arith.constant 0 : index
    %c0_149 = arith.constant 0 : index
    %388 = vector.load %arg11[%c0_148, %c0_149] : memref<1x128xf32, #tpu.memory_space<vmem>>, vector<1x128xf32>
    %389 = vector.broadcast %388 : vector<1x128xf32> to vector<8x128xf32>
    %390 = arith.addf %387, %389 : vector<8x128xf32>
    %c0_150 = arith.constant 0 : index
    %c0_151 = arith.constant 0 : index
    %c0_152 = arith.constant 0 : index
    %391 = vector.load %arg12[%c0_150, %c0_151, %c0_152] : memref<1x8x128xf32, #tpu.memory_space<vmem>>, vector<1x8x128xf32>
    %392 = vector.shape_cast %391 : vector<1x8x128xf32> to vector<8x128xf32>
    %393 = vector.shape_cast %390 : vector<8x128xf32> to vector<1x8x128xf32>
    tpu.vector_store %arg12[%c0_150, %c0_151, %c0_152], %393 {strides = array<i32>} : memref<1x8x128xf32, #tpu.memory_space<vmem>>, vector<1x8x128xf32>,
    return
  }
  func.func @transform_0(%arg0: i32) -> (i32, i32, i32) {
    %c0_i32 = arith.constant 0 : i32
    %c0_i32_0 = arith.constant 0 : i32
    %c0_i32_1 = arith.constant 0 : i32
    return %arg0, %c0_i32, %c0_i32_0 : i32, i32, i32
  }
  func.func @transform_1(%arg0: i32) -> (i32, i32) {
    %c0_i32 = arith.constant 0 : i32
    %c0_i32_0 = arith.constant 0 : i32
    %c0_i32_1 = arith.constant 0 : i32
    return %c0_i32, %c0_i32_0 : i32, i32
  }
  func.func @transform_2(%arg0: i32) -> (i32, i32) {
    %c0_i32 = arith.constant 0 : i32
    %c0_i32_0 = arith.constant 0 : i32
    %c0_i32_1 = arith.constant 0 : i32
    return %c0_i32, %c0_i32_0 : i32, i32
  }
  func.func @transform_3(%arg0: i32) -> (i32, i32) {
    %c0_i32 = arith.constant 0 : i32
    %c0_i32_0 = arith.constant 0 : i32
    %c0_i32_1 = arith.constant 0 : i32
    return %c0_i32, %c0_i32_0 : i32, i32
  }
  func.func @transform_4(%arg0: i32) -> (i32, i32) {
    %c0_i32 = arith.constant 0 : i32
    %c0_i32_0 = arith.constant 0 : i32
    %c0_i32_1 = arith.constant 0 : i32
    return %c0_i32, %c0_i32_0 : i32, i32
  }
  func.func @transform_5(%arg0: i32) -> (i32, i32) {
    %c0_i32 = arith.constant 0 : i32
    %c0_i32_0 = arith.constant 0 : i32
    %c0_i32_1 = arith.constant 0 : i32
    return %c0_i32, %c0_i32_0 : i32, i32
  }
  func.func @transform_6(%arg0: i32) -> (i32, i32) {
    %c0_i32 = arith.constant 0 : i32
    %c0_i32_0 = arith.constant 0 : i32
    %c0_i32_1 = arith.constant 0 : i32
    return %c0_i32, %c0_i32_0 : i32, i32
  }
  func.func @transform_7(%arg0: i32) -> (i32, i32) {
    %c0_i32 = arith.constant 0 : i32
    %c0_i32_0 = arith.constant 0 : i32
    %c0_i32_1 = arith.constant 0 : i32
    return %c0_i32, %c0_i32_0 : i32, i32
  }
  func.func @transform_8(%arg0: i32) -> (i32, i32) {
    %c0_i32 = arith.constant 0 : i32
    %c0_i32_0 = arith.constant 0 : i32
    %c0_i32_1 = arith.constant 0 : i32
    return %c0_i32, %c0_i32_0 : i32, i32
  }
  func.func @transform_9(%arg0: i32) -> (i32, i32) {
    %c0_i32 = arith.constant 0 : i32
    %c0_i32_0 = arith.constant 0 : i32
    %c0_i32_1 = arith.constant 0 : i32
    return %c0_i32, %c0_i32_0 : i32, i32
  }
  func.func @transform_10(%arg0: i32) -> (i32, i32) {
    %c0_i32 = arith.constant 0 : i32
    %c0_i32_0 = arith.constant 0 : i32
    %c0_i32_1 = arith.constant 0 : i32
    return %c0_i32, %c0_i32_0 : i32, i32
  }
  func.func @transform_11(%arg0: i32) -> (i32, i32, i32) {
    %c0_i32 = arith.constant 0 : i32
    %c0_i32_0 = arith.constant 0 : i32
    %c0_i32_1 = arith.constant 0 : i32
    return %arg0, %c0_i32, %c0_i32_0 : i32, i32, i32
  }
}

</mosaic_0001>

<bundles_post_ra>
// kernel: etd_forward.1
= control target key start
LH: loop header
LB: loop body
LE: loop exit
PB: predicated region body
PF: predicated region fallthrough
CT: control target
= control target key end

     0   :  { %vm76_vm0 = vcmask 1043456   ;;  %vm51_vm1 = vcmask 31744   ;;  %vm143_vm2 = vcmask 64512   ;;  %s9751_s1 = inlined_call_operand.vmem [shape: f32[4,8], index: 1, kind: input, shape index: {}]   ;;  %s9752_s0 = inlined_call_operand.vmem [shape: f32[1,64,4], index: 0, kind: input, shape index: {}]   ;;  %s9753_s2 = inlined_call_operand.vmem [shape: f32[1,8], index: 2, kind: input, shape index: {}]   ;;  %s9754_s3 = inlined_call_operand.vmem [shape: f32[8,512], index: 3, kind: input, shape index: {}]   ;;  %s9755_s7 = inlined_call_operand.vmem [shape: f32[128,512], index: 7, kind: input, shape index: {}]   ;;  %s9756_s5 = inlined_call_operand.vmem [shape: f32[128,512], index: 5, kind: input, shape index: {}]   ;;  %s9757_s4 = inlined_call_operand.vmem [shape: f32[1,512], index: 4, kind: input, shape index: {}]   ;;  %s9758_s6 = inlined_call_operand.vmem [shape: f32[128,512], index: 6, kind: input, shape index: {}]   ;;  %s9759_s8 = inlined_call_operand.vmem [shape: f32[1,512], index: 8, kind: input, shape index: {}]   ;;  %s9760_s10 = inlined_call_operand.vmem [shape: f32[1,128], index: 10, kind: input, shape index: {}]   ;;  %s9761_s9 = inlined_call_operand.vmem [shape: f32[128,128], index: 9, kind: input, shape index: {}]   ;;  %s9762_s11 = inlined_call_operand.vmem [shape: f32[1,8,128], index: 11, kind: output, shape index: {}]  }
   0x1   :  { %v46_v0 = vld [vmem:[%s9751_s1] sm:$0xf]  ;;  %v45_v2 = vld [vmem:[%s9752_s0 + $0x38] sm:$0xff]  ;;  %v39_v3 = vld [vmem:[%s9752_s0 + $0x8] sm:$0xff] }
   0x2   :  { %v38_v1 = vld [vmem:[%s9752_s0] sm:$0xff]  ;;  %2915 = vmatpush.msk.msra.mxu0 %vm76_vm0, %v46_v0  ;;  %2956 = vmatpush.msk.msra.mxu3 %vm76_vm0, %v46_v0  ;;  %v40_v4 = vld [vmem:[%s9752_s0 + $0x10] sm:$0xff]  ;;  %v41_v5 = vld [vmem:[%s9752_s0 + $0x18] sm:$0xff] }
   0x3   :  { %2916 = vmatmul.msk.f32.vlgmr.msra.gmra.mxu0 %vm51_vm1, %v38_v1  ;;  %2923 = vmatmul.msk.f32.vlgmr.msra.gmra.mxu3 %vm51_vm1, %v45_v2  ;;  %v42_v6 = vld [vmem:[%s9752_s0 + $0x20] sm:$0xff]  ;;  %v43_v7 = vld [vmem:[%s9752_s0 + $0x28] sm:$0xff]  ;;  %v44_v8 = vld [vmem:[%s9752_s0 + $0x30] sm:$0xff] }
   0x4   :  { %v129_v9 = vld [vmem:[%s9754_s3] sm:$0xff]  ;;  %v132_v10 = vld [vmem:[%s9754_s3 + $0x18] sm:$0xff]  ;;  %v130_v14 = vld [vmem:[%s9754_s3 + $0x8] sm:$0xff] }
   0x5   :  { %183 = vmatpush.msra.mxu1 %v129_v9  ;;  %v434_v11 = vld [vmem:[%s9755_s7 + $0x1e0] sm:$0xff]  ;;  %2957 = vmatpush.msrb.mxu3 %v129_v9  ;;  %v3873_v17 = vld [vmem:[%s9755_s7 + $0x1e8] sm:$0xff]  ;;  %v3961_v48 = vld [vmem:[%s9755_s7 + $0x1f8] sm:$0xff] }
   0x6   :  { %306 = vmatpush.msrb.mxu0 %v132_v10  ;;  %v430_v12 = vld [vmem:[%s9755_s7 + $0x1c0] sm:$0xff]  ;;  %224 = vmatpush.msra.mxu2 %v130_v14  ;;  %v3882_v19 = vld [vmem:[%s9755_s7 + $0x1c8] sm:$0xff]  ;;  %v3976_v52 = vld [vmem:[%s9755_s7 + $0x1d8] sm:$0xff] }
   0x7   :  { %438 = vmatpush.msrb.mxu1 %v434_v11  ;;  %v426_v13 = vld [vmem:[%s9755_s7 + $0x1a0] sm:$0xff]  ;;  %2958 = vmatpush.msra.mxu3 %v130_v14  ;;  %v427_v21 = vld [vmem:[%s9755_s7 + $0x1a8] sm:$0xff]  ;;  %v3990_v55 = vld [vmem:[%s9755_s7 + $0x1b8] sm:$0xff] }
   0x8   :  { %v422_v15 = vld [vmem:[%s9755_s7 + $0x180] sm:$0xff]  ;;  %458 = vmatpush.msrb.mxu2 %v3873_v17  ;;  %v423_v23 = vld [vmem:[%s9755_s7 + $0x188] sm:$0xff]  ;;  %v584_v56 = vld [vmem:[%s9756_s5 + $0x1f0] sm:$0xff] }
   0x9   :  { %439 = vmatpush.msrb.mxu1 %v430_v12  ;;  %v418_v16 = vld [vmem:[%s9755_s7 + $0x160] sm:$0xff]  ;;  %v419_v25 = vld [vmem:[%s9755_s7 + $0x168] sm:$0xff]  ;;  %v580_v58 = vld [vmem:[%s9756_s5 + $0x1d0] sm:$0xff]  ;;  %626 = vmatpush.msra.mxu0 %v584_v56 }
   0xa   :  { %v414_v18 = vld [vmem:[%s9755_s7 + $0x140] sm:$0xff]  ;;  %459 = vmatpush.msrb.mxu2 %v3882_v19  ;;  %v415_v27 = vld [vmem:[%s9755_s7 + $0x148] sm:$0xff]  ;;  %v131_v59 = vld [vmem:[%s9754_s3 + $0x10] sm:$0xff] }
   0xb   :  { %2917 = vmatmul.msk.f32.gmra.mxu0 %vm51_vm1, %v39_v3  ;;  %440 = vmatpush.msrb.mxu1 %v426_v13  ;;  %v410_v20 = vld [vmem:[%s9755_s7 + $0x120] sm:$0xff]  ;;  %v411_v29 = vld [vmem:[%s9755_s7 + $0x128] sm:$0xff]  ;;  %v4008_v60 = vld [vmem:[%s9755_s7 + $0x198] sm:$0xff] }
   0xc   :  { %460 = vmatpush.msrb.mxu2 %v427_v21  ;;  %v406_v22 = vld [vmem:[%s9755_s7 + $0x100] sm:$0xff]  ;;  %v407_v31 = vld [vmem:[%s9755_s7 + $0x108] sm:$0xff]  ;;  %v4018_v63 = vld [vmem:[%s9755_s7 + $0x178] sm:$0xff]  ;;  %627 = vmatpush.msra.mxu0 %v580_v58 }
   0xd   :  { %441 = vmatpush.msrb.mxu1 %v422_v15  ;;  %v402_v24 = vld [vmem:[%s9755_s7 + $0xe0] sm:$0xff]  ;;  %v403_v33 = vld [vmem:[%s9755_s7 + $0xe8] sm:$0xff]  ;;  %v576_v3 = vld [vmem:[%s9756_s5 + $0x1b0] sm:$0xff] }
   0xe   :  { %461 = vmatpush.msrb.mxu2 %v423_v23  ;;  %v398_v26 = vld [vmem:[%s9755_s7 + $0xc0] sm:$0xff]  ;;  %v399_v35 = vld [vmem:[%s9755_s7 + $0xc8] sm:$0xff]  ;;  %628 = vmatpush.msra.mxu0 %v576_v3  ;;  %v4066_v9 = vld [vmem:[%s9755_s7 + $0x1f0] sm:$0xff] }
   0xf   :  { %442 = vmatpush.msrb.mxu1 %v418_v16  ;;  %v394_v28 = vld [vmem:[%s9755_s7 + $0xa0] sm:$0xff]  ;;  %v395_v39 = vld [vmem:[%s9755_s7 + $0xa8] sm:$0xff]  ;;  %v4071_v10 = vld [vmem:[%s9755_s7 + $0x118] sm:$0xff] }
  0x10   :  { %462 = vmatpush.msrb.mxu2 %v419_v25  ;;  %v390_v30 = vld [vmem:[%s9755_s7 + $0x80] sm:$0xff]  ;;  %v391_v42 = vld [vmem:[%s9755_s7 + $0x88] sm:$0xff]  ;;  %v4081_v12 = vld [vmem:[%s9755_s7 + $0x1d0] sm:$0xff] }
  0x11   :  { %443 = vmatpush.msrb.mxu1 %v414_v18  ;;  %v386_v32 = vld [vmem:[%s9755_s7 + $0x60] sm:$0xff]  ;;  %v387_v43 = vld [vmem:[%s9755_s7 + $0x68] sm:$0xff]  ;;  %v4092_v15 = vld [vmem:[%s9755_s7 + $0xf8] sm:$0xff] }
  0x12   :  { %463 = vmatpush.msrb.mxu2 %v415_v27  ;;  %v382_v34 = vld [vmem:[%s9755_s7 + $0x40] sm:$0xff]  ;;  %v383_v44 = vld [vmem:[%s9755_s7 + $0x48] sm:$0xff]  ;;  %v4097_v16 = vld [vmem:[%s9756_s5 + $0x170] sm:$0xff] }
  0x13   :  { %2918 = vmatmul.msk.f32.gmra.mxu0 %vm51_vm1, %v40_v4  ;;  %444 = vmatpush.msrb.mxu1 %v410_v20  ;;  %v3936_v36 = vld [vmem:[%s9753_s2] ss:$0 sm:$0xff]  ;;  %v379_v49 = vld [vmem:[%s9755_s7 + $0x28] sm:$0xff]  ;;  %v4037_v4 = vld [vmem:[%s9755_s7 + $0x158] sm:$0xff] }
  0x14   :  { %464 = vmatpush.msrb.mxu2 %v411_v29  ;;  %v378_v38 = vld [vmem:[%s9755_s7 + $0x20] sm:$0xff]  ;;  %v375_v53 = vld [vmem:[%s9755_s7 + $0x8] sm:$0xff]  ;;  %v4106_v18 = vld [vmem:[%s9755_s7 + $0x1b0] sm:$0xff] }
  0x15   :  { %445 = vmatpush.msrb.mxu1 %v406_v22  ;;  %v374_v41 = vld [vmem:[%s9755_s7] sm:$0xff]  ;;  %v4119_v21 = vld [vmem:[%s9755_s7 + $0xd8] sm:$0xff]  ;;  %v4124_v22 = vld [vmem:[%s9756_s5 + $0x150] sm:$0xff] }
  0x16   :  { %465 = vmatpush.msrb.mxu2 %v407_v31  ;;  %v582_v54 = vld [vmem:[%s9756_s5 + $0x1e0] sm:$0xff]  ;;  %10235 = vst [vmem:[#allocation3_spill] sm:$0xff] %v4124_v22  ;;  %v4129_v23 = vld [vmem:[%s9755_s7 + $0x190] sm:$0xff]  ;;  %v4143_v25 = vld [vmem:[%s9755_s7 + $0xb8] sm:$0xff] }
  0x17   :  { %446 = vmatpush.msrb.mxu1 %v402_v24  ;;  %v578_v57 = vld [vmem:[%s9756_s5 + $0x1c0] sm:$0xff]  ;;  %v4155_v27 = vld [vmem:[%s9756_s5 + $0x130] sm:$0xff]  ;;  %v4290_v56 = vld [vmem:[%s9755_s7 + $0x18] sm:$0xff] }
  0x18   :  { %466 = vmatpush.msrb.mxu2 %v403_v33  ;;  %v574_v2 = vld [vmem:[%s9756_s5 + $0x1a0] sm:$0xff]  ;;  %10237 = vst [vmem:[#allocation5_spill] sm:$0xff] %v4155_v27  ;;  %v4164_v29 = vld [vmem:[%s9755_s7 + $0x150] sm:$0xff] }
  0x19   :  { %447 = vmatpush.msrb.mxu1 %v398_v26  ;;  %v4111_v20 = vld [vmem:[%s9756_s5 + $0x140] sm:$0xff]  ;;  %v4148_v26 = vld [vmem:[%s9755_s7 + $0x170] sm:$0xff] }
  0x1a   :  { %467 = vmatpush.msrb.mxu2 %v399_v35  ;;  %v4136_v24 = vld [vmem:[%s9756_s5 + $0x120] sm:$0xff]  ;;  %v4194_v35 = vld [vmem:[%s9756_s5 + $0x110] sm:$0xff] }
  0x1b   :  { %2919 = vmatmul.msk.f32.gmra.mxu0 %vm51_vm1, %v41_v5  ;;  %448 = vmatpush.msrb.mxu1 %v394_v28  ;;  %v4045_v5 = vld [vmem:[%s9756_s5 + $0x180] sm:$0xff]  ;;  %10236 = vst [vmem:[#allocation4_spill] sm:$0xff] %v4136_v24 }
  0x1c   :  { %468 = vmatpush.msrb.mxu2 %v395_v39  ;;  %v4180_v33 = vld [vmem:[%s9756_s5 + $0x100] sm:$0xff]  ;;  %10239 = vst [vmem:[#allocation7_spill] sm:$0xff] %v4194_v35  ;;  %v4212_v39 = vld [vmem:[%s9755_s7 + $0x110] sm:$0xff] }
  0x1d   :  { %449 = vmatpush.msrb.mxu1 %v390_v30  ;;  %10238 = vst [vmem:[#allocation6_spill] sm:$0xff] %v4180_v33  ;;  %v4302_v58 = vld [vmem:[%s9756_s5 + $0x80] sm:$0xff] }
  0x1e   :  { %469 = vmatpush.msrb.mxu2 %v391_v42  ;;  %v4231_v42 = vld [vmem:[%s9755_s7 + $0xf0] sm:$0xff]  ;;  %10246 = vst [vmem:[#allocation14_spill] sm:$0xff] %v4302_v58 }
  0x1f   :  { %450 = vmatpush.msrb.mxu1 %v386_v32  ;;  %v4175_v32 = vld [vmem:[%s9755_s7 + $0x98] sm:$0xff] }
  0x20   :  { %470 = vmatpush.msrb.mxu2 %v387_v43  ;;  %v4238_v43 = vld [vmem:[%s9756_s5 + $0xc0] sm:$0xff] }
  0x21   :  { %451 = vmatpush.msrb.mxu1 %v382_v34  ;;  %v4189_v34 = vld [vmem:[%s9755_s7 + $0x130] sm:$0xff]  ;;  %10242 = vst [vmem:[#allocation10_spill] sm:$0xff] %v4238_v43 }
  0x22   :  { %471 = vmatpush.msrb.mxu2 %v383_v44 }
  0x23   :  { %2920 = vmatmul.msk.f32.gmra.mxu0 %vm51_vm1, %v42_v6  ;;  %452 = vmatpush.msrb.mxu1 %v378_v38  ;;  %v4050_v6 = vld [vmem:[%s9756_s5 + $0x190] sm:$0xff]  ;;  %v4207_v38 = vld [vmem:[%s9756_s5 + $0xe0] sm:$0xff] }
  0x24   :  { %472 = vmatpush.msrb.mxu2 %v379_v49  ;;  %629 = vmatpush.msra.mxu0 %v4050_v6  ;;  %10240 = vst [vmem:[#allocation8_spill] sm:$0xff] %v4207_v38  ;;  %v4258_v49 = vld [vmem:[%s9756_s5 + $0xd0] sm:$0xff] }
  0x25   :  { %453 = vmatpush.msrb.mxu1 %v374_v41  ;;  %v4226_v41 = vld [vmem:[%s9755_s7 + $0x58] sm:$0xff]  ;;  %10243 = vst [vmem:[#allocation11_spill] sm:$0xff] %v4258_v49 }
  0x26   :  { %473 = vmatpush.msrb.mxu2 %v375_v53  ;;  %630 = vmatpush.msra.mxu0 %v4097_v16  ;;  %v4277_v53 = vld [vmem:[%s9756_s5 + $0xa0] sm:$0xff] }
  0x27   :  { %10244 = vst [vmem:[#allocation12_spill] sm:$0xff] %v4277_v53 }
  0x28   :  { %631 = vmatpush.msra.mxu0 %v4124_v22 }
  0x2a   :  { %632 = vmatpush.msra.mxu0 %v4155_v27 }
  0x2b   :  { %2921 = vmatmul.msk.f32.gmra.mxu0 %vm51_vm1, %v43_v7  ;;  %v4055_v7 = vld [vmem:[%s9755_s7 + $0x138] sm:$0xff] }
  0x2c   :  { %633 = vmatpush.msra.mxu0 %v4194_v35  ;;  %v4512_v35 = vld [vmem:[%s9756_s5 + $0x118] sm:$0xff] }
  0x2d   :  { %10264 = vst [vmem:[#allocation31_spill] sm:$0xff] %v4512_v35 }
  0x33   :  { %2922 = vmatmul.msk.f32.gmra.mxu0 %vm51_vm1, %v44_v8  ;;  %v4061_v8 = vld [vmem:[%s9756_s5 + $0x160] sm:$0xff] }
  0x80   :  { %v97_v37 = vpop.f32.mrf.mxu0 }
  0x81   :  { %v98_v40 = vadd.f32 %v3936_v36, %v97_v37  ;;  %v4202_v37 = vld [vmem:[%s9755_s7 + $0x78] sm:$0xff] }
  0x83   :  { %2962 = vtanh.f32 %v98_v40  ;;  %v4219_v40 = vld [vmem:[%s9756_s5 + $0xf0] sm:$0xff] }
  0x84   :  { %10241 = vst [vmem:[#allocation9_spill] sm:$0xff] %v4219_v40  ;;  %634 = vmatpush.msra.mxu0 %v4219_v40  ;;  %v4500_v40 = vld [vmem:[%s9756_s5 + $0xc8] sm:$0xff] }
  0x85   :  { %10262 = vst [vmem:[#allocation29_spill] sm:$0xff] %v4500_v40 }
  0x86   :  { %v118_v45 = vpop.f32.mrf.mxu3  ;;  %635 = vmatpush.msra.mxu0 %v4258_v49  ;;  %v4486_v49 = vld [vmem:[%s9756_s5 + $0xe8] sm:$0xff] }
  0x87   :  { %v119_v46 = vadd.f32 %v3936_v36, %v118_v45  ;;  %v4247_v45 = vld [vmem:[%s9755_s7 + $0xd0] sm:$0xff]  ;;  %10259 = vst [vmem:[#allocation27_spill] sm:$0xff] %v4486_v49 }
  0x88   :  { %v100_v47 = vpop.f32.mrf.mxu0 }
  0x89   :  { %v3966_v50 = vpop.eup %2962  ;;  %2964 = vtanh.f32 %v119_v46  ;;  %v101_v51 = vadd.f32 %v3936_v36, %v100_v47 }
  0x8a   :  { %2924 = vmatmul.msk.f32.vlgmr.msra.gmra.mxu1 %vm143_vm2, %v3966_v50  ;;  %2932 = vmatmul.msk.f32.vlgmr.msra.gmra.mxu2 %vm143_vm2, %v3966_v50 }
  0x8b   :  { %2966 = vtanh.f32 %v101_v51  ;;  %2948 = vmatmul.msk.f32.vlgmr.msrb.gmra.mxu0 %vm143_vm2, %v3966_v50  ;;  %498 = vmatpush.msra.mxu1 %v3961_v48  ;;  %v4272_v51 = vld [vmem:[%s9755_s7 + $0xb0] sm:$0xff] }
  0x8c   :  { %586 = vmatpush.msra.mxu2 %v582_v54  ;;  %v4285_v54 = vld [vmem:[%s9756_s5 + $0xb0] sm:$0xff] }
  0x8d   :  { %499 = vmatpush.msra.mxu1 %v3976_v52  ;;  %10245 = vst [vmem:[#allocation13_spill] sm:$0xff] %v4285_v54  ;;  %636 = vmatpush.msra.mxu0 %v4285_v54  ;;  %v4472_v54 = vld [vmem:[%s9756_s5 + $0x108] sm:$0xff] }
  0x8e   :  { %587 = vmatpush.msra.mxu2 %v578_v57  ;;  %v4297_v57 = vld [vmem:[%s9755_s7 + $0x90] sm:$0xff]  ;;  %10258 = vst [vmem:[#allocation26_spill] sm:$0xff] %v4472_v54 }
  0x8f   :  { %v4010_v61 = vpop.eup %2964  ;;  %500 = vmatpush.msra.mxu1 %v3990_v55 }
  0x90   :  { %v103_v62 = vpop.f32.mrf.mxu0  ;;  %2931 = vmatmul.msk.f32.vlgmr.msrb.gmra.mxu3 %vm143_vm2, %v4010_v61  ;;  %588 = vmatpush.msra.mxu2 %v574_v2  ;;  %v4331_v2 = vld [vmem:[%s9755_s7 + $0x50] sm:$0xff] }
  0x91   :  { %v4020_v0 = vpop.eup %2966  ;;  %v104_v1 = vadd.f32 %v3936_v36, %v103_v62  ;;  %265 = vmatpush.msrb.mxu3 %v131_v59  ;;  %501 = vmatpush.msra.mxu1 %v4008_v60  ;;  %v4309_v59 = vld [vmem:[%s9756_s5 + $0x90] sm:$0xff] }
  0x92   :  { %2925 = vmatmul.msk.f32.gmra.mxu1 %vm143_vm2, %v4020_v0  ;;  %2933 = vmatmul.msk.f32.gmra.mxu2 %vm143_vm2, %v4020_v0  ;;  %10247 = vst [vmem:[#allocation15_spill] sm:$0xff] %v4309_v59  ;;  %v4316_v62 = vld [vmem:[%s9755_s7 + $0x70] sm:$0xff] }
  0x93   :  { %2968 = vtanh.f32 %v104_v1  ;;  %2949 = vmatmul.msk.f32.gmra.mxu0 %vm143_vm2, %v4020_v0  ;;  %502 = vmatpush.msra.mxu1 %v4018_v63 }
  0x94   :  { %589 = vmatpush.msra.mxu2 %v4045_v5  ;;  %637 = vmatpush.msra.mxu0 %v4309_v59  ;;  %v4454_v59 = vld [vmem:[%s9756_s5 + $0x128] sm:$0xff] }
  0x95   :  { %503 = vmatpush.msra.mxu1 %v4037_v4  ;;  %10257 = vst [vmem:[#allocation25_spill] sm:$0xff] %v4454_v59 }
  0x96   :  { %590 = vmatpush.msra.mxu2 %v4061_v8 }
  0x97   :  { %504 = vmatpush.msra.mxu1 %v4055_v7 }
  0x98   :  { %v106_v11 = vpop.f32.mrf.mxu0  ;;  %2939 = vmatmul.msk.f32.vlgmr.msra.gmra.mxu3 %vm143_vm2, %v4010_v61  ;;  %591 = vmatpush.msra.mxu2 %v4111_v20 }
  0x99   :  { %v4084_v13 = vpop.eup %2968  ;;  %v107_v14 = vadd.f32 %v3936_v36, %v106_v11  ;;  %478 = vmatpush.msra.mxu3 %v4066_v9  ;;  %505 = vmatpush.msra.mxu1 %v4071_v10 }
  0x9a   :  { %2926 = vmatmul.msk.f32.gmra.mxu1 %vm143_vm2, %v4084_v13  ;;  %2934 = vmatmul.msk.f32.gmra.mxu2 %vm143_vm2, %v4084_v13 }
  0x9b   :  { %2970 = vtanh.f32 %v107_v14  ;;  %2950 = vmatmul.msk.f32.gmra.mxu0 %vm143_vm2, %v4084_v13  ;;  %479 = vmatpush.msra.mxu3 %v4081_v12  ;;  %v4339_v14 = vld [vmem:[%s9756_s5 + $0x70] sm:$0xff] }
  0x9c   :  { %506 = vmatpush.msra.mxu1 %v4092_v15  ;;  %592 = vmatpush.msra.mxu2 %v4136_v24  ;;  %10249 = vst [vmem:[#allocation17_spill] sm:$0xff] %v4339_v14 }
  0x9d   :  { %480 = vmatpush.msra.mxu3 %v4106_v18  ;;  %638 = vmatpush.msra.mxu0 %v4339_v14  ;;  %v4439_v14 = vld [vmem:[%s9756_s5 + $0x148] sm:$0xff] }
  0x9e   :  { %507 = vmatpush.msra.mxu1 %v4119_v21  ;;  %593 = vmatpush.msra.mxu2 %v4180_v33  ;;  %10256 = vst [vmem:[#allocation24_spill] sm:$0xff] %v4439_v14  ;;  %v4530_v33 = vld [vmem:[%s9756_s5 + $0x88] sm:$0xff] }
  0x9f   :  { %481 = vmatpush.msra.mxu3 %v4129_v23  ;;  %10267 = vst [vmem:[#allocation34_spill] sm:$0xff] %v4530_v33 }
  0xa0   :  { %v109_v28 = vpop.f32.mrf.mxu0  ;;  %2940 = vmatmul.msk.f32.vlgmr.msrb.gmra.mxu3 %vm143_vm2, %v3966_v50  ;;  %508 = vmatpush.msra.mxu1 %v4143_v25  ;;  %v4263_v50 = vld [vmem:[%s9755_s7 + $0x38] sm:$0xff] }
  0xa1   :  { %v4167_v30 = vpop.eup %2970  ;;  %v110_v31 = vadd.f32 %v3936_v36, %v109_v28  ;;  %482 = vmatpush.msra.mxu3 %v4148_v26  ;;  %594 = vmatpush.msra.mxu2 %v4207_v38  ;;  %v4358_v28 = vld [vmem:[%s9756_s5 + $0x50] sm:$0xff]  ;;  %v4505_v38 = vld [vmem:[%s9756_s5 + $0x138] sm:$0xff] }
  0xa2   :  { %2927 = vmatmul.msk.f32.gmra.mxu1 %vm143_vm2, %v4167_v30  ;;  %2935 = vmatmul.msk.f32.gmra.mxu2 %vm143_vm2, %v4167_v30  ;;  %10251 = vst [vmem:[#allocation19_spill] sm:$0xff] %v4358_v28 }
  0xa3   :  { %2972 = vtanh.f32 %v110_v31  ;;  %2951 = vmatmul.msk.f32.gmra.mxu0 %vm143_vm2, %v4167_v30  ;;  %483 = vmatpush.msra.mxu3 %v4164_v29  ;;  %v4363_v31 = vld [vmem:[%s9756_s5 + $0x20] sm:$0xff]  ;;  %10263 = vst [vmem:[#allocation30_spill] sm:$0xff] %v4505_v38 }
  0xa4   :  { %509 = vmatpush.msra.mxu1 %v4175_v32  ;;  %595 = vmatpush.msra.mxu2 %v4238_v43  ;;  %10252 = vst [vmem:[#allocation20_spill] sm:$0xff] %v4363_v31  ;;  %v10260_v43 = vmov 0.0  }
  0xa5   :  { %484 = vmatpush.msra.mxu3 %v4189_v34  ;;  %639 = vmatpush.msra.mxu0 %v4358_v28 }
  0xa6   :  { %510 = vmatpush.msra.mxu1 %v4202_v37  ;;  %596 = vmatpush.msra.mxu2 %v4277_v53  ;;  %v4479_v53 = vld [vmem:[%s9756_s5 + $0x178] sm:$0xff] }
  0xa7   :  { %485 = vmatpush.msra.mxu3 %v4212_v39 }
  0xa8   :  { %v112_v44 = vpop.f32.mrf.mxu0  ;;  %2941 = vmatmul.msk.f32.gmra.mxu3 %vm143_vm2, %v4020_v0  ;;  %511 = vmatpush.msra.mxu1 %v4226_v41  ;;  %v4321_v0 = vld [vmem:[%s9756_s5 + $0x60] sm:$0xff] }
  0xa9   :  { %v4250_v46 = vpop.eup %2972  ;;  %v113_v47 = vadd.f32 %v3936_v36, %v112_v44  ;;  %486 = vmatpush.msra.mxu3 %v4231_v42  ;;  %10248 = vst [vmem:[#allocation16_spill] sm:$0xff] %v4321_v0  ;;  %597 = vmatpush.msra.mxu2 %v4302_v58  ;;  %v4370_v44 = vld [vmem:[%s9755_s7 + $0x10] sm:$0xff]  ;;  %v4459_v58 = vld [vmem:[%s9756_s5 + $0x1b8] sm:$0xff] }
  0xaa   :  { %2928 = vmatmul.msk.f32.gmra.mxu1 %vm143_vm2, %v4250_v46  ;;  %2936 = vmatmul.msk.f32.gmra.mxu2 %vm143_vm2, %v4250_v46 }
  0xab   :  { %2974 = vtanh.f32 %v113_v47  ;;  %2952 = vmatmul.msk.f32.gmra.mxu0 %vm143_vm2, %v4250_v46  ;;  %487 = vmatpush.msra.mxu3 %v4247_v45  ;;  %v4376_v47 = vld [vmem:[%s9756_s5 + $0x30] sm:$0xff] }
  0xac   :  { %512 = vmatpush.msra.mxu1 %v4263_v50  ;;  %598 = vmatpush.msra.mxu2 %v4321_v0  ;;  %10253 = vst [vmem:[#allocation21_spill] sm:$0xff] %v4376_v47  ;;  %v9773_v0 = vmov 0.0  }
  0xad   :  { %488 = vmatpush.msra.mxu3 %v4272_v51  ;;  %640 = vmatpush.msra.mxu0 %v4376_v47  ;;  %v4425_v47 = vld [vmem:[%s9756_s5 + $0x168] sm:$0xff] }
  0xae   :  { %513 = vmatpush.msra.mxu1 %v4290_v56 }
  0xaf   :  { %489 = vmatpush.msra.mxu3 %v4297_v57 }
  0xb0   :  { %v115_v1 = vpop.f32.mrf.mxu0  ;;  %2942 = vmatmul.msk.f32.gmra.mxu3 %vm143_vm2, %v4084_v13  ;;  %v4344_v13 = vld [vmem:[%s9756_s5 + $0x40] sm:$0xff] }
  0xb1   :  { %v2975_v3 = vpop.eup %2974  ;;  %v116_v11 = vadd.f32 %v3936_v36, %v115_v1  ;;  %490 = vmatpush.msra.mxu3 %v4316_v62  ;;  %10250 = vst [vmem:[#allocation18_spill] sm:$0xff] %v4344_v13  ;;  %v4351_v36 = vld [vmem:[%s9755_s7 + $0x30] sm:$0xff]  ;;  %599 = vmatpush.msra.mxu2 %v4344_v13  ;;  %v4383_v1 = vld [vmem:[%s9756_s5] sm:$0xff] }
  0xb2   :  { %2929 = vmatmul.msk.f32.gmra.mxu1 %vm143_vm2, %v2975_v3  ;;  %2937 = vmatmul.msk.f32.gmra.mxu2 %vm143_vm2, %v2975_v3  ;;  %10254 = vst [vmem:[#allocation22_spill] sm:$0xff] %v4383_v1  ;;  %v4404_v13 = vld [vmem:[%s9756_s5 + $0x10] sm:$0xff] }
  0xb3   :  { %2976 = vtanh.f32 %v116_v11  ;;  %2953 = vmatmul.msk.f32.gmra.mxu0 %vm143_vm2, %v2975_v3  ;;  %491 = vmatpush.msra.mxu3 %v4331_v2  ;;  %v4388_v11 = vld [vmem:[%s9756_s5 + $0x1e8] sm:$0xff]  ;;  %10255 = vst [vmem:[#allocation23_spill] sm:$0xff] %v4404_v13 }
  0xb4   :  { %600 = vmatpush.msra.mxu2 %v4363_v31  ;;  %v4397_v31 = vld [vmem:[%s9756_s5 + $0x1c8] sm:$0xff]  ;;  %641 = vmatpush.msra.mxu0 %v4404_v13  ;;  %v4433_v13 = vld [vmem:[%s9756_s5 + $0x1f8] sm:$0xff] }
  0xb5   :  { %492 = vmatpush.msra.mxu3 %v4351_v36 }
  0xb6   :  { %601 = vmatpush.msra.mxu2 %v4383_v1  ;;  %v4419_v1 = vld [vmem:[%s9756_s5 + $0x188] sm:$0xff] }
  0xb7   :  { %493 = vmatpush.msra.mxu3 %v4370_v44 }
  0xb8   :  { %2943 = vmatmul.msk.f32.gmra.mxu3 %vm143_vm2, %v4167_v30  ;;  %v4411_v30 = vld [vmem:[%s9756_s5 + $0x1a8] sm:$0xff] }
  0xb9   :  { %v2977_v28 = vpop.eup %2976  ;;  %606 = vmatpush.msrb.mxu3 %v4388_v11 }
  0xba   :  { %2930 = vmatmul.msk.f32.gmra.mxu1 %vm143_vm2, %v2977_v28  ;;  %2938 = vmatmul.msk.f32.gmra.mxu2 %vm143_vm2, %v2977_v28 }
  0xbb   :  { %2954 = vmatmul.msk.f32.gmra.mxu0 %vm143_vm2, %v2977_v28  ;;  %607 = vmatpush.msrb.mxu3 %v4397_v31 }
  0xbd   :  { %608 = vmatpush.msrb.mxu3 %v4411_v30 }
  0xbf   :  { %609 = vmatpush.msrb.mxu3 %v4419_v1 }
  0xc0   :  { %2944 = vmatmul.msk.f32.gmra.mxu3 %vm143_vm2, %v4250_v46  ;;  %v4446_v46 = vld [vmem:[%s9756_s5 + $0x1d8] sm:$0xff] }
  0xc1   :  { %610 = vmatpush.msrb.mxu3 %v4425_v47 }
  0xc2   :  { %454 = vmatmul.f32.vlgmr.msrb.gmra.mxu1 %v9773_v0  ;;  %474 = vmatmul.f32.vlgmr.msrb.gmra.mxu2 %v9773_v0  ;;  %v4466_v0 = vld [vmem:[%s9756_s5 + $0x198] sm:$0xff] }
  0xc3   :  { %2955 = vmatmul.msk.f32.gmra.mxu0 %vm143_vm2, %v4010_v61  ;;  %646 = vmatpush.msrb.mxu1 %v4433_v13 }
  0xc4   :  { %611 = vmatpush.msrb.mxu3 %v4439_v14 }
  0xc5   :  { %647 = vmatpush.msrb.mxu1 %v4446_v46 }
  0xc6   :  { %612 = vmatpush.msrb.mxu3 %v4454_v59 }
  0xc7   :  { %648 = vmatpush.msrb.mxu1 %v4459_v58 }
  0xc8   :  { %2945 = vmatmul.msk.f32.gmra.mxu3 %vm143_vm2, %v2975_v3  ;;  %v4492_v3 = vld [vmem:[%s9756_s5 + $0x158] sm:$0xff] }
  0xc9   :  { %649 = vmatpush.msrb.mxu1 %v4466_v0  ;;  %613 = vmatpush.msrb.mxu3 %v4472_v54  ;;  %10261 = vst [vmem:[#allocation28_spill] sm:$0xff] %v4492_v3  ;;  %v4518_v54 = vld [vmem:[%s9756_s5 + $0xa8] sm:$0xff] }
  0xca   :  { %602 = vmatmul.f32.vlgmr.msra.gmra.mxu2 %v10260_v43  ;;  %514 = vmatmul.f32.vlgmr.msra.gmra.mxu1 %v10260_v43  ;;  %10265 = vst [vmem:[#allocation32_spill] sm:$0xff] %v4518_v54 }
  0xcb   :  { %642 = vmatmul.f32.vlgmr.msra.gmra.mxu0 %v10260_v43  ;;  %650 = vmatpush.msrb.mxu1 %v4479_v53 }
  0xcc   :  { %614 = vmatpush.msrb.mxu3 %v4486_v49  ;;  %v4525_v49 = vld [vmem:[%s9756_s5 + $0xf8] sm:$0xff] }
  0xcd   :  { %651 = vmatpush.msrb.mxu1 %v4492_v3  ;;  %10266 = vst [vmem:[#allocation33_spill] sm:$0xff] %v4525_v49 }
  0xce   :  { %615 = vmatpush.msrb.mxu3 %v4500_v40  ;;  %v4537_v40 = vld [vmem:[%s9756_s5 + $0xd8] sm:$0xff] }
  0xcf   :  { %652 = vmatpush.msrb.mxu1 %v4505_v38  ;;  %10268 = vst [vmem:[#allocation35_spill] sm:$0xff] %v4537_v40 }
  0xd0   :  { %2946 = vmatmul.msk.f32.gmra.mxu3 %vm143_vm2, %v2977_v28  ;;  %v4542_v28 = vld [vmem:[%s9756_s5 + $0x68] sm:$0xff] }
  0xd1   :  { %653 = vmatpush.msrb.mxu1 %v4512_v35  ;;  %616 = vmatpush.msrb.mxu3 %v4518_v54  ;;  %10269 = vst [vmem:[#allocation36_spill] sm:$0xff] %v4542_v28  ;;  %v4549_v35 = vld [vmem:[%s9756_s5 + $0xb8] sm:$0xff]  ;;  %v4554_v54 = vld [vmem:[%s9756_s5 + $0x48] sm:$0xff] }
  0xd2   :  { %10270 = vst [vmem:[#allocation37_spill] sm:$0xff] %v4549_v35 }
  0xd3   :  { %654 = vmatpush.msrb.mxu1 %v4525_v49  ;;  %617 = vmatpush.msrb.mxu3 %v4530_v33  ;;  %10271 = vst [vmem:[#allocation38_spill] sm:$0xff] %v4554_v54  ;;  %v4561_v49 = vld [vmem:[%s9756_s5 + $0x98] sm:$0xff]  ;;  %v4566_v33 = vld [vmem:[%s9756_s5 + $0x28] sm:$0xff] }
  0xd4   :  { %10272 = vst [vmem:[#allocation39_spill] sm:$0xff] %v4561_v49 }
  0xd5   :  { %655 = vmatpush.msrb.mxu1 %v4537_v40  ;;  %618 = vmatpush.msrb.mxu3 %v4542_v28  ;;  %10273 = vst [vmem:[#allocation40_spill] sm:$0xff] %v4566_v33  ;;  %v4575_v28 = vld [vmem:[%s9756_s5 + $0x78] sm:$0xff]  ;;  %v4580_v40 = vld [vmem:[%s9756_s5 + $0x8] sm:$0xff] }
  0xd6   :  { %10274 = vst [vmem:[#allocation41_spill] sm:$0xff] %v4575_v28 }
  0xd7   :  { %656 = vmatpush.msrb.mxu1 %v4549_v35  ;;  %619 = vmatpush.msrb.mxu3 %v4554_v54  ;;  %10275 = vst [vmem:[#allocation42_spill] sm:$0xff] %v4580_v40  ;;  %v4587_v54 = vld [vmem:[%s9756_s5 + $0x58] sm:$0xff] }
  0xd8   :  { %2947 = vmatmul.msk.f32.gmra.mxu3 %vm143_vm2, %v4010_v61  ;;  %10276 = vst [vmem:[#allocation43_spill] sm:$0xff] %v4587_v54  ;;  %v4594_v61 = vld [vmem:[%s9756_s5 + $0x38] sm:$0xff] }
  0xd9   :  { %657 = vmatpush.msrb.mxu1 %v4561_v49  ;;  %620 = vmatpush.msrb.mxu3 %v4566_v33  ;;  %10277 = vst [vmem:[#allocation44_spill] sm:$0xff] %v4594_v61  ;;  %v4600_v33 = vld [vmem:[%s9756_s5 + $0x18] sm:$0xff] }
  0xda   :  { %10278 = vst [vmem:[#allocation45_spill] sm:$0xff] %v4600_v33 }
  0xdb   :  { %658 = vmatpush.msrb.mxu1 %v4575_v28  ;;  %621 = vmatpush.msrb.mxu3 %v4580_v40 }
  0xdd   :  { %659 = vmatpush.msrb.mxu1 %v4587_v54 }
  0xdf   :  { %660 = vmatpush.msrb.mxu1 %v4594_v61 }
  0xe0   :  { %494 = vmatmul.f32.vlgmr.msra.gmra.mxu3 %v10260_v43 }
  0xe1   :  { %661 = vmatpush.msrb.mxu1 %v4600_v33 }
  0xe2   :  { %662 = vmatmul.f32.vlgmr.msrb.gmra.mxu1 %v10260_v43 }
  0xe8   :  { %622 = vmatmul.f32.vlgmr.msrb.gmra.mxu3 %v10260_v43 }
 0x107   :  { %v4611_v54 = vpop.f32.mrf.mxu1 }
 0x108   :  { %v4607_v40 = vpop.f32.mrf.mxu0 }
 0x10d   :  { %v4613_v49 = vpop.f32.mrf.mxu2 }
 0x10f   :  { %v4619_v61 = vpop.f32.mrf.mxu1 }
 0x110   :  { %v4609_v28 = vpop.f32.mrf.mxu0  ;;  %10282 = vst [vmem:[#allocation49_spill] sm:$0xff] %v4619_v61 }
 0x111   :  { %10279 = vst [vmem:[#allocation46_spill] sm:$0xff] %v4609_v28 }
 0x113   :  { %v4615_v35 = vpop.f32.mrf.mxu3 }
 0x114   :  { %10280 = vst [vmem:[#allocation47_spill] sm:$0xff] %v4615_v35 }
 0x115   :  { %v4621_v27 = vpop.f32.mrf.mxu2 }
 0x116   :  { %10283 = vst [vmem:[#allocation50_spill] sm:$0xff] %v4621_v27 }
 0x117   :  { %v4629_v24 = vpop.f32.mrf.mxu1 }
 0x118   :  { %v4617_v38 = vpop.f32.mrf.mxu0  ;;  %10286 = vst [vmem:[#allocation53_spill] sm:$0xff] %v4629_v24 }
 0x119   :  { %10281 = vst [vmem:[#allocation48_spill] sm:$0xff] %v4617_v38 }
 0x11b   :  { %v4623_v33 = vpop.f32.mrf.mxu3 }
 0x11c   :  { %10284 = vst [vmem:[#allocation51_spill] sm:$0xff] %v4623_v33 }
 0x11d   :  { %v4631_v28 = vpop.f32.mrf.mxu2 }
 0x11e   :  { %10287 = vst [vmem:[#allocation54_spill] sm:$0xff] %v4631_v28  ;;  %v4709_v28 = vld [vmem:[%s9758_s6 + $0x1d0] sm:$0xff] }
 0x11f   :  { %v4637_v35 = vpop.f32.mrf.mxu1  ;;  %10310 = vst [vmem:[#allocation77_spill] sm:$0xff] %v4709_v28 }
 0x120   :  { %v4625_v59 = vpop.f32.mrf.mxu0  ;;  %10290 = vst [vmem:[#allocation57_spill] sm:$0xff] %v4637_v35 }
 0x121   :  { %10285 = vst [vmem:[#allocation52_spill] sm:$0xff] %v4625_v59 }
 0x123   :  { %v4627_v43 = vpop.f32.mrf.mxu3 }
 0x125   :  { %v4639_v38 = vpop.f32.mrf.mxu2 }
 0x126   :  { %10291 = vst [vmem:[#allocation58_spill] sm:$0xff] %v4639_v38 }
 0x127   :  { %v4645_v33 = vpop.f32.mrf.mxu1 }
 0x128   :  { %v4633_v3 = vpop.f32.mrf.mxu0  ;;  %10294 = vst [vmem:[#allocation61_spill] sm:$0xff] %v4645_v33 }
 0x129   :  { %10288 = vst [vmem:[#allocation55_spill] sm:$0xff] %v4633_v3  ;;  %v4656_v3 = vld [vmem:[%s9757_s4] sm:$0xf] }
 0x12a   :  { %v4659_v35 = vperm.slane %v4656_v3, 3 }
 0x12b   :  { %v4635_v22 = vpop.f32.mrf.mxu3 }
 0x12c   :  { %10289 = vst [vmem:[#allocation56_spill] sm:$0xff] %v4635_v22 }
 0x12d   :  { %v4649_v14 = vpop.f32.mrf.mxu2  ;;  %10298 = vst [vmem:[#allocation65_spill] sm:$0xff] %v4659_v35 }
 0x12e   :  { %10296 = vst [vmem:[#allocation63_spill] sm:$0xff] %v4649_v14  ;;  %v4673_v14 = vld [vmem:[%s9758_s6 + $0x1e0] sm:$0xff] }
 0x12f   :  { %10303 = vst [vmem:[#allocation70_spill] sm:$0xff] %v4673_v14  ;;  %752 = vmatpush.msrb.mxu2 %v4673_v14 }
 0x130   :  { %v4641_v61 = vpop.f32.mrf.mxu0 }
 0x131   :  { %10292 = vst [vmem:[#allocation59_spill] sm:$0xff] %v4641_v61 }
 0x133   :  { %v4643_v27 = vpop.f32.mrf.mxu3 }
 0x134   :  { %10293 = vst [vmem:[#allocation60_spill] sm:$0xff] %v4643_v27  ;;  %v4664_v27 = vpop.f32.mrf.mxu1 }
 0x135   :  { %10300 = vst [vmem:[#allocation67_spill] sm:$0xff] %v4664_v27  ;;  %v4666_v33 = vpop.f32.mrf.mxu2 }
 0x136   :  { %10301 = vst [vmem:[#allocation68_spill] sm:$0xff] %v4666_v33  ;;  %v4699_v33 = vld [vmem:[%s9758_s6 + $0x1c0] sm:$0xff] }
 0x137   :  { %10308 = vst [vmem:[#allocation75_spill] sm:$0xff] %v4699_v33  ;;  %753 = vmatpush.msrb.mxu2 %v4699_v33  ;;  %v4853_v33 = vld [vmem:[%s9758_s6 + $0x100] sm:$0xff] }
 0x138   :  { %v4647_v59 = vpop.f32.mrf.mxu0  ;;  %10337 = vst [vmem:[#allocation104_spill] sm:$0xff] %v4853_v33 }
 0x139   :  { %10295 = vst [vmem:[#allocation62_spill] sm:$0xff] %v4647_v59 }
 0x13b   :  { %v4651_v24 = vpop.f32.mrf.mxu3 }
 0x13c   :  { %10297 = vst [vmem:[#allocation64_spill] sm:$0xff] %v4651_v24  ;;  %v4678_v24 = vld [vmem:[%s9758_s6 + $0x1e8] sm:$0xff] }
 0x13d   :  { %10304 = vst [vmem:[#allocation71_spill] sm:$0xff] %v4678_v24  ;;  %772 = vmatpush.msra.mxu3 %v4678_v24  ;;  %v4718_v22 = vpop.f32.mrf.mxu2  ;;  %v4903_v24 = vld [vmem:[%s9758_s6 + $0xc0] sm:$0xff] }
 0x13e   :  { %10312 = vst [vmem:[#allocation79_spill] sm:$0xff] %v4718_v22  ;;  %v4737_v22 = vld [vmem:[%s9758_s6 + $0x1b0] sm:$0xff] }
 0x13f   :  { %10316 = vst [vmem:[#allocation83_spill] sm:$0xff] %v4737_v22 }
 0x140   :  { %v329_v38 = vpop.f32.mrf.mxu0  ;;  %10346 = vst [vmem:[#allocation113_spill] sm:$0xff] %v4903_v24 }
 0x141   :  { %v4662_v61 = vadd.f32 %v329_v38, %v4659_v35  ;;  %v4683_v38 = vld [vmem:[%s9758_s6 + $0x1f0] sm:$0xff] }
 0x142   :  { %10305 = vst [vmem:[#allocation72_spill] sm:$0xff] %v4683_v38  ;;  %792 = vmatpush.msrb.mxu0 %v4683_v38  ;;  %v4727_v38 = vld [vmem:[%s9758_s6 + $0x1a0] sm:$0xff] }
 0x143   :  { %10299 = vst [vmem:[#allocation66_spill] sm:$0xff] %v4662_v61  ;;  %v4668_v59 = vpop.f32.mrf.mxu3  ;;  %v4690_v61 = vld [vmem:[%s9758_s6 + $0x1f8] sm:$0xff]  ;;  %754 = vmatpush.msrb.mxu2 %v4727_v38 }
 0x144   :  { %10302 = vst [vmem:[#allocation69_spill] sm:$0xff] %v4668_v59  ;;  %812 = vmatpush.msra.mxu1 %v4690_v61  ;;  %v4704_v59 = vld [vmem:[%s9758_s6 + $0x1c8] sm:$0xff]  ;;  %793 = vmatpush.msrb.mxu0 %v4709_v28  ;;  %v4801_v28 = vld [vmem:[%s9758_s6 + $0x140] sm:$0xff] }
 0x145   :  { %10306 = vst [vmem:[#allocation73_spill] sm:$0xff] %v4690_v61  ;;  %773 = vmatpush.msra.mxu3 %v4704_v59  ;;  %v4720_v61 = vpop.f32.mrf.mxu1 }
 0x146   :  { %10309 = vst [vmem:[#allocation76_spill] sm:$0xff] %v4704_v59  ;;  %v4732_v59 = vld [vmem:[%s9758_s6 + $0x1a8] sm:$0xff]  ;;  %794 = vmatpush.msrb.mxu0 %v4737_v22  ;;  %v4775_v22 = vld [vmem:[%s9758_s6 + $0x160] sm:$0xff] }
 0x147   :  { %10313 = vst [vmem:[#allocation80_spill] sm:$0xff] %v4720_v61  ;;  %774 = vmatpush.msra.mxu3 %v4732_v59  ;;  %v4744_v61 = vld [vmem:[%s9758_s6 + $0x1b8] sm:$0xff] }
 0x148   :  { %10314 = vst [vmem:[#allocation81_spill] sm:$0xff] %v4727_v38  ;;  %v4756_v38 = vld [vmem:[%s9758_s6 + $0x188] sm:$0xff] }
 0x149   :  { %10315 = vst [vmem:[#allocation82_spill] sm:$0xff] %v4732_v59  ;;  %v4761_v59 = vld [vmem:[%s9758_s6 + $0x190] sm:$0xff]  ;;  %775 = vmatpush.msra.mxu3 %v4756_v38 }
 0x14a   :  { %10317 = vst [vmem:[#allocation84_spill] sm:$0xff] %v4744_v61  ;;  %795 = vmatpush.msrb.mxu0 %v4761_v59 }
 0x14b   :  { %v4692_v27 = vpop.f32.mrf.mxu3  ;;  %10319 = vst [vmem:[#allocation86_spill] sm:$0xff] %v4756_v38  ;;  %v4785_v38 = vld [vmem:[%s9758_s6 + $0x170] sm:$0xff] }
 0x14c   :  { %10307 = vst [vmem:[#allocation74_spill] sm:$0xff] %v4692_v27  ;;  %v4716_v27 = vld [vmem:[%s9758_s6 + $0x1d8] sm:$0xff]  ;;  %796 = vmatpush.msrb.mxu0 %v4785_v38 }
 0x14d   :  { %10311 = vst [vmem:[#allocation78_spill] sm:$0xff] %v4716_v27  ;;  %813 = vmatpush.msra.mxu1 %v4716_v27  ;;  %v4751_v27 = vld [vmem:[%s9758_s6 + $0x180] sm:$0xff] }
 0x14e   :  { %10318 = vst [vmem:[#allocation85_spill] sm:$0xff] %v4751_v27  ;;  %755 = vmatpush.msrb.mxu2 %v4751_v27  ;;  %v4780_v27 = vld [vmem:[%s9758_s6 + $0x168] sm:$0xff] }
 0x14f   :  { %814 = vmatpush.msra.mxu1 %v4744_v61  ;;  %10320 = vst [vmem:[#allocation87_spill] sm:$0xff] %v4761_v59  ;;  %v4768_v61 = vld [vmem:[%s9758_s6 + $0x198] sm:$0xff]  ;;  %776 = vmatpush.msra.mxu3 %v4780_v27 }
 0x150   :  { %10321 = vst [vmem:[#allocation88_spill] sm:$0xff] %v4768_v61  ;;  %756 = vmatpush.msrb.mxu2 %v4775_v22 }
 0x151   :  { %815 = vmatpush.msra.mxu1 %v4768_v61  ;;  %10322 = vst [vmem:[#allocation89_spill] sm:$0xff] %v4775_v22  ;;  %v4792_v61 = vld [vmem:[%s9758_s6 + $0x178] sm:$0xff]  ;;  %v4811_v22 = vld [vmem:[%s9758_s6 + $0x150] sm:$0xff] }
 0x152   :  { %10323 = vst [vmem:[#allocation90_spill] sm:$0xff] %v4780_v27  ;;  %v4806_v27 = vld [vmem:[%s9758_s6 + $0x148] sm:$0xff]  ;;  %757 = vmatpush.msrb.mxu2 %v4801_v28  ;;  %797 = vmatpush.msrb.mxu0 %v4811_v22 }
 0x153   :  { %10324 = vst [vmem:[#allocation91_spill] sm:$0xff] %v4785_v38  ;;  %v4794_v59 = vpop.f32.mrf.mxu3  ;;  %816 = vmatpush.msra.mxu1 %v4792_v61  ;;  %777 = vmatpush.msra.mxu3 %v4806_v27  ;;  %v4846_v38 = vpop.f32.mrf.mxu1 }
 0x154   :  { %10325 = vst [vmem:[#allocation92_spill] sm:$0xff] %v4792_v61  ;;  %v4825_v61 = vld [vmem:[%s9758_s6 + $0x120] sm:$0xff] }
 0x155   :  { %10326 = vst [vmem:[#allocation93_spill] sm:$0xff] %v4794_v59  ;;  %v4818_v59 = vld [vmem:[%s9758_s6 + $0x158] sm:$0xff]  ;;  %758 = vmatpush.msrb.mxu2 %v4825_v61 }
 0x156   :  { %10327 = vst [vmem:[#allocation94_spill] sm:$0xff] %v4801_v28  ;;  %817 = vmatpush.msra.mxu1 %v4818_v59  ;;  %v4830_v28 = vld [vmem:[%s9758_s6 + $0x128] sm:$0xff] }
 0x157   :  { %10328 = vst [vmem:[#allocation95_spill] sm:$0xff] %v4806_v27  ;;  %v4835_v27 = vld [vmem:[%s9758_s6 + $0x130] sm:$0xff]  ;;  %778 = vmatpush.msra.mxu3 %v4830_v28  ;;  %759 = vmatpush.msrb.mxu2 %v4853_v33  ;;  %v4882_v33 = vld [vmem:[%s9758_s6 + $0xe8] sm:$0xff] }
 0x158   :  { %10329 = vst [vmem:[#allocation96_spill] sm:$0xff] %v4811_v22  ;;  %v4844_v22 = vpop.f32.mrf.mxu2  ;;  %798 = vmatpush.msrb.mxu0 %v4835_v27 }
 0x159   :  { %10330 = vst [vmem:[#allocation97_spill] sm:$0xff] %v4818_v59  ;;  %v4842_v59 = vld [vmem:[%s9758_s6 + $0x138] sm:$0xff] }
 0x15a   :  { %10331 = vst [vmem:[#allocation98_spill] sm:$0xff] %v4825_v61  ;;  %818 = vmatpush.msra.mxu1 %v4842_v59  ;;  %v4863_v61 = vld [vmem:[%s9758_s6 + $0x110] sm:$0xff] }
 0x15b   :  { %10332 = vst [vmem:[#allocation99_spill] sm:$0xff] %v4830_v28  ;;  %v4858_v28 = vld [vmem:[%s9758_s6 + $0x108] sm:$0xff]  ;;  %799 = vmatpush.msrb.mxu0 %v4863_v61  ;;  %v4973_v14 = vpop.f32.mrf.mxu1 }
 0x15c   :  { %10333 = vst [vmem:[#allocation100_spill] sm:$0xff] %v4835_v27  ;;  %779 = vmatpush.msra.mxu3 %v4858_v28  ;;  %v4877_v27 = vld [vmem:[%s9758_s6 + $0xe0] sm:$0xff] }
 0x15d   :  { %10334 = vst [vmem:[#allocation101_spill] sm:$0xff] %v4842_v59  ;;  %v4870_v59 = vld [vmem:[%s9758_s6 + $0x118] sm:$0xff]  ;;  %760 = vmatpush.msrb.mxu2 %v4877_v27 }
 0x15e   :  { %10335 = vst [vmem:[#allocation102_spill] sm:$0xff] %v4844_v22  ;;  %819 = vmatpush.msra.mxu1 %v4870_v59  ;;  %780 = vmatpush.msra.mxu3 %v4882_v33  ;;  %v5008_v22 = vld [vmem:[%s9758_s6 + $0x40] sm:$0xff] }
 0x15f   :  { %10336 = vst [vmem:[#allocation103_spill] sm:$0xff] %v4846_v38  ;;  %761 = vmatpush.msrb.mxu2 %v4903_v24  ;;  %v4932_v24 = vld [vmem:[%s9758_s6 + $0xa8] sm:$0xff]  ;;  %v4980_v38 = vld [vmem:[%s9758_s6 + $0x60] sm:$0xff] }
 0x160   :  { %10338 = vst [vmem:[#allocation105_spill] sm:$0xff] %v4858_v28  ;;  %v4887_v28 = vld [vmem:[%s9758_s6 + $0xf0] sm:$0xff] }
 0x161   :  { %10339 = vst [vmem:[#allocation106_spill] sm:$0xff] %v4863_v61  ;;  %v4896_v61 = vpop.f32.mrf.mxu3  ;;  %800 = vmatpush.msrb.mxu0 %v4887_v28 }
 0x162   :  { %10340 = vst [vmem:[#allocation107_spill] sm:$0xff] %v4870_v59  ;;  %v4894_v59 = vld [vmem:[%s9758_s6 + $0xf8] sm:$0xff] }
 0x163   :  { %10341 = vst [vmem:[#allocation108_spill] sm:$0xff] %v4877_v27  ;;  %820 = vmatpush.msra.mxu1 %v4894_v59  ;;  %v4913_v27 = vld [vmem:[%s9758_s6 + $0xd0] sm:$0xff] }
 0x164   :  { %10342 = vst [vmem:[#allocation109_spill] sm:$0xff] %v4882_v33  ;;  %v4908_v33 = vld [vmem:[%s9758_s6 + $0xc8] sm:$0xff]  ;;  %801 = vmatpush.msrb.mxu0 %v4913_v27 }
 0x165   :  { %10343 = vst [vmem:[#allocation110_spill] sm:$0xff] %v4887_v28  ;;  %781 = vmatpush.msra.mxu3 %v4908_v33  ;;  %v4964_v28 = vperm.slane %v4656_v3, 0 }
 0x166   :  { %10344 = vst [vmem:[#allocation111_spill] sm:$0xff] %v4894_v59  ;;  %v4927_v59 = vld [vmem:[%s9758_s6 + $0xa0] sm:$0xff] }
 0x167   :  { %10345 = vst [vmem:[#allocation112_spill] sm:$0xff] %v4896_v61  ;;  %v4920_v61 = vld [vmem:[%s9758_s6 + $0xd8] sm:$0xff]  ;;  %762 = vmatpush.msrb.mxu2 %v4927_v59  ;;  %782 = vmatpush.msra.mxu3 %v4932_v24 }
 0x168   :  { %10347 = vst [vmem:[#allocation114_spill] sm:$0xff] %v4908_v33  ;;  %821 = vmatpush.msra.mxu1 %v4920_v61  ;;  %v4937_v33 = vld [vmem:[%s9758_s6 + $0xb0] sm:$0xff] }
 0x169   :  { %10348 = vst [vmem:[#allocation115_spill] sm:$0xff] %v4913_v27  ;;  %802 = vmatpush.msrb.mxu0 %v4937_v33  ;;  %v4951_v27 = vld [vmem:[%s9758_s6 + $0x80] sm:$0xff] }
 0x16a   :  { %10349 = vst [vmem:[#allocation116_spill] sm:$0xff] %v4920_v61  ;;  %v4944_v61 = vld [vmem:[%s9758_s6 + $0xb8] sm:$0xff]  ;;  %763 = vmatpush.msrb.mxu2 %v4951_v27 }
 0x16b   :  { %10350 = vst [vmem:[#allocation117_spill] sm:$0xff] %v4927_v59  ;;  %822 = vmatpush.msra.mxu1 %v4944_v61  ;;  %v4956_v59 = vld [vmem:[%s9758_s6 + $0x88] sm:$0xff] }
 0x16c   :  { %10351 = vst [vmem:[#allocation118_spill] sm:$0xff] %v4932_v24  ;;  %v4961_v24 = vld [vmem:[%s9758_s6 + $0x90] sm:$0xff]  ;;  %783 = vmatpush.msra.mxu3 %v4956_v59  ;;  %764 = vmatpush.msrb.mxu2 %v4980_v38 }
 0x16d   :  { %10352 = vst [vmem:[#allocation119_spill] sm:$0xff] %v4937_v33  ;;  %v603_v33 = vpop.f32.mrf.mxu2  ;;  %803 = vmatpush.msrb.mxu0 %v4961_v24 }
 0x16e   :  { %10353 = vst [vmem:[#allocation120_spill] sm:$0xff] %v4944_v61  ;;  %v4971_v61 = vld [vmem:[%s9758_s6 + $0x98] sm:$0xff]  ;;  %765 = vmatpush.msrb.mxu2 %v5008_v22 }
 0x16f   :  { %10354 = vst [vmem:[#allocation121_spill] sm:$0xff] %v4951_v27  ;;  %823 = vmatpush.msra.mxu1 %v4971_v61  ;;  %v4990_v27 = vld [vmem:[%s9758_s6 + $0x70] sm:$0xff] }
 0x170   :  { %10355 = vst [vmem:[#allocation122_spill] sm:$0xff] %v4956_v59  ;;  %v4985_v59 = vld [vmem:[%s9758_s6 + $0x68] sm:$0xff]  ;;  %804 = vmatpush.msrb.mxu0 %v4990_v27 }
 0x171   :  { %10356 = vst [vmem:[#allocation123_spill] sm:$0xff] %v4961_v24  ;;  %v186_v24 = vadd.f32 %v4611_v54, %v4964_v28  ;;  %784 = vmatpush.msra.mxu3 %v4985_v59  ;;  %v5013_v54 = vld [vmem:[%s9758_s6 + $0x48] sm:$0xff] }
 0x172   :  { %10357 = vst [vmem:[#allocation124_spill] sm:$0xff] %v4964_v28  ;;  %v5018_v28 = vld [vmem:[%s9758_s6 + $0x50] sm:$0xff] }
 0x173   :  { %10358 = vst [vmem:[#allocation125_spill] sm:$0xff] %v4971_v61  ;;  %v4999_v61 = vld [vmem:[%s9758_s6 + $0x78] sm:$0xff]  ;;  %785 = vmatpush.msra.mxu3 %v5013_v54  ;;  %805 = vmatpush.msrb.mxu0 %v5018_v28 }
 0x174   :  { %10359 = vst [vmem:[#allocation126_spill] sm:$0xff] %v4973_v14  ;;  %v5001_v14 = vpop.f32.mrf.mxu3  ;;  %824 = vmatpush.msra.mxu1 %v4999_v61 }
 0x175   :  { %10360 = vst [vmem:[#allocation127_spill] sm:$0xff] %v4980_v38 }
 0x176   :  { %10361 = vst [vmem:[#allocation128_spill] sm:$0xff] %v4985_v59  ;;  %v666_v59 = vadd.f32 %v603_v33, %v186_v24  ;;  %v5037_v24 = vld [vmem:[%s9758_s6 + $0x28] sm:$0xff]  ;;  %v5042_v33 = vld [vmem:[%s9758_s6 + $0x30] sm:$0xff] }
 0x177   :  { %10362 = vst [vmem:[#allocation129_spill] sm:$0xff] %v4990_v27  ;;  %v5032_v27 = vld [vmem:[%s9758_s6 + $0x20] sm:$0xff]  ;;  %786 = vmatpush.msra.mxu3 %v5037_v24  ;;  %806 = vmatpush.msrb.mxu0 %v5042_v33 }
 0x178   :  { %10363 = vst [vmem:[#allocation130_spill] sm:$0xff] %v4999_v61  ;;  %v5025_v61 = vld [vmem:[%s9758_s6 + $0x58] sm:$0xff]  ;;  %766 = vmatpush.msrb.mxu2 %v5032_v27  ;;  %v670_v38 = vmul.f32 0.5, %v666_v59  ;;  %v663_v59 = vpop.f32.mrf.mxu1 }
 0x179   :  { %10364 = vst [vmem:[#allocation131_spill] sm:$0xff] %v5001_v14  ;;  %825 = vmatpush.msra.mxu1 %v5025_v61  ;;  %v5088_v14 = vld [vmem:[%s9755_s7 + $0x1e0] sm:$0xff] }
 0x17a   :  { %10365 = vst [vmem:[#allocation132_spill] sm:$0xff] %v5008_v22  ;;  %v5074_v22 = vperm.slane %v4656_v3, 1  ;;  %2978 = vtanh.f32 %v670_v38 }
 0x17b   :  { %10366 = vst [vmem:[#allocation133_spill] sm:$0xff] %v5013_v54  ;;  %v5059_v54 = vld [vmem:[%s9758_s6 + $0x8] sm:$0xff] }
 0x17c   :  { %10367 = vst [vmem:[#allocation134_spill] sm:$0xff] %v5018_v28  ;;  %v5054_v28 = vld [vmem:[%s9758_s6] sm:$0xff]  ;;  %787 = vmatpush.msra.mxu3 %v5059_v54 }
 0x17d   :  { %10368 = vst [vmem:[#allocation135_spill] sm:$0xff] %v5025_v61  ;;  %v5049_v61 = vld [vmem:[%s9758_s6 + $0x38] sm:$0xff]  ;;  %767 = vmatpush.msrb.mxu2 %v5054_v28 }
 0x17e   :  { %10369 = vst [vmem:[#allocation136_spill] sm:$0xff] %v5032_v27  ;;  %826 = vmatpush.msra.mxu1 %v5049_v61  ;;  %v5071_v27 = vld [vmem:[%s9758_s6 + $0x18] sm:$0xff]  ;;  %874 = vmatpush.msrb.mxu3 %v3873_v17 }
 0x17f   :  { %10370 = vst [vmem:[#allocation137_spill] sm:$0xff] %v5037_v24  ;;  %v5066_v24 = vld [vmem:[%s9758_s6 + $0x10] sm:$0xff]  ;;  %854 = vmatpush.msra.mxu2 %v5088_v14 }
 0x180   :  { %10371 = vst [vmem:[#allocation138_spill] sm:$0xff] %v5042_v33  ;;  %807 = vmatpush.msrb.mxu0 %v5066_v24  ;;  %827 = vmatpush.msra.mxu1 %v5071_v27  ;;  %v227_v33 = vadd.f32 %v4613_v49, %v5074_v22 }
 0x181   :  { %10372 = vst [vmem:[#allocation139_spill] sm:$0xff] %v5049_v61  ;;  %v5079_v61 = vperm.slane %v4656_v3, 2  ;;  %v309_v3 = vadd.f32 %v4607_v40, %v4659_v35  ;;  %875 = vmatpush.msrb.mxu3 %v3882_v19  ;;  %v5110_v40 = vld [vmem:[%s9755_s7 + $0x1a0] sm:$0xff]  ;;  %v5116_v19 = vld [vmem:[%s9755_s7 + $0x1a8] sm:$0xff] }
 0x182   :  { %10373 = vst [vmem:[#allocation140_spill] sm:$0xff] %v5059_v54  ;;  %v623_v54 = vpop.f32.mrf.mxu3  ;;  %894 = vmatpush.msra.mxu0 %v4066_v9  ;;  %914 = vmatpush.msrb.mxu1 %v3961_v48 }
 0x183   :  { %10374 = vst [vmem:[#allocation141_spill] sm:$0xff] %v5071_v27  ;;  %v643_v27 = vpop.f32.mrf.mxu0  ;;  %v667_v49 = vadd.f32 %v623_v54, %v227_v33  ;;  %v268_v17 = vadd.f32 %v4627_v43, %v5079_v61  ;;  %v669_v48 = vadd.f32 %v663_v59, %v309_v3  ;;  %876 = vmatpush.msrb.mxu3 %v5116_v19  ;;  %v5172_v33 = vld [vmem:[%s9755_s7 + $0x128] sm:$0xff] }
 0x184   :  { %10375 = vst [vmem:[#allocation142_spill] sm:$0xff] %v5074_v22  ;;  %v5099_v22 = vld [vmem:[%s9755_s7 + $0x1c0] sm:$0xff]  ;;  %895 = vmatpush.msra.mxu0 %v4081_v12  ;;  %915 = vmatpush.msrb.mxu1 %v3976_v52  ;;  %v5130_v12 = vld [vmem:[%s9755_s7 + $0x188] sm:$0xff] }
 0x185   :  { %855 = vmatpush.msra.mxu2 %v5099_v22  ;;  %v671_v9 = vmul.f32 0.5, %v667_v49  ;;  %v668_v43 = vadd.f32 %v643_v27, %v268_v17  ;;  %v5124_v52 = vld [vmem:[%s9755_s7 + $0x180] sm:$0xff]  ;;  %877 = vmatpush.msrb.mxu3 %v5130_v12  ;;  %v5144_v27 = vld [vmem:[%s9755_s7 + $0x168] sm:$0xff] }
 0x186   :  { %896 = vmatpush.msra.mxu0 %v4106_v18  ;;  %916 = vmatpush.msrb.mxu1 %v3990_v55  ;;  %v2979_v55 = vpop.eup %2978  ;;  %v5138_v18 = vld [vmem:[%s9755_s7 + $0x160] sm:$0xff]  ;;  %v5186_v3 = vld [vmem:[%s9755_s7 + $0x108] sm:$0xff] }
 0x187   :  { %856 = vmatpush.msra.mxu2 %v5110_v40  ;;  %2980 = vtanh.f32 %v671_v9  ;;  %878 = vmatpush.msrb.mxu3 %v5144_v27  ;;  %v672_v38 = vmul.f32 0.5, %v668_v43  ;;  %v676_v54 = vmul.f32 0.5, %v2979_v55 }
 0x188   :  { %897 = vmatpush.msra.mxu0 %v4129_v23  ;;  %917 = vmatpush.msrb.mxu1 %v4008_v60  ;;  %2982 = vtanh.f32 %v669_v48  ;;  %v5152_v60 = vld [vmem:[%s9755_s7 + $0x140] sm:$0xff]  ;;  %v5158_v23 = vld [vmem:[%s9755_s7 + $0x148] sm:$0xff] }
 0x189   :  { %857 = vmatpush.msra.mxu2 %v5124_v52  ;;  %879 = vmatpush.msrb.mxu3 %v5158_v23  ;;  %2984 = vtanh.f32 %v672_v38  ;;  %v679_v49 = vadd.f32 0.5, %v676_v54  ;;  %v5245_v38 = vld [vmem:[%s9755_s7 + $0x88] sm:$0xff] }
 0x18a   :  { %898 = vmatpush.msra.mxu0 %v4148_v26  ;;  %918 = vmatpush.msrb.mxu1 %v4018_v63  ;;  %v5166_v26 = vld [vmem:[%s9755_s7 + $0x120] sm:$0xff]  ;;  %v5273_v54 = vld [vmem:[%s9755_s7 + $0x48] sm:$0xff] }
 0x18b   :  { %858 = vmatpush.msra.mxu2 %v5138_v18  ;;  %880 = vmatpush.msrb.mxu3 %v5172_v33 }
 0x18c   :  { %899 = vmatpush.msra.mxu0 %v4164_v29  ;;  %919 = vmatpush.msrb.mxu1 %v4037_v4  ;;  %v5180_v29 = vld [vmem:[%s9755_s7 + $0x100] sm:$0xff] }
 0x18d   :  { %859 = vmatpush.msra.mxu2 %v5152_v60  ;;  %v2981_v63 = vpop.eup %2980  ;;  %881 = vmatpush.msrb.mxu3 %v5186_v3 }
 0x18e   :  { %v677_v59 = vmul.f32 0.5, %v2981_v63  ;;  %900 = vmatpush.msra.mxu0 %v4189_v34  ;;  %920 = vmatpush.msrb.mxu1 %v4055_v7  ;;  %v2983_v4 = vpop.eup %2982  ;;  %v5194_v7 = vld [vmem:[%s9755_s7 + $0xe0] sm:$0xff]  ;;  %v5200_v34 = vld [vmem:[%s9755_s7 + $0xe8] sm:$0xff] }
 0x18f   :  { %860 = vmatpush.msra.mxu2 %v5166_v26  ;;  %882 = vmatpush.msrb.mxu3 %v5200_v34  ;;  %v684_v48 = vmul.f32 %v2983_v4, %v679_v49  ;;  %v2985_v43 = vpop.eup %2984  ;;  %v10390_v4 = vld [vmem:[#allocation9_spill] sm:$0xff] }
 0x190   :  { %v680_v17 = vadd.f32 0.5, %v677_v59  ;;  %901 = vmatpush.msra.mxu0 %v4212_v39  ;;  %921 = vmatpush.msrb.mxu1 %v4071_v10  ;;  %v5208_v10 = vld [vmem:[%s9755_s7 + $0xc0] sm:$0xff]  ;;  %v5214_v39 = vld [vmem:[%s9755_s7 + $0xc8] sm:$0xff]  ;;  %v10391_v49 = vld [vmem:[#allocation33_spill] sm:$0xff] }
 0x191   :  { %861 = vmatpush.msra.mxu2 %v5180_v29  ;;  %883 = vmatpush.msrb.mxu3 %v5214_v39  ;;  %v5289_v59 = vld [vmem:[%s9755_s7 + $0x28] sm:$0xff] }
 0x192   :  { %v683_v9 = vmul.f32 0.0, %v680_v17  ;;  %902 = vmatpush.msra.mxu0 %v4231_v42  ;;  %922 = vmatpush.msrb.mxu1 %v4092_v15  ;;  %v5224_v15 = vld [vmem:[%s9755_s7 + $0xa0] sm:$0xff]  ;;  %v5230_v42 = vld [vmem:[%s9755_s7 + $0xa8] sm:$0xff]  ;;  %v10392_v17 = vld [vmem:[#allocation10_spill] sm:$0xff] }
 0x193   :  { %862 = vmatpush.msra.mxu2 %v5194_v7  ;;  %884 = vmatpush.msrb.mxu3 %v5230_v42 }
 0x194   :  { %v5217_v55 = vadd.f32 %v684_v48, %v683_v9  ;;  %903 = vmatpush.msra.mxu0 %v4247_v45  ;;  %923 = vmatpush.msrb.mxu1 %v4119_v21  ;;  %v678_v21 = vmul.f32 0.5, %v2985_v43  ;;  %v5239_v45 = vld [vmem:[%s9755_s7 + $0x80] sm:$0xff]  ;;  %v10393_v48 = vld [vmem:[#allocation29_spill] sm:$0xff] }
 0x195   :  { %863 = vmatpush.msra.mxu2 %v5208_v10  ;;  %885 = vmatpush.msrb.mxu3 %v5245_v38  ;;  %v10394_v9 = vld [vmem:[#allocation11_spill] sm:$0xff] }
 0x196   :  { %2986 = vtanh.f32 %v5217_v55  ;;  %904 = vmatpush.msra.mxu0 %v4272_v51  ;;  %924 = vmatpush.msrb.mxu1 %v4143_v25  ;;  %v5253_v25 = vld [vmem:[%s9755_s7 + $0x60] sm:$0xff]  ;;  %v5259_v51 = vld [vmem:[%s9755_s7 + $0x68] sm:$0xff] }
 0x197   :  { %864 = vmatpush.msra.mxu2 %v5224_v15  ;;  %886 = vmatpush.msrb.mxu3 %v5259_v51  ;;  %v10395_v43 = vld [vmem:[#allocation35_spill] sm:$0xff] }
 0x198   :  { %905 = vmatpush.msra.mxu0 %v4297_v57  ;;  %925 = vmatpush.msrb.mxu1 %v4175_v32  ;;  %v681_v57 = vadd.f32 0.5, %v678_v21  ;;  %v5267_v32 = vld [vmem:[%s9755_s7 + $0x40] sm:$0xff]  ;;  %v10396_v21 = vld [vmem:[#allocation12_spill] sm:$0xff] }
 0x199   :  { %865 = vmatpush.msra.mxu2 %v5239_v45  ;;  %887 = vmatpush.msrb.mxu3 %v5273_v54 }
 0x19a   :  { %906 = vmatpush.msra.mxu0 %v4316_v62  ;;  %926 = vmatpush.msrb.mxu1 %v4202_v37  ;;  %v5283_v62 = vld [vmem:[%s9755_s7 + $0x20] sm:$0xff] }
 0x19b   :  { %866 = vmatpush.msra.mxu2 %v5253_v25  ;;  %888 = vmatpush.msrb.mxu3 %v5289_v59 }
 0x19c   :  { %v2987_v63 = vpop.eup %2986  ;;  %907 = vmatpush.msra.mxu0 %v4331_v2  ;;  %927 = vmatpush.msrb.mxu1 %v4226_v41  ;;  %v5301_v41 = vld [vmem:[%s9755_s7] sm:$0xff]  ;;  %v5307_v2 = vld [vmem:[%s9755_s7 + $0x8] sm:$0xff] }
 0x19d   :  { %867 = vmatpush.msra.mxu2 %v5267_v32  ;;  %v5278_v37 = vmul.f32 %v2987_v63, %v681_v57  ;;  %889 = vmatpush.msrb.mxu3 %v5307_v2  ;;  %v10397_v57 = vld [vmem:[#allocation32_spill] sm:$0xff]  ;;  %v10398_v63 = vld [vmem:[#allocation13_spill] sm:$0xff] }
 0x19e   :  { %908 = vmatpush.msra.mxu0 %v4351_v36  ;;  %928 = vmatpush.msrb.mxu1 %v4263_v50  ;;  %v5315_v50 = vld [vmem:[%s9756_s5 + $0x1e0] sm:$0xff]  ;;  %v5322_v36 = vld [vmem:[%s9756_s5 + $0x1f0] sm:$0xff] }
 0x19f   :  { %868 = vmatpush.msra.mxu2 %v5283_v62  ;;  %788 = vmatmul.f32.vlgmr.msra.gmra.mxu3 %v5278_v37 }
 0x1a0   :  { %768 = vmatmul.f32.vlgmr.msrb.gmra.mxu2 %v5278_v37  ;;  %808 = vmatmul.f32.vlgmr.msrb.gmra.mxu0 %v5278_v37 }
 0x1a1   :  { %828 = vmatmul.f32.vlgmr.msra.gmra.mxu1 %v5278_v37  ;;  %869 = vmatpush.msra.mxu2 %v5301_v41 }
 0x1a2   :  { %909 = vmatpush.msra.mxu0 %v4370_v44  ;;  %929 = vmatpush.msrb.mxu1 %v4290_v56  ;;  %v5329_v56 = vld [vmem:[%s9756_s5 + $0x1c0] sm:$0xff]  ;;  %v5336_v44 = vld [vmem:[%s9756_s5 + $0x1d0] sm:$0xff] }
 0x1a3   :  { %938 = vmatpush.msrb.mxu2 %v5315_v50  ;;  %958 = vmatpush.msra.mxu3 %v4388_v11  ;;  %v10377_v11 = vld [vmem:[#allocation24_spill] sm:$0xff] }
 0x1a4   :  { %978 = vmatpush.msrb.mxu0 %v5322_v36  ;;  %998 = vmatpush.msra.mxu1 %v4433_v13  ;;  %v5343_v13 = vld [vmem:[%s9756_s5 + $0x1a0] sm:$0xff] }
 0x1a5   :  { %939 = vmatpush.msrb.mxu2 %v5329_v56  ;;  %959 = vmatpush.msra.mxu3 %v4397_v31  ;;  %v5350_v31 = vld [vmem:[%s9756_s5 + $0x1b0] sm:$0xff] }
 0x1a6   :  { %979 = vmatpush.msrb.mxu0 %v5336_v44  ;;  %999 = vmatpush.msra.mxu1 %v4446_v46  ;;  %10376 = vst [vmem:[#allocation143_spill] sm:$0xff] %v5350_v31  ;;  %v10389_v46 = vld [vmem:[#allocation27_spill] sm:$0xff] }
 0x1a7   :  { %940 = vmatpush.msrb.mxu2 %v5343_v13  ;;  %960 = vmatpush.msra.mxu3 %v4411_v30  ;;  %v10388_v30 = vld [vmem:[#allocation8_spill] sm:$0xff] }
 0x1a8   :  { %980 = vmatpush.msrb.mxu0 %v5350_v31  ;;  %1000 = vmatpush.msra.mxu1 %v4459_v58  ;;  %v10378_v58 = vld [vmem:[#allocation3_spill] sm:$0xff] }
 0x1a9   :  { %941 = vmatpush.msrb.mxu2 %v4045_v5  ;;  %961 = vmatpush.msra.mxu3 %v4419_v1  ;;  %v10379_v5 = vld [vmem:[#allocation28_spill] sm:$0xff] }
 0x1aa   :  { %981 = vmatpush.msrb.mxu0 %v4050_v6  ;;  %1001 = vmatpush.msra.mxu1 %v4466_v0  ;;  %v10380_v1 = vld [vmem:[#allocation4_spill] sm:$0xff]  ;;  %v10381_v6 = vld [vmem:[#allocation25_spill] sm:$0xff] }
 0x1ab   :  { %942 = vmatpush.msrb.mxu2 %v4061_v8  ;;  %962 = vmatpush.msra.mxu3 %v4425_v47  ;;  %v10382_v0 = vld [vmem:[#allocation5_spill] sm:$0xff]  ;;  %v10383_v8 = vld [vmem:[#allocation30_spill] sm:$0xff] }
 0x1ac   :  { %982 = vmatpush.msrb.mxu0 %v4097_v16  ;;  %1002 = vmatpush.msra.mxu1 %v4479_v53  ;;  %v10384_v47 = vld [vmem:[#allocation6_spill] sm:$0xff]  ;;  %v10386_v53 = vld [vmem:[#allocation7_spill] sm:$0xff] }
 0x1ad   :  { %943 = vmatpush.msrb.mxu2 %v4111_v20  ;;  %963 = vmatpush.msra.mxu3 %v10377_v11  ;;  %v10385_v16 = vld [vmem:[#allocation26_spill] sm:$0xff]  ;;  %v10387_v20 = vld [vmem:[#allocation31_spill] sm:$0xff]  ;;  %v10399_v11 = vld [vmem:[#allocation37_spill] sm:$0xff] }
 0x1ae   :  { %983 = vmatpush.msrb.mxu0 %v10378_v58  ;;  %1003 = vmatpush.msra.mxu1 %v10379_v5  ;;  %v10400_v58 = vld [vmem:[#allocation14_spill] sm:$0xff] }
 0x1af   :  { %944 = vmatpush.msrb.mxu2 %v10380_v1  ;;  %964 = vmatpush.msra.mxu3 %v10381_v6  ;;  %v10401_v5 = vld [vmem:[#allocation34_spill] sm:$0xff]  ;;  %v10402_v1 = vld [vmem:[#allocation15_spill] sm:$0xff] }
 0x1b0   :  { %984 = vmatpush.msrb.mxu0 %v10382_v0  ;;  %1004 = vmatpush.msra.mxu1 %v10383_v8  ;;  %v10403_v6 = vld [vmem:[#allocation39_spill] sm:$0xff]  ;;  %v10404_v0 = vld [vmem:[#allocation16_spill] sm:$0xff] }
 0x1b1   :  { %945 = vmatpush.msrb.mxu2 %v10384_v47  ;;  %965 = vmatpush.msra.mxu3 %v10385_v16  ;;  %v10405_v8 = vld [vmem:[#allocation36_spill] sm:$0xff]  ;;  %v10406_v47 = vld [vmem:[#allocation17_spill] sm:$0xff] }
 0x1b2   :  { %985 = vmatpush.msrb.mxu0 %v10386_v53  ;;  %1005 = vmatpush.msra.mxu1 %v10387_v20  ;;  %v10407_v16 = vld [vmem:[#allocation41_spill] sm:$0xff]  ;;  %v10408_v53 = vld [vmem:[#allocation18_spill] sm:$0xff] }
 0x1b3   :  { %946 = vmatpush.msrb.mxu2 %v10388_v30  ;;  %966 = vmatpush.msra.mxu3 %v10389_v46  ;;  %v10409_v20 = vld [vmem:[#allocation38_spill] sm:$0xff]  ;;  %v10410_v30 = vld [vmem:[#allocation19_spill] sm:$0xff] }
 0x1b4   :  { %986 = vmatpush.msrb.mxu0 %v10390_v4  ;;  %1006 = vmatpush.msra.mxu1 %v10391_v49  ;;  %v10411_v46 = vld [vmem:[#allocation43_spill] sm:$0xff]  ;;  %v10412_v4 = vld [vmem:[#allocation20_spill] sm:$0xff] }
 0x1b5   :  { %947 = vmatpush.msrb.mxu2 %v10392_v17  ;;  %967 = vmatpush.msra.mxu3 %v10393_v48  ;;  %v10413_v49 = vld [vmem:[#allocation40_spill] sm:$0xff]  ;;  %v10414_v17 = vld [vmem:[#allocation21_spill] sm:$0xff] }
 0x1b6   :  { %987 = vmatpush.msrb.mxu0 %v10394_v9  ;;  %1007 = vmatpush.msra.mxu1 %v10395_v43  ;;  %v10415_v48 = vld [vmem:[#allocation44_spill] sm:$0xff]  ;;  %v10416_v9 = vld [vmem:[#allocation22_spill] sm:$0xff] }
 0x1b7   :  { %948 = vmatpush.msrb.mxu2 %v10396_v21  ;;  %968 = vmatpush.msra.mxu3 %v10397_v57  ;;  %v10417_v43 = vld [vmem:[#allocation42_spill] sm:$0xff]  ;;  %v10418_v21 = vld [vmem:[#allocation23_spill] sm:$0xff]  ;;  %v10419_v57 = vld [vmem:[#allocation45_spill] sm:$0xff] }
 0x1b8   :  { %988 = vmatpush.msrb.mxu0 %v10398_v63  ;;  %1008 = vmatpush.msra.mxu1 %v10399_v11  ;;  %v364_v63 = vld [vmem:[%s9759_s8] sm:$0xf] }
 0x1b9   :  { %949 = vmatpush.msrb.mxu2 %v10400_v58  ;;  %969 = vmatpush.msra.mxu3 %v10401_v5  ;;  %v5409_v11 = vperm.slane %v364_v63, 1  ;;  %v5411_v58 = vperm.slane %v364_v63, 0  ;;  %v10422_v5 = vld [vmem:[#allocation102_spill] sm:$0xff] }
 0x1ba   :  { %989 = vmatpush.msrb.mxu0 %v10402_v1  ;;  %1009 = vmatpush.msra.mxu1 %v10403_v6  ;;  %v10423_v6 = vld [vmem:[#allocation103_spill] sm:$0xff] }
 0x1bb   :  { %950 = vmatpush.msrb.mxu2 %v10404_v0  ;;  %970 = vmatpush.msra.mxu3 %v10405_v8  ;;  %10420 = vst [vmem:[#allocation24_spill] sm:$0xff] %v5409_v11  ;;  %v476_v1 = vadd.f32 %v10422_v5, %v5409_v11  ;;  %v456_v0 = vadd.f32 %v10423_v6, %v5411_v58  ;;  %v5417_v8 = vperm.slane %v364_v63, 3 }
 0x1bc   :  { %990 = vmatpush.msrb.mxu0 %v10406_v47  ;;  %1010 = vmatpush.msra.mxu1 %v10407_v16  ;;  %10421 = vst [vmem:[#allocation3_spill] sm:$0xff] %v5411_v58  ;;  %v5419_v47 = vperm.slane %v364_v63, 2 }
 0x1bd   :  { %951 = vmatpush.msrb.mxu2 %v10408_v53  ;;  %971 = vmatpush.msra.mxu3 %v10409_v20  ;;  %10424 = vst [vmem:[#allocation28_spill] sm:$0xff] %v5417_v8 }
 0x1be   :  { %991 = vmatpush.msrb.mxu0 %v10410_v30  ;;  %1011 = vmatpush.msra.mxu1 %v10411_v46  ;;  %10425 = vst [vmem:[#allocation4_spill] sm:$0xff] %v5419_v47 }
 0x1bf   :  { %952 = vmatpush.msrb.mxu2 %v10412_v4  ;;  %972 = vmatpush.msra.mxu3 %v10413_v49  ;;  %v10426_v49 = vld [vmem:[#allocation126_spill] sm:$0xff] }
 0x1c0   :  { %992 = vmatpush.msrb.mxu0 %v10414_v17  ;;  %1012 = vmatpush.msra.mxu1 %v10415_v48  ;;  %v516_v17 = vadd.f32 %v10426_v49, %v5417_v8  ;;  %v10427_v48 = vld [vmem:[#allocation131_spill] sm:$0xff] }
 0x1c1   :  { %953 = vmatpush.msrb.mxu2 %v10416_v9  ;;  %973 = vmatpush.msra.mxu3 %v10417_v43  ;;  %v496_v9 = vadd.f32 %v10427_v48, %v5419_v47 }
 0x1c2   :  { %993 = vmatpush.msrb.mxu0 %v10418_v21  ;;  %1013 = vmatpush.msra.mxu1 %v10419_v57 }
 0x21d   :  { %v809_v46 = vpop.f32.mrf.mxu0 }
 0x21e   :  { %v829_v4 = vpop.f32.mrf.mxu1  ;;  %v834_v57 = vadd.f32 %v809_v46, %v496_v9  ;;  %v10430_v9 = vld [vmem:[#allocation72_spill] sm:$0xff] }
 0x21f   :  { %v835_v5 = vadd.f32 %v829_v4, %v516_v17  ;;  %v10428_v17 = vld [vmem:[#allocation70_spill] sm:$0xff] }
 0x220   :  { %v838_v63 = vmul.f32 0.5, %v834_v57  ;;  %v10436_v57 = vld [vmem:[#allocation81_spill] sm:$0xff] }
 0x222   :  { %v789_v53 = vpop.f32.mrf.mxu3 }
 0x223   :  { %v769_v16 = vpop.f32.mrf.mxu2  ;;  %v833_v30 = vadd.f32 %v789_v53, %v476_v1 }
 0x224   :  { %v832_v20 = vadd.f32 %v769_v16, %v456_v0 }
 0x225   :  { %v837_v21 = vmul.f32 0.5, %v833_v30 }
 0x226   :  { %v836_v43 = vmul.f32 0.5, %v832_v20 }
 0x228   :  { %2988 = vtanh.f32 %v836_v43  ;;  %v10433_v43 = vld [vmem:[#allocation76_spill] sm:$0xff] }
 0x229   :  { %2990 = vtanh.f32 %v837_v21  ;;  %v10435_v21 = vld [vmem:[#allocation78_spill] sm:$0xff] }
 0x22a   :  { %2992 = vtanh.f32 %v835_v5  ;;  %v10437_v5 = vld [vmem:[#allocation82_spill] sm:$0xff] }
 0x22b   :  { %2994 = vtanh.f32 %v838_v63  ;;  %v10438_v63 = vld [vmem:[#allocation83_spill] sm:$0xff] }
 0x22e   :  { %v2989_v6 = vpop.eup %2988 }
 0x22f   :  { %v2991_v11 = vpop.eup %2990  ;;  %v842_v0 = vmul.f32 0.5, %v2989_v6  ;;  %v10439_v6 = vld [vmem:[#allocation84_spill] sm:$0xff] }
 0x230   :  { %v843_v1 = vmul.f32 0.5, %v2991_v11  ;;  %v2993_v53 = vpop.eup %2992  ;;  %v10429_v11 = vld [vmem:[#allocation71_spill] sm:$0xff] }
 0x231   :  { %v845_v16 = vadd.f32 0.5, %v842_v0  ;;  %v2995_v31 = vpop.eup %2994  ;;  %v10440_v0 = vld [vmem:[#allocation85_spill] sm:$0xff] }
 0x232   :  { %v846_v58 = vadd.f32 0.5, %v843_v1  ;;  %v844_v20 = vmul.f32 0.5, %v2995_v31  ;;  %v10434_v31 = vld [vmem:[#allocation77_spill] sm:$0xff]  ;;  %v10441_v1 = vld [vmem:[#allocation86_spill] sm:$0xff] }
 0x233   :  { %v850_v49 = vmul.f32 %v2993_v53, %v845_v16  ;;  %v10442_v16 = vld [vmem:[#allocation87_spill] sm:$0xff]  ;;  %v10443_v53 = vld [vmem:[#allocation88_spill] sm:$0xff] }
 0x234   :  { %v849_v8 = vmul.f32 0.0, %v846_v58  ;;  %v847_v30 = vadd.f32 0.5, %v844_v20  ;;  %v10431_v58 = vld [vmem:[#allocation73_spill] sm:$0xff]  ;;  %v10445_v20 = vld [vmem:[#allocation90_spill] sm:$0xff] }
 0x236   :  { %v5425_v48 = vadd.f32 %v850_v49, %v849_v8  ;;  %v10432_v8 = vld [vmem:[#allocation75_spill] sm:$0xff]  ;;  %v10444_v49 = vld [vmem:[#allocation89_spill] sm:$0xff] }
 0x238   :  { %2996 = vtanh.f32 %v5425_v48 }
 0x23e   :  { %v2997_v46 = vpop.eup %2996 }
 0x23f   :  { %v853_v4 = vmul.f32 %v2997_v46, %v847_v30  ;;  %v10446_v30 = vld [vmem:[#allocation91_spill] sm:$0xff]  ;;  %v10447_v46 = vld [vmem:[#allocation92_spill] sm:$0xff] }
 0x241   :  { %870 = vmatmul.f32.vlgmr.msra.gmra.mxu2 %v853_v4  ;;  %890 = vmatmul.f32.vlgmr.msrb.gmra.mxu3 %v853_v4 }
 0x242   :  { %910 = vmatmul.f32.vlgmr.msra.gmra.mxu0 %v853_v4  ;;  %930 = vmatmul.f32.vlgmr.msrb.gmra.mxu1 %v853_v4  ;;  %v10448_v4 = vld [vmem:[#allocation94_spill] sm:$0xff] }
 0x243   :  { %1040 = vmatpush.msra.mxu2 %v10428_v17  ;;  %1060 = vmatpush.msrb.mxu3 %v10429_v11  ;;  %v10449_v17 = vld [vmem:[#allocation95_spill] sm:$0xff]  ;;  %v10451_v11 = vld [vmem:[#allocation97_spill] sm:$0xff] }
 0x244   :  { %1080 = vmatpush.msra.mxu0 %v10430_v9  ;;  %1100 = vmatpush.msrb.mxu1 %v10431_v58  ;;  %v10452_v9 = vld [vmem:[#allocation98_spill] sm:$0xff]  ;;  %v10453_v58 = vld [vmem:[#allocation99_spill] sm:$0xff] }
 0x245   :  { %1041 = vmatpush.msra.mxu2 %v10432_v8  ;;  %1061 = vmatpush.msrb.mxu3 %v10433_v43  ;;  %v10454_v8 = vld [vmem:[#allocation100_spill] sm:$0xff]  ;;  %v10455_v43 = vld [vmem:[#allocation101_spill] sm:$0xff] }
 0x246   :  { %1081 = vmatpush.msra.mxu0 %v10434_v31  ;;  %1101 = vmatpush.msrb.mxu1 %v10435_v21  ;;  %v10456_v31 = vld [vmem:[#allocation104_spill] sm:$0xff]  ;;  %v10457_v21 = vld [vmem:[#allocation105_spill] sm:$0xff] }
 0x247   :  { %1042 = vmatpush.msra.mxu2 %v10436_v57  ;;  %1062 = vmatpush.msrb.mxu3 %v10437_v5  ;;  %v10458_v57 = vld [vmem:[#allocation106_spill] sm:$0xff]  ;;  %v10459_v5 = vld [vmem:[#allocation107_spill] sm:$0xff] }
 0x248   :  { %1082 = vmatpush.msra.mxu0 %v10438_v63  ;;  %1102 = vmatpush.msrb.mxu1 %v10439_v6  ;;  %v10460_v63 = vld [vmem:[#allocation108_spill] sm:$0xff]  ;;  %v10461_v6 = vld [vmem:[#allocation109_spill] sm:$0xff] }
 0x249   :  { %954 = vmatmul.f32.vlgmr.msrb.gmra.mxu2 %v5278_v37  ;;  %974 = vmatmul.f32.vlgmr.msra.gmra.mxu3 %v5278_v37 }
 0x24a   :  { %994 = vmatmul.f32.vlgmr.msrb.gmra.mxu0 %v5278_v37  ;;  %1014 = vmatmul.f32.vlgmr.msra.gmra.mxu1 %v5278_v37  ;;  %v10450_v37 = vld [vmem:[#allocation96_spill] sm:$0xff] }
 0x24b   :  { %1043 = vmatpush.msra.mxu2 %v10440_v0  ;;  %1063 = vmatpush.msrb.mxu3 %v10441_v1  ;;  %v10462_v0 = vld [vmem:[#allocation110_spill] sm:$0xff]  ;;  %v10463_v1 = vld [vmem:[#allocation111_spill] sm:$0xff] }
 0x24c   :  { %1083 = vmatpush.msra.mxu0 %v10442_v16  ;;  %1103 = vmatpush.msrb.mxu1 %v10443_v53  ;;  %v10464_v16 = vld [vmem:[#allocation113_spill] sm:$0xff]  ;;  %v10465_v53 = vld [vmem:[#allocation114_spill] sm:$0xff] }
 0x24d   :  { %1044 = vmatpush.msra.mxu2 %v10444_v49  ;;  %1064 = vmatpush.msrb.mxu3 %v10445_v20  ;;  %v10466_v49 = vld [vmem:[#allocation115_spill] sm:$0xff]  ;;  %v10467_v20 = vld [vmem:[#allocation116_spill] sm:$0xff] }
 0x24e   :  { %1084 = vmatpush.msra.mxu0 %v10446_v30  ;;  %1104 = vmatpush.msrb.mxu1 %v10447_v46  ;;  %v10468_v30 = vld [vmem:[#allocation117_spill] sm:$0xff]  ;;  %v10469_v46 = vld [vmem:[#allocation118_spill] sm:$0xff] }
 0x24f   :  { %1045 = vmatpush.msra.mxu2 %v10448_v4  ;;  %1065 = vmatpush.msrb.mxu3 %v10449_v17  ;;  %v10470_v4 = vld [vmem:[#allocation119_spill] sm:$0xff]  ;;  %v10471_v17 = vld [vmem:[#allocation120_spill] sm:$0xff] }
 0x250   :  { %1085 = vmatpush.msra.mxu0 %v10450_v37  ;;  %1105 = vmatpush.msrb.mxu1 %v10451_v11  ;;  %v10472_v37 = vld [vmem:[#allocation121_spill] sm:$0xff]  ;;  %v10473_v11 = vld [vmem:[#allocation122_spill] sm:$0xff] }
 0x251   :  { %1046 = vmatpush.msra.mxu2 %v10452_v9  ;;  %1066 = vmatpush.msrb.mxu3 %v10453_v58  ;;  %v10474_v9 = vld [vmem:[#allocation123_spill] sm:$0xff]  ;;  %v10475_v58 = vld [vmem:[#allocation125_spill] sm:$0xff] }
 0x252   :  { %1086 = vmatpush.msra.mxu0 %v10454_v8  ;;  %1106 = vmatpush.msrb.mxu1 %v10455_v43  ;;  %v10476_v8 = vld [vmem:[#allocation127_spill] sm:$0xff]  ;;  %v10477_v43 = vld [vmem:[#allocation128_spill] sm:$0xff] }
 0x253   :  { %1047 = vmatpush.msra.mxu2 %v10456_v31  ;;  %1067 = vmatpush.msrb.mxu3 %v10457_v21  ;;  %v10478_v31 = vld [vmem:[#allocation129_spill] sm:$0xff]  ;;  %v10479_v21 = vld [vmem:[#allocation130_spill] sm:$0xff] }
 0x254   :  { %1087 = vmatpush.msra.mxu0 %v10458_v57  ;;  %1107 = vmatpush.msrb.mxu1 %v10459_v5  ;;  %v10480_v57 = vld [vmem:[#allocation132_spill] sm:$0xff]  ;;  %v10481_v5 = vld [vmem:[#allocation133_spill] sm:$0xff] }
 0x255   :  { %1048 = vmatpush.msra.mxu2 %v10460_v63  ;;  %1068 = vmatpush.msrb.mxu3 %v10461_v6  ;;  %v10482_v63 = vld [vmem:[#allocation134_spill] sm:$0xff]  ;;  %v10483_v6 = vld [vmem:[#allocation135_spill] sm:$0xff] }
 0x256   :  { %1088 = vmatpush.msra.mxu0 %v10462_v0  ;;  %1108 = vmatpush.msrb.mxu1 %v10463_v1  ;;  %v10484_v0 = vld [vmem:[#allocation136_spill] sm:$0xff]  ;;  %v10485_v1 = vld [vmem:[#allocation137_spill] sm:$0xff] }
 0x257   :  { %1049 = vmatpush.msra.mxu2 %v10464_v16  ;;  %1069 = vmatpush.msrb.mxu3 %v10465_v53  ;;  %v10486_v16 = vld [vmem:[#allocation138_spill] sm:$0xff]  ;;  %v10487_v53 = vld [vmem:[#allocation139_spill] sm:$0xff] }
 0x258   :  { %1089 = vmatpush.msra.mxu0 %v10466_v49  ;;  %1109 = vmatpush.msrb.mxu1 %v10467_v20  ;;  %v10488_v49 = vld [vmem:[#allocation140_spill] sm:$0xff]  ;;  %v10489_v20 = vld [vmem:[#allocation141_spill] sm:$0xff] }
 0x259   :  { %1050 = vmatpush.msra.mxu2 %v10468_v30  ;;  %1070 = vmatpush.msrb.mxu3 %v10469_v46  ;;  %v5500_v30 = vld [vmem:[%s9755_s7 + $0x1e8] sm:$0xff]  ;;  %v5506_v46 = vld [vmem:[%s9755_s7 + $0x1f0] sm:$0xff] }
 0x25a   :  { %1090 = vmatpush.msra.mxu0 %v10470_v4  ;;  %1110 = vmatpush.msrb.mxu1 %v10471_v17  ;;  %v5531_v4 = vld [vmem:[%s9755_s7 + $0x1d8] sm:$0xff] }
 0x25b   :  { %1051 = vmatpush.msra.mxu2 %v10472_v37  ;;  %1071 = vmatpush.msrb.mxu3 %v10473_v11  ;;  %v5545_v17 = vld [vmem:[%s9755_s7 + $0x1b8] sm:$0xff] }
 0x25c   :  { %1091 = vmatpush.msra.mxu0 %v10474_v9  ;;  %1111 = vmatpush.msrb.mxu1 %v10475_v58  ;;  %v10494_v9 = vld [vmem:[#allocation142_spill] sm:$0xff] }
 0x25d   :  { %1052 = vmatpush.msra.mxu2 %v10476_v8  ;;  %1072 = vmatpush.msrb.mxu3 %v10477_v43  ;;  %v10495_v58 = vld [vmem:[#allocation50_spill] sm:$0xff]  ;;  %v10496_v43 = vld [vmem:[#allocation124_spill] sm:$0xff] }
 0x25e   :  { %1092 = vmatpush.msra.mxu0 %v10478_v31  ;;  %1112 = vmatpush.msrb.mxu1 %v10479_v21  ;;  %v230_v8 = vadd.f32 %v10495_v58, %v10494_v9  ;;  %v10497_v31 = vld [vmem:[#allocation49_spill] sm:$0xff] }
 0x25f   :  { %1053 = vmatpush.msra.mxu2 %v10480_v57  ;;  %1073 = vmatpush.msrb.mxu3 %v10481_v5  ;;  %v189_v21 = vadd.f32 %v10497_v31, %v10496_v43 }
 0x260   :  { %1093 = vmatpush.msra.mxu0 %v10482_v63  ;;  %1113 = vmatpush.msrb.mxu1 %v10483_v6 }
 0x261   :  { %1054 = vmatpush.msra.mxu2 %v10484_v0  ;;  %1074 = vmatpush.msrb.mxu3 %v10485_v1 }
 0x262   :  { %1094 = vmatpush.msra.mxu0 %v10486_v16  ;;  %1114 = vmatpush.msrb.mxu1 %v10487_v53  ;;  %v10498_v16 = vld [vmem:[#allocation46_spill] sm:$0xff] }
 0x263   :  { %1055 = vmatpush.msra.mxu2 %v5054_v28  ;;  %1075 = vmatpush.msrb.mxu3 %v10488_v49  ;;  %v5512_v28 = vld [vmem:[%s9755_s7 + $0x1f8] sm:$0xff]  ;;  %v312_v53 = vadd.f32 %v10498_v16, %v4659_v35  ;;  %v10499_v49 = vld [vmem:[#allocation56_spill] sm:$0xff] }
 0x264   :  { %1095 = vmatpush.msra.mxu0 %v5066_v24  ;;  %1115 = vmatpush.msrb.mxu1 %v10489_v20  ;;  %v5525_v24 = vld [vmem:[%s9755_s7 + $0x1d0] sm:$0xff]  ;;  %v271_v20 = vadd.f32 %v10499_v49, %v5079_v61 }
 0x265   :  { %1142 = vmatpush.msrb.mxu2 %v5088_v14  ;;  %1162 = vmatpush.msra.mxu3 %v5500_v30  ;;  %v5519_v14 = vld [vmem:[%s9755_s7 + $0x1c8] sm:$0xff] }
 0x266   :  { %1182 = vmatpush.msrb.mxu0 %v5506_v46  ;;  %1202 = vmatpush.msra.mxu1 %v5512_v28 }
 0x267   :  { %1143 = vmatpush.msrb.mxu2 %v5099_v22  ;;  %1163 = vmatpush.msra.mxu3 %v5519_v14  ;;  %v5539_v22 = vld [vmem:[%s9755_s7 + $0x1b0] sm:$0xff] }
 0x268   :  { %1183 = vmatpush.msrb.mxu0 %v5525_v24  ;;  %1203 = vmatpush.msra.mxu1 %v5531_v4 }
 0x269   :  { %1144 = vmatpush.msrb.mxu2 %v5110_v40  ;;  %1164 = vmatpush.msra.mxu3 %v5116_v19  ;;  %v5553_v40 = vld [vmem:[%s9755_s7 + $0x190] sm:$0xff]  ;;  %v5559_v19 = vld [vmem:[%s9755_s7 + $0x198] sm:$0xff] }
 0x26a   :  { %1184 = vmatpush.msrb.mxu0 %v5539_v22  ;;  %1204 = vmatpush.msra.mxu1 %v5545_v17 }
 0x26b   :  { %1145 = vmatpush.msrb.mxu2 %v5124_v52  ;;  %1165 = vmatpush.msra.mxu3 %v5130_v12  ;;  %v5567_v52 = vld [vmem:[%s9755_s7 + $0x170] sm:$0xff]  ;;  %v5573_v12 = vld [vmem:[%s9755_s7 + $0x178] sm:$0xff] }
 0x26c   :  { %1185 = vmatpush.msrb.mxu0 %v5553_v40  ;;  %1205 = vmatpush.msra.mxu1 %v5559_v19 }
 0x26d   :  { %1146 = vmatpush.msrb.mxu2 %v5138_v18  ;;  %1166 = vmatpush.msra.mxu3 %v5144_v27  ;;  %v5581_v18 = vld [vmem:[%s9755_s7 + $0x150] sm:$0xff]  ;;  %v5587_v27 = vld [vmem:[%s9755_s7 + $0x158] sm:$0xff] }
 0x26e   :  { %1186 = vmatpush.msrb.mxu0 %v5567_v52  ;;  %1206 = vmatpush.msra.mxu1 %v5573_v12 }
 0x26f   :  { %1147 = vmatpush.msrb.mxu2 %v5152_v60  ;;  %1167 = vmatpush.msra.mxu3 %v5158_v23  ;;  %v5595_v60 = vld [vmem:[%s9755_s7 + $0x130] sm:$0xff]  ;;  %v5601_v23 = vld [vmem:[%s9755_s7 + $0x138] sm:$0xff] }
 0x270   :  { %1187 = vmatpush.msrb.mxu0 %v5581_v18  ;;  %1207 = vmatpush.msra.mxu1 %v5587_v27 }
 0x271   :  { %1148 = vmatpush.msrb.mxu2 %v5166_v26  ;;  %1168 = vmatpush.msra.mxu3 %v5172_v33  ;;  %v5609_v26 = vld [vmem:[%s9755_s7 + $0x110] sm:$0xff]  ;;  %v5615_v33 = vld [vmem:[%s9755_s7 + $0x118] sm:$0xff] }
 0x272   :  { %1188 = vmatpush.msrb.mxu0 %v5595_v60  ;;  %1208 = vmatpush.msra.mxu1 %v5601_v23 }
 0x273   :  { %1149 = vmatpush.msrb.mxu2 %v5180_v29  ;;  %1169 = vmatpush.msra.mxu3 %v5186_v3  ;;  %v5623_v29 = vld [vmem:[%s9755_s7 + $0xf0] sm:$0xff]  ;;  %v5629_v3 = vld [vmem:[%s9755_s7 + $0xf8] sm:$0xff] }
 0x274   :  { %1189 = vmatpush.msrb.mxu0 %v5609_v26  ;;  %1209 = vmatpush.msra.mxu1 %v5615_v33 }
 0x275   :  { %1150 = vmatpush.msrb.mxu2 %v5194_v7  ;;  %1170 = vmatpush.msra.mxu3 %v5200_v34  ;;  %v5637_v7 = vld [vmem:[%s9755_s7 + $0xd0] sm:$0xff]  ;;  %v5643_v34 = vld [vmem:[%s9755_s7 + $0xd8] sm:$0xff] }
 0x276   :  { %1190 = vmatpush.msrb.mxu0 %v5623_v29  ;;  %1210 = vmatpush.msra.mxu1 %v5629_v3 }
 0x277   :  { %1151 = vmatpush.msrb.mxu2 %v5208_v10  ;;  %1171 = vmatpush.msra.mxu3 %v5214_v39  ;;  %v5651_v10 = vld [vmem:[%s9755_s7 + $0xb0] sm:$0xff]  ;;  %v5657_v39 = vld [vmem:[%s9755_s7 + $0xb8] sm:$0xff] }
 0x278   :  { %1191 = vmatpush.msrb.mxu0 %v5637_v7  ;;  %1211 = vmatpush.msra.mxu1 %v5643_v34 }
 0x279   :  { %1152 = vmatpush.msrb.mxu2 %v5224_v15  ;;  %1172 = vmatpush.msra.mxu3 %v5230_v42  ;;  %v5665_v15 = vld [vmem:[%s9755_s7 + $0x90] sm:$0xff]  ;;  %v5671_v42 = vld [vmem:[%s9755_s7 + $0x98] sm:$0xff] }
 0x27a   :  { %1192 = vmatpush.msrb.mxu0 %v5651_v10  ;;  %1212 = vmatpush.msra.mxu1 %v5657_v39 }
 0x27b   :  { %1153 = vmatpush.msrb.mxu2 %v5239_v45  ;;  %1173 = vmatpush.msra.mxu3 %v5245_v38  ;;  %v5679_v45 = vld [vmem:[%s9755_s7 + $0x70] sm:$0xff]  ;;  %v5685_v38 = vld [vmem:[%s9755_s7 + $0x78] sm:$0xff] }
 0x27c   :  { %1193 = vmatpush.msrb.mxu0 %v5665_v15  ;;  %1213 = vmatpush.msra.mxu1 %v5671_v42 }
 0x27d   :  { %1154 = vmatpush.msrb.mxu2 %v5253_v25  ;;  %1174 = vmatpush.msra.mxu3 %v5259_v51  ;;  %v5693_v25 = vld [vmem:[%s9755_s7 + $0x50] sm:$0xff]  ;;  %v5699_v51 = vld [vmem:[%s9755_s7 + $0x58] sm:$0xff] }
 0x27e   :  { %1194 = vmatpush.msrb.mxu0 %v5679_v45  ;;  %1214 = vmatpush.msra.mxu1 %v5685_v38 }
 0x27f   :  { %1155 = vmatpush.msrb.mxu2 %v5267_v32  ;;  %1175 = vmatpush.msra.mxu3 %v5273_v54  ;;  %v5707_v32 = vld [vmem:[%s9755_s7 + $0x30] sm:$0xff]  ;;  %v5713_v54 = vld [vmem:[%s9755_s7 + $0x38] sm:$0xff] }
 0x280   :  { %1195 = vmatpush.msrb.mxu0 %v5693_v25  ;;  %1215 = vmatpush.msra.mxu1 %v5699_v51  ;;  %10490 = vst [vmem:[#allocation25_spill] sm:$0xff] %v5707_v32 }
 0x281   :  { %1156 = vmatpush.msrb.mxu2 %v5283_v62  ;;  %1176 = vmatpush.msra.mxu3 %v5289_v59  ;;  %10491 = vst [vmem:[#allocation5_spill] sm:$0xff] %v5713_v54  ;;  %v5721_v62 = vld [vmem:[%s9755_s7 + $0x10] sm:$0xff]  ;;  %v5727_v59 = vld [vmem:[%s9755_s7 + $0x18] sm:$0xff] }
 0x282   :  { %1196 = vmatpush.msrb.mxu0 %v5707_v32  ;;  %1216 = vmatpush.msra.mxu1 %v5713_v54  ;;  %10492 = vst [vmem:[#allocation30_spill] sm:$0xff] %v5721_v62 }
 0x283   :  { %1157 = vmatpush.msrb.mxu2 %v5301_v41  ;;  %1177 = vmatpush.msra.mxu3 %v5307_v2  ;;  %10493 = vst [vmem:[#allocation6_spill] sm:$0xff] %v5727_v59 }
 0x284   :  { %1197 = vmatpush.msrb.mxu0 %v5721_v62  ;;  %1217 = vmatpush.msra.mxu1 %v5727_v59 }
 0x2bf   :  { %v5730_v37 = vpop.f32.mrf.mxu0  ;;  %v5732_v11 = vpop.f32.mrf.mxu1 }
 0x2c4   :  { %v5734_v41 = vpop.f32.mrf.mxu2  ;;  %v5736_v2 = vpop.f32.mrf.mxu3 }
 0x2c7   :  { %v995_v0 = vpop.f32.mrf.mxu0  ;;  %v1015_v1 = vpop.f32.mrf.mxu1 }
 0x2c8   :  { %v1020_v54 = vadd.f32 %v995_v0, %v271_v20  ;;  %v1021_v32 = vadd.f32 %v1015_v1, %v312_v53  ;;  %v5819_v0 = vld [vmem:[%s9756_s5 + $0x198] sm:$0xff]  ;;  %v5825_v1 = vld [vmem:[%s9756_s5 + $0x160] sm:$0xff]  ;;  %v5831_v53 = vld [vmem:[%s9756_s5 + $0x168] sm:$0xff] }
 0x2c9   :  { %10502 = vst [vmem:[#allocation7_spill] sm:$0xff] %v5819_v0  ;;  %v5837_v20 = vld [vmem:[%s9756_s5 + $0x170] sm:$0xff] }
 0x2ca   :  { %v1024_v58 = vmul.f32 0.5, %v1020_v54  ;;  %10503 = vst [vmem:[#allocation31_spill] sm:$0xff] %v5825_v1 }
 0x2cb   :  { %10504 = vst [vmem:[#allocation8_spill] sm:$0xff] %v5831_v53 }
 0x2cc   :  { %v955_v57 = vpop.f32.mrf.mxu2  ;;  %v975_v5 = vpop.f32.mrf.mxu3  ;;  %10505 = vst [vmem:[#allocation27_spill] sm:$0xff] %v5837_v20 }
 0x2cd   :  { %v1018_v63 = vadd.f32 %v955_v57, %v189_v21  ;;  %v1019_v6 = vadd.f32 %v975_v5, %v230_v8 }
 0x2cf   :  { %v1022_v59 = vmul.f32 0.5, %v1018_v63  ;;  %v1023_v62 = vmul.f32 0.5, %v1019_v6  ;;  %v5813_v6 = vld [vmem:[%s9756_s5 + $0x190] sm:$0xff] }
 0x2d0   :  { %10501 = vst [vmem:[#allocation26_spill] sm:$0xff] %v5813_v6 }
 0x2d1   :  { %2998 = vtanh.f32 %v1022_v59 }
 0x2d2   :  { %3000 = vtanh.f32 %v1023_v62 }
 0x2d3   :  { %3002 = vtanh.f32 %v1021_v32 }
 0x2d4   :  { %3004 = vtanh.f32 %v1024_v58  ;;  %v5843_v58 = vld [vmem:[%s9756_s5 + $0x178] sm:$0xff] }
 0x2d5   :  { %10506 = vst [vmem:[#allocation9_spill] sm:$0xff] %v5843_v58 }
 0x2d7   :  { %v2999_v31 = vpop.eup %2998 }
 0x2d8   :  { %v3001_v43 = vpop.eup %3000  ;;  %v1028_v21 = vmul.f32 0.5, %v2999_v31  ;;  %v5849_v31 = vld [vmem:[%s9756_s5 + $0x140] sm:$0xff] }
 0x2d9   :  { %v1029_v8 = vmul.f32 0.5, %v3001_v43  ;;  %v3003_v5 = vpop.eup %3002  ;;  %v5807_v43 = vld [vmem:[%s9756_s5 + $0x188] sm:$0xff]  ;;  %10507 = vst [vmem:[#allocation33_spill] sm:$0xff] %v5849_v31 }
 0x2da   :  { %v1031_v57 = vadd.f32 0.5, %v1028_v21  ;;  %v3005_v49 = vpop.eup %3004  ;;  %v5855_v21 = vld [vmem:[%s9756_s5 + $0x148] sm:$0xff] }
 0x2db   :  { %v1032_v9 = vadd.f32 0.5, %v1029_v8  ;;  %v1030_v59 = vmul.f32 0.5, %v3005_v49  ;;  %10508 = vst [vmem:[#allocation10_spill] sm:$0xff] %v5855_v21  ;;  %v5861_v8 = vld [vmem:[%s9756_s5 + $0x150] sm:$0xff] }
 0x2dc   :  { %v1036_v16 = vmul.f32 %v3003_v5, %v1031_v57  ;;  %10509 = vst [vmem:[#allocation29_spill] sm:$0xff] %v5861_v8  ;;  %v5867_v57 = vld [vmem:[%s9756_s5 + $0x158] sm:$0xff]  ;;  %v5873_v5 = vld [vmem:[%s9756_s5 + $0x120] sm:$0xff]  ;;  %v5885_v49 = vld [vmem:[%s9756_s5 + $0x130] sm:$0xff] }
 0x2dd   :  { %v1035_v35 = vmul.f32 %v1032_v9, %v5217_v55  ;;  %v1033_v62 = vadd.f32 0.5, %v1030_v59  ;;  %v5767_v55 = vld [vmem:[%s9756_s5 + $0x1f8] sm:$0xff]  ;;  %v10500_v9 = vld [vmem:[#allocation143_spill] sm:$0xff]  ;;  %10510 = vst [vmem:[#allocation11_spill] sm:$0xff] %v5867_v57 }
 0x2de   :  { %10511 = vst [vmem:[#allocation35_spill] sm:$0xff] %v5873_v5  ;;  %v5891_v59 = vld [vmem:[%s9756_s5 + $0x138] sm:$0xff] }
 0x2df   :  { %v5747_v63 = vadd.f32 %v1036_v16, %v1035_v35  ;;  %v5760_v35 = vld [vmem:[%s9756_s5 + $0x1e8] sm:$0xff]  ;;  %10513 = vst [vmem:[#allocation32_spill] sm:$0xff] %v5885_v49 }
 0x2e0   :  { %v5879_v16 = vld [vmem:[%s9756_s5 + $0x128] sm:$0xff]  ;;  %10514 = vst [vmem:[#allocation13_spill] sm:$0xff] %v5891_v59 }
 0x2e1   :  { %3006 = vtanh.f32 %v5747_v63  ;;  %10512 = vst [vmem:[#allocation12_spill] sm:$0xff] %v5879_v16 }
 0x2e7   :  { %v3007_v54 = vpop.eup %3006 }
 0x2e8   :  { %v5750_v32 = vmul.f32 %v3007_v54, %v1033_v62  ;;  %v5897_v62 = vld [vmem:[%s9756_s5 + $0x100] sm:$0xff]  ;;  %v5903_v54 = vld [vmem:[%s9756_s5 + $0x108] sm:$0xff] }
 0x2e9   :  { %10515 = vst [vmem:[#allocation37_spill] sm:$0xff] %v5897_v62 }
 0x2ea   :  { %1056 = vmatmul.f32.vlgmr.msra.gmra.mxu2 %v5750_v32  ;;  %1076 = vmatmul.f32.vlgmr.msrb.gmra.mxu3 %v5750_v32  ;;  %10516 = vst [vmem:[#allocation14_spill] sm:$0xff] %v5903_v54 }
 0x2eb   :  { %1096 = vmatmul.f32.vlgmr.msra.gmra.mxu0 %v5750_v32  ;;  %1116 = vmatmul.f32.vlgmr.msrb.gmra.mxu1 %v5750_v32 }
 0x2ec   :  { %1226 = vmatpush.msra.mxu2 %v5315_v50  ;;  %1246 = vmatpush.msrb.mxu3 %v5760_v35  ;;  %v5774_v50 = vld [vmem:[%s9756_s5 + $0x1c8] sm:$0xff] }
 0x2ed   :  { %1266 = vmatpush.msra.mxu0 %v5322_v36  ;;  %1286 = vmatpush.msrb.mxu1 %v5767_v55  ;;  %v5781_v36 = vld [vmem:[%s9756_s5 + $0x1d8] sm:$0xff] }
 0x2ee   :  { %1227 = vmatpush.msra.mxu2 %v5329_v56  ;;  %1247 = vmatpush.msrb.mxu3 %v5774_v50  ;;  %v5788_v56 = vld [vmem:[%s9756_s5 + $0x1a8] sm:$0xff] }
 0x2ef   :  { %1267 = vmatpush.msra.mxu0 %v5336_v44  ;;  %1287 = vmatpush.msrb.mxu1 %v5781_v36  ;;  %v5795_v44 = vld [vmem:[%s9756_s5 + $0x1b8] sm:$0xff] }
 0x2f0   :  { %1228 = vmatpush.msra.mxu2 %v5343_v13  ;;  %1248 = vmatpush.msrb.mxu3 %v5788_v56  ;;  %v5801_v13 = vld [vmem:[%s9756_s5 + $0x180] sm:$0xff] }
 0x2f1   :  { %1268 = vmatpush.msra.mxu0 %v10500_v9  ;;  %1288 = vmatpush.msrb.mxu1 %v5795_v44  ;;  %v5909_v9 = vld [vmem:[%s9756_s5 + $0x110] sm:$0xff] }
 0x2f2   :  { %1229 = vmatpush.msra.mxu2 %v5801_v13  ;;  %1249 = vmatpush.msrb.mxu3 %v5807_v43  ;;  %10517 = vst [vmem:[#allocation34_spill] sm:$0xff] %v5909_v9 }
 0x2f3   :  { %1269 = vmatpush.msra.mxu0 %v5813_v6  ;;  %1289 = vmatpush.msrb.mxu1 %v5819_v0 }
 0x2f4   :  { %1230 = vmatpush.msra.mxu2 %v5825_v1  ;;  %1250 = vmatpush.msrb.mxu3 %v5831_v53 }
 0x2f5   :  { %1270 = vmatpush.msra.mxu0 %v5837_v20  ;;  %1290 = vmatpush.msrb.mxu1 %v5843_v58  ;;  %v10553_v20 = vld [vmem:[#allocation28_spill] sm:$0xff] }
 0x2f6   :  { %1231 = vmatpush.msra.mxu2 %v5849_v31  ;;  %1251 = vmatpush.msrb.mxu3 %v5855_v21  ;;  %v932_v53 = vadd.f32 %v5732_v11, %v10553_v20 }
 0x2f7   :  { %1271 = vmatpush.msra.mxu0 %v5861_v8  ;;  %1291 = vmatpush.msrb.mxu1 %v5867_v57 }
 0x2f8   :  { %1232 = vmatpush.msra.mxu2 %v5873_v5  ;;  %1252 = vmatpush.msrb.mxu3 %v5879_v16  ;;  %v10552_v16 = vld [vmem:[#allocation24_spill] sm:$0xff] }
 0x2f9   :  { %1272 = vmatpush.msra.mxu0 %v5885_v49  ;;  %1292 = vmatpush.msrb.mxu1 %v5891_v59  ;;  %v5915_v59 = vld [vmem:[%s9756_s5 + $0x118] sm:$0xff] }
 0x2fa   :  { %1233 = vmatpush.msra.mxu2 %v5897_v62  ;;  %1253 = vmatpush.msrb.mxu3 %v5903_v54  ;;  %10518 = vst [vmem:[#allocation15_spill] sm:$0xff] %v5915_v59  ;;  %v5921_v62 = vld [vmem:[%s9756_s5 + $0xe0] sm:$0xff]  ;;  %v5927_v54 = vld [vmem:[%s9756_s5 + $0xe8] sm:$0xff] }
 0x2fb   :  { %1273 = vmatpush.msra.mxu0 %v5909_v9  ;;  %1293 = vmatpush.msrb.mxu1 %v5915_v59  ;;  %10519 = vst [vmem:[#allocation39_spill] sm:$0xff] %v5921_v62  ;;  %v5933_v9 = vld [vmem:[%s9756_s5 + $0xf0] sm:$0xff]  ;;  %v5939_v59 = vld [vmem:[%s9756_s5 + $0xf8] sm:$0xff] }
 0x2fc   :  { %1234 = vmatpush.msra.mxu2 %v5921_v62  ;;  %10520 = vst [vmem:[#allocation16_spill] sm:$0xff] %v5927_v54  ;;  %1254 = vmatpush.msrb.mxu3 %v5927_v54  ;;  %v5945_v62 = vld [vmem:[%s9756_s5 + $0xc0] sm:$0xff]  ;;  %v5951_v54 = vld [vmem:[%s9756_s5 + $0xc8] sm:$0xff] }
 0x2fd   :  { %10521 = vst [vmem:[#allocation36_spill] sm:$0xff] %v5933_v9  ;;  %1274 = vmatpush.msra.mxu0 %v5933_v9  ;;  %1294 = vmatpush.msrb.mxu1 %v5939_v59  ;;  %v5957_v9 = vld [vmem:[%s9756_s5 + $0xd0] sm:$0xff] }
 0x2fe   :  { %10522 = vst [vmem:[#allocation17_spill] sm:$0xff] %v5939_v59  ;;  %1235 = vmatpush.msra.mxu2 %v5945_v62  ;;  %1255 = vmatpush.msrb.mxu3 %v5951_v54  ;;  %v5963_v59 = vld [vmem:[%s9756_s5 + $0xd8] sm:$0xff] }
 0x2ff   :  { %10523 = vst [vmem:[#allocation41_spill] sm:$0xff] %v5945_v62  ;;  %1275 = vmatpush.msra.mxu0 %v5957_v9  ;;  %1295 = vmatpush.msrb.mxu1 %v5963_v59  ;;  %v5969_v62 = vld [vmem:[%s9756_s5 + $0xa0] sm:$0xff] }
 0x300   :  { %10524 = vst [vmem:[#allocation18_spill] sm:$0xff] %v5951_v54  ;;  %1236 = vmatpush.msra.mxu2 %v5969_v62  ;;  %v5975_v54 = vld [vmem:[%s9756_s5 + $0xa8] sm:$0xff] }
 0x301   :  { %10525 = vst [vmem:[#allocation38_spill] sm:$0xff] %v5957_v9  ;;  %1256 = vmatpush.msrb.mxu3 %v5975_v54  ;;  %v5981_v9 = vld [vmem:[%s9756_s5 + $0xb0] sm:$0xff] }
 0x302   :  { %10526 = vst [vmem:[#allocation19_spill] sm:$0xff] %v5963_v59  ;;  %1276 = vmatpush.msra.mxu0 %v5981_v9  ;;  %v5987_v59 = vld [vmem:[%s9756_s5 + $0xb8] sm:$0xff] }
 0x303   :  { %10527 = vst [vmem:[#allocation43_spill] sm:$0xff] %v5969_v62  ;;  %1296 = vmatpush.msrb.mxu1 %v5987_v59  ;;  %v5993_v62 = vld [vmem:[%s9756_s5 + $0x80] sm:$0xff] }
 0x304   :  { %10528 = vst [vmem:[#allocation20_spill] sm:$0xff] %v5975_v54  ;;  %1237 = vmatpush.msra.mxu2 %v5993_v62  ;;  %v5999_v54 = vld [vmem:[%s9756_s5 + $0x88] sm:$0xff] }
 0x305   :  { %10529 = vst [vmem:[#allocation40_spill] sm:$0xff] %v5981_v9  ;;  %1257 = vmatpush.msrb.mxu3 %v5999_v54  ;;  %v6005_v9 = vld [vmem:[%s9756_s5 + $0x90] sm:$0xff] }
 0x306   :  { %10530 = vst [vmem:[#allocation21_spill] sm:$0xff] %v5987_v59  ;;  %1277 = vmatpush.msra.mxu0 %v6005_v9  ;;  %v6011_v59 = vld [vmem:[%s9756_s5 + $0x98] sm:$0xff] }
 0x307   :  { %10531 = vst [vmem:[#allocation44_spill] sm:$0xff] %v5993_v62  ;;  %1297 = vmatpush.msrb.mxu1 %v6011_v59  ;;  %v6017_v62 = vld [vmem:[%s9756_s5 + $0x60] sm:$0xff] }
 0x308   :  { %10532 = vst [vmem:[#allocation22_spill] sm:$0xff] %v5999_v54  ;;  %1238 = vmatpush.msra.mxu2 %v6017_v62  ;;  %v6023_v54 = vld [vmem:[%s9756_s5 + $0x68] sm:$0xff] }
 0x309   :  { %10533 = vst [vmem:[#allocation42_spill] sm:$0xff] %v6005_v9  ;;  %1258 = vmatpush.msrb.mxu3 %v6023_v54  ;;  %v6029_v9 = vld [vmem:[%s9756_s5 + $0x70] sm:$0xff] }
 0x30a   :  { %10534 = vst [vmem:[#allocation23_spill] sm:$0xff] %v6011_v59  ;;  %1278 = vmatpush.msra.mxu0 %v6029_v9  ;;  %v6035_v59 = vld [vmem:[%s9756_s5 + $0x78] sm:$0xff] }
 0x30b   :  { %10535 = vst [vmem:[#allocation45_spill] sm:$0xff] %v6017_v62  ;;  %1298 = vmatpush.msrb.mxu1 %v6035_v59  ;;  %v6041_v62 = vld [vmem:[%s9756_s5 + $0x40] sm:$0xff] }
 0x30c   :  { %10536 = vst [vmem:[#allocation102_spill] sm:$0xff] %v6023_v54  ;;  %1239 = vmatpush.msra.mxu2 %v6041_v62  ;;  %v6047_v54 = vld [vmem:[%s9756_s5 + $0x48] sm:$0xff] }
 0x30d   :  { %10537 = vst [vmem:[#allocation103_spill] sm:$0xff] %v6029_v9  ;;  %1259 = vmatpush.msrb.mxu3 %v6047_v54  ;;  %v6053_v9 = vld [vmem:[%s9756_s5 + $0x50] sm:$0xff] }
 0x30e   :  { %10538 = vst [vmem:[#allocation126_spill] sm:$0xff] %v6035_v59  ;;  %1279 = vmatpush.msra.mxu0 %v6053_v9  ;;  %v6059_v59 = vld [vmem:[%s9756_s5 + $0x58] sm:$0xff] }
 0x30f   :  { %10539 = vst [vmem:[#allocation131_spill] sm:$0xff] %v6041_v62  ;;  %1299 = vmatpush.msrb.mxu1 %v6059_v59  ;;  %v6065_v62 = vld [vmem:[%s9756_s5 + $0x20] sm:$0xff] }
 0x310   :  { %10540 = vst [vmem:[#allocation70_spill] sm:$0xff] %v6047_v54  ;;  %1240 = vmatpush.msra.mxu2 %v6065_v62  ;;  %v6071_v54 = vld [vmem:[%s9756_s5 + $0x28] sm:$0xff] }
 0x311   :  { %10541 = vst [vmem:[#allocation71_spill] sm:$0xff] %v6053_v9  ;;  %1260 = vmatpush.msrb.mxu3 %v6071_v54  ;;  %v6077_v9 = vld [vmem:[%s9756_s5 + $0x30] sm:$0xff] }
 0x312   :  { %10542 = vst [vmem:[#allocation72_spill] sm:$0xff] %v6059_v59  ;;  %1280 = vmatpush.msra.mxu0 %v6077_v9  ;;  %v6083_v59 = vld [vmem:[%s9756_s5 + $0x38] sm:$0xff] }
 0x313   :  { %10543 = vst [vmem:[#allocation73_spill] sm:$0xff] %v6065_v62  ;;  %1300 = vmatpush.msrb.mxu1 %v6083_v59  ;;  %v6089_v62 = vld [vmem:[%s9756_s5] sm:$0xff] }
 0x314   :  { %10544 = vst [vmem:[#allocation75_spill] sm:$0xff] %v6071_v54  ;;  %1241 = vmatpush.msra.mxu2 %v6089_v62  ;;  %v6095_v54 = vld [vmem:[%s9756_s5 + $0x8] sm:$0xff] }
 0x315   :  { %10545 = vst [vmem:[#allocation76_spill] sm:$0xff] %v6077_v9  ;;  %1261 = vmatpush.msrb.mxu3 %v6095_v54  ;;  %v6101_v9 = vld [vmem:[%s9756_s5 + $0x10] sm:$0xff] }
 0x316   :  { %10546 = vst [vmem:[#allocation77_spill] sm:$0xff] %v6083_v59  ;;  %1281 = vmatpush.msra.mxu0 %v6101_v9  ;;  %v6107_v59 = vld [vmem:[%s9756_s5 + $0x18] sm:$0xff] }
 0x317   :  { %10547 = vst [vmem:[#allocation78_spill] sm:$0xff] %v6089_v62  ;;  %1301 = vmatpush.msrb.mxu1 %v6107_v59  ;;  %v10551_v62 = vld [vmem:[#allocation3_spill] sm:$0xff] }
 0x318   :  { %10548 = vst [vmem:[#allocation81_spill] sm:$0xff] %v6095_v54  ;;  %v872_v49 = vadd.f32 %v5734_v41, %v10551_v62  ;;  %v892_v54 = vadd.f32 %v5736_v2, %v10552_v16 }
 0x319   :  { %10549 = vst [vmem:[#allocation82_spill] sm:$0xff] %v6101_v9  ;;  %v912_v9 = vadd.f32 %v5730_v37, %v5419_v47 }
 0x31a   :  { %10550 = vst [vmem:[#allocation83_spill] sm:$0xff] %v6107_v59 }
 0x368   :  { %v1097_v31 = vpop.f32.mrf.mxu0  ;;  %v1117_v58 = vpop.f32.mrf.mxu1 }
 0x369   :  { %v1122_v0 = vadd.f32 %v1097_v31, %v912_v9  ;;  %v1123_v6 = vadd.f32 %v1117_v58, %v932_v53  ;;  %v6125_v58 = vld [vmem:[%s9758_s6 + $0x1e0] sm:$0xff]  ;;  %v6143_v31 = vld [vmem:[%s9758_s6 + $0x1f8] sm:$0xff] }
 0x36a   :  { %v6173_v9 = vld [vmem:[%s9758_s6 + $0x1a0] sm:$0xff] }
 0x36b   :  { %v1126_v41 = vmul.f32 0.5, %v1122_v0 }
 0x36d   :  { %v1057_v5 = vpop.f32.mrf.mxu2  ;;  %v1077_v57 = vpop.f32.mrf.mxu3 }
 0x36e   :  { %v1120_v8 = vadd.f32 %v1057_v5, %v872_v49  ;;  %v1121_v21 = vadd.f32 %v1077_v57, %v892_v54 }
 0x370   :  { %v1124_v1 = vmul.f32 0.5, %v1120_v8  ;;  %v1125_v59 = vmul.f32 0.5, %v1121_v21  ;;  %v6149_v21 = vld [vmem:[%s9758_s6 + $0x1c0] sm:$0xff] }
 0x372   :  { %3008 = vtanh.f32 %v1124_v1 }
 0x373   :  { %3010 = vtanh.f32 %v1125_v59  ;;  %v6161_v59 = vld [vmem:[%s9758_s6 + $0x1d0] sm:$0xff] }
 0x374   :  { %3012 = vtanh.f32 %v1123_v6 }
 0x375   :  { %3014 = vtanh.f32 %v1126_v41  ;;  %v6179_v41 = vld [vmem:[%s9758_s6 + $0x1a8] sm:$0xff] }
 0x378   :  { %v3009_v2 = vpop.eup %3008 }
 0x379   :  { %v3011_v16 = vpop.eup %3010  ;;  %v1130_v5 = vmul.f32 0.5, %v3009_v2  ;;  %v6185_v2 = vld [vmem:[%s9758_s6 + $0x1b0] sm:$0xff] }
 0x37a   :  { %v1131_v57 = vmul.f32 0.5, %v3011_v16  ;;  %v3013_v54 = vpop.eup %3012  ;;  %v6155_v16 = vld [vmem:[%s9758_s6 + $0x1c8] sm:$0xff] }
 0x37b   :  { %v1133_v49 = vadd.f32 0.5, %v1130_v5  ;;  %v3015_v11 = vpop.eup %3014  ;;  %v6191_v5 = vld [vmem:[%s9758_s6 + $0x1b8] sm:$0xff] }
 0x37c   :  { %v1134_v62 = vadd.f32 0.5, %v1131_v57  ;;  %v1132_v1 = vmul.f32 0.5, %v3015_v11  ;;  %v6201_v57 = vld [vmem:[%s9758_s6 + $0x180] sm:$0xff]  ;;  %v6231_v11 = vld [vmem:[%s9758_s6 + $0x168] sm:$0xff] }
 0x37d   :  { %v1138_v37 = vmul.f32 %v3013_v54, %v1133_v49  ;;  %v6207_v49 = vld [vmem:[%s9758_s6 + $0x188] sm:$0xff]  ;;  %v6213_v54 = vld [vmem:[%s9758_s6 + $0x190] sm:$0xff] }
 0x37e   :  { %v1137_v47 = vmul.f32 %v1134_v62, %v5425_v48  ;;  %v1135_v53 = vadd.f32 0.5, %v1132_v1  ;;  %v6137_v48 = vld [vmem:[%s9758_s6 + $0x1f0] sm:$0xff]  ;;  %v6167_v62 = vld [vmem:[%s9758_s6 + $0x1d8] sm:$0xff] }
 0x37f   :  { %v6237_v1 = vld [vmem:[%s9758_s6 + $0x170] sm:$0xff] }
 0x380   :  { %v6119_v8 = vadd.f32 %v1138_v37, %v1137_v47  ;;  %v6131_v47 = vld [vmem:[%s9758_s6 + $0x1e8] sm:$0xff]  ;;  %v6225_v37 = vld [vmem:[%s9758_s6 + $0x160] sm:$0xff]  ;;  %10554 = vst [vmem:[#allocation84_spill] sm:$0xff] %v6237_v1 }
 0x382   :  { %3016 = vtanh.f32 %v6119_v8 }
 0x388   :  { %v3017_v0 = vpop.eup %3016 }
 0x389   :  { %v1141_v6 = vmul.f32 %v3017_v0, %v1135_v53  ;;  %v6243_v53 = vld [vmem:[%s9758_s6 + $0x178] sm:$0xff]  ;;  %v6249_v0 = vld [vmem:[%s9758_s6 + $0x140] sm:$0xff] }
 0x38a   :  { %10555 = vst [vmem:[#allocation85_spill] sm:$0xff] %v6243_v53 }
 0x38b   :  { %1158 = vmatmul.f32.vlgmr.msrb.gmra.mxu2 %v1141_v6  ;;  %1178 = vmatmul.f32.vlgmr.msra.gmra.mxu3 %v1141_v6  ;;  %10556 = vst [vmem:[#allocation86_spill] sm:$0xff] %v6249_v0 }
 0x38c   :  { %1198 = vmatmul.f32.vlgmr.msrb.gmra.mxu0 %v1141_v6  ;;  %1218 = vmatmul.f32.vlgmr.msra.gmra.mxu1 %v1141_v6  ;;  %v6255_v6 = vld [vmem:[%s9758_s6 + $0x148] sm:$0xff] }
 0x38d   :  { %1328 = vmatpush.msrb.mxu2 %v6125_v58  ;;  %1348 = vmatpush.msra.mxu3 %v6131_v47  ;;  %10557 = vst [vmem:[#allocation87_spill] sm:$0xff] %v6255_v6 }
 0x38e   :  { %1368 = vmatpush.msrb.mxu0 %v6137_v48  ;;  %1388 = vmatpush.msra.mxu1 %v6143_v31 }
 0x38f   :  { %1329 = vmatpush.msrb.mxu2 %v6149_v21  ;;  %1349 = vmatpush.msra.mxu3 %v6155_v16 }
 0x390   :  { %1369 = vmatpush.msrb.mxu0 %v6161_v59  ;;  %1389 = vmatpush.msra.mxu1 %v6167_v62 }
 0x391   :  { %1330 = vmatpush.msrb.mxu2 %v6173_v9  ;;  %1350 = vmatpush.msra.mxu3 %v6179_v41 }
 0x392   :  { %1370 = vmatpush.msrb.mxu0 %v6185_v2  ;;  %1390 = vmatpush.msra.mxu1 %v6191_v5 }
 0x393   :  { %1242 = vmatmul.f32.vlgmr.msra.gmra.mxu2 %v5750_v32  ;;  %1262 = vmatmul.f32.vlgmr.msrb.gmra.mxu3 %v5750_v32 }
 0x394   :  { %1282 = vmatmul.f32.vlgmr.msra.gmra.mxu0 %v5750_v32  ;;  %1302 = vmatmul.f32.vlgmr.msrb.gmra.mxu1 %v5750_v32  ;;  %v6219_v32 = vld [vmem:[%s9758_s6 + $0x198] sm:$0xff] }
 0x395   :  { %1331 = vmatpush.msrb.mxu2 %v6201_v57  ;;  %1351 = vmatpush.msra.mxu3 %v6207_v49 }
 0x396   :  { %1371 = vmatpush.msrb.mxu0 %v6213_v54  ;;  %1391 = vmatpush.msra.mxu1 %v6219_v32 }
 0x397   :  { %1332 = vmatpush.msrb.mxu2 %v6225_v37  ;;  %1352 = vmatpush.msra.mxu3 %v6231_v11 }
 0x398   :  { %1372 = vmatpush.msrb.mxu0 %v6237_v1  ;;  %1392 = vmatpush.msra.mxu1 %v6243_v53  ;;  %v6261_v1 = vld [vmem:[%s9758_s6 + $0x150] sm:$0xff]  ;;  %v6267_v53 = vld [vmem:[%s9758_s6 + $0x158] sm:$0xff] }
 0x399   :  { %1333 = vmatpush.msrb.mxu2 %v6249_v0  ;;  %1353 = vmatpush.msra.mxu3 %v6255_v6  ;;  %10558 = vst [vmem:[#allocation88_spill] sm:$0xff] %v6261_v1  ;;  %v6273_v0 = vld [vmem:[%s9758_s6 + $0x120] sm:$0xff]  ;;  %v6279_v6 = vld [vmem:[%s9758_s6 + $0x128] sm:$0xff] }
 0x39a   :  { %1373 = vmatpush.msrb.mxu0 %v6261_v1  ;;  %10559 = vst [vmem:[#allocation89_spill] sm:$0xff] %v6267_v53  ;;  %1393 = vmatpush.msra.mxu1 %v6267_v53  ;;  %v6285_v1 = vld [vmem:[%s9758_s6 + $0x130] sm:$0xff]  ;;  %v6291_v53 = vld [vmem:[%s9758_s6 + $0x138] sm:$0xff] }
 0x39b   :  { %10560 = vst [vmem:[#allocation90_spill] sm:$0xff] %v6273_v0  ;;  %1334 = vmatpush.msrb.mxu2 %v6273_v0  ;;  %1354 = vmatpush.msra.mxu3 %v6279_v6  ;;  %v6297_v0 = vld [vmem:[%s9758_s6 + $0x100] sm:$0xff] }
 0x39c   :  { %10561 = vst [vmem:[#allocation91_spill] sm:$0xff] %v6279_v6  ;;  %1374 = vmatpush.msrb.mxu0 %v6285_v1  ;;  %1394 = vmatpush.msra.mxu1 %v6291_v53  ;;  %v6303_v6 = vld [vmem:[%s9758_s6 + $0x108] sm:$0xff] }
 0x39d   :  { %10562 = vst [vmem:[#allocation92_spill] sm:$0xff] %v6285_v1  ;;  %1335 = vmatpush.msrb.mxu2 %v6297_v0  ;;  %1355 = vmatpush.msra.mxu3 %v6303_v6  ;;  %v6309_v1 = vld [vmem:[%s9758_s6 + $0x110] sm:$0xff] }
 0x39e   :  { %10563 = vst [vmem:[#allocation94_spill] sm:$0xff] %v6291_v53  ;;  %1375 = vmatpush.msrb.mxu0 %v6309_v1  ;;  %v6315_v53 = vld [vmem:[%s9758_s6 + $0x118] sm:$0xff] }
 0x39f   :  { %10564 = vst [vmem:[#allocation95_spill] sm:$0xff] %v6297_v0  ;;  %1395 = vmatpush.msra.mxu1 %v6315_v53  ;;  %v6321_v0 = vld [vmem:[%s9758_s6 + $0xe0] sm:$0xff] }
 0x3a0   :  { %10565 = vst [vmem:[#allocation96_spill] sm:$0xff] %v6303_v6  ;;  %1336 = vmatpush.msrb.mxu2 %v6321_v0  ;;  %v6327_v6 = vld [vmem:[%s9758_s6 + $0xe8] sm:$0xff] }
 0x3a1   :  { %10566 = vst [vmem:[#allocation97_spill] sm:$0xff] %v6309_v1  ;;  %1356 = vmatpush.msra.mxu3 %v6327_v6  ;;  %v6333_v1 = vld [vmem:[%s9758_s6 + $0xf0] sm:$0xff] }
 0x3a2   :  { %10567 = vst [vmem:[#allocation98_spill] sm:$0xff] %v6315_v53  ;;  %1376 = vmatpush.msrb.mxu0 %v6333_v1  ;;  %v6339_v53 = vld [vmem:[%s9758_s6 + $0xf8] sm:$0xff] }
 0x3a3   :  { %10568 = vst [vmem:[#allocation99_spill] sm:$0xff] %v6321_v0  ;;  %1396 = vmatpush.msra.mxu1 %v6339_v53  ;;  %v6345_v0 = vld [vmem:[%s9758_s6 + $0xc0] sm:$0xff] }
 0x3a4   :  { %10569 = vst [vmem:[#allocation100_spill] sm:$0xff] %v6327_v6  ;;  %1337 = vmatpush.msrb.mxu2 %v6345_v0  ;;  %v6351_v6 = vld [vmem:[%s9758_s6 + $0xc8] sm:$0xff] }
 0x3a5   :  { %10570 = vst [vmem:[#allocation101_spill] sm:$0xff] %v6333_v1  ;;  %1357 = vmatpush.msra.mxu3 %v6351_v6  ;;  %v6357_v1 = vld [vmem:[%s9758_s6 + $0xd0] sm:$0xff] }
 0x3a6   :  { %10571 = vst [vmem:[#allocation104_spill] sm:$0xff] %v6339_v53  ;;  %1377 = vmatpush.msrb.mxu0 %v6357_v1  ;;  %v6363_v53 = vld [vmem:[%s9758_s6 + $0xd8] sm:$0xff] }
 0x3a7   :  { %10572 = vst [vmem:[#allocation105_spill] sm:$0xff] %v6345_v0  ;;  %1397 = vmatpush.msra.mxu1 %v6363_v53  ;;  %v6369_v0 = vld [vmem:[%s9758_s6 + $0xa0] sm:$0xff] }
 0x3a8   :  { %10573 = vst [vmem:[#allocation106_spill] sm:$0xff] %v6351_v6  ;;  %1338 = vmatpush.msrb.mxu2 %v6369_v0  ;;  %v6375_v6 = vld [vmem:[%s9758_s6 + $0xa8] sm:$0xff] }
 0x3a9   :  { %10574 = vst [vmem:[#allocation107_spill] sm:$0xff] %v6357_v1  ;;  %1358 = vmatpush.msra.mxu3 %v6375_v6  ;;  %v6381_v1 = vld [vmem:[%s9758_s6 + $0xb0] sm:$0xff] }
 0x3aa   :  { %10575 = vst [vmem:[#allocation108_spill] sm:$0xff] %v6363_v53  ;;  %1378 = vmatpush.msrb.mxu0 %v6381_v1  ;;  %v6387_v53 = vld [vmem:[%s9758_s6 + $0xb8] sm:$0xff] }
 0x3ab   :  { %10576 = vst [vmem:[#allocation109_spill] sm:$0xff] %v6369_v0  ;;  %1398 = vmatpush.msra.mxu1 %v6387_v53  ;;  %v6393_v0 = vld [vmem:[%s9758_s6 + $0x80] sm:$0xff] }
 0x3ac   :  { %10577 = vst [vmem:[#allocation110_spill] sm:$0xff] %v6375_v6  ;;  %1339 = vmatpush.msrb.mxu2 %v6393_v0  ;;  %v6399_v6 = vld [vmem:[%s9758_s6 + $0x88] sm:$0xff] }
 0x3ad   :  { %10578 = vst [vmem:[#allocation111_spill] sm:$0xff] %v6381_v1  ;;  %1359 = vmatpush.msra.mxu3 %v6399_v6  ;;  %v6405_v1 = vld [vmem:[%s9758_s6 + $0x90] sm:$0xff] }
 0x3ae   :  { %10579 = vst [vmem:[#allocation113_spill] sm:$0xff] %v6387_v53  ;;  %1379 = vmatpush.msrb.mxu0 %v6405_v1  ;;  %v6411_v53 = vld [vmem:[%s9758_s6 + $0x98] sm:$0xff] }
 0x3af   :  { %10580 = vst [vmem:[#allocation114_spill] sm:$0xff] %v6393_v0  ;;  %1399 = vmatpush.msra.mxu1 %v6411_v53  ;;  %v6417_v0 = vld [vmem:[%s9758_s6 + $0x60] sm:$0xff] }
 0x3b0   :  { %10581 = vst [vmem:[#allocation115_spill] sm:$0xff] %v6399_v6  ;;  %1340 = vmatpush.msrb.mxu2 %v6417_v0  ;;  %v6423_v6 = vld [vmem:[%s9758_s6 + $0x68] sm:$0xff] }
 0x3b1   :  { %10582 = vst [vmem:[#allocation116_spill] sm:$0xff] %v6405_v1  ;;  %1360 = vmatpush.msra.mxu3 %v6423_v6  ;;  %v6429_v1 = vld [vmem:[%s9758_s6 + $0x70] sm:$0xff] }
 0x3b2   :  { %10583 = vst [vmem:[#allocation117_spill] sm:$0xff] %v6411_v53  ;;  %1380 = vmatpush.msrb.mxu0 %v6429_v1  ;;  %v6435_v53 = vld [vmem:[%s9758_s6 + $0x78] sm:$0xff] }
 0x3b3   :  { %10584 = vst [vmem:[#allocation118_spill] sm:$0xff] %v6417_v0  ;;  %1400 = vmatpush.msra.mxu1 %v6435_v53  ;;  %v6441_v0 = vld [vmem:[%s9758_s6 + $0x40] sm:$0xff] }
 0x3b4   :  { %10585 = vst [vmem:[#allocation119_spill] sm:$0xff] %v6423_v6  ;;  %1341 = vmatpush.msrb.mxu2 %v6441_v0  ;;  %v6447_v6 = vld [vmem:[%s9758_s6 + $0x48] sm:$0xff] }
 0x3b5   :  { %10586 = vst [vmem:[#allocation120_spill] sm:$0xff] %v6429_v1  ;;  %1361 = vmatpush.msra.mxu3 %v6447_v6  ;;  %v6453_v1 = vld [vmem:[%s9758_s6 + $0x50] sm:$0xff] }
 0x3b6   :  { %10587 = vst [vmem:[#allocation121_spill] sm:$0xff] %v6435_v53  ;;  %1381 = vmatpush.msrb.mxu0 %v6453_v1  ;;  %v6459_v53 = vld [vmem:[%s9758_s6 + $0x58] sm:$0xff] }
 0x3b7   :  { %10588 = vst [vmem:[#allocation122_spill] sm:$0xff] %v6441_v0  ;;  %1401 = vmatpush.msra.mxu1 %v6459_v53  ;;  %v6465_v0 = vld [vmem:[%s9758_s6 + $0x20] sm:$0xff] }
 0x3b8   :  { %10589 = vst [vmem:[#allocation123_spill] sm:$0xff] %v6447_v6  ;;  %1342 = vmatpush.msrb.mxu2 %v6465_v0  ;;  %v6471_v6 = vld [vmem:[%s9758_s6 + $0x28] sm:$0xff] }
 0x3b9   :  { %10590 = vst [vmem:[#allocation125_spill] sm:$0xff] %v6453_v1  ;;  %1362 = vmatpush.msra.mxu3 %v6471_v6  ;;  %v6477_v1 = vld [vmem:[%s9758_s6 + $0x30] sm:$0xff] }
 0x3ba   :  { %10591 = vst [vmem:[#allocation127_spill] sm:$0xff] %v6459_v53  ;;  %1382 = vmatpush.msrb.mxu0 %v6477_v1  ;;  %v6483_v53 = vld [vmem:[%s9758_s6 + $0x38] sm:$0xff] }
 0x3bb   :  { %10592 = vst [vmem:[#allocation128_spill] sm:$0xff] %v6465_v0  ;;  %1402 = vmatpush.msra.mxu1 %v6483_v53  ;;  %v6489_v0 = vld [vmem:[%s9758_s6] sm:$0xff] }
 0x3bc   :  { %10593 = vst [vmem:[#allocation129_spill] sm:$0xff] %v6471_v6  ;;  %1343 = vmatpush.msrb.mxu2 %v6489_v0  ;;  %v6495_v6 = vld [vmem:[%s9758_s6 + $0x8] sm:$0xff] }
 0x3bd   :  { %10594 = vst [vmem:[#allocation130_spill] sm:$0xff] %v6477_v1  ;;  %1363 = vmatpush.msra.mxu3 %v6495_v6  ;;  %v6501_v1 = vld [vmem:[%s9758_s6 + $0x10] sm:$0xff] }
 0x3be   :  { %10595 = vst [vmem:[#allocation132_spill] sm:$0xff] %v6483_v53  ;;  %1383 = vmatpush.msrb.mxu0 %v6501_v1  ;;  %v6507_v53 = vld [vmem:[%s9758_s6 + $0x18] sm:$0xff] }
 0x3bf   :  { %10596 = vst [vmem:[#allocation133_spill] sm:$0xff] %v6489_v0  ;;  %1403 = vmatpush.msra.mxu1 %v6507_v53  ;;  %v6513_v0 = vld [vmem:[%s9755_s7 + $0x1e0] sm:$0xff]  ;;  %1450 = vmatpush.msrb.mxu3 %v5500_v30 }
 0x3c0   :  { %10597 = vst [vmem:[#allocation134_spill] sm:$0xff] %v6501_v1  ;;  %1430 = vmatpush.msra.mxu2 %v6513_v0  ;;  %1470 = vmatpush.msra.mxu0 %v5506_v46  ;;  %v6522_v1 = vld [vmem:[%s9755_s7 + $0x1c0] sm:$0xff]  ;;  %v6537_v46 = vld [vmem:[%s9755_s7 + $0x1a8] sm:$0xff] }
 0x3c1   :  { %1490 = vmatpush.msrb.mxu1 %v5512_v28  ;;  %1451 = vmatpush.msrb.mxu3 %v5519_v14  ;;  %v6531_v30 = vld [vmem:[%s9755_s7 + $0x1a0] sm:$0xff]  ;;  %v6551_v14 = vld [vmem:[%s9755_s7 + $0x188] sm:$0xff] }
 0x3c2   :  { %1431 = vmatpush.msra.mxu2 %v6522_v1  ;;  %1471 = vmatpush.msra.mxu0 %v5525_v24  ;;  %v6545_v28 = vld [vmem:[%s9755_s7 + $0x180] sm:$0xff] }
 0x3c3   :  { %1491 = vmatpush.msrb.mxu1 %v5531_v4  ;;  %1452 = vmatpush.msrb.mxu3 %v6537_v46  ;;  %v6559_v24 = vld [vmem:[%s9755_s7 + $0x160] sm:$0xff]  ;;  %v6565_v4 = vld [vmem:[%s9755_s7 + $0x168] sm:$0xff] }
 0x3c4   :  { %1432 = vmatpush.msra.mxu2 %v6531_v30  ;;  %1472 = vmatpush.msra.mxu0 %v5539_v22  ;;  %10598 = vst [vmem:[#allocation135_spill] sm:$0xff] %v6565_v4  ;;  %v6573_v22 = vld [vmem:[%s9755_s7 + $0x140] sm:$0xff] }
 0x3c5   :  { %1492 = vmatpush.msrb.mxu1 %v5545_v17  ;;  %1453 = vmatpush.msrb.mxu3 %v6551_v14  ;;  %10599 = vst [vmem:[#allocation136_spill] sm:$0xff] %v6573_v22  ;;  %v6579_v17 = vld [vmem:[%s9755_s7 + $0x148] sm:$0xff] }
 0x3c6   :  { %1433 = vmatpush.msra.mxu2 %v6545_v28  ;;  %1473 = vmatpush.msra.mxu0 %v5553_v40  ;;  %10600 = vst [vmem:[#allocation137_spill] sm:$0xff] %v6579_v17  ;;  %v6587_v40 = vld [vmem:[%s9755_s7 + $0x120] sm:$0xff] }
 0x3c7   :  { %1493 = vmatpush.msrb.mxu1 %v5559_v19  ;;  %1454 = vmatpush.msrb.mxu3 %v6565_v4  ;;  %10601 = vst [vmem:[#allocation138_spill] sm:$0xff] %v6587_v40  ;;  %v6593_v19 = vld [vmem:[%s9755_s7 + $0x128] sm:$0xff] }
 0x3c8   :  { %1434 = vmatpush.msra.mxu2 %v6559_v24  ;;  %1474 = vmatpush.msra.mxu0 %v5567_v52  ;;  %10602 = vst [vmem:[#allocation139_spill] sm:$0xff] %v6593_v19  ;;  %v6601_v52 = vld [vmem:[%s9755_s7 + $0x100] sm:$0xff] }
 0x3c9   :  { %1494 = vmatpush.msrb.mxu1 %v5573_v12  ;;  %1455 = vmatpush.msrb.mxu3 %v6579_v17  ;;  %10603 = vst [vmem:[#allocation140_spill] sm:$0xff] %v6601_v52  ;;  %v6607_v12 = vld [vmem:[%s9755_s7 + $0x108] sm:$0xff] }
 0x3ca   :  { %1435 = vmatpush.msra.mxu2 %v6573_v22  ;;  %1475 = vmatpush.msra.mxu0 %v5581_v18  ;;  %10604 = vst [vmem:[#allocation141_spill] sm:$0xff] %v6607_v12  ;;  %v6615_v18 = vld [vmem:[%s9755_s7 + $0xe0] sm:$0xff] }
 0x3cb   :  { %1495 = vmatpush.msrb.mxu1 %v5587_v27  ;;  %1456 = vmatpush.msrb.mxu3 %v6593_v19  ;;  %10605 = vst [vmem:[#allocation50_spill] sm:$0xff] %v6615_v18  ;;  %v6621_v27 = vld [vmem:[%s9755_s7 + $0xe8] sm:$0xff] }
 0x3cc   :  { %1436 = vmatpush.msra.mxu2 %v6587_v40  ;;  %1476 = vmatpush.msra.mxu0 %v5595_v60  ;;  %10606 = vst [vmem:[#allocation49_spill] sm:$0xff] %v6621_v27  ;;  %v6629_v60 = vld [vmem:[%s9755_s7 + $0xc0] sm:$0xff] }
 0x3cd   :  { %1496 = vmatpush.msrb.mxu1 %v5601_v23  ;;  %1457 = vmatpush.msrb.mxu3 %v6607_v12  ;;  %10607 = vst [vmem:[#allocation46_spill] sm:$0xff] %v6629_v60  ;;  %v6635_v23 = vld [vmem:[%s9755_s7 + $0xc8] sm:$0xff] }
 0x3ce   :  { %1437 = vmatpush.msra.mxu2 %v6601_v52  ;;  %1477 = vmatpush.msra.mxu0 %v5609_v26  ;;  %10608 = vst [vmem:[#allocation56_spill] sm:$0xff] %v6635_v23  ;;  %v6643_v26 = vld [vmem:[%s9755_s7 + $0xa0] sm:$0xff]  ;;  %v10631_v52 = vld [vmem:[#allocation60_spill] sm:$0xff] }
 0x3cf   :  { %1497 = vmatpush.msrb.mxu1 %v5615_v33  ;;  %1458 = vmatpush.msrb.mxu3 %v6621_v27  ;;  %10609 = vst [vmem:[#allocation143_spill] sm:$0xff] %v6643_v26  ;;  %v6649_v33 = vld [vmem:[%s9755_s7 + $0xa8] sm:$0xff]  ;;  %v10629_v27 = vld [vmem:[#allocation65_spill] sm:$0xff]  ;;  %v274_v19 = vadd.f32 %v10631_v52, %v5079_v61 }
 0x3d0   :  { %1438 = vmatpush.msra.mxu2 %v6615_v18  ;;  %1478 = vmatpush.msra.mxu0 %v5623_v29  ;;  %10610 = vst [vmem:[#allocation28_spill] sm:$0xff] %v6649_v33  ;;  %v6657_v29 = vld [vmem:[%s9755_s7 + $0x80] sm:$0xff]  ;;  %v10630_v18 = vld [vmem:[#allocation48_spill] sm:$0xff] }
 0x3d1   :  { %1498 = vmatpush.msrb.mxu1 %v5629_v3  ;;  %1459 = vmatpush.msrb.mxu3 %v6635_v23  ;;  %10611 = vst [vmem:[#allocation144_spill] sm:$0xff] %v6657_v29  ;;  %v6663_v3 = vld [vmem:[%s9755_s7 + $0x88] sm:$0xff]  ;;  %v315_v12 = vadd.f32 %v10630_v18, %v10629_v27 }
 0x3d2   :  { %1439 = vmatpush.msra.mxu2 %v6629_v60  ;;  %1479 = vmatpush.msra.mxu0 %v5637_v7  ;;  %10612 = vst [vmem:[#allocation145_spill] sm:$0xff] %v6663_v3  ;;  %v6671_v7 = vld [vmem:[%s9755_s7 + $0x60] sm:$0xff] }
 0x3d3   :  { %1499 = vmatpush.msrb.mxu1 %v5643_v34  ;;  %1460 = vmatpush.msrb.mxu3 %v6649_v33  ;;  %10613 = vst [vmem:[#allocation146_spill] sm:$0xff] %v6671_v7  ;;  %v6677_v34 = vld [vmem:[%s9755_s7 + $0x68] sm:$0xff] }
 0x3d4   :  { %1440 = vmatpush.msra.mxu2 %v6643_v26  ;;  %1480 = vmatpush.msra.mxu0 %v5651_v10  ;;  %10614 = vst [vmem:[#allocation147_spill] sm:$0xff] %v6677_v34  ;;  %v6685_v10 = vld [vmem:[%s9755_s7 + $0x40] sm:$0xff] }
 0x3d5   :  { %1500 = vmatpush.msrb.mxu1 %v5657_v39  ;;  %1461 = vmatpush.msrb.mxu3 %v6663_v3  ;;  %10615 = vst [vmem:[#allocation148_spill] sm:$0xff] %v6685_v10  ;;  %v6691_v39 = vld [vmem:[%s9755_s7 + $0x48] sm:$0xff] }
 0x3d6   :  { %1441 = vmatpush.msra.mxu2 %v6657_v29  ;;  %1481 = vmatpush.msra.mxu0 %v5665_v15  ;;  %10616 = vst [vmem:[#allocation149_spill] sm:$0xff] %v6691_v39  ;;  %v6699_v15 = vld [vmem:[%s9755_s7 + $0x20] sm:$0xff]  ;;  %v10627_v3 = vld [vmem:[#allocation124_spill] sm:$0xff]  ;;  %v10628_v29 = vld [vmem:[#allocation53_spill] sm:$0xff] }
 0x3d7   :  { %1501 = vmatpush.msrb.mxu1 %v5671_v42  ;;  %1462 = vmatpush.msrb.mxu3 %v6677_v34  ;;  %10617 = vst [vmem:[#allocation150_spill] sm:$0xff] %v6699_v15  ;;  %v6705_v42 = vld [vmem:[%s9755_s7 + $0x28] sm:$0xff]  ;;  %v10626_v34 = vld [vmem:[#allocation54_spill] sm:$0xff]  ;;  %v192_v33 = vadd.f32 %v10628_v29, %v10627_v3 }
 0x3d8   :  { %1442 = vmatpush.msra.mxu2 %v6671_v7  ;;  %1482 = vmatpush.msra.mxu0 %v5679_v45  ;;  %10618 = vst [vmem:[#allocation151_spill] sm:$0xff] %v6705_v42  ;;  %v10619_v45 = vld [vmem:[#allocation25_spill] sm:$0xff] }
 0x3d9   :  { %1502 = vmatpush.msrb.mxu1 %v5685_v38  ;;  %1463 = vmatpush.msrb.mxu3 %v6691_v39  ;;  %v10620_v38 = vld [vmem:[#allocation5_spill] sm:$0xff] }
 0x3da   :  { %1443 = vmatpush.msra.mxu2 %v6685_v10  ;;  %1483 = vmatpush.msra.mxu0 %v5693_v25  ;;  %v6713_v25 = vld [vmem:[%s9755_s7] sm:$0xff] }
 0x3db   :  { %1503 = vmatpush.msrb.mxu1 %v5699_v51  ;;  %1464 = vmatpush.msrb.mxu3 %v6705_v42  ;;  %10621 = vst [vmem:[#allocation25_spill] sm:$0xff] %v6713_v25  ;;  %v6719_v51 = vld [vmem:[%s9755_s7 + $0x8] sm:$0xff]  ;;  %v10624_v42 = vld [vmem:[#allocation6_spill] sm:$0xff] }
 0x3dc   :  { %1444 = vmatpush.msra.mxu2 %v6699_v15  ;;  %1484 = vmatpush.msra.mxu0 %v10619_v45  ;;  %10622 = vst [vmem:[#allocation5_spill] sm:$0xff] %v6719_v51  ;;  %v10623_v15 = vld [vmem:[#allocation30_spill] sm:$0xff] }
 0x3dd   :  { %1504 = vmatpush.msrb.mxu1 %v10620_v38  ;;  %1465 = vmatpush.msrb.mxu3 %v6719_v51 }
 0x3de   :  { %1445 = vmatpush.msra.mxu2 %v6713_v25  ;;  %1485 = vmatpush.msra.mxu0 %v10623_v15  ;;  %v10625_v25 = vld [vmem:[#allocation142_spill] sm:$0xff] }
 0x3df   :  { %1505 = vmatpush.msrb.mxu1 %v10624_v42  ;;  %v233_v7 = vadd.f32 %v10626_v34, %v10625_v25 }
 0x409   :  { %v6724_v45 = vpop.f32.mrf.mxu0  ;;  %v6726_v38 = vpop.f32.mrf.mxu1 }
 0x40e   :  { %v6728_v39 = vpop.f32.mrf.mxu2  ;;  %v6730_v10 = vpop.f32.mrf.mxu3 }
 0x411   :  { %v1283_v60 = vpop.f32.mrf.mxu0  ;;  %v1303_v42 = vpop.f32.mrf.mxu1 }
 0x412   :  { %v1308_v22 = vadd.f32 %v1283_v60, %v274_v19  ;;  %v1309_v4 = vadd.f32 %v1303_v42, %v315_v12  ;;  %v6760_v19 = vld [vmem:[%s9756_s5 + $0x1f0] sm:$0xff]  ;;  %v6767_v12 = vld [vmem:[%s9756_s5 + $0x1c0] sm:$0xff]  ;;  %v10639_v42 = vld [vmem:[#allocation10_spill] sm:$0xff] }
 0x413   :  { %v10634_v60 = vld [vmem:[#allocation31_spill] sm:$0xff] }
 0x414   :  { %v1312_v34 = vmul.f32 0.5, %v1308_v22 }
 0x416   :  { %v1243_v26 = vpop.f32.mrf.mxu2  ;;  %v1263_v51 = vpop.f32.mrf.mxu3 }
 0x417   :  { %v1306_v23 = vadd.f32 %v1243_v26, %v192_v33  ;;  %v1307_v15 = vadd.f32 %v1263_v51, %v233_v7 }
 0x419   :  { %v1310_v40 = vmul.f32 0.5, %v1306_v23  ;;  %v1311_v17 = vmul.f32 0.5, %v1307_v15  ;;  %v10638_v15 = vld [vmem:[#allocation33_spill] sm:$0xff] }
 0x41b   :  { %3018 = vtanh.f32 %v1310_v40 }
 0x41c   :  { %3020 = vtanh.f32 %v1311_v17 }
 0x41d   :  { %3022 = vtanh.f32 %v1309_v4 }
 0x41e   :  { %3024 = vtanh.f32 %v1312_v34  ;;  %v10643_v34 = vld [vmem:[#allocation12_spill] sm:$0xff] }
 0x421   :  { %v3019_v29 = vpop.eup %3018 }
 0x422   :  { %v3021_v3 = vpop.eup %3020  ;;  %v1316_v26 = vmul.f32 0.5, %v3019_v29  ;;  %v10644_v29 = vld [vmem:[#allocation32_spill] sm:$0xff] }
 0x423   :  { %v1317_v33 = vmul.f32 0.5, %v3021_v3  ;;  %v3023_v51 = vpop.eup %3022  ;;  %v10636_v3 = vld [vmem:[#allocation27_spill] sm:$0xff] }
 0x424   :  { %v1319_v7 = vadd.f32 0.5, %v1316_v26  ;;  %v3025_v52 = vpop.eup %3024  ;;  %v10645_v26 = vld [vmem:[#allocation13_spill] sm:$0xff] }
 0x425   :  { %v1320_v25 = vadd.f32 0.5, %v1317_v33  ;;  %v1318_v40 = vmul.f32 0.5, %v3025_v52  ;;  %v10646_v33 = vld [vmem:[#allocation37_spill] sm:$0xff]  ;;  %v10650_v52 = vld [vmem:[#allocation39_spill] sm:$0xff] }
 0x426   :  { %v1324_v18 = vmul.f32 %v3023_v51, %v1319_v7  ;;  %v10647_v7 = vld [vmem:[#allocation14_spill] sm:$0xff] }
 0x427   :  { %v1323_v27 = vmul.f32 %v1320_v25, %v5747_v63  ;;  %v1321_v17 = vadd.f32 0.5, %v1318_v40  ;;  %v6753_v63 = vld [vmem:[%s9756_s5 + $0x1e0] sm:$0xff]  ;;  %v10637_v25 = vld [vmem:[#allocation9_spill] sm:$0xff]  ;;  %v10648_v51 = vld [vmem:[#allocation34_spill] sm:$0xff] }
 0x428   :  { %v10651_v40 = vld [vmem:[#allocation16_spill] sm:$0xff] }
 0x429   :  { %v6741_v23 = vadd.f32 %v1324_v18, %v1323_v27  ;;  %v10633_v27 = vld [vmem:[#allocation7_spill] sm:$0xff] }
 0x42a   :  { %v10649_v18 = vld [vmem:[#allocation15_spill] sm:$0xff] }
 0x42b   :  { %3026 = vtanh.f32 %v6741_v23 }
 0x431   :  { %v3027_v22 = vpop.eup %3026 }
 0x432   :  { %v6744_v4 = vmul.f32 %v3027_v22, %v1321_v17  ;;  %v10652_v17 = vld [vmem:[#allocation36_spill] sm:$0xff]  ;;  %v10653_v22 = vld [vmem:[#allocation17_spill] sm:$0xff] }
 0x434   :  { %1344 = vmatmul.f32.vlgmr.msrb.gmra.mxu2 %v6744_v4  ;;  %1364 = vmatmul.f32.vlgmr.msra.gmra.mxu3 %v6744_v4 }
 0x435   :  { %1384 = vmatmul.f32.vlgmr.msrb.gmra.mxu0 %v6744_v4  ;;  %1404 = vmatmul.f32.vlgmr.msra.gmra.mxu1 %v6744_v4 }
 0x436   :  { %1514 = vmatpush.msrb.mxu2 %v6753_v63  ;;  %1534 = vmatpush.msra.mxu3 %v5760_v35  ;;  %v6774_v35 = vld [vmem:[%s9756_s5 + $0x1d0] sm:$0xff] }
 0x437   :  { %1554 = vmatpush.msrb.mxu0 %v6760_v19  ;;  %1574 = vmatpush.msra.mxu1 %v5767_v55  ;;  %v6781_v55 = vld [vmem:[%s9756_s5 + $0x1a0] sm:$0xff] }
 0x438   :  { %1515 = vmatpush.msrb.mxu2 %v6767_v12  ;;  %1535 = vmatpush.msra.mxu3 %v5774_v50  ;;  %v6788_v50 = vld [vmem:[%s9756_s5 + $0x1b0] sm:$0xff] }
 0x439   :  { %1555 = vmatpush.msrb.mxu0 %v6774_v35  ;;  %1575 = vmatpush.msra.mxu1 %v5781_v36  ;;  %v10632_v36 = vld [vmem:[#allocation26_spill] sm:$0xff] }
 0x43a   :  { %1516 = vmatpush.msrb.mxu2 %v6781_v55  ;;  %1536 = vmatpush.msra.mxu3 %v5788_v56  ;;  %v10635_v56 = vld [vmem:[#allocation8_spill] sm:$0xff] }
 0x43b   :  { %1556 = vmatpush.msrb.mxu0 %v6788_v50  ;;  %1576 = vmatpush.msra.mxu1 %v5795_v44  ;;  %v10640_v44 = vld [vmem:[#allocation29_spill] sm:$0xff] }
 0x43c   :  { %1517 = vmatpush.msrb.mxu2 %v5801_v13  ;;  %1537 = vmatpush.msra.mxu3 %v5807_v43  ;;  %v10641_v13 = vld [vmem:[#allocation11_spill] sm:$0xff] }
 0x43d   :  { %1557 = vmatpush.msrb.mxu0 %v10632_v36  ;;  %1577 = vmatpush.msra.mxu1 %v10633_v27  ;;  %v10642_v43 = vld [vmem:[#allocation35_spill] sm:$0xff]  ;;  %v10654_v36 = vld [vmem:[#allocation41_spill] sm:$0xff]  ;;  %v10655_v27 = vld [vmem:[#allocation18_spill] sm:$0xff] }
 0x43e   :  { %1518 = vmatpush.msrb.mxu2 %v10634_v60  ;;  %1538 = vmatpush.msra.mxu3 %v10635_v56  ;;  %v10656_v60 = vld [vmem:[#allocation38_spill] sm:$0xff]  ;;  %v10657_v56 = vld [vmem:[#allocation19_spill] sm:$0xff] }
 0x43f   :  { %1558 = vmatpush.msrb.mxu0 %v10636_v3  ;;  %1578 = vmatpush.msra.mxu1 %v10637_v25  ;;  %v10658_v3 = vld [vmem:[#allocation43_spill] sm:$0xff]  ;;  %v10659_v25 = vld [vmem:[#allocation20_spill] sm:$0xff] }
 0x440   :  { %1519 = vmatpush.msrb.mxu2 %v10638_v15  ;;  %1539 = vmatpush.msra.mxu3 %v10639_v42  ;;  %v10660_v15 = vld [vmem:[#allocation40_spill] sm:$0xff]  ;;  %v10661_v42 = vld [vmem:[#allocation21_spill] sm:$0xff] }
 0x441   :  { %1559 = vmatpush.msrb.mxu0 %v10640_v44  ;;  %1579 = vmatpush.msra.mxu1 %v10641_v13  ;;  %v10662_v44 = vld [vmem:[#allocation44_spill] sm:$0xff]  ;;  %v10663_v13 = vld [vmem:[#allocation22_spill] sm:$0xff] }
 0x442   :  { %1520 = vmatpush.msrb.mxu2 %v10642_v43  ;;  %1540 = vmatpush.msra.mxu3 %v10643_v34  ;;  %v10664_v43 = vld [vmem:[#allocation42_spill] sm:$0xff]  ;;  %v10665_v34 = vld [vmem:[#allocation23_spill] sm:$0xff] }
 0x443   :  { %1560 = vmatpush.msrb.mxu0 %v10644_v29  ;;  %1580 = vmatpush.msra.mxu1 %v10645_v26  ;;  %v10666_v29 = vld [vmem:[#allocation45_spill] sm:$0xff]  ;;  %v10667_v26 = vld [vmem:[#allocation102_spill] sm:$0xff] }
 0x444   :  { %1521 = vmatpush.msrb.mxu2 %v10646_v33  ;;  %1541 = vmatpush.msra.mxu3 %v10647_v7  ;;  %v10668_v33 = vld [vmem:[#allocation103_spill] sm:$0xff]  ;;  %v10669_v7 = vld [vmem:[#allocation126_spill] sm:$0xff] }
 0x445   :  { %1561 = vmatpush.msrb.mxu0 %v10648_v51  ;;  %1581 = vmatpush.msra.mxu1 %v10649_v18  ;;  %v10670_v51 = vld [vmem:[#allocation131_spill] sm:$0xff]  ;;  %v10671_v18 = vld [vmem:[#allocation70_spill] sm:$0xff] }
 0x446   :  { %1522 = vmatpush.msrb.mxu2 %v10650_v52  ;;  %1542 = vmatpush.msra.mxu3 %v10651_v40  ;;  %v10672_v52 = vld [vmem:[#allocation71_spill] sm:$0xff]  ;;  %v10673_v40 = vld [vmem:[#allocation72_spill] sm:$0xff] }
 0x447   :  { %1562 = vmatpush.msrb.mxu0 %v10652_v17  ;;  %1582 = vmatpush.msra.mxu1 %v10653_v22  ;;  %v10674_v17 = vld [vmem:[#allocation73_spill] sm:$0xff]  ;;  %v10675_v22 = vld [vmem:[#allocation75_spill] sm:$0xff] }
 0x448   :  { %1523 = vmatpush.msrb.mxu2 %v10654_v36  ;;  %1543 = vmatpush.msra.mxu3 %v10655_v27  ;;  %v10676_v36 = vld [vmem:[#allocation76_spill] sm:$0xff]  ;;  %v10677_v27 = vld [vmem:[#allocation77_spill] sm:$0xff] }
 0x449   :  { %1563 = vmatpush.msrb.mxu0 %v10656_v60  ;;  %1583 = vmatpush.msra.mxu1 %v10657_v56  ;;  %v10678_v60 = vld [vmem:[#allocation78_spill] sm:$0xff]  ;;  %v10679_v56 = vld [vmem:[#allocation81_spill] sm:$0xff] }
 0x44a   :  { %1524 = vmatpush.msrb.mxu2 %v10658_v3  ;;  %1544 = vmatpush.msra.mxu3 %v10659_v25  ;;  %v10680_v3 = vld [vmem:[#allocation82_spill] sm:$0xff]  ;;  %v10681_v25 = vld [vmem:[#allocation83_spill] sm:$0xff] }
 0x44b   :  { %1564 = vmatpush.msrb.mxu0 %v10660_v15  ;;  %1584 = vmatpush.msra.mxu1 %v10661_v42  ;;  %v10682_v15 = vld [vmem:[#allocation3_spill] sm:$0xff] }
 0x44c   :  { %1525 = vmatpush.msrb.mxu2 %v10662_v44  ;;  %1545 = vmatpush.msra.mxu3 %v10663_v13  ;;  %v1160_v42 = vadd.f32 %v6728_v39, %v10682_v15  ;;  %v10683_v44 = vld [vmem:[#allocation24_spill] sm:$0xff] }
 0x44d   :  { %1565 = vmatpush.msrb.mxu0 %v10664_v43  ;;  %1585 = vmatpush.msra.mxu1 %v10665_v34  ;;  %v1180_v13 = vadd.f32 %v6730_v10, %v10683_v44 }
 0x44e   :  { %1526 = vmatpush.msrb.mxu2 %v10666_v29  ;;  %1546 = vmatpush.msra.mxu3 %v10667_v26 }
 0x44f   :  { %1566 = vmatpush.msrb.mxu0 %v10668_v33  ;;  %1586 = vmatpush.msra.mxu1 %v10669_v7 }
 0x450   :  { %1527 = vmatpush.msrb.mxu2 %v10670_v51  ;;  %1547 = vmatpush.msra.mxu3 %v10671_v18  ;;  %v10684_v51 = vld [vmem:[#allocation4_spill] sm:$0xff] }
 0x451   :  { %1567 = vmatpush.msrb.mxu0 %v10672_v52  ;;  %1587 = vmatpush.msra.mxu1 %v10673_v40  ;;  %v1200_v18 = vadd.f32 %v6724_v45, %v10684_v51  ;;  %v1220_v52 = vadd.f32 %v6726_v38, %v10553_v20 }
 0x452   :  { %1528 = vmatpush.msrb.mxu2 %v10674_v17  ;;  %1548 = vmatpush.msra.mxu3 %v10675_v22 }
 0x453   :  { %1568 = vmatpush.msrb.mxu0 %v10676_v36  ;;  %1588 = vmatpush.msra.mxu1 %v10677_v27 }
 0x454   :  { %1529 = vmatpush.msrb.mxu2 %v10678_v60  ;;  %1549 = vmatpush.msra.mxu3 %v10679_v56 }
 0x455   :  { %1569 = vmatpush.msrb.mxu0 %v10680_v3  ;;  %1589 = vmatpush.msra.mxu1 %v10681_v25 }
 0x4b2   :  { %v1385_v33 = vpop.f32.mrf.mxu0  ;;  %v1405_v7 = vpop.f32.mrf.mxu1 }
 0x4b3   :  { %v1410_v22 = vadd.f32 %v1385_v33, %v1200_v18  ;;  %v1411_v36 = vadd.f32 %v1405_v7, %v1220_v52  ;;  %v10705_v7 = vld [vmem:[#allocation107_spill] sm:$0xff]  ;;  %v10706_v18 = vld [vmem:[#allocation108_spill] sm:$0xff]  ;;  %v10707_v52 = vld [vmem:[#allocation109_spill] sm:$0xff] }
 0x4b5   :  { %v1414_v39 = vmul.f32 0.5, %v1410_v22  ;;  %v10710_v22 = vld [vmem:[#allocation113_spill] sm:$0xff] }
 0x4b7   :  { %v1345_v43 = vpop.f32.mrf.mxu2  ;;  %v1365_v34 = vpop.f32.mrf.mxu3 }
 0x4b8   :  { %v1408_v29 = vadd.f32 %v1345_v43, %v1160_v42  ;;  %v1409_v26 = vadd.f32 %v1365_v34, %v1180_v13 }
 0x4ba   :  { %v1412_v40 = vmul.f32 0.5, %v1408_v29  ;;  %v1413_v17 = vmul.f32 0.5, %v1409_v26 }
 0x4bc   :  { %3028 = vtanh.f32 %v1412_v40  ;;  %v10708_v40 = vld [vmem:[#allocation110_spill] sm:$0xff] }
 0x4bd   :  { %3030 = vtanh.f32 %v1413_v17  ;;  %v10709_v17 = vld [vmem:[#allocation111_spill] sm:$0xff] }
 0x4be   :  { %3032 = vtanh.f32 %v1411_v36  ;;  %v10711_v36 = vld [vmem:[#allocation114_spill] sm:$0xff] }
 0x4bf   :  { %3034 = vtanh.f32 %v1414_v39  ;;  %v10712_v39 = vld [vmem:[#allocation115_spill] sm:$0xff] }
 0x4c2   :  { %v3029_v10 = vpop.eup %3028 }
 0x4c3   :  { %v3031_v27 = vpop.eup %3030  ;;  %v1418_v60 = vmul.f32 0.5, %v3029_v10  ;;  %v10713_v10 = vld [vmem:[#allocation116_spill] sm:$0xff] }
 0x4c4   :  { %v1419_v56 = vmul.f32 0.5, %v3031_v27  ;;  %v3033_v25 = vpop.eup %3032  ;;  %v10714_v27 = vld [vmem:[#allocation117_spill] sm:$0xff] }
 0x4c5   :  { %v1421_v3 = vadd.f32 0.5, %v1418_v60  ;;  %v3035_v38 = vpop.eup %3034  ;;  %v10715_v60 = vld [vmem:[#allocation118_spill] sm:$0xff] }
 0x4c6   :  { %v1422_v42 = vadd.f32 0.5, %v1419_v56  ;;  %v1420_v34 = vmul.f32 0.5, %v3035_v38  ;;  %v10716_v56 = vld [vmem:[#allocation119_spill] sm:$0xff] }
 0x4c7   :  { %v1426_v45 = vmul.f32 %v3033_v25, %v1421_v3  ;;  %v10717_v3 = vld [vmem:[#allocation120_spill] sm:$0xff]  ;;  %v10718_v25 = vld [vmem:[#allocation121_spill] sm:$0xff]  ;;  %v10722_v38 = vld [vmem:[#allocation127_spill] sm:$0xff] }
 0x4c8   :  { %v1425_v13 = vmul.f32 %v1422_v42, %v6119_v8  ;;  %v1423_v29 = vadd.f32 0.5, %v1420_v34  ;;  %v10685_v8 = vld [vmem:[#allocation84_spill] sm:$0xff]  ;;  %v10719_v42 = vld [vmem:[#allocation122_spill] sm:$0xff] }
 0x4c9   :  { %v10723_v34 = vld [vmem:[#allocation128_spill] sm:$0xff] }
 0x4ca   :  { %v6853_v43 = vadd.f32 %v1426_v45, %v1425_v13  ;;  %v10720_v45 = vld [vmem:[#allocation123_spill] sm:$0xff]  ;;  %v10721_v13 = vld [vmem:[#allocation125_spill] sm:$0xff] }
 0x4cc   :  { %3036 = vtanh.f32 %v6853_v43 }
 0x4d2   :  { %v3037_v26 = vpop.eup %3036 }
 0x4d3   :  { %v1429_v33 = vmul.f32 %v3037_v26, %v1423_v29  ;;  %v10724_v29 = vld [vmem:[#allocation129_spill] sm:$0xff]  ;;  %v10725_v26 = vld [vmem:[#allocation130_spill] sm:$0xff] }
 0x4d5   :  { %1446 = vmatmul.f32.vlgmr.msra.gmra.mxu2 %v1429_v33  ;;  %1466 = vmatmul.f32.vlgmr.msrb.gmra.mxu3 %v1429_v33 }
 0x4d6   :  { %1486 = vmatmul.f32.vlgmr.msra.gmra.mxu0 %v1429_v33  ;;  %1506 = vmatmul.f32.vlgmr.msrb.gmra.mxu1 %v1429_v33  ;;  %v10726_v33 = vld [vmem:[#allocation132_spill] sm:$0xff] }
 0x4d7   :  { %1616 = vmatpush.msra.mxu2 %v6125_v58  ;;  %1636 = vmatpush.msrb.mxu3 %v6131_v47  ;;  %v10686_v58 = vld [vmem:[#allocation85_spill] sm:$0xff]  ;;  %v10687_v47 = vld [vmem:[#allocation86_spill] sm:$0xff] }
 0x4d8   :  { %1656 = vmatpush.msra.mxu0 %v6137_v48  ;;  %1676 = vmatpush.msrb.mxu1 %v6143_v31  ;;  %v10688_v48 = vld [vmem:[#allocation87_spill] sm:$0xff]  ;;  %v10689_v31 = vld [vmem:[#allocation88_spill] sm:$0xff] }
 0x4d9   :  { %1617 = vmatpush.msra.mxu2 %v6149_v21  ;;  %1637 = vmatpush.msrb.mxu3 %v6155_v16  ;;  %v10690_v21 = vld [vmem:[#allocation89_spill] sm:$0xff]  ;;  %v10691_v16 = vld [vmem:[#allocation90_spill] sm:$0xff] }
 0x4da   :  { %1657 = vmatpush.msra.mxu0 %v6161_v59  ;;  %1677 = vmatpush.msrb.mxu1 %v6167_v62  ;;  %v10692_v59 = vld [vmem:[#allocation91_spill] sm:$0xff]  ;;  %v10693_v62 = vld [vmem:[#allocation92_spill] sm:$0xff] }
 0x4db   :  { %1618 = vmatpush.msra.mxu2 %v6173_v9  ;;  %1638 = vmatpush.msrb.mxu3 %v6179_v41  ;;  %v10694_v9 = vld [vmem:[#allocation94_spill] sm:$0xff]  ;;  %v10695_v41 = vld [vmem:[#allocation95_spill] sm:$0xff] }
 0x4dc   :  { %1658 = vmatpush.msra.mxu0 %v6185_v2  ;;  %1678 = vmatpush.msrb.mxu1 %v6191_v5  ;;  %v10696_v2 = vld [vmem:[#allocation96_spill] sm:$0xff]  ;;  %v10697_v5 = vld [vmem:[#allocation97_spill] sm:$0xff] }
 0x4dd   :  { %1530 = vmatmul.f32.vlgmr.msrb.gmra.mxu2 %v6744_v4  ;;  %1550 = vmatmul.f32.vlgmr.msra.gmra.mxu3 %v6744_v4 }
 0x4de   :  { %1570 = vmatmul.f32.vlgmr.msrb.gmra.mxu0 %v6744_v4  ;;  %1590 = vmatmul.f32.vlgmr.msra.gmra.mxu1 %v6744_v4  ;;  %v10704_v4 = vld [vmem:[#allocation106_spill] sm:$0xff] }
 0x4df   :  { %1619 = vmatpush.msra.mxu2 %v6201_v57  ;;  %1639 = vmatpush.msrb.mxu3 %v6207_v49  ;;  %v10698_v57 = vld [vmem:[#allocation98_spill] sm:$0xff]  ;;  %v10699_v49 = vld [vmem:[#allocation99_spill] sm:$0xff] }
 0x4e0   :  { %1659 = vmatpush.msra.mxu0 %v6213_v54  ;;  %1679 = vmatpush.msrb.mxu1 %v6219_v32  ;;  %v10700_v54 = vld [vmem:[#allocation100_spill] sm:$0xff]  ;;  %v10701_v32 = vld [vmem:[#allocation101_spill] sm:$0xff] }
 0x4e1   :  { %1620 = vmatpush.msra.mxu2 %v6225_v37  ;;  %1640 = vmatpush.msrb.mxu3 %v6231_v11  ;;  %v10702_v37 = vld [vmem:[#allocation104_spill] sm:$0xff]  ;;  %v10703_v11 = vld [vmem:[#allocation105_spill] sm:$0xff] }
 0x4e2   :  { %1660 = vmatpush.msra.mxu0 %v10685_v8  ;;  %1680 = vmatpush.msrb.mxu1 %v10686_v58  ;;  %v10727_v8 = vld [vmem:[#allocation133_spill] sm:$0xff]  ;;  %v10728_v58 = vld [vmem:[#allocation134_spill] sm:$0xff] }
 0x4e3   :  { %1621 = vmatpush.msra.mxu2 %v10687_v47  ;;  %1641 = vmatpush.msrb.mxu3 %v10688_v48  ;;  %v6928_v47 = vld [vmem:[%s9755_s7 + $0x1e8] sm:$0xff]  ;;  %v6934_v48 = vld [vmem:[%s9755_s7 + $0x1f0] sm:$0xff] }
 0x4e4   :  { %1661 = vmatpush.msra.mxu0 %v10689_v31  ;;  %1681 = vmatpush.msrb.mxu1 %v10690_v21  ;;  %v6959_v31 = vld [vmem:[%s9755_s7 + $0x1d8] sm:$0xff] }
 0x4e5   :  { %1622 = vmatpush.msra.mxu2 %v10691_v16  ;;  %1642 = vmatpush.msrb.mxu3 %v10692_v59  ;;  %v6973_v21 = vld [vmem:[%s9755_s7 + $0x1b8] sm:$0xff]  ;;  %v10729_v16 = vld [vmem:[#allocation135_spill] sm:$0xff]  ;;  %v10730_v59 = vld [vmem:[#allocation136_spill] sm:$0xff] }
 0x4e6   :  { %1662 = vmatpush.msra.mxu0 %v10693_v62  ;;  %1682 = vmatpush.msrb.mxu1 %v10694_v9  ;;  %v10731_v62 = vld [vmem:[#allocation137_spill] sm:$0xff]  ;;  %v7015_v9 = vld [vmem:[%s9755_s7 + $0x158] sm:$0xff] }
 0x4e7   :  { %1623 = vmatpush.msra.mxu2 %v10695_v41  ;;  %1643 = vmatpush.msrb.mxu3 %v10696_v2  ;;  %v10732_v41 = vld [vmem:[#allocation138_spill] sm:$0xff]  ;;  %v10733_v2 = vld [vmem:[#allocation139_spill] sm:$0xff] }
 0x4e8   :  { %1663 = vmatpush.msra.mxu0 %v10697_v5  ;;  %1683 = vmatpush.msrb.mxu1 %v10698_v57  ;;  %v7023_v5 = vld [vmem:[%s9755_s7 + $0x130] sm:$0xff]  ;;  %v7029_v57 = vld [vmem:[%s9755_s7 + $0x138] sm:$0xff] }
 0x4e9   :  { %1624 = vmatpush.msra.mxu2 %v10699_v49  ;;  %1644 = vmatpush.msrb.mxu3 %v10700_v54  ;;  %v10734_v49 = vld [vmem:[#allocation140_spill] sm:$0xff]  ;;  %v10735_v54 = vld [vmem:[#allocation141_spill] sm:$0xff] }
 0x4ea   :  { %1664 = vmatpush.msra.mxu0 %v10701_v32  ;;  %1684 = vmatpush.msrb.mxu1 %v10702_v37  ;;  %v7037_v32 = vld [vmem:[%s9755_s7 + $0x110] sm:$0xff]  ;;  %v7043_v37 = vld [vmem:[%s9755_s7 + $0x118] sm:$0xff] }
 0x4eb   :  { %1625 = vmatpush.msra.mxu2 %v10703_v11  ;;  %1645 = vmatpush.msrb.mxu3 %v10704_v4  ;;  %v10736_v11 = vld [vmem:[#allocation50_spill] sm:$0xff]  ;;  %v10737_v4 = vld [vmem:[#allocation49_spill] sm:$0xff] }
 0x4ec   :  { %1665 = vmatpush.msra.mxu0 %v10705_v7  ;;  %1685 = vmatpush.msrb.mxu1 %v10706_v18  ;;  %v7051_v7 = vld [vmem:[%s9755_s7 + $0xf0] sm:$0xff]  ;;  %v7057_v18 = vld [vmem:[%s9755_s7 + $0xf8] sm:$0xff] }
 0x4ed   :  { %1626 = vmatpush.msra.mxu2 %v10707_v52  ;;  %1646 = vmatpush.msrb.mxu3 %v10708_v40  ;;  %v10738_v52 = vld [vmem:[#allocation46_spill] sm:$0xff]  ;;  %v10739_v40 = vld [vmem:[#allocation56_spill] sm:$0xff] }
 0x4ee   :  { %1666 = vmatpush.msra.mxu0 %v10709_v17  ;;  %1686 = vmatpush.msrb.mxu1 %v10710_v22  ;;  %v7065_v17 = vld [vmem:[%s9755_s7 + $0xd0] sm:$0xff]  ;;  %v7071_v22 = vld [vmem:[%s9755_s7 + $0xd8] sm:$0xff] }
 0x4ef   :  { %1627 = vmatpush.msra.mxu2 %v10711_v36  ;;  %1647 = vmatpush.msrb.mxu3 %v10712_v39  ;;  %v10740_v36 = vld [vmem:[#allocation143_spill] sm:$0xff]  ;;  %v10741_v39 = vld [vmem:[#allocation28_spill] sm:$0xff] }
 0x4f0   :  { %1667 = vmatpush.msra.mxu0 %v10713_v10  ;;  %1687 = vmatpush.msrb.mxu1 %v10714_v27  ;;  %v7079_v10 = vld [vmem:[%s9755_s7 + $0xb0] sm:$0xff]  ;;  %v7085_v27 = vld [vmem:[%s9755_s7 + $0xb8] sm:$0xff] }
 0x4f1   :  { %1628 = vmatpush.msra.mxu2 %v10715_v60  ;;  %1648 = vmatpush.msrb.mxu3 %v10716_v56  ;;  %v10742_v60 = vld [vmem:[#allocation144_spill] sm:$0xff]  ;;  %v10743_v56 = vld [vmem:[#allocation145_spill] sm:$0xff] }
 0x4f2   :  { %1668 = vmatpush.msra.mxu0 %v10717_v3  ;;  %1688 = vmatpush.msrb.mxu1 %v10718_v25  ;;  %v7093_v3 = vld [vmem:[%s9755_s7 + $0x90] sm:$0xff]  ;;  %v7099_v25 = vld [vmem:[%s9755_s7 + $0x98] sm:$0xff] }
 0x4f3   :  { %1629 = vmatpush.msra.mxu2 %v10719_v42  ;;  %1649 = vmatpush.msrb.mxu3 %v10720_v45  ;;  %v10744_v42 = vld [vmem:[#allocation146_spill] sm:$0xff]  ;;  %v10745_v45 = vld [vmem:[#allocation147_spill] sm:$0xff] }
 0x4f4   :  { %1669 = vmatpush.msra.mxu0 %v10721_v13  ;;  %1689 = vmatpush.msrb.mxu1 %v10722_v38  ;;  %v7107_v13 = vld [vmem:[%s9755_s7 + $0x70] sm:$0xff]  ;;  %v7113_v38 = vld [vmem:[%s9755_s7 + $0x78] sm:$0xff] }
 0x4f5   :  { %1630 = vmatpush.msra.mxu2 %v10723_v34  ;;  %1650 = vmatpush.msrb.mxu3 %v10724_v29  ;;  %10746 = vst [vmem:[#allocation30_spill] sm:$0xff] %v7107_v13  ;;  %v10748_v34 = vld [vmem:[#allocation148_spill] sm:$0xff]  ;;  %v10749_v29 = vld [vmem:[#allocation149_spill] sm:$0xff] }
 0x4f6   :  { %1670 = vmatpush.msra.mxu0 %v10725_v26  ;;  %1690 = vmatpush.msrb.mxu1 %v10726_v33  ;;  %10747 = vst [vmem:[#allocation6_spill] sm:$0xff] %v7113_v38  ;;  %v7121_v26 = vld [vmem:[%s9755_s7 + $0x50] sm:$0xff]  ;;  %v7127_v33 = vld [vmem:[%s9755_s7 + $0x58] sm:$0xff] }
 0x4f7   :  { %1631 = vmatpush.msra.mxu2 %v10727_v8  ;;  %1651 = vmatpush.msrb.mxu3 %v6495_v6  ;;  %v6953_v6 = vld [vmem:[%s9755_s7 + $0x1d0] sm:$0xff]  ;;  %10750 = vst [vmem:[#allocation54_spill] sm:$0xff] %v7121_v26  ;;  %v10752_v8 = vld [vmem:[#allocation150_spill] sm:$0xff] }
 0x4f8   :  { %1671 = vmatpush.msra.mxu0 %v10728_v58  ;;  %1691 = vmatpush.msrb.mxu1 %v6507_v53  ;;  %v6940_v53 = vld [vmem:[%s9755_s7 + $0x1f8] sm:$0xff]  ;;  %10751 = vst [vmem:[#allocation53_spill] sm:$0xff] %v7127_v33  ;;  %v10753_v58 = vld [vmem:[#allocation151_spill] sm:$0xff] }
 0x4f9   :  { %1718 = vmatpush.msrb.mxu2 %v6513_v0  ;;  %1738 = vmatpush.msra.mxu3 %v6928_v47  ;;  %v6947_v0 = vld [vmem:[%s9755_s7 + $0x1c8] sm:$0xff] }
 0x4fa   :  { %1758 = vmatpush.msrb.mxu0 %v6934_v48  ;;  %1778 = vmatpush.msra.mxu1 %v6940_v53 }
 0x4fb   :  { %1719 = vmatpush.msrb.mxu2 %v6522_v1  ;;  %1739 = vmatpush.msra.mxu3 %v6947_v0  ;;  %v6967_v1 = vld [vmem:[%s9755_s7 + $0x1b0] sm:$0xff] }
 0x4fc   :  { %1759 = vmatpush.msrb.mxu0 %v6953_v6  ;;  %1779 = vmatpush.msra.mxu1 %v6959_v31 }
 0x4fd   :  { %1720 = vmatpush.msrb.mxu2 %v6531_v30  ;;  %1740 = vmatpush.msra.mxu3 %v6537_v46  ;;  %v6981_v30 = vld [vmem:[%s9755_s7 + $0x190] sm:$0xff]  ;;  %v6987_v46 = vld [vmem:[%s9755_s7 + $0x198] sm:$0xff] }
 0x4fe   :  { %1760 = vmatpush.msrb.mxu0 %v6967_v1  ;;  %1780 = vmatpush.msra.mxu1 %v6973_v21 }
 0x4ff   :  { %1721 = vmatpush.msrb.mxu2 %v6545_v28  ;;  %1741 = vmatpush.msra.mxu3 %v6551_v14  ;;  %v6995_v28 = vld [vmem:[%s9755_s7 + $0x170] sm:$0xff]  ;;  %v7001_v14 = vld [vmem:[%s9755_s7 + $0x178] sm:$0xff] }
 0x500   :  { %1761 = vmatpush.msrb.mxu0 %v6981_v30  ;;  %1781 = vmatpush.msra.mxu1 %v6987_v46 }
 0x501   :  { %1722 = vmatpush.msrb.mxu2 %v6559_v24  ;;  %1742 = vmatpush.msra.mxu3 %v10729_v16  ;;  %v7009_v24 = vld [vmem:[%s9755_s7 + $0x150] sm:$0xff] }
 0x502   :  { %1762 = vmatpush.msrb.mxu0 %v6995_v28  ;;  %1782 = vmatpush.msra.mxu1 %v7001_v14  ;;  %v7135_v16 = vld [vmem:[%s9755_s7 + $0x30] sm:$0xff] }
 0x503   :  { %1723 = vmatpush.msrb.mxu2 %v10730_v59  ;;  %1743 = vmatpush.msra.mxu3 %v10731_v62  ;;  %10754 = vst [vmem:[#allocation48_spill] sm:$0xff] %v7135_v16  ;;  %v7141_v59 = vld [vmem:[%s9755_s7 + $0x38] sm:$0xff]  ;;  %v10756_v62 = vld [vmem:[#allocation25_spill] sm:$0xff] }
 0x504   :  { %1763 = vmatpush.msrb.mxu0 %v7009_v24  ;;  %1783 = vmatpush.msra.mxu1 %v7015_v9  ;;  %10755 = vst [vmem:[#allocation60_spill] sm:$0xff] %v7141_v59 }
 0x505   :  { %1724 = vmatpush.msrb.mxu2 %v10732_v41  ;;  %1744 = vmatpush.msra.mxu3 %v10733_v2  ;;  %v10757_v41 = vld [vmem:[#allocation5_spill] sm:$0xff] }
 0x506   :  { %1764 = vmatpush.msrb.mxu0 %v7023_v5  ;;  %1784 = vmatpush.msra.mxu1 %v7029_v57  ;;  %v7149_v2 = vld [vmem:[%s9755_s7 + $0x10] sm:$0xff] }
 0x507   :  { %1725 = vmatpush.msrb.mxu2 %v10734_v49  ;;  %1745 = vmatpush.msra.mxu3 %v10735_v54  ;;  %10758 = vst [vmem:[#allocation26_spill] sm:$0xff] %v7149_v2  ;;  %v7155_v49 = vld [vmem:[%s9755_s7 + $0x18] sm:$0xff] }
 0x508   :  { %1765 = vmatpush.msrb.mxu0 %v7037_v32  ;;  %1785 = vmatpush.msra.mxu1 %v7043_v37  ;;  %10759 = vst [vmem:[#allocation7_spill] sm:$0xff] %v7155_v49 }
 0x509   :  { %1726 = vmatpush.msrb.mxu2 %v10736_v11  ;;  %1746 = vmatpush.msra.mxu3 %v10737_v4 }
 0x50a   :  { %1766 = vmatpush.msrb.mxu0 %v7051_v7  ;;  %1786 = vmatpush.msra.mxu1 %v7057_v18 }
 0x50b   :  { %1727 = vmatpush.msrb.mxu2 %v10738_v52  ;;  %1747 = vmatpush.msra.mxu3 %v10739_v40  ;;  %v10760_v40 = vld [vmem:[#allocation142_spill] sm:$0xff] }
 0x50c   :  { %1767 = vmatpush.msrb.mxu0 %v7065_v17  ;;  %1787 = vmatpush.msra.mxu1 %v7071_v22 }
 0x50d   :  { %1728 = vmatpush.msrb.mxu2 %v10740_v36  ;;  %1748 = vmatpush.msra.mxu3 %v10741_v39  ;;  %v10761_v36 = vld [vmem:[#allocation58_spill] sm:$0xff] }
 0x50e   :  { %1768 = vmatpush.msrb.mxu0 %v7079_v10  ;;  %1788 = vmatpush.msra.mxu1 %v7085_v27  ;;  %v236_v39 = vadd.f32 %v10761_v36, %v10760_v40 }
 0x50f   :  { %1729 = vmatpush.msrb.mxu2 %v10742_v60  ;;  %1749 = vmatpush.msra.mxu3 %v10743_v56  ;;  %v10762_v60 = vld [vmem:[#allocation124_spill] sm:$0xff]  ;;  %v10763_v56 = vld [vmem:[#allocation57_spill] sm:$0xff] }
 0x510   :  { %1769 = vmatpush.msrb.mxu0 %v7093_v3  ;;  %1789 = vmatpush.msra.mxu1 %v7099_v25 }
 0x511   :  { %1730 = vmatpush.msrb.mxu2 %v10744_v42  ;;  %1750 = vmatpush.msra.mxu3 %v10745_v45  ;;  %v195_v42 = vadd.f32 %v10763_v56, %v10762_v60 }
 0x512   :  { %1770 = vmatpush.msrb.mxu0 %v7107_v13  ;;  %1790 = vmatpush.msra.mxu1 %v7113_v38 }
 0x513   :  { %1731 = vmatpush.msrb.mxu2 %v10748_v34  ;;  %1751 = vmatpush.msra.mxu3 %v10749_v29 }
 0x514   :  { %1771 = vmatpush.msrb.mxu0 %v7121_v26  ;;  %1791 = vmatpush.msra.mxu1 %v7127_v33 }
 0x515   :  { %1732 = vmatpush.msrb.mxu2 %v10752_v8  ;;  %1752 = vmatpush.msra.mxu3 %v10753_v58 }
 0x516   :  { %1772 = vmatpush.msrb.mxu0 %v7135_v16  ;;  %1792 = vmatpush.msra.mxu1 %v7141_v59  ;;  %v10766_v59 = vld [vmem:[#allocation64_spill] sm:$0xff] }
 0x517   :  { %1733 = vmatpush.msrb.mxu2 %v10756_v62  ;;  %1753 = vmatpush.msra.mxu3 %v10757_v41  ;;  %v10764_v41 = vld [vmem:[#allocation65_spill] sm:$0xff]  ;;  %v277_v16 = vadd.f32 %v10766_v59, %v5079_v61 }
 0x518   :  { %1773 = vmatpush.msrb.mxu0 %v7149_v2  ;;  %1793 = vmatpush.msra.mxu1 %v7155_v49  ;;  %v10765_v49 = vld [vmem:[#allocation52_spill] sm:$0xff] }
 0x519   :  { %v318_v2 = vadd.f32 %v10765_v49, %v10764_v41 }
 0x553   :  { %v7158_v54 = vpop.f32.mrf.mxu0  ;;  %v7160_v11 = vpop.f32.mrf.mxu1 }
 0x558   :  { %v7162_v4 = vpop.f32.mrf.mxu2  ;;  %v7164_v52 = vpop.f32.mrf.mxu3 }
 0x55b   :  { %v1571_v58 = vpop.f32.mrf.mxu0  ;;  %v1591_v62 = vpop.f32.mrf.mxu1 }
 0x55c   :  { %v1596_v38 = vadd.f32 %v1571_v58, %v277_v16  ;;  %v1597_v13 = vadd.f32 %v1591_v62, %v318_v2  ;;  %v7195_v16 = vld [vmem:[%s9756_s5 + $0x1f8] sm:$0xff]  ;;  %v7235_v2 = vld [vmem:[%s9756_s5 + $0x188] sm:$0xff]  ;;  %v7265_v58 = vld [vmem:[%s9756_s5 + $0x170] sm:$0xff] }
 0x55d   :  { %10767 = vst [vmem:[#allocation31_spill] sm:$0xff] %v7265_v58  ;;  %v7271_v62 = vld [vmem:[%s9756_s5 + $0x178] sm:$0xff] }
 0x55e   :  { %v1600_v36 = vmul.f32 0.5, %v1596_v38  ;;  %10768 = vst [vmem:[#allocation8_spill] sm:$0xff] %v7271_v62 }
 0x560   :  { %v1531_v45 = vpop.f32.mrf.mxu2  ;;  %v1551_v34 = vpop.f32.mrf.mxu3 }
 0x561   :  { %v1594_v29 = vadd.f32 %v1531_v45, %v195_v42  ;;  %v1595_v8 = vadd.f32 %v1551_v34, %v236_v39 }
 0x563   :  { %v1598_v33 = vmul.f32 0.5, %v1594_v29  ;;  %v1599_v26 = vmul.f32 0.5, %v1595_v8  ;;  %v7259_v8 = vld [vmem:[%s9756_s5 + $0x168] sm:$0xff] }
 0x565   :  { %3038 = vtanh.f32 %v1598_v33 }
 0x566   :  { %3040 = vtanh.f32 %v1599_v26 }
 0x567   :  { %3042 = vtanh.f32 %v1597_v13 }
 0x568   :  { %3044 = vtanh.f32 %v1600_v36  ;;  %v7283_v36 = vld [vmem:[%s9756_s5 + $0x148] sm:$0xff] }
 0x569   :  { %10770 = vst [vmem:[#allocation9_spill] sm:$0xff] %v7283_v36 }
 0x56b   :  { %v3039_v56 = vpop.eup %3038 }
 0x56c   :  { %v3041_v60 = vpop.eup %3040  ;;  %v1604_v42 = vmul.f32 0.5, %v3039_v56  ;;  %v7289_v56 = vld [vmem:[%s9756_s5 + $0x150] sm:$0xff] }
 0x56d   :  { %v1605_v39 = vmul.f32 0.5, %v3041_v60  ;;  %v3043_v34 = vpop.eup %3042  ;;  %v7253_v60 = vld [vmem:[%s9756_s5 + $0x160] sm:$0xff]  ;;  %10771 = vst [vmem:[#allocation33_spill] sm:$0xff] %v7289_v56 }
 0x56e   :  { %v1607_v45 = vadd.f32 0.5, %v1604_v42  ;;  %v3045_v59 = vpop.eup %3044  ;;  %v7295_v42 = vld [vmem:[%s9756_s5 + $0x158] sm:$0xff] }
 0x56f   :  { %v1608_v40 = vadd.f32 0.5, %v1605_v39  ;;  %v1606_v33 = vmul.f32 0.5, %v3045_v59  ;;  %10772 = vst [vmem:[#allocation10_spill] sm:$0xff] %v7295_v42  ;;  %v7301_v39 = vld [vmem:[%s9756_s5 + $0x120] sm:$0xff] }
 0x570   :  { %v1612_v49 = vmul.f32 %v3043_v34, %v1607_v45  ;;  %10773 = vst [vmem:[#allocation29_spill] sm:$0xff] %v7301_v39  ;;  %v7307_v45 = vld [vmem:[%s9756_s5 + $0x128] sm:$0xff]  ;;  %v7313_v34 = vld [vmem:[%s9756_s5 + $0x130] sm:$0xff]  ;;  %v7325_v59 = vld [vmem:[%s9756_s5 + $0x100] sm:$0xff] }
 0x571   :  { %v1611_v41 = vmul.f32 %v1608_v40, %v6741_v23  ;;  %v1609_v26 = vadd.f32 0.5, %v1606_v33  ;;  %v7188_v23 = vld [vmem:[%s9756_s5 + $0x1e8] sm:$0xff]  ;;  %v7247_v40 = vld [vmem:[%s9756_s5 + $0x198] sm:$0xff]  ;;  %10774 = vst [vmem:[#allocation11_spill] sm:$0xff] %v7307_v45 }
 0x572   :  { %10775 = vst [vmem:[#allocation35_spill] sm:$0xff] %v7313_v34  ;;  %v7331_v33 = vld [vmem:[%s9756_s5 + $0x108] sm:$0xff] }
 0x573   :  { %v7175_v29 = vadd.f32 %v1612_v49, %v1611_v41  ;;  %v7277_v41 = vld [vmem:[%s9756_s5 + $0x140] sm:$0xff]  ;;  %v7319_v49 = vld [vmem:[%s9756_s5 + $0x138] sm:$0xff]  ;;  %10777 = vst [vmem:[#allocation32_spill] sm:$0xff] %v7325_v59 }
 0x574   :  { %10769 = vst [vmem:[#allocation27_spill] sm:$0xff] %v7277_v41 }
 0x575   :  { %3046 = vtanh.f32 %v7175_v29  ;;  %10776 = vst [vmem:[#allocation12_spill] sm:$0xff] %v7319_v49 }
 0x576   :  { %10778 = vst [vmem:[#allocation13_spill] sm:$0xff] %v7331_v33 }
 0x57b   :  { %v3047_v38 = vpop.eup %3046 }
 0x57c   :  { %v7178_v13 = vmul.f32 %v3047_v38, %v1609_v26  ;;  %v7337_v26 = vld [vmem:[%s9756_s5 + $0x110] sm:$0xff]  ;;  %v7343_v38 = vld [vmem:[%s9756_s5 + $0x118] sm:$0xff] }
 0x57d   :  { %10779 = vst [vmem:[#allocation37_spill] sm:$0xff] %v7337_v26 }
 0x57e   :  { %1632 = vmatmul.f32.vlgmr.msra.gmra.mxu2 %v7178_v13  ;;  %1652 = vmatmul.f32.vlgmr.msrb.gmra.mxu3 %v7178_v13  ;;  %10780 = vst [vmem:[#allocation14_spill] sm:$0xff] %v7343_v38 }
 0x57f   :  { %1672 = vmatmul.f32.vlgmr.msra.gmra.mxu0 %v7178_v13  ;;  %1692 = vmatmul.f32.vlgmr.msrb.gmra.mxu1 %v7178_v13 }
 0x580   :  { %1802 = vmatpush.msra.mxu2 %v6753_v63  ;;  %1822 = vmatpush.msrb.mxu3 %v7188_v23  ;;  %v7202_v63 = vld [vmem:[%s9756_s5 + $0x1c8] sm:$0xff] }
 0x581   :  { %1842 = vmatpush.msra.mxu0 %v6760_v19  ;;  %1862 = vmatpush.msrb.mxu1 %v7195_v16  ;;  %v7209_v19 = vld [vmem:[%s9756_s5 + $0x1d8] sm:$0xff] }
 0x582   :  { %1803 = vmatpush.msra.mxu2 %v6767_v12  ;;  %1823 = vmatpush.msrb.mxu3 %v7202_v63  ;;  %v7216_v12 = vld [vmem:[%s9756_s5 + $0x1a8] sm:$0xff] }
 0x583   :  { %1843 = vmatpush.msra.mxu0 %v6774_v35  ;;  %1863 = vmatpush.msrb.mxu1 %v7209_v19  ;;  %v7223_v35 = vld [vmem:[%s9756_s5 + $0x1b8] sm:$0xff] }
 0x584   :  { %1804 = vmatpush.msra.mxu2 %v6781_v55  ;;  %1824 = vmatpush.msrb.mxu3 %v7216_v12  ;;  %v7229_v55 = vld [vmem:[%s9756_s5 + $0x180] sm:$0xff] }
 0x585   :  { %1844 = vmatpush.msra.mxu0 %v6788_v50  ;;  %1864 = vmatpush.msrb.mxu1 %v7223_v35  ;;  %v7241_v50 = vld [vmem:[%s9756_s5 + $0x190] sm:$0xff] }
 0x586   :  { %1805 = vmatpush.msra.mxu2 %v7229_v55  ;;  %1825 = vmatpush.msrb.mxu3 %v7235_v2 }
 0x587   :  { %1845 = vmatpush.msra.mxu0 %v7241_v50  ;;  %1865 = vmatpush.msrb.mxu1 %v7247_v40 }
 0x588   :  { %1806 = vmatpush.msra.mxu2 %v7253_v60  ;;  %1826 = vmatpush.msrb.mxu3 %v7259_v8 }
 0x589   :  { %1846 = vmatpush.msra.mxu0 %v7265_v58  ;;  %1866 = vmatpush.msrb.mxu1 %v7271_v62 }
 0x58a   :  { %1807 = vmatpush.msra.mxu2 %v7277_v41  ;;  %1827 = vmatpush.msrb.mxu3 %v7283_v36  ;;  %v1508_v36 = vadd.f32 %v7160_v11, %v10553_v20 }
 0x58b   :  { %1847 = vmatpush.msra.mxu0 %v7289_v56  ;;  %1867 = vmatpush.msrb.mxu1 %v7295_v42 }
 0x58c   :  { %1808 = vmatpush.msra.mxu2 %v7301_v39  ;;  %1828 = vmatpush.msrb.mxu3 %v7307_v45 }
 0x58d   :  { %1848 = vmatpush.msra.mxu0 %v7313_v34  ;;  %1868 = vmatpush.msrb.mxu1 %v7319_v49 }
 0x58e   :  { %1809 = vmatpush.msra.mxu2 %v7325_v59  ;;  %1829 = vmatpush.msrb.mxu3 %v7331_v33  ;;  %v7349_v59 = vld [vmem:[%s9756_s5 + $0xe0] sm:$0xff]  ;;  %v7355_v33 = vld [vmem:[%s9756_s5 + $0xe8] sm:$0xff] }
 0x58f   :  { %1849 = vmatpush.msra.mxu0 %v7337_v26  ;;  %1869 = vmatpush.msrb.mxu1 %v7343_v38  ;;  %10781 = vst [vmem:[#allocation34_spill] sm:$0xff] %v7349_v59  ;;  %v7361_v26 = vld [vmem:[%s9756_s5 + $0xf0] sm:$0xff]  ;;  %v7367_v38 = vld [vmem:[%s9756_s5 + $0xf8] sm:$0xff] }
 0x590   :  { %1810 = vmatpush.msra.mxu2 %v7349_v59  ;;  %10782 = vst [vmem:[#allocation15_spill] sm:$0xff] %v7355_v33  ;;  %1830 = vmatpush.msrb.mxu3 %v7355_v33  ;;  %v7373_v59 = vld [vmem:[%s9756_s5 + $0xc0] sm:$0xff]  ;;  %v7379_v33 = vld [vmem:[%s9756_s5 + $0xc8] sm:$0xff] }
 0x591   :  { %10783 = vst [vmem:[#allocation39_spill] sm:$0xff] %v7361_v26  ;;  %1850 = vmatpush.msra.mxu0 %v7361_v26  ;;  %1870 = vmatpush.msrb.mxu1 %v7367_v38  ;;  %v7385_v26 = vld [vmem:[%s9756_s5 + $0xd0] sm:$0xff] }
 0x592   :  { %10784 = vst [vmem:[#allocation16_spill] sm:$0xff] %v7367_v38  ;;  %1811 = vmatpush.msra.mxu2 %v7373_v59  ;;  %1831 = vmatpush.msrb.mxu3 %v7379_v33  ;;  %v7391_v38 = vld [vmem:[%s9756_s5 + $0xd8] sm:$0xff] }
 0x593   :  { %10785 = vst [vmem:[#allocation36_spill] sm:$0xff] %v7373_v59  ;;  %1851 = vmatpush.msra.mxu0 %v7385_v26  ;;  %1871 = vmatpush.msrb.mxu1 %v7391_v38  ;;  %v7397_v59 = vld [vmem:[%s9756_s5 + $0xa0] sm:$0xff] }
 0x594   :  { %10786 = vst [vmem:[#allocation17_spill] sm:$0xff] %v7379_v33  ;;  %1812 = vmatpush.msra.mxu2 %v7397_v59  ;;  %v7403_v33 = vld [vmem:[%s9756_s5 + $0xa8] sm:$0xff] }
 0x595   :  { %10787 = vst [vmem:[#allocation41_spill] sm:$0xff] %v7385_v26  ;;  %1832 = vmatpush.msrb.mxu3 %v7403_v33  ;;  %v7409_v26 = vld [vmem:[%s9756_s5 + $0xb0] sm:$0xff] }
 0x596   :  { %10788 = vst [vmem:[#allocation18_spill] sm:$0xff] %v7391_v38  ;;  %1852 = vmatpush.msra.mxu0 %v7409_v26  ;;  %v7415_v38 = vld [vmem:[%s9756_s5 + $0xb8] sm:$0xff] }
 0x597   :  { %10789 = vst [vmem:[#allocation38_spill] sm:$0xff] %v7397_v59  ;;  %1872 = vmatpush.msrb.mxu1 %v7415_v38  ;;  %v7421_v59 = vld [vmem:[%s9756_s5 + $0x80] sm:$0xff] }
 0x598   :  { %10790 = vst [vmem:[#allocation19_spill] sm:$0xff] %v7403_v33  ;;  %1813 = vmatpush.msra.mxu2 %v7421_v59  ;;  %v7427_v33 = vld [vmem:[%s9756_s5 + $0x88] sm:$0xff] }
 0x599   :  { %10791 = vst [vmem:[#allocation43_spill] sm:$0xff] %v7409_v26  ;;  %1833 = vmatpush.msrb.mxu3 %v7427_v33  ;;  %v7433_v26 = vld [vmem:[%s9756_s5 + $0x90] sm:$0xff] }
 0x59a   :  { %10792 = vst [vmem:[#allocation20_spill] sm:$0xff] %v7415_v38  ;;  %1853 = vmatpush.msra.mxu0 %v7433_v26  ;;  %v7439_v38 = vld [vmem:[%s9756_s5 + $0x98] sm:$0xff] }
 0x59b   :  { %10793 = vst [vmem:[#allocation40_spill] sm:$0xff] %v7421_v59  ;;  %1873 = vmatpush.msrb.mxu1 %v7439_v38  ;;  %v7445_v59 = vld [vmem:[%s9756_s5 + $0x60] sm:$0xff] }
 0x59c   :  { %10794 = vst [vmem:[#allocation21_spill] sm:$0xff] %v7427_v33  ;;  %1814 = vmatpush.msra.mxu2 %v7445_v59  ;;  %v7451_v33 = vld [vmem:[%s9756_s5 + $0x68] sm:$0xff] }
 0x59d   :  { %10795 = vst [vmem:[#allocation44_spill] sm:$0xff] %v7433_v26  ;;  %1834 = vmatpush.msrb.mxu3 %v7451_v33  ;;  %v7457_v26 = vld [vmem:[%s9756_s5 + $0x70] sm:$0xff] }
 0x59e   :  { %10796 = vst [vmem:[#allocation22_spill] sm:$0xff] %v7439_v38  ;;  %1854 = vmatpush.msra.mxu0 %v7457_v26  ;;  %v7463_v38 = vld [vmem:[%s9756_s5 + $0x78] sm:$0xff] }
 0x59f   :  { %10797 = vst [vmem:[#allocation42_spill] sm:$0xff] %v7445_v59  ;;  %1874 = vmatpush.msrb.mxu1 %v7463_v38  ;;  %v7469_v59 = vld [vmem:[%s9756_s5 + $0x40] sm:$0xff] }
 0x5a0   :  { %10798 = vst [vmem:[#allocation23_spill] sm:$0xff] %v7451_v33  ;;  %1815 = vmatpush.msra.mxu2 %v7469_v59  ;;  %v7475_v33 = vld [vmem:[%s9756_s5 + $0x48] sm:$0xff] }
 0x5a1   :  { %10799 = vst [vmem:[#allocation45_spill] sm:$0xff] %v7457_v26  ;;  %1835 = vmatpush.msrb.mxu3 %v7475_v33  ;;  %v7481_v26 = vld [vmem:[%s9756_s5 + $0x50] sm:$0xff] }
 0x5a2   :  { %10800 = vst [vmem:[#allocation102_spill] sm:$0xff] %v7463_v38  ;;  %1855 = vmatpush.msra.mxu0 %v7481_v26  ;;  %v7487_v38 = vld [vmem:[%s9756_s5 + $0x58] sm:$0xff] }
 0x5a3   :  { %10801 = vst [vmem:[#allocation103_spill] sm:$0xff] %v7469_v59  ;;  %1875 = vmatpush.msrb.mxu1 %v7487_v38  ;;  %v7493_v59 = vld [vmem:[%s9756_s5 + $0x20] sm:$0xff] }
 0x5a4   :  { %10802 = vst [vmem:[#allocation126_spill] sm:$0xff] %v7475_v33  ;;  %1816 = vmatpush.msra.mxu2 %v7493_v59  ;;  %v7499_v33 = vld [vmem:[%s9756_s5 + $0x28] sm:$0xff] }
 0x5a5   :  { %10803 = vst [vmem:[#allocation131_spill] sm:$0xff] %v7481_v26  ;;  %1836 = vmatpush.msrb.mxu3 %v7499_v33  ;;  %v7505_v26 = vld [vmem:[%s9756_s5 + $0x30] sm:$0xff] }
 0x5a6   :  { %10804 = vst [vmem:[#allocation70_spill] sm:$0xff] %v7487_v38  ;;  %1856 = vmatpush.msra.mxu0 %v7505_v26  ;;  %v7511_v38 = vld [vmem:[%s9756_s5 + $0x38] sm:$0xff] }
 0x5a7   :  { %10805 = vst [vmem:[#allocation71_spill] sm:$0xff] %v7493_v59  ;;  %1876 = vmatpush.msrb.mxu1 %v7511_v38  ;;  %v7517_v59 = vld [vmem:[%s9756_s5] sm:$0xff] }
 0x5a8   :  { %10806 = vst [vmem:[#allocation72_spill] sm:$0xff] %v7499_v33  ;;  %1817 = vmatpush.msra.mxu2 %v7517_v59  ;;  %v7523_v33 = vld [vmem:[%s9756_s5 + $0x8] sm:$0xff] }
 0x5a9   :  { %10807 = vst [vmem:[#allocation73_spill] sm:$0xff] %v7505_v26  ;;  %1837 = vmatpush.msrb.mxu3 %v7523_v33  ;;  %v7529_v26 = vld [vmem:[%s9756_s5 + $0x10] sm:$0xff] }
 0x5aa   :  { %10808 = vst [vmem:[#allocation75_spill] sm:$0xff] %v7511_v38  ;;  %1857 = vmatpush.msra.mxu0 %v7529_v26  ;;  %v7535_v38 = vld [vmem:[%s9756_s5 + $0x18] sm:$0xff] }
 0x5ab   :  { %10809 = vst [vmem:[#allocation76_spill] sm:$0xff] %v7517_v59  ;;  %1877 = vmatpush.msrb.mxu1 %v7535_v38  ;;  %v1448_v59 = vadd.f32 %v7162_v4, %v10682_v15 }
 0x5ac   :  { %10810 = vst [vmem:[#allocation77_spill] sm:$0xff] %v7523_v33  ;;  %v1468_v33 = vadd.f32 %v7164_v52, %v10683_v44 }
 0x5ad   :  { %10811 = vst [vmem:[#allocation78_spill] sm:$0xff] %v7529_v26  ;;  %v1488_v26 = vadd.f32 %v7158_v54, %v10684_v51 }
 0x5ae   :  { %10812 = vst [vmem:[#allocation81_spill] sm:$0xff] %v7535_v38 }
 0x5fc   :  { %v1673_v42 = vpop.f32.mrf.mxu0  ;;  %v1693_v56 = vpop.f32.mrf.mxu1 }
 0x5fd   :  { %v1698_v62 = vadd.f32 %v1673_v42, %v1488_v26  ;;  %v1699_v58 = vadd.f32 %v1693_v56, %v1508_v36  ;;  %v7577_v56 = vld [vmem:[%s9758_s6 + $0x1c0] sm:$0xff]  ;;  %v7583_v42 = vld [vmem:[%s9758_s6 + $0x1c8] sm:$0xff]  ;;  %v7595_v26 = vld [vmem:[%s9758_s6 + $0x1d8] sm:$0xff] }
 0x5ff   :  { %v1702_v4 = vmul.f32 0.5, %v1698_v62 }
 0x601   :  { %v1633_v49 = vpop.f32.mrf.mxu2  ;;  %v1653_v34 = vpop.f32.mrf.mxu3 }
 0x602   :  { %v1696_v45 = vadd.f32 %v1633_v49, %v1448_v59  ;;  %v1697_v39 = vadd.f32 %v1653_v34, %v1468_v33 }
 0x604   :  { %v1700_v41 = vmul.f32 0.5, %v1696_v45  ;;  %v1701_v38 = vmul.f32 0.5, %v1697_v39  ;;  %v7589_v39 = vld [vmem:[%s9758_s6 + $0x1d0] sm:$0xff] }
 0x606   :  { %3048 = vtanh.f32 %v1700_v41 }
 0x607   :  { %3050 = vtanh.f32 %v1701_v38  ;;  %v7601_v38 = vld [vmem:[%s9758_s6 + $0x1a0] sm:$0xff] }
 0x608   :  { %3052 = vtanh.f32 %v1699_v58 }
 0x609   :  { %3054 = vtanh.f32 %v1702_v4  ;;  %v7607_v4 = vld [vmem:[%s9758_s6 + $0x1a8] sm:$0xff] }
 0x60c   :  { %v3049_v52 = vpop.eup %3048 }
 0x60d   :  { %v3051_v44 = vpop.eup %3050  ;;  %v1706_v49 = vmul.f32 0.5, %v3049_v52  ;;  %v7613_v52 = vld [vmem:[%s9758_s6 + $0x1b0] sm:$0xff] }
 0x60e   :  { %v1707_v34 = vmul.f32 0.5, %v3051_v44  ;;  %v3053_v33 = vpop.eup %3052  ;;  %v7553_v44 = vld [vmem:[%s9758_s6 + $0x1e0] sm:$0xff] }
 0x60f   :  { %v1709_v59 = vadd.f32 0.5, %v1706_v49  ;;  %v3055_v11 = vpop.eup %3054  ;;  %v7619_v49 = vld [vmem:[%s9758_s6 + $0x1b8] sm:$0xff] }
 0x610   :  { %v1710_v15 = vadd.f32 0.5, %v1707_v34  ;;  %v1708_v41 = vmul.f32 0.5, %v3055_v11  ;;  %v7629_v34 = vld [vmem:[%s9758_s6 + $0x180] sm:$0xff]  ;;  %v7659_v11 = vld [vmem:[%s9758_s6 + $0x168] sm:$0xff] }
 0x611   :  { %v1714_v54 = vmul.f32 %v3053_v33, %v1709_v59  ;;  %v7635_v59 = vld [vmem:[%s9758_s6 + $0x188] sm:$0xff]  ;;  %v7641_v33 = vld [vmem:[%s9758_s6 + $0x190] sm:$0xff] }
 0x612   :  { %v1713_v51 = vmul.f32 %v1710_v15, %v6853_v43  ;;  %v1711_v36 = vadd.f32 0.5, %v1708_v41  ;;  %v7559_v15 = vld [vmem:[%s9758_s6 + $0x1e8] sm:$0xff]  ;;  %v7571_v43 = vld [vmem:[%s9758_s6 + $0x1f8] sm:$0xff]  ;;  %v7665_v41 = vld [vmem:[%s9758_s6 + $0x170] sm:$0xff] }
 0x613   :  { %10813 = vst [vmem:[#allocation82_spill] sm:$0xff] %v7665_v41 }
 0x614   :  { %v7547_v45 = vadd.f32 %v1714_v54, %v1713_v51  ;;  %v7565_v51 = vld [vmem:[%s9758_s6 + $0x1f0] sm:$0xff]  ;;  %v7653_v54 = vld [vmem:[%s9758_s6 + $0x160] sm:$0xff] }
 0x616   :  { %3056 = vtanh.f32 %v7547_v45 }
 0x61c   :  { %v3057_v62 = vpop.eup %3056 }
 0x61d   :  { %v1717_v58 = vmul.f32 %v3057_v62, %v1711_v36  ;;  %v7671_v36 = vld [vmem:[%s9758_s6 + $0x178] sm:$0xff]  ;;  %v7677_v62 = vld [vmem:[%s9758_s6 + $0x140] sm:$0xff] }
 0x61e   :  { %10814 = vst [vmem:[#allocation83_spill] sm:$0xff] %v7671_v36 }
 0x61f   :  { %1734 = vmatmul.f32.vlgmr.msrb.gmra.mxu2 %v1717_v58  ;;  %1754 = vmatmul.f32.vlgmr.msra.gmra.mxu3 %v1717_v58  ;;  %10815 = vst [vmem:[#allocation84_spill] sm:$0xff] %v7677_v62 }
 0x620   :  { %1774 = vmatmul.f32.vlgmr.msrb.gmra.mxu0 %v1717_v58  ;;  %1794 = vmatmul.f32.vlgmr.msra.gmra.mxu1 %v1717_v58  ;;  %v7683_v58 = vld [vmem:[%s9758_s6 + $0x148] sm:$0xff] }
 0x621   :  { %1904 = vmatpush.msrb.mxu2 %v7553_v44  ;;  %1924 = vmatpush.msra.mxu3 %v7559_v15  ;;  %10816 = vst [vmem:[#allocation85_spill] sm:$0xff] %v7683_v58 }
 0x622   :  { %1944 = vmatpush.msrb.mxu0 %v7565_v51  ;;  %1964 = vmatpush.msra.mxu1 %v7571_v43 }
 0x623   :  { %1905 = vmatpush.msrb.mxu2 %v7577_v56  ;;  %1925 = vmatpush.msra.mxu3 %v7583_v42 }
 0x624   :  { %1945 = vmatpush.msrb.mxu0 %v7589_v39  ;;  %1965 = vmatpush.msra.mxu1 %v7595_v26 }
 0x625   :  { %1906 = vmatpush.msrb.mxu2 %v7601_v38  ;;  %1926 = vmatpush.msra.mxu3 %v7607_v4 }
 0x626   :  { %1946 = vmatpush.msrb.mxu0 %v7613_v52  ;;  %1966 = vmatpush.msra.mxu1 %v7619_v49 }
 0x627   :  { %1818 = vmatmul.f32.vlgmr.msra.gmra.mxu2 %v7178_v13  ;;  %1838 = vmatmul.f32.vlgmr.msrb.gmra.mxu3 %v7178_v13 }
 0x628   :  { %1858 = vmatmul.f32.vlgmr.msra.gmra.mxu0 %v7178_v13  ;;  %1878 = vmatmul.f32.vlgmr.msrb.gmra.mxu1 %v7178_v13  ;;  %v7647_v13 = vld [vmem:[%s9758_s6 + $0x198] sm:$0xff] }
 0x629   :  { %1907 = vmatpush.msrb.mxu2 %v7629_v34  ;;  %1927 = vmatpush.msra.mxu3 %v7635_v59 }
 0x62a   :  { %1947 = vmatpush.msrb.mxu0 %v7641_v33  ;;  %1967 = vmatpush.msra.mxu1 %v7647_v13 }
 0x62b   :  { %1908 = vmatpush.msrb.mxu2 %v7653_v54  ;;  %1928 = vmatpush.msra.mxu3 %v7659_v11 }
 0x62c   :  { %1948 = vmatpush.msrb.mxu0 %v7665_v41  ;;  %1968 = vmatpush.msra.mxu1 %v7671_v36  ;;  %v7689_v41 = vld [vmem:[%s9758_s6 + $0x150] sm:$0xff]  ;;  %v7695_v36 = vld [vmem:[%s9758_s6 + $0x158] sm:$0xff] }
 0x62d   :  { %1909 = vmatpush.msrb.mxu2 %v7677_v62  ;;  %1929 = vmatpush.msra.mxu3 %v7683_v58  ;;  %10817 = vst [vmem:[#allocation86_spill] sm:$0xff] %v7689_v41  ;;  %v7701_v62 = vld [vmem:[%s9758_s6 + $0x120] sm:$0xff]  ;;  %v7707_v58 = vld [vmem:[%s9758_s6 + $0x128] sm:$0xff] }
 0x62e   :  { %1949 = vmatpush.msrb.mxu0 %v7689_v41  ;;  %10818 = vst [vmem:[#allocation87_spill] sm:$0xff] %v7695_v36  ;;  %1969 = vmatpush.msra.mxu1 %v7695_v36  ;;  %v7713_v41 = vld [vmem:[%s9758_s6 + $0x130] sm:$0xff]  ;;  %v7719_v36 = vld [vmem:[%s9758_s6 + $0x138] sm:$0xff] }
 0x62f   :  { %10819 = vst [vmem:[#allocation88_spill] sm:$0xff] %v7701_v62  ;;  %1910 = vmatpush.msrb.mxu2 %v7701_v62  ;;  %1930 = vmatpush.msra.mxu3 %v7707_v58  ;;  %v7725_v62 = vld [vmem:[%s9758_s6 + $0x100] sm:$0xff] }
 0x630   :  { %10820 = vst [vmem:[#allocation89_spill] sm:$0xff] %v7707_v58  ;;  %1950 = vmatpush.msrb.mxu0 %v7713_v41  ;;  %1970 = vmatpush.msra.mxu1 %v7719_v36  ;;  %v7731_v58 = vld [vmem:[%s9758_s6 + $0x108] sm:$0xff] }
 0x631   :  { %10821 = vst [vmem:[#allocation90_spill] sm:$0xff] %v7713_v41  ;;  %1911 = vmatpush.msrb.mxu2 %v7725_v62  ;;  %1931 = vmatpush.msra.mxu3 %v7731_v58  ;;  %v7737_v41 = vld [vmem:[%s9758_s6 + $0x110] sm:$0xff] }
 0x632   :  { %10822 = vst [vmem:[#allocation91_spill] sm:$0xff] %v7719_v36  ;;  %1951 = vmatpush.msrb.mxu0 %v7737_v41  ;;  %v7743_v36 = vld [vmem:[%s9758_s6 + $0x118] sm:$0xff] }
 0x633   :  { %10823 = vst [vmem:[#allocation92_spill] sm:$0xff] %v7725_v62  ;;  %1971 = vmatpush.msra.mxu1 %v7743_v36  ;;  %v7749_v62 = vld [vmem:[%s9758_s6 + $0xe0] sm:$0xff] }
 0x634   :  { %10824 = vst [vmem:[#allocation94_spill] sm:$0xff] %v7731_v58  ;;  %1912 = vmatpush.msrb.mxu2 %v7749_v62  ;;  %v7755_v58 = vld [vmem:[%s9758_s6 + $0xe8] sm:$0xff] }
 0x635   :  { %10825 = vst [vmem:[#allocation95_spill] sm:$0xff] %v7737_v41  ;;  %1932 = vmatpush.msra.mxu3 %v7755_v58  ;;  %v7761_v41 = vld [vmem:[%s9758_s6 + $0xf0] sm:$0xff] }
 0x636   :  { %10826 = vst [vmem:[#allocation96_spill] sm:$0xff] %v7743_v36  ;;  %1952 = vmatpush.msrb.mxu0 %v7761_v41  ;;  %v7767_v36 = vld [vmem:[%s9758_s6 + $0xf8] sm:$0xff] }
 0x637   :  { %10827 = vst [vmem:[#allocation97_spill] sm:$0xff] %v7749_v62  ;;  %1972 = vmatpush.msra.mxu1 %v7767_v36  ;;  %v7773_v62 = vld [vmem:[%s9758_s6 + $0xc0] sm:$0xff] }
 0x638   :  { %10828 = vst [vmem:[#allocation98_spill] sm:$0xff] %v7755_v58  ;;  %1913 = vmatpush.msrb.mxu2 %v7773_v62  ;;  %v7779_v58 = vld [vmem:[%s9758_s6 + $0xc8] sm:$0xff] }
 0x639   :  { %10829 = vst [vmem:[#allocation99_spill] sm:$0xff] %v7761_v41  ;;  %1933 = vmatpush.msra.mxu3 %v7779_v58  ;;  %v7785_v41 = vld [vmem:[%s9758_s6 + $0xd0] sm:$0xff] }
 0x63a   :  { %10830 = vst [vmem:[#allocation100_spill] sm:$0xff] %v7767_v36  ;;  %1953 = vmatpush.msrb.mxu0 %v7785_v41  ;;  %v7791_v36 = vld [vmem:[%s9758_s6 + $0xd8] sm:$0xff] }
 0x63b   :  { %10831 = vst [vmem:[#allocation101_spill] sm:$0xff] %v7773_v62  ;;  %1973 = vmatpush.msra.mxu1 %v7791_v36  ;;  %v7797_v62 = vld [vmem:[%s9758_s6 + $0xa0] sm:$0xff] }
 0x63c   :  { %10832 = vst [vmem:[#allocation104_spill] sm:$0xff] %v7779_v58  ;;  %1914 = vmatpush.msrb.mxu2 %v7797_v62  ;;  %v7803_v58 = vld [vmem:[%s9758_s6 + $0xa8] sm:$0xff] }
 0x63d   :  { %10833 = vst [vmem:[#allocation105_spill] sm:$0xff] %v7785_v41  ;;  %1934 = vmatpush.msra.mxu3 %v7803_v58  ;;  %v7809_v41 = vld [vmem:[%s9758_s6 + $0xb0] sm:$0xff] }
 0x63e   :  { %10834 = vst [vmem:[#allocation106_spill] sm:$0xff] %v7791_v36  ;;  %1954 = vmatpush.msrb.mxu0 %v7809_v41  ;;  %v7815_v36 = vld [vmem:[%s9758_s6 + $0xb8] sm:$0xff] }
 0x63f   :  { %10835 = vst [vmem:[#allocation107_spill] sm:$0xff] %v7797_v62  ;;  %1974 = vmatpush.msra.mxu1 %v7815_v36  ;;  %v7821_v62 = vld [vmem:[%s9758_s6 + $0x80] sm:$0xff] }
 0x640   :  { %10836 = vst [vmem:[#allocation108_spill] sm:$0xff] %v7803_v58  ;;  %1915 = vmatpush.msrb.mxu2 %v7821_v62  ;;  %v7827_v58 = vld [vmem:[%s9758_s6 + $0x88] sm:$0xff] }
 0x641   :  { %10837 = vst [vmem:[#allocation109_spill] sm:$0xff] %v7809_v41  ;;  %1935 = vmatpush.msra.mxu3 %v7827_v58  ;;  %v7833_v41 = vld [vmem:[%s9758_s6 + $0x90] sm:$0xff] }
 0x642   :  { %10838 = vst [vmem:[#allocation110_spill] sm:$0xff] %v7815_v36  ;;  %1955 = vmatpush.msrb.mxu0 %v7833_v41  ;;  %v7839_v36 = vld [vmem:[%s9758_s6 + $0x98] sm:$0xff] }
 0x643   :  { %10839 = vst [vmem:[#allocation111_spill] sm:$0xff] %v7821_v62  ;;  %1975 = vmatpush.msra.mxu1 %v7839_v36  ;;  %v7845_v62 = vld [vmem:[%s9758_s6 + $0x60] sm:$0xff] }
 0x644   :  { %10840 = vst [vmem:[#allocation113_spill] sm:$0xff] %v7827_v58  ;;  %1916 = vmatpush.msrb.mxu2 %v7845_v62  ;;  %v7851_v58 = vld [vmem:[%s9758_s6 + $0x68] sm:$0xff] }
 0x645   :  { %10841 = vst [vmem:[#allocation114_spill] sm:$0xff] %v7833_v41  ;;  %1936 = vmatpush.msra.mxu3 %v7851_v58  ;;  %v7857_v41 = vld [vmem:[%s9758_s6 + $0x70] sm:$0xff] }
 0x646   :  { %10842 = vst [vmem:[#allocation115_spill] sm:$0xff] %v7839_v36  ;;  %1956 = vmatpush.msrb.mxu0 %v7857_v41  ;;  %v7863_v36 = vld [vmem:[%s9758_s6 + $0x78] sm:$0xff] }
 0x647   :  { %10843 = vst [vmem:[#allocation116_spill] sm:$0xff] %v7845_v62  ;;  %1976 = vmatpush.msra.mxu1 %v7863_v36  ;;  %v7869_v62 = vld [vmem:[%s9758_s6 + $0x40] sm:$0xff] }
 0x648   :  { %10844 = vst [vmem:[#allocation117_spill] sm:$0xff] %v7851_v58  ;;  %1917 = vmatpush.msrb.mxu2 %v7869_v62  ;;  %v7875_v58 = vld [vmem:[%s9758_s6 + $0x48] sm:$0xff] }
 0x649   :  { %10845 = vst [vmem:[#allocation118_spill] sm:$0xff] %v7857_v41  ;;  %1937 = vmatpush.msra.mxu3 %v7875_v58  ;;  %v7881_v41 = vld [vmem:[%s9758_s6 + $0x50] sm:$0xff] }
 0x64a   :  { %10846 = vst [vmem:[#allocation119_spill] sm:$0xff] %v7863_v36  ;;  %1957 = vmatpush.msrb.mxu0 %v7881_v41  ;;  %v7887_v36 = vld [vmem:[%s9758_s6 + $0x58] sm:$0xff] }
 0x64b   :  { %10847 = vst [vmem:[#allocation120_spill] sm:$0xff] %v7869_v62  ;;  %1977 = vmatpush.msra.mxu1 %v7887_v36  ;;  %v7893_v62 = vld [vmem:[%s9758_s6 + $0x20] sm:$0xff] }
 0x64c   :  { %10848 = vst [vmem:[#allocation121_spill] sm:$0xff] %v7875_v58  ;;  %1918 = vmatpush.msrb.mxu2 %v7893_v62  ;;  %v7899_v58 = vld [vmem:[%s9758_s6 + $0x28] sm:$0xff] }
 0x64d   :  { %10849 = vst [vmem:[#allocation122_spill] sm:$0xff] %v7881_v41  ;;  %1938 = vmatpush.msra.mxu3 %v7899_v58  ;;  %v7905_v41 = vld [vmem:[%s9758_s6 + $0x30] sm:$0xff] }
 0x64e   :  { %10850 = vst [vmem:[#allocation123_spill] sm:$0xff] %v7887_v36  ;;  %1958 = vmatpush.msrb.mxu0 %v7905_v41  ;;  %v7911_v36 = vld [vmem:[%s9758_s6 + $0x38] sm:$0xff] }
 0x64f   :  { %10851 = vst [vmem:[#allocation125_spill] sm:$0xff] %v7893_v62  ;;  %1978 = vmatpush.msra.mxu1 %v7911_v36  ;;  %v7917_v62 = vld [vmem:[%s9758_s6] sm:$0xff] }
 0x650   :  { %10852 = vst [vmem:[#allocation127_spill] sm:$0xff] %v7899_v58  ;;  %1919 = vmatpush.msrb.mxu2 %v7917_v62  ;;  %v7923_v58 = vld [vmem:[%s9758_s6 + $0x8] sm:$0xff] }
 0x651   :  { %10853 = vst [vmem:[#allocation128_spill] sm:$0xff] %v7905_v41  ;;  %1939 = vmatpush.msra.mxu3 %v7923_v58  ;;  %v7929_v41 = vld [vmem:[%s9758_s6 + $0x10] sm:$0xff] }
 0x652   :  { %10854 = vst [vmem:[#allocation129_spill] sm:$0xff] %v7911_v36  ;;  %1959 = vmatpush.msrb.mxu0 %v7929_v41  ;;  %v7935_v36 = vld [vmem:[%s9758_s6 + $0x18] sm:$0xff] }
 0x653   :  { %10855 = vst [vmem:[#allocation130_spill] sm:$0xff] %v7917_v62  ;;  %1979 = vmatpush.msra.mxu1 %v7935_v36  ;;  %v7941_v62 = vld [vmem:[%s9755_s7 + $0x1e0] sm:$0xff]  ;;  %2026 = vmatpush.msrb.mxu3 %v6928_v47 }
 0x654   :  { %10856 = vst [vmem:[#allocation132_spill] sm:$0xff] %v7929_v41  ;;  %2006 = vmatpush.msra.mxu2 %v7941_v62  ;;  %2046 = vmatpush.msra.mxu0 %v6934_v48  ;;  %v7950_v41 = vld [vmem:[%s9755_s7 + $0x1c0] sm:$0xff]  ;;  %v7965_v48 = vld [vmem:[%s9755_s7 + $0x1a8] sm:$0xff] }
 0x655   :  { %2066 = vmatpush.msrb.mxu1 %v6940_v53  ;;  %2027 = vmatpush.msrb.mxu3 %v6947_v0  ;;  %v7959_v47 = vld [vmem:[%s9755_s7 + $0x1a0] sm:$0xff]  ;;  %10857 = vst [vmem:[#allocation133_spill] sm:$0xff] %v7965_v48  ;;  %v7979_v0 = vld [vmem:[%s9755_s7 + $0x188] sm:$0xff] }
 0x656   :  { %2007 = vmatpush.msra.mxu2 %v7950_v41  ;;  %2047 = vmatpush.msra.mxu0 %v6953_v6  ;;  %v7973_v53 = vld [vmem:[%s9755_s7 + $0x180] sm:$0xff]  ;;  %10859 = vst [vmem:[#allocation135_spill] sm:$0xff] %v7979_v0 }
 0x657   :  { %2067 = vmatpush.msrb.mxu1 %v6959_v31  ;;  %2028 = vmatpush.msrb.mxu3 %v7965_v48  ;;  %10858 = vst [vmem:[#allocation134_spill] sm:$0xff] %v7973_v53  ;;  %v7987_v6 = vld [vmem:[%s9755_s7 + $0x160] sm:$0xff]  ;;  %v7993_v31 = vld [vmem:[%s9755_s7 + $0x168] sm:$0xff] }
 0x658   :  { %2008 = vmatpush.msra.mxu2 %v7959_v47  ;;  %2048 = vmatpush.msra.mxu0 %v6967_v1  ;;  %10860 = vst [vmem:[#allocation136_spill] sm:$0xff] %v7987_v6  ;;  %v8001_v1 = vld [vmem:[%s9755_s7 + $0x140] sm:$0xff] }
 0x659   :  { %2068 = vmatpush.msrb.mxu1 %v6973_v21  ;;  %2029 = vmatpush.msrb.mxu3 %v7979_v0  ;;  %10861 = vst [vmem:[#allocation137_spill] sm:$0xff] %v7993_v31  ;;  %v8007_v21 = vld [vmem:[%s9755_s7 + $0x148] sm:$0xff] }
 0x65a   :  { %2009 = vmatpush.msra.mxu2 %v7973_v53  ;;  %2049 = vmatpush.msra.mxu0 %v6981_v30  ;;  %10862 = vst [vmem:[#allocation138_spill] sm:$0xff] %v8001_v1  ;;  %v8015_v30 = vld [vmem:[%s9755_s7 + $0x120] sm:$0xff] }
 0x65b   :  { %2069 = vmatpush.msrb.mxu1 %v6987_v46  ;;  %2030 = vmatpush.msrb.mxu3 %v7993_v31  ;;  %10863 = vst [vmem:[#allocation139_spill] sm:$0xff] %v8007_v21  ;;  %v8021_v46 = vld [vmem:[%s9755_s7 + $0x128] sm:$0xff] }
 0x65c   :  { %2010 = vmatpush.msra.mxu2 %v7987_v6  ;;  %2050 = vmatpush.msra.mxu0 %v6995_v28  ;;  %10864 = vst [vmem:[#allocation140_spill] sm:$0xff] %v8015_v30  ;;  %v8029_v28 = vld [vmem:[%s9755_s7 + $0x100] sm:$0xff] }
 0x65d   :  { %2070 = vmatpush.msrb.mxu1 %v7001_v14  ;;  %2031 = vmatpush.msrb.mxu3 %v8007_v21  ;;  %10865 = vst [vmem:[#allocation141_spill] sm:$0xff] %v8021_v46  ;;  %v8035_v14 = vld [vmem:[%s9755_s7 + $0x108] sm:$0xff] }
 0x65e   :  { %2011 = vmatpush.msra.mxu2 %v8001_v1  ;;  %2051 = vmatpush.msra.mxu0 %v7009_v24  ;;  %10866 = vst [vmem:[#allocation50_spill] sm:$0xff] %v8029_v28  ;;  %v8043_v24 = vld [vmem:[%s9755_s7 + $0xe0] sm:$0xff]  ;;  %v10898_v1 = vld [vmem:[#allocation69_spill] sm:$0xff] }
 0x65f   :  { %2071 = vmatpush.msrb.mxu1 %v7015_v9  ;;  %2032 = vmatpush.msrb.mxu3 %v8021_v46  ;;  %10867 = vst [vmem:[#allocation49_spill] sm:$0xff] %v8035_v14  ;;  %v8049_v9 = vld [vmem:[%s9755_s7 + $0xe8] sm:$0xff]  ;;  %v10896_v46 = vld [vmem:[#allocation65_spill] sm:$0xff]  ;;  %v280_v31 = vadd.f32 %v10898_v1, %v5079_v61 }
 0x660   :  { %2012 = vmatpush.msra.mxu2 %v8015_v30  ;;  %2052 = vmatpush.msra.mxu0 %v7023_v5  ;;  %10868 = vst [vmem:[#allocation46_spill] sm:$0xff] %v8043_v24  ;;  %v8057_v5 = vld [vmem:[%s9755_s7 + $0xc0] sm:$0xff] }
 0x661   :  { %2072 = vmatpush.msrb.mxu1 %v7029_v57  ;;  %2033 = vmatpush.msrb.mxu3 %v8035_v14  ;;  %10869 = vst [vmem:[#allocation56_spill] sm:$0xff] %v8049_v9  ;;  %v8063_v57 = vld [vmem:[%s9755_s7 + $0xc8] sm:$0xff]  ;;  %v10897_v30 = vld [vmem:[#allocation55_spill] sm:$0xff] }
 0x662   :  { %2013 = vmatpush.msra.mxu2 %v8029_v28  ;;  %2053 = vmatpush.msra.mxu0 %v7037_v32  ;;  %10870 = vst [vmem:[#allocation143_spill] sm:$0xff] %v8057_v5  ;;  %v8071_v32 = vld [vmem:[%s9755_s7 + $0xa0] sm:$0xff]  ;;  %v321_v21 = vadd.f32 %v10897_v30, %v10896_v46 }
 0x663   :  { %2073 = vmatpush.msrb.mxu1 %v7043_v37  ;;  %2034 = vmatpush.msrb.mxu3 %v8049_v9  ;;  %10871 = vst [vmem:[#allocation28_spill] sm:$0xff] %v8063_v57  ;;  %v8077_v37 = vld [vmem:[%s9755_s7 + $0xa8] sm:$0xff] }
 0x664   :  { %2014 = vmatpush.msra.mxu2 %v8043_v24  ;;  %2054 = vmatpush.msra.mxu0 %v7051_v7  ;;  %10872 = vst [vmem:[#allocation144_spill] sm:$0xff] %v8071_v32  ;;  %v8085_v7 = vld [vmem:[%s9755_s7 + $0x80] sm:$0xff] }
 0x665   :  { %2074 = vmatpush.msrb.mxu1 %v7057_v18  ;;  %2035 = vmatpush.msrb.mxu3 %v8063_v57  ;;  %10873 = vst [vmem:[#allocation145_spill] sm:$0xff] %v8077_v37  ;;  %v8091_v18 = vld [vmem:[%s9755_s7 + $0x88] sm:$0xff] }
 0x666   :  { %2015 = vmatpush.msra.mxu2 %v8057_v5  ;;  %2055 = vmatpush.msra.mxu0 %v7065_v17  ;;  %10874 = vst [vmem:[#allocation146_spill] sm:$0xff] %v8085_v7  ;;  %v8099_v17 = vld [vmem:[%s9755_s7 + $0x60] sm:$0xff]  ;;  %v10894_v57 = vld [vmem:[#allocation124_spill] sm:$0xff]  ;;  %v10895_v5 = vld [vmem:[#allocation61_spill] sm:$0xff] }
 0x667   :  { %2075 = vmatpush.msrb.mxu1 %v7071_v22  ;;  %2036 = vmatpush.msrb.mxu3 %v8077_v37  ;;  %10875 = vst [vmem:[#allocation147_spill] sm:$0xff] %v8091_v18  ;;  %v8105_v22 = vld [vmem:[%s9755_s7 + $0x68] sm:$0xff]  ;;  %v10893_v37 = vld [vmem:[#allocation63_spill] sm:$0xff]  ;;  %v198_v9 = vadd.f32 %v10895_v5, %v10894_v57 }
 0x668   :  { %2016 = vmatpush.msra.mxu2 %v8071_v32  ;;  %2056 = vmatpush.msra.mxu0 %v7079_v10  ;;  %10876 = vst [vmem:[#allocation148_spill] sm:$0xff] %v8099_v17  ;;  %v10878_v10 = vld [vmem:[#allocation30_spill] sm:$0xff] }
 0x669   :  { %2076 = vmatpush.msrb.mxu1 %v7085_v27  ;;  %2037 = vmatpush.msrb.mxu3 %v8091_v18  ;;  %10877 = vst [vmem:[#allocation149_spill] sm:$0xff] %v8105_v22  ;;  %v10879_v27 = vld [vmem:[#allocation6_spill] sm:$0xff] }
 0x66a   :  { %2017 = vmatpush.msra.mxu2 %v8085_v7  ;;  %2057 = vmatpush.msra.mxu0 %v7093_v3  ;;  %v8113_v3 = vld [vmem:[%s9755_s7 + $0x40] sm:$0xff] }
 0x66b   :  { %2077 = vmatpush.msrb.mxu1 %v7099_v25  ;;  %2038 = vmatpush.msrb.mxu3 %v8105_v22  ;;  %10880 = vst [vmem:[#allocation150_spill] sm:$0xff] %v8113_v3  ;;  %v8119_v25 = vld [vmem:[%s9755_s7 + $0x48] sm:$0xff]  ;;  %v10883_v22 = vld [vmem:[#allocation53_spill] sm:$0xff] }
 0x66c   :  { %2018 = vmatpush.msra.mxu2 %v8099_v17  ;;  %2058 = vmatpush.msra.mxu0 %v10878_v10  ;;  %10881 = vst [vmem:[#allocation151_spill] sm:$0xff] %v8119_v25  ;;  %v10882_v17 = vld [vmem:[#allocation54_spill] sm:$0xff]  ;;  %v8127_v10 = vld [vmem:[%s9755_s7 + $0x20] sm:$0xff] }
 0x66d   :  { %2078 = vmatpush.msrb.mxu1 %v10879_v27  ;;  %2039 = vmatpush.msrb.mxu3 %v8119_v25  ;;  %10884 = vst [vmem:[#allocation25_spill] sm:$0xff] %v8127_v10  ;;  %v8133_v27 = vld [vmem:[%s9755_s7 + $0x28] sm:$0xff] }
 0x66e   :  { %2019 = vmatpush.msra.mxu2 %v8113_v3  ;;  %2059 = vmatpush.msra.mxu0 %v10882_v17  ;;  %10885 = vst [vmem:[#allocation5_spill] sm:$0xff] %v8133_v27  ;;  %v10886_v3 = vld [vmem:[#allocation48_spill] sm:$0xff]  ;;  %v8141_v17 = vld [vmem:[%s9755_s7] sm:$0xff] }
 0x66f   :  { %2079 = vmatpush.msrb.mxu1 %v10883_v22  ;;  %2040 = vmatpush.msrb.mxu3 %v8133_v27  ;;  %v10887_v25 = vld [vmem:[#allocation60_spill] sm:$0xff]  ;;  %10888 = vst [vmem:[#allocation58_spill] sm:$0xff] %v8141_v17  ;;  %v10891_v27 = vld [vmem:[#allocation7_spill] sm:$0xff] }
 0x670   :  { %2020 = vmatpush.msra.mxu2 %v8127_v10  ;;  %2060 = vmatpush.msra.mxu0 %v10886_v3  ;;  %v8147_v22 = vld [vmem:[%s9755_s7 + $0x8] sm:$0xff]  ;;  %v10890_v10 = vld [vmem:[#allocation26_spill] sm:$0xff] }
 0x671   :  { %2080 = vmatpush.msrb.mxu1 %v10887_v25  ;;  %10889 = vst [vmem:[#allocation57_spill] sm:$0xff] %v8147_v22  ;;  %2041 = vmatpush.msrb.mxu3 %v8147_v22 }
 0x672   :  { %2021 = vmatpush.msra.mxu2 %v8141_v17  ;;  %2061 = vmatpush.msra.mxu0 %v10890_v10  ;;  %v10892_v17 = vld [vmem:[#allocation142_spill] sm:$0xff] }
 0x673   :  { %2081 = vmatpush.msrb.mxu1 %v10891_v27  ;;  %v239_v32 = vadd.f32 %v10893_v37, %v10892_v17 }
 0x69d   :  { %v8152_v3 = vpop.f32.mrf.mxu0  ;;  %v8154_v25 = vpop.f32.mrf.mxu1 }
 0x6a2   :  { %v8156_v18 = vpop.f32.mrf.mxu2  ;;  %v8158_v7 = vpop.f32.mrf.mxu3 }
 0x6a5   :  { %v1859_v28 = vpop.f32.mrf.mxu0  ;;  %v1879_v27 = vpop.f32.mrf.mxu1 }
 0x6a6   :  { %v1884_v53 = vadd.f32 %v1859_v28, %v280_v31  ;;  %v1885_v48 = vadd.f32 %v1879_v27, %v321_v21  ;;  %v8188_v31 = vld [vmem:[%s9756_s5 + $0x1f0] sm:$0xff]  ;;  %v8195_v21 = vld [vmem:[%s9756_s5 + $0x1c0] sm:$0xff]  ;;  %v10913_v27 = vld [vmem:[#allocation34_spill] sm:$0xff] }
 0x6a7   :  { %v10902_v28 = vld [vmem:[#allocation9_spill] sm:$0xff] }
 0x6a8   :  { %v1888_v37 = vmul.f32 0.5, %v1884_v53 }
 0x6aa   :  { %v1819_v24 = vpop.f32.mrf.mxu2  ;;  %v1839_v22 = vpop.f32.mrf.mxu3 }
 0x6ab   :  { %v1882_v14 = vadd.f32 %v1819_v24, %v198_v9  ;;  %v1883_v10 = vadd.f32 %v1839_v22, %v239_v32 }
 0x6ad   :  { %v1886_v6 = vmul.f32 0.5, %v1882_v14  ;;  %v1887_v0 = vmul.f32 0.5, %v1883_v10  ;;  %v10912_v10 = vld [vmem:[#allocation14_spill] sm:$0xff] }
 0x6af   :  { %3058 = vtanh.f32 %v1886_v6 }
 0x6b0   :  { %3060 = vtanh.f32 %v1887_v0 }
 0x6b1   :  { %3062 = vtanh.f32 %v1885_v48 }
 0x6b2   :  { %3064 = vtanh.f32 %v1888_v37  ;;  %v10914_v37 = vld [vmem:[#allocation15_spill] sm:$0xff] }
 0x6b5   :  { %v3059_v5 = vpop.eup %3058 }
 0x6b6   :  { %v3061_v57 = vpop.eup %3060  ;;  %v1892_v24 = vmul.f32 0.5, %v3059_v5  ;;  %v10915_v5 = vld [vmem:[#allocation39_spill] sm:$0xff] }
 0x6b7   :  { %v1893_v9 = vmul.f32 0.5, %v3061_v57  ;;  %v3063_v22 = vpop.eup %3062  ;;  %v10910_v57 = vld [vmem:[#allocation13_spill] sm:$0xff] }
 0x6b8   :  { %v1895_v32 = vadd.f32 0.5, %v1892_v24  ;;  %v3065_v1 = vpop.eup %3064  ;;  %v10916_v24 = vld [vmem:[#allocation16_spill] sm:$0xff] }
 0x6b9   :  { %v1896_v17 = vadd.f32 0.5, %v1893_v9  ;;  %v1894_v6 = vmul.f32 0.5, %v3065_v1  ;;  %v10917_v9 = vld [vmem:[#allocation36_spill] sm:$0xff]  ;;  %v10921_v1 = vld [vmem:[#allocation38_spill] sm:$0xff] }
 0x6ba   :  { %v1900_v30 = vmul.f32 %v3063_v22, %v1895_v32  ;;  %v10918_v32 = vld [vmem:[#allocation17_spill] sm:$0xff] }
 0x6bb   :  { %v1899_v46 = vmul.f32 %v1896_v17, %v7175_v29  ;;  %v1897_v0 = vadd.f32 0.5, %v1894_v6  ;;  %v8181_v29 = vld [vmem:[%s9756_s5 + $0x1e0] sm:$0xff]  ;;  %v10911_v17 = vld [vmem:[#allocation37_spill] sm:$0xff] }
 0x6bc   :  { %v10919_v22 = vld [vmem:[#allocation41_spill] sm:$0xff]  ;;  %v10922_v6 = vld [vmem:[#allocation19_spill] sm:$0xff] }
 0x6bd   :  { %v8169_v14 = vadd.f32 %v1900_v30, %v1899_v46  ;;  %v10901_v46 = vld [vmem:[#allocation27_spill] sm:$0xff]  ;;  %v10920_v30 = vld [vmem:[#allocation18_spill] sm:$0xff] }
 0x6bf   :  { %3066 = vtanh.f32 %v8169_v14 }
 0x6c5   :  { %v3067_v53 = vpop.eup %3066 }
 0x6c6   :  { %v8172_v48 = vmul.f32 %v3067_v53, %v1897_v0  ;;  %v10923_v0 = vld [vmem:[#allocation43_spill] sm:$0xff]  ;;  %v10924_v53 = vld [vmem:[#allocation20_spill] sm:$0xff] }
 0x6c8   :  { %1920 = vmatmul.f32.vlgmr.msrb.gmra.mxu2 %v8172_v48  ;;  %1940 = vmatmul.f32.vlgmr.msra.gmra.mxu3 %v8172_v48 }
 0x6c9   :  { %1960 = vmatmul.f32.vlgmr.msrb.gmra.mxu0 %v8172_v48  ;;  %1980 = vmatmul.f32.vlgmr.msra.gmra.mxu1 %v8172_v48 }
 0x6ca   :  { %2090 = vmatpush.msrb.mxu2 %v8181_v29  ;;  %2110 = vmatpush.msra.mxu3 %v7188_v23  ;;  %v8202_v23 = vld [vmem:[%s9756_s5 + $0x1d0] sm:$0xff] }
 0x6cb   :  { %2130 = vmatpush.msrb.mxu0 %v8188_v31  ;;  %2150 = vmatpush.msra.mxu1 %v7195_v16  ;;  %v8209_v16 = vld [vmem:[%s9756_s5 + $0x1a0] sm:$0xff] }
 0x6cc   :  { %2091 = vmatpush.msrb.mxu2 %v8195_v21  ;;  %2111 = vmatpush.msra.mxu3 %v7202_v63  ;;  %v8216_v63 = vld [vmem:[%s9756_s5 + $0x1b0] sm:$0xff] }
 0x6cd   :  { %2131 = vmatpush.msrb.mxu0 %v8202_v23  ;;  %2151 = vmatpush.msra.mxu1 %v7209_v19  ;;  %v10899_v19 = vld [vmem:[#allocation31_spill] sm:$0xff] }
 0x6ce   :  { %2092 = vmatpush.msrb.mxu2 %v8209_v16  ;;  %2112 = vmatpush.msra.mxu3 %v7216_v12  ;;  %v10900_v12 = vld [vmem:[#allocation8_spill] sm:$0xff] }
 0x6cf   :  { %2132 = vmatpush.msrb.mxu0 %v8216_v63  ;;  %2152 = vmatpush.msra.mxu1 %v7223_v35  ;;  %v10903_v35 = vld [vmem:[#allocation33_spill] sm:$0xff] }
 0x6d0   :  { %2093 = vmatpush.msrb.mxu2 %v7229_v55  ;;  %2113 = vmatpush.msra.mxu3 %v7235_v2  ;;  %v10904_v55 = vld [vmem:[#allocation10_spill] sm:$0xff]  ;;  %v10905_v2 = vld [vmem:[#allocation29_spill] sm:$0xff] }
 0x6d1   :  { %2133 = vmatpush.msrb.mxu0 %v7241_v50  ;;  %2153 = vmatpush.msra.mxu1 %v7247_v40  ;;  %v10906_v50 = vld [vmem:[#allocation11_spill] sm:$0xff] }
 0x6d2   :  { %2094 = vmatpush.msrb.mxu2 %v7253_v60  ;;  %2114 = vmatpush.msra.mxu3 %v7259_v8  ;;  %v10907_v40 = vld [vmem:[#allocation35_spill] sm:$0xff]  ;;  %v10908_v60 = vld [vmem:[#allocation12_spill] sm:$0xff] }
 0x6d3   :  { %2134 = vmatpush.msrb.mxu0 %v10899_v19  ;;  %2154 = vmatpush.msra.mxu1 %v10900_v12  ;;  %v10909_v8 = vld [vmem:[#allocation32_spill] sm:$0xff]  ;;  %v10926_v12 = vld [vmem:[#allocation21_spill] sm:$0xff] }
 0x6d4   :  { %2095 = vmatpush.msrb.mxu2 %v10901_v46  ;;  %2115 = vmatpush.msra.mxu3 %v10902_v28  ;;  %v10925_v19 = vld [vmem:[#allocation40_spill] sm:$0xff]  ;;  %v10928_v28 = vld [vmem:[#allocation22_spill] sm:$0xff] }
 0x6d5   :  { %2135 = vmatpush.msrb.mxu0 %v10903_v35  ;;  %2155 = vmatpush.msra.mxu1 %v10904_v55  ;;  %v10927_v46 = vld [vmem:[#allocation44_spill] sm:$0xff]  ;;  %v10929_v35 = vld [vmem:[#allocation42_spill] sm:$0xff]  ;;  %v10930_v55 = vld [vmem:[#allocation23_spill] sm:$0xff] }
 0x6d6   :  { %2096 = vmatpush.msrb.mxu2 %v10905_v2  ;;  %2116 = vmatpush.msra.mxu3 %v10906_v50  ;;  %v10931_v2 = vld [vmem:[#allocation45_spill] sm:$0xff]  ;;  %v10932_v50 = vld [vmem:[#allocation102_spill] sm:$0xff] }
 0x6d7   :  { %2136 = vmatpush.msrb.mxu0 %v10907_v40  ;;  %2156 = vmatpush.msra.mxu1 %v10908_v60  ;;  %v10933_v40 = vld [vmem:[#allocation103_spill] sm:$0xff]  ;;  %v10934_v60 = vld [vmem:[#allocation126_spill] sm:$0xff] }
 0x6d8   :  { %2097 = vmatpush.msrb.mxu2 %v10909_v8  ;;  %2117 = vmatpush.msra.mxu3 %v10910_v57  ;;  %v10935_v8 = vld [vmem:[#allocation131_spill] sm:$0xff]  ;;  %v10936_v57 = vld [vmem:[#allocation70_spill] sm:$0xff] }
 0x6d9   :  { %2137 = vmatpush.msrb.mxu0 %v10911_v17  ;;  %2157 = vmatpush.msra.mxu1 %v10912_v10  ;;  %v10937_v17 = vld [vmem:[#allocation71_spill] sm:$0xff]  ;;  %v10938_v10 = vld [vmem:[#allocation72_spill] sm:$0xff] }
 0x6da   :  { %2098 = vmatpush.msrb.mxu2 %v10913_v27  ;;  %2118 = vmatpush.msra.mxu3 %v10914_v37  ;;  %v10939_v27 = vld [vmem:[#allocation73_spill] sm:$0xff]  ;;  %v10940_v37 = vld [vmem:[#allocation75_spill] sm:$0xff] }
 0x6db   :  { %2138 = vmatpush.msrb.mxu0 %v10915_v5  ;;  %2158 = vmatpush.msra.mxu1 %v10916_v24  ;;  %v10941_v5 = vld [vmem:[#allocation76_spill] sm:$0xff]  ;;  %v10942_v24 = vld [vmem:[#allocation77_spill] sm:$0xff] }
 0x6dc   :  { %2099 = vmatpush.msrb.mxu2 %v10917_v9  ;;  %2119 = vmatpush.msra.mxu3 %v10918_v32  ;;  %v10943_v9 = vld [vmem:[#allocation78_spill] sm:$0xff]  ;;  %v10944_v32 = vld [vmem:[#allocation81_spill] sm:$0xff] }
 0x6dd   :  { %2139 = vmatpush.msrb.mxu0 %v10919_v22  ;;  %2159 = vmatpush.msra.mxu1 %v10920_v30  ;;  %v10945_v22 = vld [vmem:[#allocation3_spill] sm:$0xff] }
 0x6de   :  { %2100 = vmatpush.msrb.mxu2 %v10921_v1  ;;  %2120 = vmatpush.msra.mxu3 %v10922_v6  ;;  %v1736_v30 = vadd.f32 %v8156_v18, %v10945_v22  ;;  %v10946_v1 = vld [vmem:[#allocation24_spill] sm:$0xff] }
 0x6df   :  { %2140 = vmatpush.msrb.mxu0 %v10923_v0  ;;  %2160 = vmatpush.msra.mxu1 %v10924_v53  ;;  %v1756_v6 = vadd.f32 %v8158_v7, %v10946_v1 }
 0x6e0   :  { %2101 = vmatpush.msrb.mxu2 %v10925_v19  ;;  %2121 = vmatpush.msra.mxu3 %v10926_v12 }
 0x6e1   :  { %2141 = vmatpush.msrb.mxu0 %v10927_v46  ;;  %2161 = vmatpush.msra.mxu1 %v10928_v28 }
 0x6e2   :  { %2102 = vmatpush.msrb.mxu2 %v10929_v35  ;;  %2122 = vmatpush.msra.mxu3 %v10930_v55  ;;  %v10947_v35 = vld [vmem:[#allocation4_spill] sm:$0xff] }
 0x6e3   :  { %2142 = vmatpush.msrb.mxu0 %v10931_v2  ;;  %2162 = vmatpush.msra.mxu1 %v10932_v50  ;;  %v1776_v55 = vadd.f32 %v8152_v3, %v10947_v35  ;;  %v1796_v2 = vadd.f32 %v8154_v25, %v10553_v20 }
 0x6e4   :  { %2103 = vmatpush.msrb.mxu2 %v10933_v40  ;;  %2123 = vmatpush.msra.mxu3 %v10934_v60 }
 0x6e5   :  { %2143 = vmatpush.msrb.mxu0 %v10935_v8  ;;  %2163 = vmatpush.msra.mxu1 %v10936_v57 }
 0x6e6   :  { %2104 = vmatpush.msrb.mxu2 %v10937_v17  ;;  %2124 = vmatpush.msra.mxu3 %v10938_v10 }
 0x6e7   :  { %2144 = vmatpush.msrb.mxu0 %v10939_v27  ;;  %2164 = vmatpush.msra.mxu1 %v10940_v37 }
 0x6e8   :  { %2105 = vmatpush.msrb.mxu2 %v10941_v5  ;;  %2125 = vmatpush.msra.mxu3 %v10942_v24 }
 0x6e9   :  { %2145 = vmatpush.msrb.mxu0 %v10943_v9  ;;  %2165 = vmatpush.msra.mxu1 %v10944_v32 }
 0x746   :  { %v1961_v46 = vpop.f32.mrf.mxu0  ;;  %v1981_v28 = vpop.f32.mrf.mxu1 }
 0x747   :  { %v1986_v60 = vadd.f32 %v1961_v46, %v1776_v55  ;;  %v1987_v8 = vadd.f32 %v1981_v28, %v1796_v2  ;;  %v10971_v46 = vld [vmem:[#allocation108_spill] sm:$0xff]  ;;  %v10972_v28 = vld [vmem:[#allocation109_spill] sm:$0xff]  ;;  %v10973_v55 = vld [vmem:[#allocation110_spill] sm:$0xff] }
 0x748   :  { %v10974_v2 = vld [vmem:[#allocation111_spill] sm:$0xff] }
 0x749   :  { %v1990_v18 = vmul.f32 0.5, %v1986_v60  ;;  %v10977_v60 = vld [vmem:[#allocation115_spill] sm:$0xff] }
 0x74b   :  { %v1921_v0 = vpop.f32.mrf.mxu2  ;;  %v1941_v53 = vpop.f32.mrf.mxu3 }
 0x74c   :  { %v1984_v19 = vadd.f32 %v1921_v0, %v1736_v30  ;;  %v1985_v12 = vadd.f32 %v1941_v53, %v1756_v6  ;;  %v10968_v53 = vld [vmem:[#allocation105_spill] sm:$0xff] }
 0x74e   :  { %v1988_v50 = vmul.f32 0.5, %v1984_v19  ;;  %v1989_v40 = vmul.f32 0.5, %v1985_v12  ;;  %v10969_v19 = vld [vmem:[#allocation106_spill] sm:$0xff]  ;;  %v10970_v12 = vld [vmem:[#allocation107_spill] sm:$0xff] }
 0x750   :  { %3068 = vtanh.f32 %v1988_v50  ;;  %v10975_v50 = vld [vmem:[#allocation113_spill] sm:$0xff] }
 0x751   :  { %3070 = vtanh.f32 %v1989_v40  ;;  %v10976_v40 = vld [vmem:[#allocation114_spill] sm:$0xff] }
 0x752   :  { %3072 = vtanh.f32 %v1987_v8  ;;  %v10978_v8 = vld [vmem:[#allocation116_spill] sm:$0xff] }
 0x753   :  { %3074 = vtanh.f32 %v1990_v18  ;;  %v10979_v18 = vld [vmem:[#allocation117_spill] sm:$0xff] }
 0x756   :  { %v3069_v7 = vpop.eup %3068 }
 0x757   :  { %v3071_v57 = vpop.eup %3070  ;;  %v1994_v17 = vmul.f32 0.5, %v3069_v7  ;;  %v10980_v7 = vld [vmem:[#allocation118_spill] sm:$0xff] }
 0x758   :  { %v1995_v10 = vmul.f32 0.5, %v3071_v57  ;;  %v3073_v37 = vpop.eup %3072  ;;  %v10981_v57 = vld [vmem:[#allocation119_spill] sm:$0xff] }
 0x759   :  { %v1997_v27 = vadd.f32 0.5, %v1994_v17  ;;  %v3075_v25 = vpop.eup %3074  ;;  %v10982_v17 = vld [vmem:[#allocation120_spill] sm:$0xff] }
 0x75a   :  { %v1998_v5 = vadd.f32 0.5, %v1995_v10  ;;  %v1996_v32 = vmul.f32 0.5, %v3075_v25  ;;  %v10983_v10 = vld [vmem:[#allocation121_spill] sm:$0xff] }
 0x75b   :  { %v2002_v3 = vmul.f32 %v3073_v37, %v1997_v27  ;;  %v10984_v27 = vld [vmem:[#allocation122_spill] sm:$0xff]  ;;  %v10985_v37 = vld [vmem:[#allocation123_spill] sm:$0xff]  ;;  %v10989_v25 = vld [vmem:[#allocation129_spill] sm:$0xff] }
 0x75c   :  { %v2001_v24 = vmul.f32 %v1998_v5, %v7547_v45  ;;  %v1999_v30 = vadd.f32 0.5, %v1996_v32  ;;  %v10948_v45 = vld [vmem:[#allocation82_spill] sm:$0xff]  ;;  %v10986_v5 = vld [vmem:[#allocation125_spill] sm:$0xff] }
 0x75d   :  { %v10990_v32 = vld [vmem:[#allocation130_spill] sm:$0xff] }
 0x75e   :  { %v8281_v9 = vadd.f32 %v2002_v3, %v2001_v24  ;;  %v10987_v3 = vld [vmem:[#allocation127_spill] sm:$0xff]  ;;  %v10988_v24 = vld [vmem:[#allocation128_spill] sm:$0xff] }
 0x760   :  { %3076 = vtanh.f32 %v8281_v9 }
 0x766   :  { %v3077_v6 = vpop.eup %3076 }
 0x767   :  { %v2005_v0 = vmul.f32 %v3077_v6, %v1999_v30  ;;  %v10991_v30 = vld [vmem:[#allocation132_spill] sm:$0xff] }
 0x768   :  { %v8356_v6 = vld [vmem:[%s9755_s7 + $0x1e8] sm:$0xff] }
 0x769   :  { %2022 = vmatmul.f32.vlgmr.msra.gmra.mxu2 %v2005_v0  ;;  %2042 = vmatmul.f32.vlgmr.msrb.gmra.mxu3 %v2005_v0 }
 0x76a   :  { %2062 = vmatmul.f32.vlgmr.msra.gmra.mxu0 %v2005_v0  ;;  %2082 = vmatmul.f32.vlgmr.msrb.gmra.mxu1 %v2005_v0  ;;  %v8362_v0 = vld [vmem:[%s9755_s7 + $0x1f0] sm:$0xff] }
 0x76b   :  { %2192 = vmatpush.msra.mxu2 %v7553_v44  ;;  %2212 = vmatpush.msrb.mxu3 %v7559_v15  ;;  %v10949_v44 = vld [vmem:[#allocation83_spill] sm:$0xff]  ;;  %v10950_v15 = vld [vmem:[#allocation84_spill] sm:$0xff] }
 0x76c   :  { %2232 = vmatpush.msra.mxu0 %v7565_v51  ;;  %2252 = vmatpush.msrb.mxu1 %v7571_v43  ;;  %v10951_v51 = vld [vmem:[#allocation85_spill] sm:$0xff]  ;;  %v10952_v43 = vld [vmem:[#allocation86_spill] sm:$0xff] }
 0x76d   :  { %2193 = vmatpush.msra.mxu2 %v7577_v56  ;;  %2213 = vmatpush.msrb.mxu3 %v7583_v42  ;;  %v10953_v56 = vld [vmem:[#allocation87_spill] sm:$0xff]  ;;  %v10954_v42 = vld [vmem:[#allocation88_spill] sm:$0xff] }
 0x76e   :  { %2233 = vmatpush.msra.mxu0 %v7589_v39  ;;  %2253 = vmatpush.msrb.mxu1 %v7595_v26  ;;  %v10955_v39 = vld [vmem:[#allocation89_spill] sm:$0xff]  ;;  %v10956_v26 = vld [vmem:[#allocation90_spill] sm:$0xff] }
 0x76f   :  { %2194 = vmatpush.msra.mxu2 %v7601_v38  ;;  %2214 = vmatpush.msrb.mxu3 %v7607_v4  ;;  %v10957_v38 = vld [vmem:[#allocation91_spill] sm:$0xff]  ;;  %v10958_v4 = vld [vmem:[#allocation92_spill] sm:$0xff] }
 0x770   :  { %2234 = vmatpush.msra.mxu0 %v7613_v52  ;;  %2254 = vmatpush.msrb.mxu1 %v7619_v49  ;;  %v10959_v52 = vld [vmem:[#allocation94_spill] sm:$0xff]  ;;  %v10960_v49 = vld [vmem:[#allocation95_spill] sm:$0xff] }
 0x771   :  { %2106 = vmatmul.f32.vlgmr.msrb.gmra.mxu2 %v8172_v48  ;;  %2126 = vmatmul.f32.vlgmr.msra.gmra.mxu3 %v8172_v48 }
 0x772   :  { %2146 = vmatmul.f32.vlgmr.msrb.gmra.mxu0 %v8172_v48  ;;  %2166 = vmatmul.f32.vlgmr.msra.gmra.mxu1 %v8172_v48  ;;  %v10967_v48 = vld [vmem:[#allocation104_spill] sm:$0xff] }
 0x773   :  { %2195 = vmatpush.msra.mxu2 %v7629_v34  ;;  %2215 = vmatpush.msrb.mxu3 %v7635_v59  ;;  %v10961_v34 = vld [vmem:[#allocation96_spill] sm:$0xff]  ;;  %v10962_v59 = vld [vmem:[#allocation97_spill] sm:$0xff] }
 0x774   :  { %2235 = vmatpush.msra.mxu0 %v7641_v33  ;;  %2255 = vmatpush.msrb.mxu1 %v7647_v13  ;;  %v10963_v33 = vld [vmem:[#allocation98_spill] sm:$0xff]  ;;  %v10964_v13 = vld [vmem:[#allocation99_spill] sm:$0xff] }
 0x775   :  { %2196 = vmatpush.msra.mxu2 %v7653_v54  ;;  %2216 = vmatpush.msrb.mxu3 %v7659_v11  ;;  %v10965_v54 = vld [vmem:[#allocation100_spill] sm:$0xff]  ;;  %v10966_v11 = vld [vmem:[#allocation101_spill] sm:$0xff] }
 0x776   :  { %2236 = vmatpush.msra.mxu0 %v10948_v45  ;;  %2256 = vmatpush.msrb.mxu1 %v10949_v44  ;;  %v8387_v45 = vld [vmem:[%s9755_s7 + $0x1d8] sm:$0xff]  ;;  %v8395_v44 = vld [vmem:[%s9755_s7 + $0x1b0] sm:$0xff] }
 0x777   :  { %2197 = vmatpush.msra.mxu2 %v10950_v15  ;;  %2217 = vmatpush.msrb.mxu3 %v10951_v51  ;;  %v8401_v15 = vld [vmem:[%s9755_s7 + $0x1b8] sm:$0xff] }
 0x778   :  { %2237 = vmatpush.msra.mxu0 %v10952_v43  ;;  %2257 = vmatpush.msrb.mxu1 %v10953_v56  ;;  %v10993_v51 = vld [vmem:[#allocation134_spill] sm:$0xff]  ;;  %v10994_v43 = vld [vmem:[#allocation135_spill] sm:$0xff] }
 0x779   :  { %2198 = vmatpush.msra.mxu2 %v10954_v42  ;;  %2218 = vmatpush.msrb.mxu3 %v10955_v39  ;;  %v8415_v56 = vld [vmem:[%s9755_s7 + $0x198] sm:$0xff]  ;;  %v10995_v42 = vld [vmem:[#allocation136_spill] sm:$0xff]  ;;  %v10996_v39 = vld [vmem:[#allocation137_spill] sm:$0xff] }
 0x77a   :  { %2238 = vmatpush.msra.mxu0 %v10956_v26  ;;  %2258 = vmatpush.msrb.mxu1 %v10957_v38  ;;  %v8423_v26 = vld [vmem:[%s9755_s7 + $0x170] sm:$0xff]  ;;  %v8429_v38 = vld [vmem:[%s9755_s7 + $0x178] sm:$0xff] }
 0x77b   :  { %2199 = vmatpush.msra.mxu2 %v10958_v4  ;;  %2219 = vmatpush.msrb.mxu3 %v10959_v52  ;;  %v10997_v4 = vld [vmem:[#allocation138_spill] sm:$0xff]  ;;  %v10998_v52 = vld [vmem:[#allocation139_spill] sm:$0xff] }
 0x77c   :  { %2239 = vmatpush.msra.mxu0 %v10960_v49  ;;  %2259 = vmatpush.msrb.mxu1 %v10961_v34  ;;  %v8437_v49 = vld [vmem:[%s9755_s7 + $0x150] sm:$0xff]  ;;  %v8443_v34 = vld [vmem:[%s9755_s7 + $0x158] sm:$0xff] }
 0x77d   :  { %2200 = vmatpush.msra.mxu2 %v10962_v59  ;;  %2220 = vmatpush.msrb.mxu3 %v10963_v33  ;;  %v10999_v59 = vld [vmem:[#allocation140_spill] sm:$0xff]  ;;  %v11000_v33 = vld [vmem:[#allocation141_spill] sm:$0xff] }
 0x77e   :  { %2240 = vmatpush.msra.mxu0 %v10964_v13  ;;  %2260 = vmatpush.msrb.mxu1 %v10965_v54  ;;  %v8451_v13 = vld [vmem:[%s9755_s7 + $0x130] sm:$0xff]  ;;  %v8457_v54 = vld [vmem:[%s9755_s7 + $0x138] sm:$0xff] }
 0x77f   :  { %2201 = vmatpush.msra.mxu2 %v10966_v11  ;;  %2221 = vmatpush.msrb.mxu3 %v10967_v48  ;;  %v11001_v11 = vld [vmem:[#allocation50_spill] sm:$0xff]  ;;  %v11002_v48 = vld [vmem:[#allocation49_spill] sm:$0xff] }
 0x780   :  { %2241 = vmatpush.msra.mxu0 %v10968_v53  ;;  %2261 = vmatpush.msrb.mxu1 %v10969_v19  ;;  %v8465_v53 = vld [vmem:[%s9755_s7 + $0x110] sm:$0xff]  ;;  %v8471_v19 = vld [vmem:[%s9755_s7 + $0x118] sm:$0xff] }
 0x781   :  { %2202 = vmatpush.msra.mxu2 %v10970_v12  ;;  %2222 = vmatpush.msrb.mxu3 %v10971_v46  ;;  %v11003_v12 = vld [vmem:[#allocation46_spill] sm:$0xff]  ;;  %v11004_v46 = vld [vmem:[#allocation56_spill] sm:$0xff] }
 0x782   :  { %2242 = vmatpush.msra.mxu0 %v10972_v28  ;;  %2262 = vmatpush.msrb.mxu1 %v10973_v55  ;;  %v8479_v28 = vld [vmem:[%s9755_s7 + $0xf0] sm:$0xff]  ;;  %v8485_v55 = vld [vmem:[%s9755_s7 + $0xf8] sm:$0xff] }
 0x783   :  { %2203 = vmatpush.msra.mxu2 %v10974_v2  ;;  %2223 = vmatpush.msrb.mxu3 %v10975_v50  ;;  %v11005_v2 = vld [vmem:[#allocation143_spill] sm:$0xff]  ;;  %v11006_v50 = vld [vmem:[#allocation28_spill] sm:$0xff] }
 0x784   :  { %2243 = vmatpush.msra.mxu0 %v10976_v40  ;;  %2263 = vmatpush.msrb.mxu1 %v10977_v60  ;;  %v8493_v40 = vld [vmem:[%s9755_s7 + $0xd0] sm:$0xff]  ;;  %v8499_v60 = vld [vmem:[%s9755_s7 + $0xd8] sm:$0xff] }
 0x785   :  { %2204 = vmatpush.msra.mxu2 %v10978_v8  ;;  %2224 = vmatpush.msrb.mxu3 %v10979_v18  ;;  %v11007_v8 = vld [vmem:[#allocation144_spill] sm:$0xff]  ;;  %v11008_v18 = vld [vmem:[#allocation145_spill] sm:$0xff] }
 0x786   :  { %2244 = vmatpush.msra.mxu0 %v10980_v7  ;;  %2264 = vmatpush.msrb.mxu1 %v10981_v57  ;;  %v8507_v7 = vld [vmem:[%s9755_s7 + $0xb0] sm:$0xff]  ;;  %v8513_v57 = vld [vmem:[%s9755_s7 + $0xb8] sm:$0xff] }
 0x787   :  { %2205 = vmatpush.msra.mxu2 %v10982_v17  ;;  %2225 = vmatpush.msrb.mxu3 %v10983_v10  ;;  %v11009_v17 = vld [vmem:[#allocation146_spill] sm:$0xff]  ;;  %v11010_v10 = vld [vmem:[#allocation147_spill] sm:$0xff] }
 0x788   :  { %2245 = vmatpush.msra.mxu0 %v10984_v27  ;;  %2265 = vmatpush.msrb.mxu1 %v10985_v37  ;;  %v8521_v27 = vld [vmem:[%s9755_s7 + $0x90] sm:$0xff]  ;;  %v8527_v37 = vld [vmem:[%s9755_s7 + $0x98] sm:$0xff] }
 0x789   :  { %2206 = vmatpush.msra.mxu2 %v10986_v5  ;;  %2226 = vmatpush.msrb.mxu3 %v10987_v3  ;;  %v11011_v5 = vld [vmem:[#allocation148_spill] sm:$0xff]  ;;  %v11012_v3 = vld [vmem:[#allocation149_spill] sm:$0xff] }
 0x78a   :  { %2246 = vmatpush.msra.mxu0 %v10988_v24  ;;  %2266 = vmatpush.msrb.mxu1 %v10989_v25  ;;  %v8535_v24 = vld [vmem:[%s9755_s7 + $0x70] sm:$0xff]  ;;  %v8541_v25 = vld [vmem:[%s9755_s7 + $0x78] sm:$0xff] }
 0x78b   :  { %2207 = vmatpush.msra.mxu2 %v10990_v32  ;;  %2227 = vmatpush.msrb.mxu3 %v7923_v58  ;;  %v8381_v58 = vld [vmem:[%s9755_s7 + $0x1d0] sm:$0xff]  ;;  %11013 = vst [vmem:[#allocation52_spill] sm:$0xff] %v8535_v24  ;;  %v11015_v32 = vld [vmem:[#allocation150_spill] sm:$0xff] }
 0x78c   :  { %2247 = vmatpush.msra.mxu0 %v10991_v30  ;;  %2267 = vmatpush.msrb.mxu1 %v7935_v36  ;;  %v8368_v36 = vld [vmem:[%s9755_s7 + $0x1f8] sm:$0xff]  ;;  %11014 = vst [vmem:[#allocation64_spill] sm:$0xff] %v8541_v25  ;;  %v11016_v30 = vld [vmem:[#allocation151_spill] sm:$0xff] }
 0x78d   :  { %2294 = vmatpush.msrb.mxu2 %v7941_v62  ;;  %2314 = vmatpush.msra.mxu3 %v8356_v6  ;;  %v8375_v62 = vld [vmem:[%s9755_s7 + $0x1c8] sm:$0xff] }
 0x78e   :  { %2334 = vmatpush.msrb.mxu0 %v8362_v0  ;;  %2354 = vmatpush.msra.mxu1 %v8368_v36 }
 0x78f   :  { %2295 = vmatpush.msrb.mxu2 %v7950_v41  ;;  %2315 = vmatpush.msra.mxu3 %v8375_v62  ;;  %v10992_v41 = vld [vmem:[#allocation133_spill] sm:$0xff] }
 0x790   :  { %2335 = vmatpush.msrb.mxu0 %v8381_v58  ;;  %2355 = vmatpush.msra.mxu1 %v8387_v45 }
 0x791   :  { %2296 = vmatpush.msrb.mxu2 %v7959_v47  ;;  %2316 = vmatpush.msra.mxu3 %v10992_v41  ;;  %v8409_v47 = vld [vmem:[%s9755_s7 + $0x190] sm:$0xff] }
 0x792   :  { %2336 = vmatpush.msrb.mxu0 %v8395_v44  ;;  %2356 = vmatpush.msra.mxu1 %v8401_v15  ;;  %v8549_v41 = vld [vmem:[%s9755_s7 + $0x50] sm:$0xff] }
 0x793   :  { %2297 = vmatpush.msrb.mxu2 %v10993_v51  ;;  %2317 = vmatpush.msra.mxu3 %v10994_v43  ;;  %11017 = vst [vmem:[#allocation30_spill] sm:$0xff] %v8549_v41  ;;  %v8555_v51 = vld [vmem:[%s9755_s7 + $0x58] sm:$0xff]  ;;  %v11019_v43 = vld [vmem:[#allocation25_spill] sm:$0xff] }
 0x794   :  { %2337 = vmatpush.msrb.mxu0 %v8409_v47  ;;  %2357 = vmatpush.msra.mxu1 %v8415_v56  ;;  %11018 = vst [vmem:[#allocation6_spill] sm:$0xff] %v8555_v51 }
 0x795   :  { %2298 = vmatpush.msrb.mxu2 %v10995_v42  ;;  %2318 = vmatpush.msra.mxu3 %v10996_v39  ;;  %v11020_v42 = vld [vmem:[#allocation5_spill] sm:$0xff] }
 0x796   :  { %2338 = vmatpush.msrb.mxu0 %v8423_v26  ;;  %2358 = vmatpush.msra.mxu1 %v8429_v38  ;;  %v8563_v39 = vld [vmem:[%s9755_s7 + $0x30] sm:$0xff] }
 0x797   :  { %2299 = vmatpush.msrb.mxu2 %v10997_v4  ;;  %2319 = vmatpush.msra.mxu3 %v10998_v52  ;;  %11021 = vst [vmem:[#allocation54_spill] sm:$0xff] %v8563_v39  ;;  %v8569_v4 = vld [vmem:[%s9755_s7 + $0x38] sm:$0xff] }
 0x798   :  { %2339 = vmatpush.msrb.mxu0 %v8437_v49  ;;  %2359 = vmatpush.msra.mxu1 %v8443_v34  ;;  %11022 = vst [vmem:[#allocation53_spill] sm:$0xff] %v8569_v4  ;;  %v11023_v52 = vld [vmem:[#allocation58_spill] sm:$0xff] }
 0x799   :  { %2300 = vmatpush.msrb.mxu2 %v10999_v59  ;;  %2320 = vmatpush.msra.mxu3 %v11000_v33  ;;  %v11024_v59 = vld [vmem:[#allocation57_spill] sm:$0xff] }
 0x79a   :  { %2340 = vmatpush.msrb.mxu0 %v8451_v13  ;;  %2360 = vmatpush.msra.mxu1 %v8457_v54  ;;  %v8577_v33 = vld [vmem:[%s9755_s7 + $0x10] sm:$0xff] }
 0x79b   :  { %2301 = vmatpush.msrb.mxu2 %v11001_v11  ;;  %2321 = vmatpush.msra.mxu3 %v11002_v48  ;;  %11025 = vst [vmem:[#allocation48_spill] sm:$0xff] %v8577_v33  ;;  %v8583_v11 = vld [vmem:[%s9755_s7 + $0x18] sm:$0xff] }
 0x79c   :  { %2341 = vmatpush.msrb.mxu0 %v8465_v53  ;;  %2361 = vmatpush.msra.mxu1 %v8471_v19  ;;  %11026 = vst [vmem:[#allocation60_spill] sm:$0xff] %v8583_v11 }
 0x79d   :  { %2302 = vmatpush.msrb.mxu2 %v11003_v12  ;;  %2322 = vmatpush.msra.mxu3 %v11004_v46 }
 0x79e   :  { %2342 = vmatpush.msrb.mxu0 %v8479_v28  ;;  %2362 = vmatpush.msra.mxu1 %v8485_v55 }
 0x79f   :  { %2303 = vmatpush.msrb.mxu2 %v11005_v2  ;;  %2323 = vmatpush.msra.mxu3 %v11006_v50  ;;  %v11027_v50 = vld [vmem:[#allocation142_spill] sm:$0xff] }
 0x7a0   :  { %2343 = vmatpush.msrb.mxu0 %v8493_v40  ;;  %2363 = vmatpush.msra.mxu1 %v8499_v60 }
 0x7a1   :  { %2304 = vmatpush.msrb.mxu2 %v11007_v8  ;;  %2324 = vmatpush.msra.mxu3 %v11008_v18  ;;  %v11028_v8 = vld [vmem:[#allocation68_spill] sm:$0xff] }
 0x7a2   :  { %2344 = vmatpush.msrb.mxu0 %v8507_v7  ;;  %2364 = vmatpush.msra.mxu1 %v8513_v57  ;;  %v242_v18 = vadd.f32 %v11028_v8, %v11027_v50 }
 0x7a3   :  { %2305 = vmatpush.msrb.mxu2 %v11009_v17  ;;  %2325 = vmatpush.msra.mxu3 %v11010_v10  ;;  %v11029_v17 = vld [vmem:[#allocation124_spill] sm:$0xff]  ;;  %v11030_v10 = vld [vmem:[#allocation67_spill] sm:$0xff] }
 0x7a4   :  { %2345 = vmatpush.msrb.mxu0 %v8521_v27  ;;  %2365 = vmatpush.msra.mxu1 %v8527_v37 }
 0x7a5   :  { %2306 = vmatpush.msrb.mxu2 %v11011_v5  ;;  %2326 = vmatpush.msra.mxu3 %v11012_v3  ;;  %v201_v5 = vadd.f32 %v11030_v10, %v11029_v17 }
 0x7a6   :  { %2346 = vmatpush.msrb.mxu0 %v8535_v24  ;;  %2366 = vmatpush.msra.mxu1 %v8541_v25 }
 0x7a7   :  { %2307 = vmatpush.msrb.mxu2 %v11015_v32  ;;  %2327 = vmatpush.msra.mxu3 %v11016_v30 }
 0x7a8   :  { %2347 = vmatpush.msrb.mxu0 %v8549_v41  ;;  %2367 = vmatpush.msra.mxu1 %v8555_v51 }
 0x7a9   :  { %2308 = vmatpush.msrb.mxu2 %v11019_v43  ;;  %2328 = vmatpush.msra.mxu3 %v11020_v42 }
 0x7aa   :  { %2348 = vmatpush.msrb.mxu0 %v8563_v39  ;;  %2368 = vmatpush.msra.mxu1 %v8569_v4  ;;  %v11033_v4 = vld [vmem:[#allocation74_spill] sm:$0xff] }
 0x7ab   :  { %2309 = vmatpush.msrb.mxu2 %v11023_v52  ;;  %2329 = vmatpush.msra.mxu3 %v11024_v59  ;;  %v11031_v59 = vld [vmem:[#allocation65_spill] sm:$0xff]  ;;  %v283_v39 = vadd.f32 %v11033_v4, %v5079_v61 }
 0x7ac   :  { %2349 = vmatpush.msrb.mxu0 %v8577_v33  ;;  %2369 = vmatpush.msra.mxu1 %v8583_v11  ;;  %v11032_v11 = vld [vmem:[#allocation59_spill] sm:$0xff] }
 0x7ad   :  { %v324_v33 = vadd.f32 %v11032_v11, %v11031_v59 }
 0x7e7   :  { %v8586_v48 = vpop.f32.mrf.mxu0  ;;  %v8588_v12 = vpop.f32.mrf.mxu1 }
 0x7ec   :  { %v8590_v46 = vpop.f32.mrf.mxu2  ;;  %v8592_v2 = vpop.f32.mrf.mxu3 }
 0x7ef   :  { %v2147_v42 = vpop.f32.mrf.mxu0  ;;  %v2167_v52 = vpop.f32.mrf.mxu1 }
 0x7f0   :  { %v2172_v25 = vadd.f32 %v2147_v42, %v283_v39  ;;  %v2173_v24 = vadd.f32 %v2167_v52, %v324_v33  ;;  %v8623_v39 = vld [vmem:[%s9756_s5 + $0x1f8] sm:$0xff]  ;;  %v8663_v33 = vld [vmem:[%s9756_s5 + $0x188] sm:$0xff]  ;;  %v8693_v42 = vld [vmem:[%s9756_s5 + $0x170] sm:$0xff] }
 0x7f1   :  { %11034 = vst [vmem:[#allocation26_spill] sm:$0xff] %v8693_v42  ;;  %v8699_v52 = vld [vmem:[%s9756_s5 + $0x178] sm:$0xff] }
 0x7f2   :  { %v2176_v8 = vmul.f32 0.5, %v2172_v25  ;;  %11035 = vst [vmem:[#allocation7_spill] sm:$0xff] %v8699_v52 }
 0x7f4   :  { %v2107_v3 = vpop.f32.mrf.mxu2  ;;  %v2127_v32 = vpop.f32.mrf.mxu3 }
 0x7f5   :  { %v2170_v30 = vadd.f32 %v2107_v3, %v201_v5  ;;  %v2171_v43 = vadd.f32 %v2127_v32, %v242_v18 }
 0x7f7   :  { %v2174_v51 = vmul.f32 0.5, %v2170_v30  ;;  %v2175_v41 = vmul.f32 0.5, %v2171_v43  ;;  %v8687_v43 = vld [vmem:[%s9756_s5 + $0x168] sm:$0xff] }
 0x7f9   :  { %3078 = vtanh.f32 %v2174_v51 }
 0x7fa   :  { %3080 = vtanh.f32 %v2175_v41 }
 0x7fb   :  { %3082 = vtanh.f32 %v2173_v24 }
 0x7fc   :  { %3084 = vtanh.f32 %v2176_v8  ;;  %v8711_v8 = vld [vmem:[%s9756_s5 + $0x148] sm:$0xff] }
 0x7fd   :  { %11037 = vst [vmem:[#allocation61_spill] sm:$0xff] %v8711_v8 }
 0x7ff   :  { %v3079_v10 = vpop.eup %3078 }
 0x800   :  { %v3081_v17 = vpop.eup %3080  ;;  %v2180_v5 = vmul.f32 0.5, %v3079_v10  ;;  %v8717_v10 = vld [vmem:[%s9756_s5 + $0x150] sm:$0xff] }
 0x801   :  { %v2181_v18 = vmul.f32 0.5, %v3081_v17  ;;  %v3083_v32 = vpop.eup %3082  ;;  %v8681_v17 = vld [vmem:[%s9756_s5 + $0x160] sm:$0xff]  ;;  %11038 = vst [vmem:[#allocation55_spill] sm:$0xff] %v8717_v10 }
 0x802   :  { %v2183_v3 = vadd.f32 0.5, %v2180_v5  ;;  %v3085_v4 = vpop.eup %3084  ;;  %v8723_v5 = vld [vmem:[%s9756_s5 + $0x158] sm:$0xff] }
 0x803   :  { %v2184_v50 = vadd.f32 0.5, %v2181_v18  ;;  %v2182_v51 = vmul.f32 0.5, %v3085_v4  ;;  %11039 = vst [vmem:[#allocation69_spill] sm:$0xff] %v8723_v5  ;;  %v8729_v18 = vld [vmem:[%s9756_s5 + $0x120] sm:$0xff] }
 0x804   :  { %v2188_v11 = vmul.f32 %v3083_v32, %v2183_v3  ;;  %11040 = vst [vmem:[#allocation31_spill] sm:$0xff] %v8729_v18  ;;  %v8735_v3 = vld [vmem:[%s9756_s5 + $0x128] sm:$0xff]  ;;  %v8741_v32 = vld [vmem:[%s9756_s5 + $0x130] sm:$0xff]  ;;  %v8753_v4 = vld [vmem:[%s9756_s5 + $0x100] sm:$0xff] }
 0x805   :  { %v2187_v59 = vmul.f32 %v2184_v50, %v8169_v14  ;;  %v2185_v41 = vadd.f32 0.5, %v2182_v51  ;;  %v8616_v14 = vld [vmem:[%s9756_s5 + $0x1e8] sm:$0xff]  ;;  %v8675_v50 = vld [vmem:[%s9756_s5 + $0x198] sm:$0xff]  ;;  %11041 = vst [vmem:[#allocation8_spill] sm:$0xff] %v8735_v3 }
 0x806   :  { %11042 = vst [vmem:[#allocation27_spill] sm:$0xff] %v8741_v32  ;;  %v8759_v51 = vld [vmem:[%s9756_s5 + $0x108] sm:$0xff] }
 0x807   :  { %v8603_v30 = vadd.f32 %v2188_v11, %v2187_v59  ;;  %v8705_v59 = vld [vmem:[%s9756_s5 + $0x140] sm:$0xff]  ;;  %v8747_v11 = vld [vmem:[%s9756_s5 + $0x138] sm:$0xff]  ;;  %11044 = vst [vmem:[#allocation33_spill] sm:$0xff] %v8753_v4 }
 0x808   :  { %11036 = vst [vmem:[#allocation63_spill] sm:$0xff] %v8705_v59 }
 0x809   :  { %3086 = vtanh.f32 %v8603_v30  ;;  %11043 = vst [vmem:[#allocation9_spill] sm:$0xff] %v8747_v11 }
 0x80a   :  { %11045 = vst [vmem:[#allocation10_spill] sm:$0xff] %v8759_v51 }
 0x80f   :  { %v3087_v25 = vpop.eup %3086 }
 0x810   :  { %v8606_v24 = vmul.f32 %v3087_v25, %v2185_v41  ;;  %v8765_v41 = vld [vmem:[%s9756_s5 + $0x110] sm:$0xff]  ;;  %v8771_v25 = vld [vmem:[%s9756_s5 + $0x118] sm:$0xff] }
 0x811   :  { %11046 = vst [vmem:[#allocation29_spill] sm:$0xff] %v8765_v41 }
 0x812   :  { %2208 = vmatmul.f32.vlgmr.msra.gmra.mxu2 %v8606_v24  ;;  %2228 = vmatmul.f32.vlgmr.msrb.gmra.mxu3 %v8606_v24  ;;  %11047 = vst [vmem:[#allocation11_spill] sm:$0xff] %v8771_v25 }
 0x813   :  { %2248 = vmatmul.f32.vlgmr.msra.gmra.mxu0 %v8606_v24  ;;  %2268 = vmatmul.f32.vlgmr.msrb.gmra.mxu1 %v8606_v24 }
 0x814   :  { %2378 = vmatpush.msra.mxu2 %v8181_v29  ;;  %2398 = vmatpush.msrb.mxu3 %v8616_v14  ;;  %v8630_v29 = vld [vmem:[%s9756_s5 + $0x1c8] sm:$0xff] }
 0x815   :  { %2418 = vmatpush.msra.mxu0 %v8188_v31  ;;  %2438 = vmatpush.msrb.mxu1 %v8623_v39  ;;  %v8637_v31 = vld [vmem:[%s9756_s5 + $0x1d8] sm:$0xff] }
 0x816   :  { %2379 = vmatpush.msra.mxu2 %v8195_v21  ;;  %2399 = vmatpush.msrb.mxu3 %v8630_v29  ;;  %v8644_v21 = vld [vmem:[%s9756_s5 + $0x1a8] sm:$0xff] }
 0x817   :  { %2419 = vmatpush.msra.mxu0 %v8202_v23  ;;  %2439 = vmatpush.msrb.mxu1 %v8637_v31  ;;  %v8651_v23 = vld [vmem:[%s9756_s5 + $0x1b8] sm:$0xff] }
 0x818   :  { %2380 = vmatpush.msra.mxu2 %v8209_v16  ;;  %2400 = vmatpush.msrb.mxu3 %v8644_v21  ;;  %v8657_v16 = vld [vmem:[%s9756_s5 + $0x180] sm:$0xff] }
 0x819   :  { %2420 = vmatpush.msra.mxu0 %v8216_v63  ;;  %2440 = vmatpush.msrb.mxu1 %v8651_v23  ;;  %v8669_v63 = vld [vmem:[%s9756_s5 + $0x190] sm:$0xff] }
 0x81a   :  { %2381 = vmatpush.msra.mxu2 %v8657_v16  ;;  %2401 = vmatpush.msrb.mxu3 %v8663_v33 }
 0x81b   :  { %2421 = vmatpush.msra.mxu0 %v8669_v63  ;;  %2441 = vmatpush.msrb.mxu1 %v8675_v50 }
 0x81c   :  { %2382 = vmatpush.msra.mxu2 %v8681_v17  ;;  %2402 = vmatpush.msrb.mxu3 %v8687_v43 }
 0x81d   :  { %2422 = vmatpush.msra.mxu0 %v8693_v42  ;;  %2442 = vmatpush.msrb.mxu1 %v8699_v52 }
 0x81e   :  { %2383 = vmatpush.msra.mxu2 %v8705_v59  ;;  %2403 = vmatpush.msrb.mxu3 %v8711_v8  ;;  %v2084_v8 = vadd.f32 %v8588_v12, %v10553_v20 }
 0x81f   :  { %2423 = vmatpush.msra.mxu0 %v8717_v10  ;;  %2443 = vmatpush.msrb.mxu1 %v8723_v5 }
 0x820   :  { %2384 = vmatpush.msra.mxu2 %v8729_v18  ;;  %2404 = vmatpush.msrb.mxu3 %v8735_v3 }
 0x821   :  { %2424 = vmatpush.msra.mxu0 %v8741_v32  ;;  %2444 = vmatpush.msrb.mxu1 %v8747_v11 }
 0x822   :  { %2385 = vmatpush.msra.mxu2 %v8753_v4  ;;  %2405 = vmatpush.msrb.mxu3 %v8759_v51  ;;  %v8777_v4 = vld [vmem:[%s9756_s5 + $0xe0] sm:$0xff]  ;;  %v8783_v51 = vld [vmem:[%s9756_s5 + $0xe8] sm:$0xff] }
 0x823   :  { %2425 = vmatpush.msra.mxu0 %v8765_v41  ;;  %2445 = vmatpush.msrb.mxu1 %v8771_v25  ;;  %11048 = vst [vmem:[#allocation35_spill] sm:$0xff] %v8777_v4  ;;  %v8789_v41 = vld [vmem:[%s9756_s5 + $0xf0] sm:$0xff]  ;;  %v8795_v25 = vld [vmem:[%s9756_s5 + $0xf8] sm:$0xff] }
 0x824   :  { %2386 = vmatpush.msra.mxu2 %v8777_v4  ;;  %11049 = vst [vmem:[#allocation12_spill] sm:$0xff] %v8783_v51  ;;  %2406 = vmatpush.msrb.mxu3 %v8783_v51  ;;  %v8801_v4 = vld [vmem:[%s9756_s5 + $0xc0] sm:$0xff]  ;;  %v8807_v51 = vld [vmem:[%s9756_s5 + $0xc8] sm:$0xff] }
 0x825   :  { %11050 = vst [vmem:[#allocation32_spill] sm:$0xff] %v8789_v41  ;;  %2426 = vmatpush.msra.mxu0 %v8789_v41  ;;  %2446 = vmatpush.msrb.mxu1 %v8795_v25  ;;  %v8813_v41 = vld [vmem:[%s9756_s5 + $0xd0] sm:$0xff] }
 0x826   :  { %11051 = vst [vmem:[#allocation13_spill] sm:$0xff] %v8795_v25  ;;  %2387 = vmatpush.msra.mxu2 %v8801_v4  ;;  %2407 = vmatpush.msrb.mxu3 %v8807_v51  ;;  %v8819_v25 = vld [vmem:[%s9756_s5 + $0xd8] sm:$0xff] }
 0x827   :  { %11052 = vst [vmem:[#allocation37_spill] sm:$0xff] %v8801_v4  ;;  %2427 = vmatpush.msra.mxu0 %v8813_v41  ;;  %2447 = vmatpush.msrb.mxu1 %v8819_v25  ;;  %v8825_v4 = vld [vmem:[%s9756_s5 + $0xa0] sm:$0xff] }
 0x828   :  { %11053 = vst [vmem:[#allocation14_spill] sm:$0xff] %v8807_v51  ;;  %2388 = vmatpush.msra.mxu2 %v8825_v4  ;;  %v8831_v51 = vld [vmem:[%s9756_s5 + $0xa8] sm:$0xff] }
 0x829   :  { %11054 = vst [vmem:[#allocation34_spill] sm:$0xff] %v8813_v41  ;;  %2408 = vmatpush.msrb.mxu3 %v8831_v51  ;;  %v8837_v41 = vld [vmem:[%s9756_s5 + $0xb0] sm:$0xff] }
 0x82a   :  { %11055 = vst [vmem:[#allocation15_spill] sm:$0xff] %v8819_v25  ;;  %2428 = vmatpush.msra.mxu0 %v8837_v41  ;;  %v8843_v25 = vld [vmem:[%s9756_s5 + $0xb8] sm:$0xff] }
 0x82b   :  { %11056 = vst [vmem:[#allocation39_spill] sm:$0xff] %v8825_v4  ;;  %2448 = vmatpush.msrb.mxu1 %v8843_v25  ;;  %v8849_v4 = vld [vmem:[%s9756_s5 + $0x80] sm:$0xff] }
 0x82c   :  { %11057 = vst [vmem:[#allocation16_spill] sm:$0xff] %v8831_v51  ;;  %2389 = vmatpush.msra.mxu2 %v8849_v4  ;;  %v8855_v51 = vld [vmem:[%s9756_s5 + $0x88] sm:$0xff] }
 0x82d   :  { %11058 = vst [vmem:[#allocation36_spill] sm:$0xff] %v8837_v41  ;;  %2409 = vmatpush.msrb.mxu3 %v8855_v51  ;;  %v8861_v41 = vld [vmem:[%s9756_s5 + $0x90] sm:$0xff] }
 0x82e   :  { %11059 = vst [vmem:[#allocation17_spill] sm:$0xff] %v8843_v25  ;;  %2429 = vmatpush.msra.mxu0 %v8861_v41  ;;  %v8867_v25 = vld [vmem:[%s9756_s5 + $0x98] sm:$0xff] }
 0x82f   :  { %11060 = vst [vmem:[#allocation41_spill] sm:$0xff] %v8849_v4  ;;  %2449 = vmatpush.msrb.mxu1 %v8867_v25  ;;  %v8873_v4 = vld [vmem:[%s9756_s5 + $0x60] sm:$0xff] }
 0x830   :  { %11061 = vst [vmem:[#allocation18_spill] sm:$0xff] %v8855_v51  ;;  %2390 = vmatpush.msra.mxu2 %v8873_v4  ;;  %v8879_v51 = vld [vmem:[%s9756_s5 + $0x68] sm:$0xff] }
 0x831   :  { %11062 = vst [vmem:[#allocation38_spill] sm:$0xff] %v8861_v41  ;;  %2410 = vmatpush.msrb.mxu3 %v8879_v51  ;;  %v8885_v41 = vld [vmem:[%s9756_s5 + $0x70] sm:$0xff] }
 0x832   :  { %11063 = vst [vmem:[#allocation19_spill] sm:$0xff] %v8867_v25  ;;  %2430 = vmatpush.msra.mxu0 %v8885_v41  ;;  %v8891_v25 = vld [vmem:[%s9756_s5 + $0x78] sm:$0xff] }
 0x833   :  { %11064 = vst [vmem:[#allocation43_spill] sm:$0xff] %v8873_v4  ;;  %2450 = vmatpush.msrb.mxu1 %v8891_v25  ;;  %v8897_v4 = vld [vmem:[%s9756_s5 + $0x40] sm:$0xff] }
 0x834   :  { %11065 = vst [vmem:[#allocation20_spill] sm:$0xff] %v8879_v51  ;;  %2391 = vmatpush.msra.mxu2 %v8897_v4  ;;  %v8903_v51 = vld [vmem:[%s9756_s5 + $0x48] sm:$0xff] }
 0x835   :  { %11066 = vst [vmem:[#allocation40_spill] sm:$0xff] %v8885_v41  ;;  %2411 = vmatpush.msrb.mxu3 %v8903_v51  ;;  %v8909_v41 = vld [vmem:[%s9756_s5 + $0x50] sm:$0xff] }
 0x836   :  { %11067 = vst [vmem:[#allocation21_spill] sm:$0xff] %v8891_v25  ;;  %2431 = vmatpush.msra.mxu0 %v8909_v41  ;;  %v8915_v25 = vld [vmem:[%s9756_s5 + $0x58] sm:$0xff] }
 0x837   :  { %11068 = vst [vmem:[#allocation44_spill] sm:$0xff] %v8897_v4  ;;  %2451 = vmatpush.msrb.mxu1 %v8915_v25  ;;  %v8921_v4 = vld [vmem:[%s9756_s5 + $0x20] sm:$0xff] }
 0x838   :  { %11069 = vst [vmem:[#allocation22_spill] sm:$0xff] %v8903_v51  ;;  %2392 = vmatpush.msra.mxu2 %v8921_v4  ;;  %v8927_v51 = vld [vmem:[%s9756_s5 + $0x28] sm:$0xff] }
 0x839   :  { %11070 = vst [vmem:[#allocation42_spill] sm:$0xff] %v8909_v41  ;;  %2412 = vmatpush.msrb.mxu3 %v8927_v51  ;;  %v8933_v41 = vld [vmem:[%s9756_s5 + $0x30] sm:$0xff] }
 0x83a   :  { %11071 = vst [vmem:[#allocation23_spill] sm:$0xff] %v8915_v25  ;;  %2432 = vmatpush.msra.mxu0 %v8933_v41  ;;  %v8939_v25 = vld [vmem:[%s9756_s5 + $0x38] sm:$0xff] }
 0x83b   :  { %11072 = vst [vmem:[#allocation45_spill] sm:$0xff] %v8921_v4  ;;  %2452 = vmatpush.msrb.mxu1 %v8939_v25  ;;  %v8945_v4 = vld [vmem:[%s9756_s5] sm:$0xff] }
 0x83c   :  { %11073 = vst [vmem:[#allocation102_spill] sm:$0xff] %v8927_v51  ;;  %2393 = vmatpush.msra.mxu2 %v8945_v4  ;;  %v8951_v51 = vld [vmem:[%s9756_s5 + $0x8] sm:$0xff] }
 0x83d   :  { %11074 = vst [vmem:[#allocation103_spill] sm:$0xff] %v8933_v41  ;;  %2413 = vmatpush.msrb.mxu3 %v8951_v51  ;;  %v8957_v41 = vld [vmem:[%s9756_s5 + $0x10] sm:$0xff] }
 0x83e   :  { %11075 = vst [vmem:[#allocation126_spill] sm:$0xff] %v8939_v25  ;;  %2433 = vmatpush.msra.mxu0 %v8957_v41  ;;  %v8963_v25 = vld [vmem:[%s9756_s5 + $0x18] sm:$0xff] }
 0x83f   :  { %11076 = vst [vmem:[#allocation131_spill] sm:$0xff] %v8945_v4  ;;  %2453 = vmatpush.msrb.mxu1 %v8963_v25  ;;  %v2024_v4 = vadd.f32 %v8590_v46, %v10945_v22 }
 0x840   :  { %11077 = vst [vmem:[#allocation70_spill] sm:$0xff] %v8951_v51  ;;  %v2044_v51 = vadd.f32 %v8592_v2, %v10946_v1 }
 0x841   :  { %11078 = vst [vmem:[#allocation71_spill] sm:$0xff] %v8957_v41  ;;  %v2064_v41 = vadd.f32 %v8586_v48, %v10947_v35 }
 0x842   :  { %11079 = vst [vmem:[#allocation72_spill] sm:$0xff] %v8963_v25 }
 0x890   :  { %v2249_v5 = vpop.f32.mrf.mxu0  ;;  %v2269_v10 = vpop.f32.mrf.mxu1 }
 0x891   :  { %v2274_v52 = vadd.f32 %v2249_v5, %v2064_v41  ;;  %v2275_v42 = vadd.f32 %v2269_v10, %v2084_v8  ;;  %v9005_v10 = vld [vmem:[%s9758_s6 + $0x1c0] sm:$0xff]  ;;  %v9011_v5 = vld [vmem:[%s9758_s6 + $0x1c8] sm:$0xff]  ;;  %v9023_v41 = vld [vmem:[%s9758_s6 + $0x1d8] sm:$0xff] }
 0x893   :  { %v2278_v46 = vmul.f32 0.5, %v2274_v52 }
 0x895   :  { %v2209_v11 = vpop.f32.mrf.mxu2  ;;  %v2229_v32 = vpop.f32.mrf.mxu3 }
 0x896   :  { %v2272_v3 = vadd.f32 %v2209_v11, %v2024_v4  ;;  %v2273_v18 = vadd.f32 %v2229_v32, %v2044_v51 }
 0x898   :  { %v2276_v59 = vmul.f32 0.5, %v2272_v3  ;;  %v2277_v25 = vmul.f32 0.5, %v2273_v18  ;;  %v9017_v18 = vld [vmem:[%s9758_s6 + $0x1d0] sm:$0xff] }
 0x89a   :  { %3088 = vtanh.f32 %v2276_v59 }
 0x89b   :  { %3090 = vtanh.f32 %v2277_v25  ;;  %v9029_v25 = vld [vmem:[%s9758_s6 + $0x1a0] sm:$0xff] }
 0x89c   :  { %3092 = vtanh.f32 %v2275_v42 }
 0x89d   :  { %3094 = vtanh.f32 %v2278_v46  ;;  %v9035_v46 = vld [vmem:[%s9758_s6 + $0x1a8] sm:$0xff] }
 0x8a0   :  { %v3089_v2 = vpop.eup %3088 }
 0x8a1   :  { %v3091_v1 = vpop.eup %3090  ;;  %v2282_v11 = vmul.f32 0.5, %v3089_v2  ;;  %v9041_v2 = vld [vmem:[%s9758_s6 + $0x1b0] sm:$0xff] }
 0x8a2   :  { %v2283_v32 = vmul.f32 0.5, %v3091_v1  ;;  %v3093_v51 = vpop.eup %3092  ;;  %v8981_v1 = vld [vmem:[%s9758_s6 + $0x1e0] sm:$0xff] }
 0x8a3   :  { %v2285_v4 = vadd.f32 0.5, %v2282_v11  ;;  %v3095_v12 = vpop.eup %3094  ;;  %v9047_v11 = vld [vmem:[%s9758_s6 + $0x1b8] sm:$0xff] }
 0x8a4   :  { %v2286_v22 = vadd.f32 0.5, %v2283_v32  ;;  %v2284_v59 = vmul.f32 0.5, %v3095_v12  ;;  %v9057_v32 = vld [vmem:[%s9758_s6 + $0x180] sm:$0xff]  ;;  %v9087_v12 = vld [vmem:[%s9758_s6 + $0x168] sm:$0xff] }
 0x8a5   :  { %v2290_v48 = vmul.f32 %v3093_v51, %v2285_v4  ;;  %v9063_v4 = vld [vmem:[%s9758_s6 + $0x188] sm:$0xff]  ;;  %v9069_v51 = vld [vmem:[%s9758_s6 + $0x190] sm:$0xff] }
 0x8a6   :  { %v2289_v35 = vmul.f32 %v2286_v22, %v8281_v9  ;;  %v2287_v8 = vadd.f32 0.5, %v2284_v59  ;;  %v8987_v22 = vld [vmem:[%s9758_s6 + $0x1e8] sm:$0xff]  ;;  %v8999_v9 = vld [vmem:[%s9758_s6 + $0x1f8] sm:$0xff]  ;;  %v9093_v59 = vld [vmem:[%s9758_s6 + $0x170] sm:$0xff] }
 0x8a7   :  { %11080 = vst [vmem:[#allocation73_spill] sm:$0xff] %v9093_v59 }
 0x8a8   :  { %v8975_v3 = vadd.f32 %v2290_v48, %v2289_v35  ;;  %v8993_v35 = vld [vmem:[%s9758_s6 + $0x1f0] sm:$0xff]  ;;  %v9081_v48 = vld [vmem:[%s9758_s6 + $0x160] sm:$0xff] }
 0x8aa   :  { %3096 = vtanh.f32 %v8975_v3 }
 0x8b0   :  { %v3097_v52 = vpop.eup %3096 }
 0x8b1   :  { %v2293_v42 = vmul.f32 %v3097_v52, %v2287_v8  ;;  %v9099_v8 = vld [vmem:[%s9758_s6 + $0x178] sm:$0xff]  ;;  %v9105_v52 = vld [vmem:[%s9758_s6 + $0x140] sm:$0xff] }
 0x8b2   :  { %11081 = vst [vmem:[#allocation75_spill] sm:$0xff] %v9099_v8 }
 0x8b3   :  { %2310 = vmatmul.f32.vlgmr.msrb.gmra.mxu2 %v2293_v42  ;;  %2330 = vmatmul.f32.vlgmr.msra.gmra.mxu3 %v2293_v42  ;;  %11082 = vst [vmem:[#allocation76_spill] sm:$0xff] %v9105_v52 }
 0x8b4   :  { %2350 = vmatmul.f32.vlgmr.msrb.gmra.mxu0 %v2293_v42  ;;  %2370 = vmatmul.f32.vlgmr.msra.gmra.mxu1 %v2293_v42  ;;  %v9111_v42 = vld [vmem:[%s9758_s6 + $0x148] sm:$0xff] }
 0x8b5   :  { %2480 = vmatpush.msrb.mxu2 %v8981_v1  ;;  %2500 = vmatpush.msra.mxu3 %v8987_v22  ;;  %11083 = vst [vmem:[#allocation77_spill] sm:$0xff] %v9111_v42 }
 0x8b6   :  { %2520 = vmatpush.msrb.mxu0 %v8993_v35  ;;  %2540 = vmatpush.msra.mxu1 %v8999_v9 }
 0x8b7   :  { %2481 = vmatpush.msrb.mxu2 %v9005_v10  ;;  %2501 = vmatpush.msra.mxu3 %v9011_v5 }
 0x8b8   :  { %2521 = vmatpush.msrb.mxu0 %v9017_v18  ;;  %2541 = vmatpush.msra.mxu1 %v9023_v41 }
 0x8b9   :  { %2482 = vmatpush.msrb.mxu2 %v9029_v25  ;;  %2502 = vmatpush.msra.mxu3 %v9035_v46 }
 0x8ba   :  { %2522 = vmatpush.msrb.mxu0 %v9041_v2  ;;  %2542 = vmatpush.msra.mxu1 %v9047_v11 }
 0x8bb   :  { %2394 = vmatmul.f32.vlgmr.msra.gmra.mxu2 %v8606_v24  ;;  %2414 = vmatmul.f32.vlgmr.msrb.gmra.mxu3 %v8606_v24 }
 0x8bc   :  { %2434 = vmatmul.f32.vlgmr.msra.gmra.mxu0 %v8606_v24  ;;  %2454 = vmatmul.f32.vlgmr.msrb.gmra.mxu1 %v8606_v24  ;;  %v9075_v24 = vld [vmem:[%s9758_s6 + $0x198] sm:$0xff] }
 0x8bd   :  { %2483 = vmatpush.msrb.mxu2 %v9057_v32  ;;  %2503 = vmatpush.msra.mxu3 %v9063_v4 }
 0x8be   :  { %2523 = vmatpush.msrb.mxu0 %v9069_v51  ;;  %2543 = vmatpush.msra.mxu1 %v9075_v24 }
 0x8bf   :  { %2484 = vmatpush.msrb.mxu2 %v9081_v48  ;;  %2504 = vmatpush.msra.mxu3 %v9087_v12 }
 0x8c0   :  { %2524 = vmatpush.msrb.mxu0 %v9093_v59  ;;  %2544 = vmatpush.msra.mxu1 %v9099_v8  ;;  %v9117_v59 = vld [vmem:[%s9758_s6 + $0x150] sm:$0xff]  ;;  %v9123_v8 = vld [vmem:[%s9758_s6 + $0x158] sm:$0xff] }
 0x8c1   :  { %2485 = vmatpush.msrb.mxu2 %v9105_v52  ;;  %2505 = vmatpush.msra.mxu3 %v9111_v42  ;;  %11084 = vst [vmem:[#allocation78_spill] sm:$0xff] %v9117_v59  ;;  %v9129_v52 = vld [vmem:[%s9758_s6 + $0x120] sm:$0xff]  ;;  %v9135_v42 = vld [vmem:[%s9758_s6 + $0x128] sm:$0xff] }
 0x8c2   :  { %2525 = vmatpush.msrb.mxu0 %v9117_v59  ;;  %11085 = vst [vmem:[#allocation81_spill] sm:$0xff] %v9123_v8  ;;  %2545 = vmatpush.msra.mxu1 %v9123_v8  ;;  %v9141_v59 = vld [vmem:[%s9758_s6 + $0x130] sm:$0xff]  ;;  %v9147_v8 = vld [vmem:[%s9758_s6 + $0x138] sm:$0xff] }
 0x8c3   :  { %11086 = vst [vmem:[#allocation82_spill] sm:$0xff] %v9129_v52  ;;  %2486 = vmatpush.msrb.mxu2 %v9129_v52  ;;  %2506 = vmatpush.msra.mxu3 %v9135_v42  ;;  %v9153_v52 = vld [vmem:[%s9758_s6 + $0x100] sm:$0xff] }
 0x8c4   :  { %11087 = vst [vmem:[#allocation83_spill] sm:$0xff] %v9135_v42  ;;  %2526 = vmatpush.msrb.mxu0 %v9141_v59  ;;  %2546 = vmatpush.msra.mxu1 %v9147_v8  ;;  %v9159_v42 = vld [vmem:[%s9758_s6 + $0x108] sm:$0xff] }
 0x8c5   :  { %11088 = vst [vmem:[#allocation84_spill] sm:$0xff] %v9141_v59  ;;  %2487 = vmatpush.msrb.mxu2 %v9153_v52  ;;  %2507 = vmatpush.msra.mxu3 %v9159_v42  ;;  %v9165_v59 = vld [vmem:[%s9758_s6 + $0x110] sm:$0xff] }
 0x8c6   :  { %11089 = vst [vmem:[#allocation85_spill] sm:$0xff] %v9147_v8  ;;  %2527 = vmatpush.msrb.mxu0 %v9165_v59  ;;  %v9171_v8 = vld [vmem:[%s9758_s6 + $0x118] sm:$0xff] }
 0x8c7   :  { %11090 = vst [vmem:[#allocation86_spill] sm:$0xff] %v9153_v52  ;;  %2547 = vmatpush.msra.mxu1 %v9171_v8  ;;  %v9177_v52 = vld [vmem:[%s9758_s6 + $0xe0] sm:$0xff] }
 0x8c8   :  { %11091 = vst [vmem:[#allocation87_spill] sm:$0xff] %v9159_v42  ;;  %2488 = vmatpush.msrb.mxu2 %v9177_v52  ;;  %v9183_v42 = vld [vmem:[%s9758_s6 + $0xe8] sm:$0xff] }
 0x8c9   :  { %11092 = vst [vmem:[#allocation88_spill] sm:$0xff] %v9165_v59  ;;  %2508 = vmatpush.msra.mxu3 %v9183_v42  ;;  %v9189_v59 = vld [vmem:[%s9758_s6 + $0xf0] sm:$0xff] }
 0x8ca   :  { %11093 = vst [vmem:[#allocation89_spill] sm:$0xff] %v9171_v8  ;;  %2528 = vmatpush.msrb.mxu0 %v9189_v59  ;;  %v9195_v8 = vld [vmem:[%s9758_s6 + $0xf8] sm:$0xff] }
 0x8cb   :  { %11094 = vst [vmem:[#allocation90_spill] sm:$0xff] %v9177_v52  ;;  %2548 = vmatpush.msra.mxu1 %v9195_v8  ;;  %v9201_v52 = vld [vmem:[%s9758_s6 + $0xc0] sm:$0xff] }
 0x8cc   :  { %11095 = vst [vmem:[#allocation91_spill] sm:$0xff] %v9183_v42  ;;  %2489 = vmatpush.msrb.mxu2 %v9201_v52  ;;  %v9207_v42 = vld [vmem:[%s9758_s6 + $0xc8] sm:$0xff] }
 0x8cd   :  { %11096 = vst [vmem:[#allocation92_spill] sm:$0xff] %v9189_v59  ;;  %2509 = vmatpush.msra.mxu3 %v9207_v42  ;;  %v9213_v59 = vld [vmem:[%s9758_s6 + $0xd0] sm:$0xff] }
 0x8ce   :  { %11097 = vst [vmem:[#allocation94_spill] sm:$0xff] %v9195_v8  ;;  %2529 = vmatpush.msrb.mxu0 %v9213_v59  ;;  %v9219_v8 = vld [vmem:[%s9758_s6 + $0xd8] sm:$0xff] }
 0x8cf   :  { %11098 = vst [vmem:[#allocation95_spill] sm:$0xff] %v9201_v52  ;;  %2549 = vmatpush.msra.mxu1 %v9219_v8  ;;  %v9225_v52 = vld [vmem:[%s9758_s6 + $0xa0] sm:$0xff] }
 0x8d0   :  { %11099 = vst [vmem:[#allocation96_spill] sm:$0xff] %v9207_v42  ;;  %2490 = vmatpush.msrb.mxu2 %v9225_v52  ;;  %v9231_v42 = vld [vmem:[%s9758_s6 + $0xa8] sm:$0xff] }
 0x8d1   :  { %11100 = vst [vmem:[#allocation97_spill] sm:$0xff] %v9213_v59  ;;  %2510 = vmatpush.msra.mxu3 %v9231_v42  ;;  %v9237_v59 = vld [vmem:[%s9758_s6 + $0xb0] sm:$0xff] }
 0x8d2   :  { %11101 = vst [vmem:[#allocation98_spill] sm:$0xff] %v9219_v8  ;;  %2530 = vmatpush.msrb.mxu0 %v9237_v59  ;;  %v9243_v8 = vld [vmem:[%s9758_s6 + $0xb8] sm:$0xff] }
 0x8d3   :  { %11102 = vst [vmem:[#allocation99_spill] sm:$0xff] %v9225_v52  ;;  %2550 = vmatpush.msra.mxu1 %v9243_v8  ;;  %v9249_v52 = vld [vmem:[%s9758_s6 + $0x80] sm:$0xff] }
 0x8d4   :  { %11103 = vst [vmem:[#allocation100_spill] sm:$0xff] %v9231_v42  ;;  %2491 = vmatpush.msrb.mxu2 %v9249_v52  ;;  %v9255_v42 = vld [vmem:[%s9758_s6 + $0x88] sm:$0xff] }
 0x8d5   :  { %11104 = vst [vmem:[#allocation101_spill] sm:$0xff] %v9237_v59  ;;  %2511 = vmatpush.msra.mxu3 %v9255_v42  ;;  %v9261_v59 = vld [vmem:[%s9758_s6 + $0x90] sm:$0xff] }
 0x8d6   :  { %11105 = vst [vmem:[#allocation104_spill] sm:$0xff] %v9243_v8  ;;  %2531 = vmatpush.msrb.mxu0 %v9261_v59  ;;  %v9267_v8 = vld [vmem:[%s9758_s6 + $0x98] sm:$0xff] }
 0x8d7   :  { %11106 = vst [vmem:[#allocation105_spill] sm:$0xff] %v9249_v52  ;;  %2551 = vmatpush.msra.mxu1 %v9267_v8  ;;  %v9273_v52 = vld [vmem:[%s9758_s6 + $0x60] sm:$0xff] }
 0x8d8   :  { %11107 = vst [vmem:[#allocation106_spill] sm:$0xff] %v9255_v42  ;;  %2492 = vmatpush.msrb.mxu2 %v9273_v52  ;;  %v9279_v42 = vld [vmem:[%s9758_s6 + $0x68] sm:$0xff] }
 0x8d9   :  { %11108 = vst [vmem:[#allocation107_spill] sm:$0xff] %v9261_v59  ;;  %2512 = vmatpush.msra.mxu3 %v9279_v42  ;;  %v9285_v59 = vld [vmem:[%s9758_s6 + $0x70] sm:$0xff] }
 0x8da   :  { %11109 = vst [vmem:[#allocation108_spill] sm:$0xff] %v9267_v8  ;;  %2532 = vmatpush.msrb.mxu0 %v9285_v59  ;;  %v9291_v8 = vld [vmem:[%s9758_s6 + $0x78] sm:$0xff] }
 0x8db   :  { %11110 = vst [vmem:[#allocation109_spill] sm:$0xff] %v9273_v52  ;;  %2552 = vmatpush.msra.mxu1 %v9291_v8  ;;  %v9297_v52 = vld [vmem:[%s9758_s6 + $0x40] sm:$0xff] }
 0x8dc   :  { %11111 = vst [vmem:[#allocation110_spill] sm:$0xff] %v9279_v42  ;;  %2493 = vmatpush.msrb.mxu2 %v9297_v52  ;;  %v9303_v42 = vld [vmem:[%s9758_s6 + $0x48] sm:$0xff] }
 0x8dd   :  { %11112 = vst [vmem:[#allocation111_spill] sm:$0xff] %v9285_v59  ;;  %2513 = vmatpush.msra.mxu3 %v9303_v42  ;;  %v9309_v59 = vld [vmem:[%s9758_s6 + $0x50] sm:$0xff] }
 0x8de   :  { %11113 = vst [vmem:[#allocation113_spill] sm:$0xff] %v9291_v8  ;;  %2533 = vmatpush.msrb.mxu0 %v9309_v59  ;;  %v9315_v8 = vld [vmem:[%s9758_s6 + $0x58] sm:$0xff] }
 0x8df   :  { %11114 = vst [vmem:[#allocation114_spill] sm:$0xff] %v9297_v52  ;;  %2553 = vmatpush.msra.mxu1 %v9315_v8  ;;  %v9321_v52 = vld [vmem:[%s9758_s6 + $0x20] sm:$0xff] }
 0x8e0   :  { %11115 = vst [vmem:[#allocation115_spill] sm:$0xff] %v9303_v42  ;;  %2494 = vmatpush.msrb.mxu2 %v9321_v52  ;;  %v9327_v42 = vld [vmem:[%s9758_s6 + $0x28] sm:$0xff] }
 0x8e1   :  { %11116 = vst [vmem:[#allocation116_spill] sm:$0xff] %v9309_v59  ;;  %2514 = vmatpush.msra.mxu3 %v9327_v42  ;;  %v9333_v59 = vld [vmem:[%s9758_s6 + $0x30] sm:$0xff] }
 0x8e2   :  { %11117 = vst [vmem:[#allocation117_spill] sm:$0xff] %v9315_v8  ;;  %2534 = vmatpush.msrb.mxu0 %v9333_v59  ;;  %v9339_v8 = vld [vmem:[%s9758_s6 + $0x38] sm:$0xff] }
 0x8e3   :  { %11118 = vst [vmem:[#allocation118_spill] sm:$0xff] %v9321_v52  ;;  %2554 = vmatpush.msra.mxu1 %v9339_v8  ;;  %v9345_v52 = vld [vmem:[%s9758_s6] sm:$0xff] }
 0x8e4   :  { %11119 = vst [vmem:[#allocation119_spill] sm:$0xff] %v9327_v42  ;;  %2495 = vmatpush.msrb.mxu2 %v9345_v52  ;;  %v9351_v42 = vld [vmem:[%s9758_s6 + $0x8] sm:$0xff] }
 0x8e5   :  { %11120 = vst [vmem:[#allocation120_spill] sm:$0xff] %v9333_v59  ;;  %2515 = vmatpush.msra.mxu3 %v9351_v42  ;;  %v9357_v59 = vld [vmem:[%s9758_s6 + $0x10] sm:$0xff] }
 0x8e6   :  { %11121 = vst [vmem:[#allocation121_spill] sm:$0xff] %v9339_v8  ;;  %2535 = vmatpush.msrb.mxu0 %v9357_v59  ;;  %v9363_v8 = vld [vmem:[%s9758_s6 + $0x18] sm:$0xff] }
 0x8e7   :  { %11122 = vst [vmem:[#allocation122_spill] sm:$0xff] %v9345_v52  ;;  %2555 = vmatpush.msra.mxu1 %v9363_v8  ;;  %v3714_v52 = vld [vmem:[%s9755_s7 + $0x1e0] sm:$0xff]  ;;  %2602 = vmatpush.msrb.mxu3 %v8356_v6  ;;  %v3717_v6 = vld [vmem:[%s9755_s7 + $0x1a8] sm:$0xff] }
 0x8e8   :  { %11123 = vst [vmem:[#allocation123_spill] sm:$0xff] %v9357_v59  ;;  %2582 = vmatpush.msra.mxu2 %v3714_v52  ;;  %2622 = vmatpush.msra.mxu0 %v8362_v0  ;;  %v3715_v59 = vld [vmem:[%s9755_s7 + $0x1c0] sm:$0xff] }
 0x8e9   :  { %2642 = vmatpush.msrb.mxu1 %v8368_v36  ;;  %2603 = vmatpush.msrb.mxu3 %v8375_v62  ;;  %v3716_v52 = vld [vmem:[%s9755_s7 + $0x1a0] sm:$0xff]  ;;  %v3719_v36 = vld [vmem:[%s9755_s7 + $0x188] sm:$0xff] }
 0x8ea   :  { %2583 = vmatpush.msra.mxu2 %v3715_v59  ;;  %2623 = vmatpush.msra.mxu0 %v8381_v58  ;;  %v3718_v0 = vld [vmem:[%s9755_s7 + $0x180] sm:$0xff]  ;;  %v3721_v58 = vld [vmem:[%s9755_s7 + $0x168] sm:$0xff]  ;;  %v11127_v59 = vld [vmem:[#allocation6_spill] sm:$0xff] }
 0x8eb   :  { %2643 = vmatpush.msrb.mxu1 %v8387_v45  ;;  %2604 = vmatpush.msrb.mxu3 %v3717_v6  ;;  %v3720_v62 = vld [vmem:[%s9755_s7 + $0x160] sm:$0xff]  ;;  %v3741_v6 = vld [vmem:[%s9755_s7 + $0x28] sm:$0xff] }
 0x8ec   :  { %2584 = vmatpush.msra.mxu2 %v3716_v52  ;;  %2624 = vmatpush.msra.mxu0 %v8395_v44  ;;  %v3722_v45 = vld [vmem:[%s9755_s7 + $0x140] sm:$0xff]  ;;  %v3723_v44 = vld [vmem:[%s9755_s7 + $0x148] sm:$0xff] }
 0x8ed   :  { %2644 = vmatpush.msrb.mxu1 %v8401_v15  ;;  %2605 = vmatpush.msrb.mxu3 %v3719_v36  ;;  %v3724_v15 = vld [vmem:[%s9755_s7 + $0x120] sm:$0xff]  ;;  %v11129_v36 = vld [vmem:[#allocation53_spill] sm:$0xff] }
 0x8ee   :  { %2585 = vmatpush.msra.mxu2 %v3718_v0  ;;  %2625 = vmatpush.msra.mxu0 %v8409_v47  ;;  %v3725_v47 = vld [vmem:[%s9755_s7 + $0x128] sm:$0xff]  ;;  %v3740_v52 = vld [vmem:[%s9755_s7 + $0x20] sm:$0xff]  ;;  %v11128_v0 = vld [vmem:[#allocation54_spill] sm:$0xff] }
 0x8ef   :  { %2645 = vmatpush.msrb.mxu1 %v8415_v56  ;;  %2606 = vmatpush.msrb.mxu3 %v3721_v58  ;;  %v3726_v56 = vld [vmem:[%s9755_s7 + $0x100] sm:$0xff]  ;;  %v3743_v58 = vld [vmem:[%s9755_s7 + $0x8] sm:$0xff] }
 0x8f0   :  { %2586 = vmatpush.msra.mxu2 %v3720_v62  ;;  %2626 = vmatpush.msra.mxu0 %v8423_v26  ;;  %v3727_v26 = vld [vmem:[%s9755_s7 + $0x108] sm:$0xff]  ;;  %v3742_v62 = vld [vmem:[%s9755_s7] sm:$0xff] }
 0x8f1   :  { %2646 = vmatpush.msrb.mxu1 %v8429_v38  ;;  %2607 = vmatpush.msrb.mxu3 %v3723_v44  ;;  %v3728_v38 = vld [vmem:[%s9755_s7 + $0xe0] sm:$0xff]  ;;  %v11131_v44 = vld [vmem:[#allocation60_spill] sm:$0xff] }
 0x8f2   :  { %2587 = vmatpush.msra.mxu2 %v3722_v45  ;;  %2627 = vmatpush.msra.mxu0 %v8437_v49  ;;  %v3729_v49 = vld [vmem:[%s9755_s7 + $0xe8] sm:$0xff] }
 0x8f3   :  { %2647 = vmatpush.msrb.mxu1 %v8443_v34  ;;  %2608 = vmatpush.msrb.mxu3 %v3725_v47  ;;  %v3730_v34 = vld [vmem:[%s9755_s7 + $0xc0] sm:$0xff]  ;;  %v11130_v45 = vld [vmem:[#allocation48_spill] sm:$0xff] }
 0x8f4   :  { %2588 = vmatpush.msra.mxu2 %v3724_v15  ;;  %2628 = vmatpush.msra.mxu0 %v8451_v13  ;;  %v3731_v13 = vld [vmem:[%s9755_s7 + $0xc8] sm:$0xff] }
 0x8f5   :  { %2648 = vmatpush.msrb.mxu1 %v8457_v54  ;;  %2609 = vmatpush.msrb.mxu3 %v3727_v26  ;;  %v3732_v54 = vld [vmem:[%s9755_s7 + $0xa0] sm:$0xff] }
 0x8f6   :  { %2589 = vmatpush.msra.mxu2 %v3726_v56  ;;  %2629 = vmatpush.msra.mxu0 %v8465_v53  ;;  %v3733_v53 = vld [vmem:[%s9755_s7 + $0xa8] sm:$0xff] }
 0x8f7   :  { %2649 = vmatpush.msrb.mxu1 %v8471_v19  ;;  %2610 = vmatpush.msrb.mxu3 %v3729_v49  ;;  %v3734_v19 = vld [vmem:[%s9755_s7 + $0x80] sm:$0xff] }
 0x8f8   :  { %2590 = vmatpush.msra.mxu2 %v3728_v38  ;;  %2630 = vmatpush.msra.mxu0 %v8479_v28  ;;  %v3735_v28 = vld [vmem:[%s9755_s7 + $0x88] sm:$0xff]  ;;  %v11132_v38 = vld [vmem:[#allocation142_spill] sm:$0xff]  ;;  %v11133_v49 = vld [vmem:[#allocation79_spill] sm:$0xff] }
 0x8f9   :  { %2650 = vmatpush.msrb.mxu1 %v8485_v55  ;;  %2611 = vmatpush.msrb.mxu3 %v3731_v13  ;;  %v3736_v55 = vld [vmem:[%s9755_s7 + $0x60] sm:$0xff]  ;;  %v11134_v13 = vld [vmem:[#allocation124_spill] sm:$0xff] }
 0x8fa   :  { %2591 = vmatpush.msra.mxu2 %v3730_v34  ;;  %2631 = vmatpush.msra.mxu0 %v8493_v40  ;;  %v3737_v40 = vld [vmem:[%s9755_s7 + $0x68] sm:$0xff]  ;;  %v245_v34 = vadd.f32 %v11133_v49, %v11132_v38 }
 0x8fb   :  { %2651 = vmatpush.msrb.mxu1 %v8499_v60  ;;  %2612 = vmatpush.msrb.mxu3 %v3733_v53  ;;  %v11124_v60 = vld [vmem:[#allocation52_spill] sm:$0xff] }
 0x8fc   :  { %2592 = vmatpush.msra.mxu2 %v3732_v54  ;;  %2632 = vmatpush.msra.mxu0 %v8507_v7  ;;  %v11125_v7 = vld [vmem:[#allocation64_spill] sm:$0xff] }
 0x8fd   :  { %2652 = vmatpush.msrb.mxu1 %v8513_v57  ;;  %2613 = vmatpush.msrb.mxu3 %v3735_v28  ;;  %v3738_v57 = vld [vmem:[%s9755_s7 + $0x40] sm:$0xff]  ;;  %v11135_v54 = vld [vmem:[#allocation80_spill] sm:$0xff] }
 0x8fe   :  { %2593 = vmatpush.msra.mxu2 %v3734_v19  ;;  %2633 = vmatpush.msra.mxu0 %v8521_v27  ;;  %v3739_v27 = vld [vmem:[%s9755_s7 + $0x48] sm:$0xff]  ;;  %v204_v53 = vadd.f32 %v11135_v54, %v11134_v13 }
 0x8ff   :  { %2653 = vmatpush.msrb.mxu1 %v8527_v37  ;;  %2614 = vmatpush.msrb.mxu3 %v3737_v40  ;;  %v11126_v37 = vld [vmem:[#allocation30_spill] sm:$0xff] }
 0x900   :  { %2594 = vmatpush.msra.mxu2 %v3736_v55  ;;  %2634 = vmatpush.msra.mxu0 %v11124_v60 }
 0x901   :  { %2654 = vmatpush.msrb.mxu1 %v11125_v7  ;;  %2615 = vmatpush.msrb.mxu3 %v3739_v27  ;;  %v11137_v27 = vld [vmem:[#allocation62_spill] sm:$0xff] }
 0x902   :  { %2595 = vmatpush.msra.mxu2 %v3738_v57  ;;  %2635 = vmatpush.msra.mxu0 %v11126_v37  ;;  %v11136_v57 = vld [vmem:[#allocation65_spill] sm:$0xff] }
 0x903   :  { %2655 = vmatpush.msrb.mxu1 %v11127_v59  ;;  %2616 = vmatpush.msrb.mxu3 %v3741_v6  ;;  %v327_v37 = vadd.f32 %v11137_v27, %v11136_v57  ;;  %v11138_v59 = vld [vmem:[#allocation93_spill] sm:$0xff] }
 0x904   :  { %2596 = vmatpush.msra.mxu2 %v3740_v52  ;;  %2636 = vmatpush.msra.mxu0 %v11128_v0  ;;  %v286_v52 = vadd.f32 %v11138_v59, %v5079_v61  ;;  %v3745_v59 = vld [vmem:[%s9756_s5 + $0x1f0] sm:$0xff] }
 0x905   :  { %2656 = vmatpush.msrb.mxu1 %v11129_v36  ;;  %2617 = vmatpush.msrb.mxu3 %v3743_v58 }
 0x906   :  { %2597 = vmatpush.msra.mxu2 %v3742_v62  ;;  %2637 = vmatpush.msra.mxu0 %v11130_v45 }
 0x907   :  { %2657 = vmatpush.msrb.mxu1 %v11131_v44 }
 0x931   :  { %v9490_v15 = vpop.f32.mrf.mxu0  ;;  %v9492_v47 = vpop.f32.mrf.mxu1 }
 0x936   :  { %v9494_v56 = vpop.f32.mrf.mxu2  ;;  %v9496_v26 = vpop.f32.mrf.mxu3 }
 0x939   :  { %v2435_v60 = vpop.f32.mrf.mxu0  ;;  %v2455_v7 = vpop.f32.mrf.mxu1 }
 0x93a   :  { %v2460_v36 = vadd.f32 %v2435_v60, %v286_v52  ;;  %v2461_v62 = vadd.f32 %v2455_v7, %v327_v37  ;;  %v3746_v52 = vld [vmem:[%s9756_s5 + $0x1c0] sm:$0xff] }
 0x93c   :  { %v2464_v58 = vmul.f32 0.5, %v2460_v36  ;;  %v11150_v36 = vld [vmem:[#allocation10_spill] sm:$0xff] }
 0x93e   :  { %v2395_v19 = vpop.f32.mrf.mxu2  ;;  %v2415_v28 = vpop.f32.mrf.mxu3 }
 0x93f   :  { %v2458_v55 = vadd.f32 %v2395_v19, %v204_v53  ;;  %v2459_v40 = vadd.f32 %v2415_v28, %v245_v34 }
 0x941   :  { %v2462_v6 = vmul.f32 0.5, %v2458_v55  ;;  %v2463_v0 = vmul.f32 0.5, %v2459_v40 }
 0x943   :  { %3098 = vtanh.f32 %v2462_v6  ;;  %v3747_v6 = vld [vmem:[%s9756_s5 + $0x1d0] sm:$0xff] }
 0x944   :  { %3100 = vtanh.f32 %v2463_v0  ;;  %v11142_v0 = vld [vmem:[#allocation61_spill] sm:$0xff] }
 0x945   :  { %3102 = vtanh.f32 %v2461_v62  ;;  %v11151_v62 = vld [vmem:[#allocation29_spill] sm:$0xff] }
 0x946   :  { %3104 = vtanh.f32 %v2464_v58  ;;  %v11152_v58 = vld [vmem:[#allocation11_spill] sm:$0xff] }
 0x949   :  { %v3099_v45 = vpop.eup %3098 }
 0x94a   :  { %v3101_v44 = vpop.eup %3100  ;;  %v2468_v49 = vmul.f32 0.5, %v3099_v45  ;;  %v11153_v45 = vld [vmem:[#allocation35_spill] sm:$0xff] }
 0x94b   :  { %v2469_v34 = vmul.f32 0.5, %v3101_v44  ;;  %v3103_v53 = vpop.eup %3102  ;;  %v11154_v44 = vld [vmem:[#allocation12_spill] sm:$0xff] }
 0x94c   :  { %v2471_v54 = vadd.f32 0.5, %v2468_v49  ;;  %v3105_v27 = vpop.eup %3104  ;;  %v11155_v49 = vld [vmem:[#allocation32_spill] sm:$0xff] }
 0x94d   :  { %v2472_v19 = vadd.f32 0.5, %v2469_v34  ;;  %v2470_v40 = vmul.f32 0.5, %v3105_v27  ;;  %v11156_v34 = vld [vmem:[#allocation13_spill] sm:$0xff]  ;;  %v11162_v27 = vld [vmem:[#allocation16_spill] sm:$0xff] }
 0x94e   :  { %v2476_v28 = vmul.f32 %v3103_v53, %v2471_v54  ;;  %v11157_v54 = vld [vmem:[#allocation37_spill] sm:$0xff]  ;;  %v11158_v53 = vld [vmem:[#allocation14_spill] sm:$0xff] }
 0x94f   :  { %v2475_v57 = vmul.f32 %v2472_v19, %v8603_v30  ;;  %v2473_v60 = vadd.f32 0.5, %v2470_v40  ;;  %v3744_v30 = vld [vmem:[%s9756_s5 + $0x1e0] sm:$0xff]  ;;  %v11159_v19 = vld [vmem:[#allocation34_spill] sm:$0xff]  ;;  %v11163_v40 = vld [vmem:[#allocation36_spill] sm:$0xff] }
 0x951   :  { %v9507_v55 = vadd.f32 %v2476_v28, %v2475_v57  ;;  %v11160_v28 = vld [vmem:[#allocation15_spill] sm:$0xff] }
 0x952   :  { %v11161_v57 = vld [vmem:[#allocation39_spill] sm:$0xff] }
 0x953   :  { %3106 = vtanh.f32 %v9507_v55 }
 0x959   :  { %v3107_v7 = vpop.eup %3106 }
 0x95a   :  { %v9510_v37 = vmul.f32 %v3107_v7, %v2473_v60  ;;  %v11164_v60 = vld [vmem:[#allocation17_spill] sm:$0xff] }
 0x95b   :  { %v11165_v7 = vld [vmem:[#allocation41_spill] sm:$0xff] }
 0x95c   :  { %2496 = vmatmul.f32.vlgmr.msrb.gmra.mxu2 %v9510_v37  ;;  %2516 = vmatmul.f32.vlgmr.msra.gmra.mxu3 %v9510_v37 }
 0x95d   :  { %2536 = vmatmul.f32.vlgmr.msrb.gmra.mxu0 %v9510_v37  ;;  %2556 = vmatmul.f32.vlgmr.msra.gmra.mxu1 %v9510_v37 }
 0x95e   :  { %2666 = vmatpush.msrb.mxu2 %v3744_v30  ;;  %2686 = vmatpush.msra.mxu3 %v8616_v14  ;;  %v3748_v14 = vld [vmem:[%s9756_s5 + $0x1a0] sm:$0xff]  ;;  %v11166_v30 = vld [vmem:[#allocation18_spill] sm:$0xff] }
 0x95f   :  { %2706 = vmatpush.msrb.mxu0 %v3745_v59  ;;  %2726 = vmatpush.msra.mxu1 %v8623_v39  ;;  %v3749_v39 = vld [vmem:[%s9756_s5 + $0x1b0] sm:$0xff]  ;;  %v11167_v59 = vld [vmem:[#allocation38_spill] sm:$0xff] }
 0x960   :  { %2667 = vmatpush.msrb.mxu2 %v3746_v52  ;;  %2687 = vmatpush.msra.mxu3 %v8630_v29  ;;  %v11139_v29 = vld [vmem:[#allocation26_spill] sm:$0xff]  ;;  %v11168_v52 = vld [vmem:[#allocation19_spill] sm:$0xff] }
 0x961   :  { %2707 = vmatpush.msrb.mxu0 %v3747_v6  ;;  %2727 = vmatpush.msra.mxu1 %v8637_v31  ;;  %v11140_v31 = vld [vmem:[#allocation7_spill] sm:$0xff] }
 0x962   :  { %2668 = vmatpush.msrb.mxu2 %v3748_v14  ;;  %2688 = vmatpush.msra.mxu3 %v8644_v21  ;;  %v11141_v21 = vld [vmem:[#allocation63_spill] sm:$0xff]  ;;  %v11170_v14 = vld [vmem:[#allocation20_spill] sm:$0xff] }
 0x963   :  { %2708 = vmatpush.msrb.mxu0 %v3749_v39  ;;  %2728 = vmatpush.msra.mxu1 %v8651_v23  ;;  %v11143_v23 = vld [vmem:[#allocation55_spill] sm:$0xff]  ;;  %v11171_v39 = vld [vmem:[#allocation40_spill] sm:$0xff] }
 0x964   :  { %2669 = vmatpush.msrb.mxu2 %v8657_v16  ;;  %2689 = vmatpush.msra.mxu3 %v8663_v33  ;;  %v11144_v16 = vld [vmem:[#allocation69_spill] sm:$0xff]  ;;  %v11145_v33 = vld [vmem:[#allocation31_spill] sm:$0xff] }
 0x965   :  { %2709 = vmatpush.msrb.mxu0 %v8669_v63  ;;  %2729 = vmatpush.msra.mxu1 %v8675_v50  ;;  %v11146_v63 = vld [vmem:[#allocation8_spill] sm:$0xff]  ;;  %v11147_v50 = vld [vmem:[#allocation27_spill] sm:$0xff] }
 0x966   :  { %2670 = vmatpush.msrb.mxu2 %v8681_v17  ;;  %2690 = vmatpush.msra.mxu3 %v8687_v43  ;;  %v11148_v17 = vld [vmem:[#allocation9_spill] sm:$0xff]  ;;  %v11169_v6 = vld [vmem:[#allocation43_spill] sm:$0xff] }
 0x967   :  { %2710 = vmatpush.msrb.mxu0 %v11139_v29  ;;  %2730 = vmatpush.msra.mxu1 %v11140_v31  ;;  %v11149_v43 = vld [vmem:[#allocation33_spill] sm:$0xff]  ;;  %v11173_v31 = vld [vmem:[#allocation44_spill] sm:$0xff] }
 0x968   :  { %2671 = vmatpush.msrb.mxu2 %v11141_v21  ;;  %2691 = vmatpush.msra.mxu3 %v11142_v0  ;;  %v11172_v29 = vld [vmem:[#allocation21_spill] sm:$0xff]  ;;  %v11174_v21 = vld [vmem:[#allocation22_spill] sm:$0xff] }
 0x969   :  { %2711 = vmatpush.msrb.mxu0 %v11143_v23  ;;  %2731 = vmatpush.msra.mxu1 %v11144_v16  ;;  %v11175_v0 = vld [vmem:[#allocation42_spill] sm:$0xff]  ;;  %v11176_v23 = vld [vmem:[#allocation23_spill] sm:$0xff]  ;;  %v11177_v16 = vld [vmem:[#allocation45_spill] sm:$0xff] }
 0x96a   :  { %2672 = vmatpush.msrb.mxu2 %v11145_v33  ;;  %2692 = vmatpush.msra.mxu3 %v11146_v63  ;;  %v11178_v33 = vld [vmem:[#allocation102_spill] sm:$0xff]  ;;  %v11179_v63 = vld [vmem:[#allocation103_spill] sm:$0xff] }
 0x96b   :  { %2712 = vmatpush.msrb.mxu0 %v11147_v50  ;;  %2732 = vmatpush.msra.mxu1 %v11148_v17  ;;  %v11180_v50 = vld [vmem:[#allocation126_spill] sm:$0xff]  ;;  %v11181_v17 = vld [vmem:[#allocation131_spill] sm:$0xff] }
 0x96c   :  { %2673 = vmatpush.msrb.mxu2 %v11149_v43  ;;  %2693 = vmatpush.msra.mxu3 %v11150_v36  ;;  %v11182_v43 = vld [vmem:[#allocation70_spill] sm:$0xff]  ;;  %v11183_v36 = vld [vmem:[#allocation71_spill] sm:$0xff] }
 0x96d   :  { %2713 = vmatpush.msrb.mxu0 %v11151_v62  ;;  %2733 = vmatpush.msra.mxu1 %v11152_v58  ;;  %v11184_v62 = vld [vmem:[#allocation72_spill] sm:$0xff]  ;;  %v11185_v58 = vld [vmem:[#allocation3_spill] sm:$0xff] }
 0x96e   :  { %2674 = vmatpush.msrb.mxu2 %v11153_v45  ;;  %2694 = vmatpush.msra.mxu3 %v11154_v44  ;;  %v2312_v45 = vadd.f32 %v9494_v56, %v11185_v58  ;;  %v11186_v44 = vld [vmem:[#allocation24_spill] sm:$0xff] }
 0x96f   :  { %2714 = vmatpush.msrb.mxu0 %v11155_v49  ;;  %2734 = vmatpush.msra.mxu1 %v11156_v34  ;;  %v2332_v49 = vadd.f32 %v9496_v26, %v11186_v44 }
 0x970   :  { %2675 = vmatpush.msrb.mxu2 %v11157_v54  ;;  %2695 = vmatpush.msra.mxu3 %v11158_v53 }
 0x971   :  { %2715 = vmatpush.msrb.mxu0 %v11159_v19  ;;  %2735 = vmatpush.msra.mxu1 %v11160_v28 }
 0x972   :  { %2676 = vmatpush.msrb.mxu2 %v11161_v57  ;;  %2696 = vmatpush.msra.mxu3 %v11162_v27  ;;  %v11187_v27 = vld [vmem:[#allocation4_spill] sm:$0xff] }
 0x973   :  { %2716 = vmatpush.msrb.mxu0 %v11163_v40  ;;  %2736 = vmatpush.msra.mxu1 %v11164_v60  ;;  %v2352_v40 = vadd.f32 %v9490_v15, %v11187_v27  ;;  %v2372_v60 = vadd.f32 %v9492_v47, %v10553_v20 }
 0x974   :  { %2677 = vmatpush.msrb.mxu2 %v11165_v7  ;;  %2697 = vmatpush.msra.mxu3 %v11166_v30 }
 0x975   :  { %2717 = vmatpush.msrb.mxu0 %v11167_v59  ;;  %2737 = vmatpush.msra.mxu1 %v11168_v52 }
 0x976   :  { %2678 = vmatpush.msrb.mxu2 %v11169_v6  ;;  %2698 = vmatpush.msra.mxu3 %v11170_v14 }
 0x977   :  { %2718 = vmatpush.msrb.mxu0 %v11171_v39  ;;  %2738 = vmatpush.msra.mxu1 %v11172_v29 }
 0x978   :  { %2679 = vmatpush.msrb.mxu2 %v11173_v31  ;;  %2699 = vmatpush.msra.mxu3 %v11174_v21 }
 0x979   :  { %2719 = vmatpush.msrb.mxu0 %v11175_v0  ;;  %2739 = vmatpush.msra.mxu1 %v11176_v23 }
 0x97a   :  { %2680 = vmatpush.msrb.mxu2 %v11177_v16  ;;  %2700 = vmatpush.msra.mxu3 %v11178_v33 }
 0x97b   :  { %2720 = vmatpush.msrb.mxu0 %v11179_v63  ;;  %2740 = vmatpush.msra.mxu1 %v11180_v50 }
 0x97c   :  { %2681 = vmatpush.msrb.mxu2 %v11181_v17  ;;  %2701 = vmatpush.msra.mxu3 %v11182_v43  ;;  %v11208_v17 = vld [vmem:[#allocation97_spill] sm:$0xff]  ;;  %v11209_v43 = vld [vmem:[#allocation98_spill] sm:$0xff] }
 0x97d   :  { %2721 = vmatpush.msrb.mxu0 %v11183_v36  ;;  %2741 = vmatpush.msra.mxu1 %v11184_v62  ;;  %v11210_v36 = vld [vmem:[#allocation99_spill] sm:$0xff]  ;;  %v11211_v62 = vld [vmem:[#allocation100_spill] sm:$0xff] }
 0x9da   :  { %v2537_v28 = vpop.f32.mrf.mxu0  ;;  %v2557_v57 = vpop.f32.mrf.mxu1 }
 0x9db   :  { %v2562_v59 = vadd.f32 %v2537_v28, %v2352_v40  ;;  %v2563_v52 = vadd.f32 %v2557_v57, %v2372_v60  ;;  %v11218_v28 = vld [vmem:[#allocation109_spill] sm:$0xff]  ;;  %v11219_v57 = vld [vmem:[#allocation110_spill] sm:$0xff]  ;;  %v11220_v40 = vld [vmem:[#allocation111_spill] sm:$0xff] }
 0x9dc   :  { %v11221_v60 = vld [vmem:[#allocation113_spill] sm:$0xff] }
 0x9dd   :  { %v2566_v56 = vmul.f32 0.5, %v2562_v59  ;;  %v11224_v59 = vld [vmem:[#allocation116_spill] sm:$0xff] }
 0x9df   :  { %v2497_v34 = vpop.f32.mrf.mxu2  ;;  %v2517_v54 = vpop.f32.mrf.mxu3 }
 0x9e0   :  { %v2560_v53 = vadd.f32 %v2497_v34, %v2312_v45  ;;  %v2561_v19 = vadd.f32 %v2517_v54, %v2332_v49  ;;  %v11212_v45 = vld [vmem:[#allocation101_spill] sm:$0xff]  ;;  %v11213_v49 = vld [vmem:[#allocation104_spill] sm:$0xff]  ;;  %v11215_v54 = vld [vmem:[#allocation106_spill] sm:$0xff] }
 0x9e1   :  { %v11214_v34 = vld [vmem:[#allocation105_spill] sm:$0xff] }
 0x9e2   :  { %v2564_v7 = vmul.f32 0.5, %v2560_v53  ;;  %v2565_v30 = vmul.f32 0.5, %v2561_v19  ;;  %v11216_v53 = vld [vmem:[#allocation107_spill] sm:$0xff]  ;;  %v11217_v19 = vld [vmem:[#allocation108_spill] sm:$0xff] }
 0x9e4   :  { %3108 = vtanh.f32 %v2564_v7  ;;  %v11222_v7 = vld [vmem:[#allocation114_spill] sm:$0xff] }
 0x9e5   :  { %3110 = vtanh.f32 %v2565_v30  ;;  %v11223_v30 = vld [vmem:[#allocation115_spill] sm:$0xff] }
 0x9e6   :  { %3112 = vtanh.f32 %v2563_v52  ;;  %v11225_v52 = vld [vmem:[#allocation117_spill] sm:$0xff] }
 0x9e7   :  { %3114 = vtanh.f32 %v2566_v56  ;;  %v11226_v56 = vld [vmem:[#allocation118_spill] sm:$0xff] }
 0x9ea   :  { %v3109_v26 = vpop.eup %3108 }
 0x9eb   :  { %v3111_v6 = vpop.eup %3110  ;;  %v2570_v14 = vmul.f32 0.5, %v3109_v26  ;;  %v11227_v26 = vld [vmem:[#allocation119_spill] sm:$0xff] }
 0x9ec   :  { %v2571_v39 = vmul.f32 0.5, %v3111_v6  ;;  %v3113_v31 = vpop.eup %3112  ;;  %v11228_v6 = vld [vmem:[#allocation120_spill] sm:$0xff] }
 0x9ed   :  { %v2573_v29 = vadd.f32 0.5, %v2570_v14  ;;  %v3115_v47 = vpop.eup %3114  ;;  %v11229_v14 = vld [vmem:[#allocation121_spill] sm:$0xff] }
 0x9ee   :  { %v2574_v21 = vadd.f32 0.5, %v2571_v39  ;;  %v2572_v16 = vmul.f32 0.5, %v3115_v47  ;;  %v11230_v39 = vld [vmem:[#allocation122_spill] sm:$0xff]  ;;  %v11232_v47 = vld [vmem:[#allocation47_spill] sm:$0xff] }
 0x9ef   :  { %v2578_v15 = vmul.f32 %v3113_v31, %v2573_v29  ;;  %v11231_v29 = vld [vmem:[#allocation123_spill] sm:$0xff] }
 0x9f0   :  { %v2577_v0 = vmul.f32 %v2574_v21, %v8975_v3  ;;  %v2575_v33 = vadd.f32 0.5, %v2572_v16  ;;  %v11188_v3 = vld [vmem:[#allocation73_spill] sm:$0xff]  ;;  %v207_v16 = vadd.f32 %v11232_v47, %v11134_v13 }
 0x9f2   :  { %v9601_v23 = vadd.f32 %v2578_v15, %v2577_v0 }
 0x9f4   :  { %3116 = vtanh.f32 %v9601_v23 }
 0x9fa   :  { %v3117_v63 = vpop.eup %3116 }
 0x9fb   :  { %v2581_v50 = vmul.f32 %v3117_v63, %v2575_v33  ;;  %v11233_v33 = vld [vmem:[#allocation51_spill] sm:$0xff] }
 0x9fc   :  { %v248_v63 = vadd.f32 %v11233_v33, %v11132_v38 }
 0x9fd   :  { %2598 = vmatmul.f32.vlgmr.msra.gmra.mxu2 %v2581_v50  ;;  %2618 = vmatmul.f32.vlgmr.msrb.gmra.mxu3 %v2581_v50 }
 0x9fe   :  { %2638 = vmatmul.f32.vlgmr.msra.gmra.mxu0 %v2581_v50  ;;  %2658 = vmatmul.f32.vlgmr.msrb.gmra.mxu1 %v2581_v50 }
 0x9ff   :  { %2768 = vmatpush.msra.mxu2 %v8981_v1  ;;  %2788 = vmatpush.msrb.mxu3 %v8987_v22  ;;  %v11189_v1 = vld [vmem:[#allocation75_spill] sm:$0xff]  ;;  %v11190_v22 = vld [vmem:[#allocation76_spill] sm:$0xff] }
 0xa00   :  { %2808 = vmatpush.msra.mxu0 %v8993_v35  ;;  %2828 = vmatpush.msrb.mxu1 %v8999_v9  ;;  %v11191_v35 = vld [vmem:[#allocation77_spill] sm:$0xff]  ;;  %v11192_v9 = vld [vmem:[#allocation78_spill] sm:$0xff] }
 0xa01   :  { %2769 = vmatpush.msra.mxu2 %v9005_v10  ;;  %2789 = vmatpush.msrb.mxu3 %v9011_v5  ;;  %v11193_v10 = vld [vmem:[#allocation81_spill] sm:$0xff]  ;;  %v11194_v5 = vld [vmem:[#allocation82_spill] sm:$0xff] }
 0xa02   :  { %2809 = vmatpush.msra.mxu0 %v9017_v18  ;;  %2829 = vmatpush.msrb.mxu1 %v9023_v41  ;;  %v11195_v18 = vld [vmem:[#allocation83_spill] sm:$0xff]  ;;  %v11196_v41 = vld [vmem:[#allocation84_spill] sm:$0xff] }
 0xa03   :  { %2770 = vmatpush.msra.mxu2 %v9029_v25  ;;  %2790 = vmatpush.msrb.mxu3 %v9035_v46  ;;  %v11197_v25 = vld [vmem:[#allocation85_spill] sm:$0xff]  ;;  %v11198_v46 = vld [vmem:[#allocation86_spill] sm:$0xff] }
 0xa04   :  { %2810 = vmatpush.msra.mxu0 %v9041_v2  ;;  %2830 = vmatpush.msrb.mxu1 %v9047_v11  ;;  %v11199_v2 = vld [vmem:[#allocation87_spill] sm:$0xff]  ;;  %v11200_v11 = vld [vmem:[#allocation88_spill] sm:$0xff] }
 0xa05   :  { %2682 = vmatmul.f32.vlgmr.msrb.gmra.mxu2 %v9510_v37  ;;  %2702 = vmatmul.f32.vlgmr.msra.gmra.mxu3 %v9510_v37 }
 0xa06   :  { %2722 = vmatmul.f32.vlgmr.msrb.gmra.mxu0 %v9510_v37  ;;  %2742 = vmatmul.f32.vlgmr.msra.gmra.mxu1 %v9510_v37  ;;  %v11207_v37 = vld [vmem:[#allocation96_spill] sm:$0xff] }
 0xa07   :  { %2771 = vmatpush.msra.mxu2 %v9057_v32  ;;  %2791 = vmatpush.msrb.mxu3 %v9063_v4  ;;  %v11201_v32 = vld [vmem:[#allocation89_spill] sm:$0xff]  ;;  %v11202_v4 = vld [vmem:[#allocation90_spill] sm:$0xff] }
 0xa08   :  { %2811 = vmatpush.msra.mxu0 %v9069_v51  ;;  %2831 = vmatpush.msrb.mxu1 %v9075_v24  ;;  %v11203_v51 = vld [vmem:[#allocation91_spill] sm:$0xff]  ;;  %v11204_v24 = vld [vmem:[#allocation92_spill] sm:$0xff] }
 0xa09   :  { %2772 = vmatpush.msra.mxu2 %v9081_v48  ;;  %2792 = vmatpush.msrb.mxu3 %v9087_v12  ;;  %v11205_v48 = vld [vmem:[#allocation94_spill] sm:$0xff]  ;;  %v11206_v12 = vld [vmem:[#allocation95_spill] sm:$0xff] }
 0xa0a   :  { %2812 = vmatpush.msra.mxu0 %v11188_v3  ;;  %2832 = vmatpush.msrb.mxu1 %v11189_v1 }
 0xa0b   :  { %2773 = vmatpush.msra.mxu2 %v11190_v22  ;;  %2793 = vmatpush.msrb.mxu3 %v11191_v35  ;;  %v11234_v35 = vld [vmem:[#allocation112_spill] sm:$0xff] }
 0xa0c   :  { %2813 = vmatpush.msra.mxu0 %v11192_v9  ;;  %2833 = vmatpush.msrb.mxu1 %v11193_v10  ;;  %v289_v9 = vadd.f32 %v11234_v35, %v5079_v61 }
 0xa0d   :  { %2774 = vmatpush.msra.mxu2 %v11194_v5  ;;  %2794 = vmatpush.msrb.mxu3 %v11195_v18 }
 0xa0e   :  { %2814 = vmatpush.msra.mxu0 %v11196_v41  ;;  %2834 = vmatpush.msrb.mxu1 %v11197_v25  ;;  %v11235_v41 = vld [vmem:[#allocation66_spill] sm:$0xff] }
 0xa0f   :  { %2775 = vmatpush.msra.mxu2 %v11198_v46  ;;  %2795 = vmatpush.msrb.mxu3 %v11199_v2 }
 0xa10   :  { %2815 = vmatpush.msra.mxu0 %v11200_v11  ;;  %2835 = vmatpush.msrb.mxu1 %v11201_v32 }
 0xa11   :  { %2776 = vmatpush.msra.mxu2 %v11202_v4  ;;  %2796 = vmatpush.msrb.mxu3 %v11203_v51 }
 0xa12   :  { %2816 = vmatpush.msra.mxu0 %v11204_v24  ;;  %2836 = vmatpush.msrb.mxu1 %v11205_v48 }
 0xa13   :  { %2777 = vmatpush.msra.mxu2 %v11206_v12  ;;  %2797 = vmatpush.msrb.mxu3 %v11207_v37 }
 0xa14   :  { %2817 = vmatpush.msra.mxu0 %v11208_v17  ;;  %2837 = vmatpush.msrb.mxu1 %v11209_v43 }
 0xa15   :  { %2778 = vmatpush.msra.mxu2 %v11210_v36  ;;  %2798 = vmatpush.msrb.mxu3 %v11211_v62  ;;  %v2885_v62 = vld [vmem:[%s9761_s9 + $0x78] sm:$0xff] }
 0xa16   :  { %2818 = vmatpush.msra.mxu0 %v11212_v45  ;;  %2838 = vmatpush.msrb.mxu1 %v11213_v49  ;;  %v2883_v45 = vld [vmem:[%s9761_s9 + $0x68] sm:$0xff]  ;;  %v2882_v49 = vld [vmem:[%s9761_s9 + $0x60] sm:$0xff] }
 0xa17   :  { %2779 = vmatpush.msra.mxu2 %v11214_v34  ;;  %2799 = vmatpush.msrb.mxu3 %v11215_v54  ;;  %v2881_v34 = vld [vmem:[%s9761_s9 + $0x58] sm:$0xff]  ;;  %v2880_v54 = vld [vmem:[%s9761_s9 + $0x50] sm:$0xff] }
 0xa18   :  { %2819 = vmatpush.msra.mxu0 %v11216_v53  ;;  %2839 = vmatpush.msrb.mxu1 %v11217_v19  ;;  %v2879_v53 = vld [vmem:[%s9761_s9 + $0x48] sm:$0xff]  ;;  %v2878_v19 = vld [vmem:[%s9761_s9 + $0x40] sm:$0xff] }
 0xa19   :  { %2780 = vmatpush.msra.mxu2 %v11218_v28  ;;  %2800 = vmatpush.msrb.mxu3 %v11219_v57  ;;  %v2877_v28 = vld [vmem:[%s9761_s9 + $0x38] sm:$0xff]  ;;  %v2876_v57 = vld [vmem:[%s9761_s9 + $0x30] sm:$0xff] }
 0xa1a   :  { %2820 = vmatpush.msra.mxu0 %v11220_v40  ;;  %2840 = vmatpush.msrb.mxu1 %v11221_v60  ;;  %v2875_v40 = vld [vmem:[%s9761_s9 + $0x28] sm:$0xff]  ;;  %v2874_v60 = vld [vmem:[%s9761_s9 + $0x20] sm:$0xff] }
 0xa1b   :  { %2781 = vmatpush.msra.mxu2 %v11222_v7  ;;  %2801 = vmatpush.msrb.mxu3 %v11223_v30  ;;  %v2873_v7 = vld [vmem:[%s9761_s9 + $0x18] sm:$0xff]  ;;  %v2872_v30 = vld [vmem:[%s9761_s9 + $0x10] sm:$0xff] }
 0xa1c   :  { %2821 = vmatpush.msra.mxu0 %v11224_v59  ;;  %2841 = vmatpush.msrb.mxu1 %v11225_v52  ;;  %v2871_v59 = vld [vmem:[%s9761_s9 + $0x8] sm:$0xff]  ;;  %v2870_v52 = vld [vmem:[%s9761_s9] sm:$0xff] }
 0xa1d   :  { %2782 = vmatpush.msra.mxu2 %v11226_v56  ;;  %2802 = vmatpush.msrb.mxu3 %v11227_v26 }
 0xa1e   :  { %2822 = vmatpush.msra.mxu0 %v11228_v6  ;;  %2842 = vmatpush.msrb.mxu1 %v11229_v14 }
 0xa1f   :  { %2783 = vmatpush.msra.mxu2 %v11230_v39  ;;  %2803 = vmatpush.msrb.mxu3 %v9351_v42 }
 0xa20   :  { %2823 = vmatpush.msra.mxu0 %v11231_v29  ;;  %2843 = vmatpush.msrb.mxu1 %v9363_v8 }
 0xa21   :  { %2890 = vmatpush.msrb.mxu2 %v2885_v62 }
 0xa7b   :  { %v9672_v31 = vpop.f32.mrf.mxu0  ;;  %v9674_v21 = vpop.f32.mrf.mxu1 }
 0xa7c   :  { %v2640_v33 = vadd.f32 %v9672_v31, %v11187_v27 }
 0xa80   :  { %v9676_v15 = vpop.f32.mrf.mxu2  ;;  %v9678_v0 = vpop.f32.mrf.mxu3 }
 0xa81   :  { %v2600_v56 = vadd.f32 %v9676_v15, %v11185_v58  ;;  %v2620_v26 = vadd.f32 %v9678_v0, %v11186_v44 }
 0xa83   :  { %v2723_v22 = vpop.f32.mrf.mxu0  ;;  %v2743_v8 = vpop.f32.mrf.mxu1 }
 0xa84   :  { %v2748_v18 = vadd.f32 %v2723_v22, %v289_v9  ;;  %v2749_v25 = vadd.f32 %v2743_v8, %v11235_v41 }
 0xa86   :  { %v2752_v13 = vmul.f32 0.5, %v2748_v18 }
 0xa88   :  { %v2683_v50 = vpop.f32.mrf.mxu2  ;;  %v2703_v42 = vpop.f32.mrf.mxu3 }
 0xa89   :  { %v2746_v3 = vadd.f32 %v2683_v50, %v207_v16  ;;  %v2747_v1 = vadd.f32 %v2703_v42, %v248_v63  ;;  %v2660_v63 = vadd.f32 %v9674_v21, %v10553_v20 }
 0xa8b   :  { %v2750_v10 = vmul.f32 0.5, %v2746_v3  ;;  %v2751_v5 = vmul.f32 0.5, %v2747_v1 }
 0xa8d   :  { %3118 = vtanh.f32 %v2750_v10 }
 0xa8e   :  { %3120 = vtanh.f32 %v2751_v5 }
 0xa8f   :  { %3122 = vtanh.f32 %v2749_v25  ;;  %v2961_v25 = vld [vmem:[%s9760_s10] ss:$0 sm:$0xff] }
 0xa90   :  { %3124 = vtanh.f32 %v2752_v13 }
 0xa93   :  { %v3119_v46 = vpop.eup %3118 }
 0xa94   :  { %v3121_v38 = vpop.eup %3120  ;;  %v2756_v2 = vmul.f32 0.5, %v3119_v46 }
 0xa95   :  { %v2757_v11 = vmul.f32 0.5, %v3121_v38  ;;  %v3123_v4 = vpop.eup %3122 }
 0xa96   :  { %v2759_v32 = vadd.f32 0.5, %v2756_v2  ;;  %v3125_v48 = vpop.eup %3124 }
 0xa97   :  { %v2760_v51 = vadd.f32 0.5, %v2757_v11  ;;  %v2758_v37 = vmul.f32 0.5, %v3125_v48 }
 0xa98   :  { %v2764_v24 = vmul.f32 %v3123_v4, %v2759_v32 }
 0xa99   :  { %v2763_v61 = vmul.f32 %v2760_v51, %v9507_v55  ;;  %v2761_v17 = vadd.f32 0.5, %v2758_v37  ;;  %v2884_v55 = vld [vmem:[%s9761_s9 + $0x70] sm:$0xff] }
 0xa9a   :  { %2891 = vmatpush.msrb.mxu2 %v2884_v55 }
 0xa9b   :  { %v2765_v12 = vadd.f32 %v2764_v24, %v2763_v61 }
 0xa9c   :  { %2892 = vmatpush.msrb.mxu2 %v2883_v45 }
 0xa9d   :  { %3126 = vtanh.f32 %v2765_v12 }
 0xa9e   :  { %2893 = vmatpush.msrb.mxu2 %v2882_v49 }
 0xaa0   :  { %2894 = vmatpush.msrb.mxu2 %v2881_v34 }
 0xaa2   :  { %2895 = vmatpush.msrb.mxu2 %v2880_v54 }
 0xaa3   :  { %v3127_v43 = vpop.eup %3126 }
 0xaa4   :  { %v2767_v36 = vmul.f32 %v3127_v43, %v2761_v17  ;;  %2896 = vmatpush.msrb.mxu2 %v2879_v53 }
 0xaa6   :  { %2784 = vmatmul.f32.vlgmr.msra.gmra.mxu2 %v2767_v36  ;;  %2804 = vmatmul.f32.vlgmr.msrb.gmra.mxu3 %v2767_v36 }
 0xaa7   :  { %2824 = vmatmul.f32.vlgmr.msra.gmra.mxu0 %v2767_v36  ;;  %2844 = vmatmul.f32.vlgmr.msrb.gmra.mxu1 %v2767_v36 }
 0xaa8   :  { %2897 = vmatpush.msrb.mxu2 %v2878_v19 }
 0xaaa   :  { %2898 = vmatpush.msrb.mxu2 %v2877_v28 }
 0xaac   :  { %2899 = vmatpush.msrb.mxu2 %v2876_v57 }
 0xaae   :  { %2900 = vmatpush.msrb.mxu2 %v2875_v40 }
 0xab0   :  { %2901 = vmatpush.msrb.mxu2 %v2874_v60 }
 0xab2   :  { %2902 = vmatpush.msrb.mxu2 %v2873_v7 }
 0xab4   :  { %2903 = vmatpush.msrb.mxu2 %v2872_v30 }
 0xab6   :  { %2904 = vmatpush.msrb.mxu2 %v2871_v59 }
 0xab8   :  { %2905 = vmatpush.msrb.mxu2 %v2870_v52 }
 0xb24   :  { %v2825_v47 = vpop.f32.mrf.mxu0  ;;  %v2845_v16 = vpop.f32.mrf.mxu1 }
 0xb25   :  { %v2850_v3 = vadd.f32 %v2825_v47, %v2640_v33  ;;  %v2851_v1 = vadd.f32 %v2845_v16, %v2660_v63 }
 0xb27   :  { %v2854_v58 = vmul.f32 0.5, %v2850_v3 }
 0xb29   :  { %v2785_v6 = vpop.f32.mrf.mxu2  ;;  %v2805_v14 = vpop.f32.mrf.mxu3 }
 0xb2a   :  { %v2848_v39 = vadd.f32 %v2785_v6, %v2600_v56  ;;  %v2849_v29 = vadd.f32 %v2805_v14, %v2620_v26 }
 0xb2c   :  { %v2852_v50 = vmul.f32 0.5, %v2848_v39  ;;  %v2853_v42 = vmul.f32 0.5, %v2849_v29 }
 0xb2e   :  { %3128 = vtanh.f32 %v2852_v50 }
 0xb2f   :  { %3130 = vtanh.f32 %v2853_v42 }
 0xb30   :  { %3132 = vtanh.f32 %v2851_v1 }
 0xb31   :  { %3134 = vtanh.f32 %v2854_v58 }
 0xb34   :  { %v3129_v44 = vpop.eup %3128 }
 0xb35   :  { %v3131_v15 = vpop.eup %3130  ;;  %v2858_v0 = vmul.f32 0.5, %v3129_v44 }
 0xb36   :  { %v2859_v22 = vmul.f32 0.5, %v3131_v15  ;;  %v3133_v35 = vpop.eup %3132 }
 0xb37   :  { %v2861_v8 = vadd.f32 0.5, %v2858_v0  ;;  %v3135_v20 = vpop.eup %3134 }
 0xb38   :  { %v2862_v9 = vadd.f32 0.5, %v2859_v22  ;;  %v2860_v10 = vmul.f32 0.5, %v3135_v20 }
 0xb39   :  { %v2866_v27 = vmul.f32 %v3133_v35, %v2861_v8 }
 0xb3a   :  { %v2865_v31 = vmul.f32 %v2862_v9, %v9601_v23  ;;  %v2863_v5 = vadd.f32 0.5, %v2860_v10 }
 0xb3c   :  { %v2867_v21 = vadd.f32 %v2866_v27, %v2865_v31 }
 0xb3e   :  { %3136 = vtanh.f32 %v2867_v21 }
 0xb44   :  { %v3137_v18 = vpop.eup %3136 }
 0xb45   :  { %v2869_v41 = vmul.f32 %v3137_v18, %v2863_v5 }
 0xb47   :  { %2906 = vmatmul.f32.vlgmr.msrb.gmra.mxu2 %v2869_v41 }
 0xbca   :  { %v2907_v13 = vpop.f32.mrf.mxu2 }
 0xbcb   :  { %v2908_v46 = vadd.f32 %v2961_v25, %v2907_v13 }
 0xbcd   :  { %2910 = vst [vmem:[%s9762_s11] sm:$0xff] %v2908_v46 }

</bundles_post_ra>
